<compile_context>
chip_gen: v7x
topology: tpu7x:2x2x1
jax: 0.10.0
libtpu: 0.0.40
codegen_flags: <defaults>
</compile_context>

<pallas_src>
import functools

import jax
import jax.numpy as jnp
from jax.experimental import pallas as pl
from jax.experimental.pallas import tpu as pltpu

LANE = 128  # channel dims padded to a multiple of the 128-lane axis


def _round_up(x, m):
    return ((x + m - 1) // m) * m


@functools.lru_cache(maxsize=1)
def _vmem_budget_bytes():
    """Per-generation VMEM budget for kernel buffers (v5e/v6e 128 MiB, v7x 64 MiB)."""
    cap = 128 * 1024 * 1024
    try:
        cap = int(getattr(pltpu.get_tpu_info(), "vmem_capacity_bytes", cap))
    except Exception:  # pragma: no cover - conservative fallback
        pass
    return max(16 * 1024 * 1024, int(0.45 * cap))


def _conv_vmem_bytes(th, w, c, cout, d, pool):
    """Conservative VMEM estimate: all pipelined operands double-buffered."""
    tho, wo = (th // 2, w // 2) if pool else (th, w)
    in_blk = th * w * c * 2                      # bf16 center tile
    halo = 2 * d * w * c * 2                     # bf16 up + down halo rows
    wts = 9 * c * cout * 2                       # bf16 weights (BN folded)
    outb = tho * wo * cout * 2                   # bf16 output tile
    bias = cout * 4
    pad = (th + 2 * d) * (w + 2 * d) * c * 2     # bf16 padded-tile scratch
    acc = th * w * cout * 4                      # f32 accumulator scratch
    return 2 * (in_blk + halo + wts + outb + bias) + pad + acc


def _pick_tile_h(H, W, C, Cout, d, pool, budget):
    """Largest H tile that fits the VMEM budget; prefer >=2 tiles per image."""
    def valid(th):
        if H % th or th % d:
            return False
        if pool and th % 2:
            return False
        return _conv_vmem_bytes(th, W, C, Cout, d, pool) <= budget

    cands = [th for th in range(H, 0, -1) if valid(th)]
    if not cands:
        raise ValueError(
            f"no H tile fits VMEM budget (H={H}, W={W}, C={C}, Cout={Cout}, d={d});"
            " W-tiling needed")  # TODO(synk): add W tiling for very wide images
    for th in cands:  # descending: largest tile that still gives >=2 grid steps
        if H // th >= 2 and th >= 4:
            return th
    return cands[0]


# ----------------------------------------------------------------------------
# Kernel 1: 3x3 (optionally dilated) conv + folded BN + ReLU (+ fused 2x2 pool)
# ----------------------------------------------------------------------------
def _conv_bn_relu_kernel(x_ref, up_ref, dn_ref, w_ref, bias_ref, out_ref,
                         pad_ref, acc_ref, *, dilation, pool, n_tiles):
    # x_ref:    (1, TH, W, C)   bf16 center tile (C = multiple of 128)
    # up_ref:   (1, d, W, C)    bf16 rows just above the tile (unused at i==0)
    # dn_ref:   (1, d, W, C)    bf16 rows just below the tile (unused at i==last)
    # w_ref:    (9*C, Cout)     bf16 weights, tap-major, BN(eval) scale folded in
    # bias_ref: (1, Cout)       f32 folded conv-bias + BN shift
    # out_ref:  (1, THo, Wo, Cout) bf16
    # pad_ref:  (TH+2d, W+2d, C) bf16 scratch (padded tile)
    # acc_ref:  (TH*W, Cout)    f32 scratch accumulator
    i = pl.program_id(1)
    TH, W, C = x_ref.shape[1], x_ref.shape[2], x_ref.shape[3]
    Cout = out_ref.shape[3]
    d = dilation
    Wp = W + 2 * d

    # ---- padded tile in VMEM: zero only the halo ring, never the interior ---
    zero_col = jnp.zeros((TH + 2 * d, d, C), pad_ref.dtype)
    zero_row = jnp.zeros((d, W, C), pad_ref.dtype)
    pad_ref[:, 0:d, :] = zero_col                       # left halo columns
    pad_ref[:, W + d:Wp, :] = zero_col                  # right halo columns
    pad_ref[d:d + TH, d:d + W, :] = x_ref[0]            # interior copy

    @pl.when(i == 0)                                    # top halo: image border
    def _():
        pad_ref[0:d, d:d + W, :] = zero_row

    @pl.when(i > 0)                                     # top halo: neighbor rows
    def _():
        pad_ref[0:d, d:d + W, :] = up_ref[0]

    @pl.when(i == n_tiles - 1)                          # bottom halo: border
    def _():
        pad_ref[TH + d:TH + 2 * d, d:d + W, :] = zero_row

    @pl.when(i < n_tiles - 1)                           # bottom halo: neighbor
    def _():
        pad_ref[TH + d:TH + 2 * d, d:d + W, :] = dn_ref[0]

    # ---- 9 per-tap MXU matmuls accumulated into the f32 VMEM scratch --------
    # (im2col slab removed; K per matmul = C.  See header TODOs for dense-K
    #  packing of small-channel layers and tap pairing for K>=256 on v6e/v7x.)
    for kh in range(3):
        for kw in range(3):
            t = kh * 3 + kw
            tap = pad_ref[kh * d:kh * d + TH, kw * d:kw * d + W, :].reshape(TH * W, C)
            part = jnp.dot(tap, w_ref[t * C:(t + 1) * C, :],
                           preferred_element_type=jnp.float32)
            if t == 0:
                acc_ref[...] = part
            else:
                acc_ref[...] += part

    # ---- epilogue: bias + ReLU (+ fused 2x2/2 max-pool), bf16 store ---------
    y = jnp.maximum(acc_ref[...] + bias_ref[0], 0.0).reshape(TH, W, Cout)
    if pool:
        y = y.reshape(TH // 2, 2, W // 2, 2, Cout)
        y = jnp.maximum(y[:, 0], y[:, 1])               # (TH//2, W//2, 2, Cout)
        y = jnp.maximum(y[:, :, 0], y[:, :, 1])         # (TH//2, W//2, Cout)
    out_ref[0] = y.astype(out_ref.dtype)


def conv_bn_relu(x_nhwc, w2d, bias, *, dilation, pool):
    N, H, W, C = x_nhwc.shape
    K9, Cout = w2d.shape
    d = dilation
    assert K9 == 9 * C, (K9, C)
    assert C % LANE == 0 and Cout % LANE == 0, (C, Cout)
    assert H % d == 0, (H, d)
    if pool:
        assert H % 2 == 0 and W % 2 == 0, "fused 2x2/2 pool needs even H and W"

    budget = _vmem_budget_bytes()
    TH = _pick_tile_h(H, W, C, Cout, d, pool, budget)
    nT = H // TH
    r = TH // d                     # H-tile height in units of halo blocks
    max_blk_h = H // d - 1
    Ho, Wo = (H // 2, W // 2) if pool else (H, W)
    THo = TH // 2 if pool else TH

    kernel = functools.partial(_conv_bn_relu_kernel,
                               dilation=d, pool=pool, n_tiles=nT)
    return pl.pallas_call(
        kernel,
        out_shape=jax.ShapeDtypeStruct((N, Ho, Wo, Cout), jnp.bfloat16),
        grid=(N, nT),
        in_specs=[
            # center tile
            pl.BlockSpec((1, TH, W, C), lambda n, i: (n, i, 0, 0)),
            # d rows just above the tile (clamped; zeroed in-kernel at i==0)
            pl.BlockSpec((1, d, W, C),
                         lambda n, i: (n, jnp.maximum(i * r - 1, 0), 0, 0)),
            # d rows just below the tile (clamped; zeroed in-kernel at i==last)
            pl.BlockSpec((1, d, W, C),
                         lambda n, i: (n, jnp.minimum((i + 1) * r, max_blk_h), 0, 0)),
            # weights / bias: constant block index -> stay VMEM-resident
            pl.BlockSpec((K9, Cout), lambda n, i: (0, 0)),
            pl.BlockSpec((1, Cout), lambda n, i: (0, 0)),
        ],
        out_specs=pl.BlockSpec((1, THo, Wo, Cout), lambda n, i: (n, i, 0, 0)),
        scratch_shapes=[
            pltpu.VMEM((TH + 2 * d, W + 2 * d, C), jnp.bfloat16),  # padded tile
            pltpu.VMEM((TH * W, Cout), jnp.float32),               # f32 accumulator
        ],
        compiler_params=pltpu.CompilerParams(
            dimension_semantics=("parallel", "parallel"),
            vmem_limit_bytes=budget,
        ),
    )(x_nhwc, x_nhwc, x_nhwc, w2d,
      bias.reshape(1, Cout).astype(jnp.float32))


# ----------------------------------------------------------------------------
# Kernel 2: standalone 2x2/2 max-pool (only used if an 'M' does not directly
# follow a conv layer; in the CSRNet cfg every pool is fused into the conv).
# ----------------------------------------------------------------------------
def _maxpool2x2_kernel(x_ref, out_ref):
    H, W, C = x_ref.shape[1], x_ref.shape[2], x_ref.shape[3]
    y = x_ref[0].reshape(H // 2, 2, W // 2, 2, C)
    y = jnp.maximum(y[:, 0], y[:, 1])
    y = jnp.maximum(y[:, :, 0], y[:, :, 1])
    out_ref[0] = y.astype(out_ref.dtype)


def maxpool2x2(x_nhwc):
    N, H, W, C = x_nhwc.shape
    return pl.pallas_call(
        _maxpool2x2_kernel,
        out_shape=jax.ShapeDtypeStruct((N, H // 2, W // 2, C), x_nhwc.dtype),
        grid=(N,),
        in_specs=[pl.BlockSpec((1, H, W, C), lambda n: (n, 0, 0, 0))],
        out_specs=pl.BlockSpec((1, H // 2, W // 2, C), lambda n: (n, 0, 0, 0)),
        compiler_params=pltpu.CompilerParams(dimension_semantics=("parallel",)),
    )(x_nhwc)


# ----------------------------------------------------------------------------
# Parameter construction (deterministic, synthetic) and forward pass
# ----------------------------------------------------------------------------
def make_backbone_params(key, cfg, in_ch, dilation):
    """Mirrors make_layers(): conv3x3 + BN(eval, folded) + ReLU, 'M' = pool.

    BN(eval) scale is folded into the (bf16) conv weights; the remaining
    per-channel bias is (b_conv - running_mean) * scale + beta.  Channels are
    zero-padded to multiples of 128; padded output channels have zero weights
    and zero bias, so they remain exactly zero through ReLU (invariant needed
    by downstream layers).  'M' is fused into the preceding conv as pool=True.
    """
    eps = 1e-5
    layers = []
    for idx, v in enumerate(cfg):
        if v == "M":
            if layers and layers[-1][0] == "C" and not layers[-1][1]["pool"]:
                layers[-1][1]["pool"] = True
            else:
                layers.append(("M", None))
            continue

        k = jax.random.fold_in(key, idx)
        kw_, kb, kg, kbe, km, kv = jax.random.split(k, 6)
        fan_in = 9 * in_ch
        w = jax.random.normal(kw_, (3, 3, in_ch, v), jnp.float32) * jnp.sqrt(2.0 / fan_in)
        b_conv = 0.01 * jax.random.normal(kb, (v,), jnp.float32)
        gamma = 1.0 + 0.1 * jax.random.normal(kg, (v,), jnp.float32)
        beta = 0.1 * jax.random.normal(kbe, (v,), jnp.float32)
        rmean = 0.05 * jax.random.normal(km, (v,), jnp.float32)
        rvar = 1.0 + 0.1 * jax.random.uniform(kv, (v,), jnp.float32)

        s = gamma / jnp.sqrt(rvar + eps)            # BN eval-mode scale
        w_folded = w * s[None, None, None, :]       # fold BN scale into weights
        bias = (b_conv - rmean) * s + beta          # conv bias + BN shift, folded

        cp_in = _round_up(in_ch, LANE)
        cp_out = _round_up(v, LANE)
        w_p = jnp.zeros((3, 3, cp_in, cp_out), jnp.float32)
        w_p = w_p.at[:, :, :in_ch, :v].set(w_folded)
        w2d = w_p.reshape(9 * cp_in, cp_out).astype(jnp.bfloat16)
        bias_p = jnp.zeros((cp_out,), jnp.float32).at[:v].set(bias)

        layers.append(("C", {
            "w": w2d, "bias": bias_p, "dilation": dilation, "pool": False,
            # unpadded, bf16-rounded copies for the pure-JAX reference
            "w_ref": w_folded.astype(jnp.bfloat16).astype(jnp.float32),
            "b_ref": bias,
        }))
        in_ch = v
    return layers, in_ch


def csrnet_backbone_forward(x_nchw, layers, out_channels):
    N, Cin, H, W = x_nchw.shape
    cp = _round_up(Cin, LANE)
    x = jnp.transpose(x_nchw, (0, 2, 3, 1))                     # NCHW -> NHWC
    x = jnp.pad(x, ((0, 0), (0, 0), (0, 0), (0, cp - Cin)))     # lane-pad channels
    x = x.astype(jnp.bfloat16)
    for kind, p in layers:
        if kind == "M":
            x = maxpool2x2(x)
        else:
            x = conv_bn_relu(x, p["w"], p["bias"],
                             dilation=p["dilation"], pool=p["pool"])
    x = x[..., :out_channels].astype(jnp.float32)               # drop channel padding
    return jnp.transpose(x, (0, 3, 1, 2))                       # back to NCHW


def ref_forward_nchw(x_nchw, layers):
    """Pure-JAX reference with matched numerics (bf16 weights / activations,
    f32 accumulation), used only for a loose correctness check."""
    x = jnp.transpose(x_nchw, (0, 2, 3, 1)).astype(jnp.bfloat16).astype(jnp.float32)
    for kind, p in layers:
        if kind == "M":
            N, H, W, C = x.shape
            x = x.reshape(N, H // 2, 2, W // 2, 2, C).max(axis=(2, 4))
            continue
        d = p["dilation"]
        y = jax.lax.conv_general_dilated(
            x, p["w_ref"], window_strides=(1, 1), padding=((d, d), (d, d)),
            rhs_dilation=(d, d), dimension_numbers=("NHWC", "HWIO", "NHWC"),
            precision=jax.lax.Precision.HIGHEST)
        y = jnp.maximum(y + p["b_ref"], 0.0)
        if p["pool"]:
            N, H, W, C = y.shape
            y = y.reshape(N, H // 2, 2, W // 2, 2, C).max(axis=(2, 4))
        x = y.astype(jnp.bfloat16).astype(jnp.float32)
    return jnp.transpose(x, (0, 3, 1, 2))


if __name__ == "__main__":
    # reduce_channel=16 keeps the synthetic model small: real channels 3..32
    # (zero-padded to 128 lanes inside the kernels).
    rc = 16
    frontend_cfg = [64 // rc, 64 // rc, "M",
                    128 // rc, 128 // rc, "M",
                    256 // rc, 256 // rc, 256 // rc, "M",
                    512 // rc, 512 // rc, 512 // rc]
    backend_cfg = [512 // rc, 512 // rc, 512 // rc]

    key = jax.random.PRNGKey(0)
    k_front, k_back, k_x = jax.random.split(key, 3)

    front_layers, ch = make_backbone_params(k_front, frontend_cfg, in_ch=3, dilation=1)
    back_layers, ch = make_backbone_params(k_back, backend_cfg, in_ch=ch, dilation=2)
    layers = front_layers + back_layers

    # PyTorch-convention NCHW input.
    x = jax.random.normal(k_x, (2, 3, 32, 32), jnp.float32)

    out = csrnet_backbone_forward(x, layers, out_channels=ch)
    out = jax.block_until_ready(out)

    # 3 max-pools: 32 -> 4 spatial; final channels = 512 // rc = 32 (NCHW out).
    assert out.shape == (2, 512 // rc, 4, 4), out.shape
    assert bool(jnp.all(jnp.isfinite(out)))

    # Loose check vs a numerics-matched reference (bf16 everywhere, f32 accum);
    # tolerance is intentionally generous per the bf16 review note.
    ref = ref_forward_nchw(x, layers)
    err = float(jnp.max(jnp.abs(out - ref)))
    ref_mag = float(jnp.max(jnp.abs(ref)))
    assert err <= 1e-2 + 0.05 * ref_mag, (err, ref_mag)

    print("KERNEL_OK")
</pallas_src>

<mosaic_0001>
module attributes {stable_mosaic.version = 11 : i64} {
  func.func @_conv_bn_relu_kernel(%arg0: i32, %arg1: i32, %arg2: memref<1x16x32x128xbf16, #tpu.memory_space<vmem>>, %arg3: memref<1x1x32x128xbf16, #tpu.memory_space<vmem>>, %arg4: memref<1x1x32x128xbf16, #tpu.memory_space<vmem>>, %arg5: memref<1152x128xbf16, #tpu.memory_space<vmem>>, %arg6: memref<1x128xf32, #tpu.memory_space<vmem>>, %arg7: memref<1x16x32x128xbf16, #tpu.memory_space<vmem>>, %arg8: memref<18x34x128xbf16, #tpu.memory_space<vmem>>, %arg9: memref<512x128xf32, #tpu.memory_space<vmem>>) attributes {dimension_semantics = [#tpu.dimension_semantics<parallel>, #tpu.dimension_semantics<parallel>], iteration_bounds = array<i64: 2, 2>, scalar_prefetch = 0 : i64, scratch_operands = 2 : i64, tpu.core_type = #tpu.core_type<tc>, window_params = [{transform_indices = @transform_0, window_bounds = array<i64: 1, 16, 32, 128>}, {transform_indices = @transform_1, window_bounds = array<i64: 1, 1, 32, 128>}, {transform_indices = @transform_2, window_bounds = array<i64: 1, 1, 32, 128>}, {pipeline_mode = #tpu.pipeline_mode<synchronous>, transform_indices = @transform_3, window_bounds = array<i64: 1152, 128>}, {pipeline_mode = #tpu.pipeline_mode<synchronous>, transform_indices = @transform_4, window_bounds = array<i64: 1, 128>}, {transform_indices = @transform_5, window_bounds = array<i64: 1, 16, 32, 128>}]} {
    %cst = arith.constant 0.000000e+00 : bf16
    %0 = vector.broadcast %cst : bf16 to vector<18x1x128xbf16>
    %cst_0 = arith.constant 0.000000e+00 : bf16
    %1 = vector.broadcast %cst_0 : bf16 to vector<1x32x128xbf16>
    %c0 = arith.constant 0 : index
    %c0_1 = arith.constant 0 : index
    %c0_2 = arith.constant 0 : index
    %2 = vector.load %arg8[%c0, %c0_1, %c0_2] : memref<18x34x128xbf16, #tpu.memory_space<vmem>>, vector<18x1x128xbf16>
    tpu.vector_store %arg8[%c0, %c0_1, %c0_2], %0 {strides = array<i32>} : memref<18x34x128xbf16, #tpu.memory_space<vmem>>, vector<18x1x128xbf16>,
    %c0_3 = arith.constant 0 : index
    %c33 = arith.constant 33 : index
    %c0_4 = arith.constant 0 : index
    %3 = vector.load %arg8[%c0_3, %c33, %c0_4] : memref<18x34x128xbf16, #tpu.memory_space<vmem>>, vector<18x1x128xbf16>
    tpu.vector_store %arg8[%c0_3, %c33, %c0_4], %0 {strides = array<i32>} : memref<18x34x128xbf16, #tpu.memory_space<vmem>>, vector<18x1x128xbf16>,
    %c0_5 = arith.constant 0 : index
    %c0_6 = arith.constant 0 : index
    %c0_7 = arith.constant 0 : index
    %c0_8 = arith.constant 0 : index
    %4 = vector.load %arg2[%c0_5, %c0_6, %c0_7, %c0_8] : memref<1x16x32x128xbf16, #tpu.memory_space<vmem>>, vector<1x16x32x128xbf16>
    %5 = vector.shape_cast %4 : vector<1x16x32x128xbf16> to vector<16x32x128xbf16>
    %c1 = arith.constant 1 : index
    %c1_9 = arith.constant 1 : index
    %c0_10 = arith.constant 0 : index
    %6 = vector.load %arg8[%c1, %c1_9, %c0_10] : memref<18x34x128xbf16, #tpu.memory_space<vmem>>, vector<16x32x128xbf16>
    tpu.vector_store %arg8[%c1, %c1_9, %c0_10], %5 {strides = array<i32>} : memref<18x34x128xbf16, #tpu.memory_space<vmem>>, vector<16x32x128xbf16>,
    %c0_i32 = arith.constant 0 : i32
    %7 = arith.cmpi eq, %arg1, %c0_i32 : i32
    %8 = arith.extui %7 : i1 to i32
    %c0_i32_11 = arith.constant 0 : i32
    %9 = arith.cmpi ne, %8, %c0_i32_11 : i32
    scf.if %9 {
      %c0_105 = arith.constant 0 : index
      %c1_106 = arith.constant 1 : index
      %c0_107 = arith.constant 0 : index
      %93 = vector.load %arg8[%c0_105, %c1_106, %c0_107] : memref<18x34x128xbf16, #tpu.memory_space<vmem>>, vector<1x32x128xbf16>
      tpu.vector_store %arg8[%c0_105, %c1_106, %c0_107], %1 {strides = array<i32>} : memref<18x34x128xbf16, #tpu.memory_space<vmem>>, vector<1x32x128xbf16>,
    } else {
    }
    %c0_i32_12 = arith.constant 0 : i32
    %10 = arith.cmpi sgt, %arg1, %c0_i32_12 : i32
    %11 = arith.extui %10 : i1 to i32
    %c0_i32_13 = arith.constant 0 : i32
    %12 = arith.cmpi ne, %11, %c0_i32_13 : i32
    scf.if %12 {
      %c0_105 = arith.constant 0 : index
      %c0_106 = arith.constant 0 : index
      %c0_107 = arith.constant 0 : index
      %c0_108 = arith.constant 0 : index
      %93 = vector.load %arg3[%c0_105, %c0_106, %c0_107, %c0_108] : memref<1x1x32x128xbf16, #tpu.memory_space<vmem>>, vector<1x1x32x128xbf16>
      %94 = vector.shape_cast %93 : vector<1x1x32x128xbf16> to vector<1x32x128xbf16>
      %c0_109 = arith.constant 0 : index
      %c1_110 = arith.constant 1 : index
      %c0_111 = arith.constant 0 : index
      %95 = vector.load %arg8[%c0_109, %c1_110, %c0_111] : memref<18x34x128xbf16, #tpu.memory_space<vmem>>, vector<1x32x128xbf16>
      tpu.vector_store %arg8[%c0_109, %c1_110, %c0_111], %94 {strides = array<i32>} : memref<18x34x128xbf16, #tpu.memory_space<vmem>>, vector<1x32x128xbf16>,
    } else {
    }
    %c1_i32 = arith.constant 1 : i32
    %13 = arith.cmpi eq, %arg1, %c1_i32 : i32
    %14 = arith.extui %13 : i1 to i32
    %c0_i32_14 = arith.constant 0 : i32
    %15 = arith.cmpi ne, %14, %c0_i32_14 : i32
    scf.if %15 {
      %c17 = arith.constant 17 : index
      %c1_105 = arith.constant 1 : index
      %c0_106 = arith.constant 0 : index
      %93 = vector.load %arg8[%c17, %c1_105, %c0_106] : memref<18x34x128xbf16, #tpu.memory_space<vmem>>, vector<1x32x128xbf16>
      tpu.vector_store %arg8[%c17, %c1_105, %c0_106], %1 {strides = array<i32>} : memref<18x34x128xbf16, #tpu.memory_space<vmem>>, vector<1x32x128xbf16>,
    } else {
    }
    %c1_i32_15 = arith.constant 1 : i32
    %16 = arith.cmpi slt, %arg1, %c1_i32_15 : i32
    %17 = arith.extui %16 : i1 to i32
    %c0_i32_16 = arith.constant 0 : i32
    %18 = arith.cmpi ne, %17, %c0_i32_16 : i32
    scf.if %18 {
      %c0_105 = arith.constant 0 : index
      %c0_106 = arith.constant 0 : index
      %c0_107 = arith.constant 0 : index
      %c0_108 = arith.constant 0 : index
      %93 = vector.load %arg4[%c0_105, %c0_106, %c0_107, %c0_108] : memref<1x1x32x128xbf16, #tpu.memory_space<vmem>>, vector<1x1x32x128xbf16>
      %94 = vector.shape_cast %93 : vector<1x1x32x128xbf16> to vector<1x32x128xbf16>
      %c17 = arith.constant 17 : index
      %c1_109 = arith.constant 1 : index
      %c0_110 = arith.constant 0 : index
      %95 = vector.load %arg8[%c17, %c1_109, %c0_110] : memref<18x34x128xbf16, #tpu.memory_space<vmem>>, vector<1x32x128xbf16>
      tpu.vector_store %arg8[%c17, %c1_109, %c0_110], %94 {strides = array<i32>} : memref<18x34x128xbf16, #tpu.memory_space<vmem>>, vector<1x32x128xbf16>,
    } else {
    }
    %c0_17 = arith.constant 0 : index
    %c0_18 = arith.constant 0 : index
    %c0_19 = arith.constant 0 : index
    %19 = vector.load %arg8[%c0_17, %c0_18, %c0_19] : memref<18x34x128xbf16, #tpu.memory_space<vmem>>, vector<16x32x128xbf16>
    %20 = vector.shape_cast %19 : vector<16x32x128xbf16> to vector<512x128xbf16>
    %c0_20 = arith.constant 0 : index
    %c0_21 = arith.constant 0 : index
    %21 = vector.load %arg5[%c0_20, %c0_21] : memref<1152x128xbf16, #tpu.memory_space<vmem>>, vector<128x128xbf16>
    %cst_22 = arith.constant dense<0.000000e+00> : vector<512x128xf32>
    %22 = tpu.matmul %20, %21, %cst_22 {dimension_numbers = #tpu.dot_dimension_numbers<[1], [0], [0], [1], [0, 0, 1, 1], [], []>} : vector<512x128xbf16>, vector<128x128xbf16>, vector<512x128xf32> -> vector<512x128xf32>
    %c0_23 = arith.constant 0 : index
    %c0_24 = arith.constant 0 : index
    %23 = vector.load %arg9[%c0_23, %c0_24] : memref<512x128xf32, #tpu.memory_space<vmem>>, vector<512x128xf32>
    tpu.vector_store %arg9[%c0_23, %c0_24], %22 {strides = array<i32>} : memref<512x128xf32, #tpu.memory_space<vmem>>, vector<512x128xf32>,
    %c0_25 = arith.constant 0 : index
    %c1_26 = arith.constant 1 : index
    %c0_27 = arith.constant 0 : index
    %24 = vector.load %arg8[%c0_25, %c1_26, %c0_27] : memref<18x34x128xbf16, #tpu.memory_space<vmem>>, vector<16x32x128xbf16>
    %25 = vector.shape_cast %24 : vector<16x32x128xbf16> to vector<512x128xbf16>
    %c128 = arith.constant 128 : index
    %c0_28 = arith.constant 0 : index
    %26 = vector.load %arg5[%c128, %c0_28] : memref<1152x128xbf16, #tpu.memory_space<vmem>>, vector<128x128xbf16>
    %cst_29 = arith.constant dense<0.000000e+00> : vector<512x128xf32>
    %27 = tpu.matmul %25, %26, %cst_29 {dimension_numbers = #tpu.dot_dimension_numbers<[1], [0], [0], [1], [0, 0, 1, 1], [], []>} : vector<512x128xbf16>, vector<128x128xbf16>, vector<512x128xf32> -> vector<512x128xf32>
    %c0_30 = arith.constant 0 : index
    %c0_31 = arith.constant 0 : index
    %28 = vector.load %arg9[%c0_30, %c0_31] : memref<512x128xf32, #tpu.memory_space<vmem>>, vector<512x128xf32>
    %29 = arith.addf %28, %27 : vector<512x128xf32>
    %c0_32 = arith.constant 0 : index
    %c0_33 = arith.constant 0 : index
    %30 = vector.load %arg9[%c0_32, %c0_33] : memref<512x128xf32, #tpu.memory_space<vmem>>, vector<512x128xf32>
    tpu.vector_store %arg9[%c0_32, %c0_33], %29 {strides = array<i32>} : memref<512x128xf32, #tpu.memory_space<vmem>>, vector<512x128xf32>,
    %c0_34 = arith.constant 0 : index
    %c2 = arith.constant 2 : index
    %c0_35 = arith.constant 0 : index
    %31 = vector.load %arg8[%c0_34, %c2, %c0_35] : memref<18x34x128xbf16, #tpu.memory_space<vmem>>, vector<16x32x128xbf16>
    %32 = vector.shape_cast %31 : vector<16x32x128xbf16> to vector<512x128xbf16>
    %c256 = arith.constant 256 : index
    %c0_36 = arith.constant 0 : index
    %33 = vector.load %arg5[%c256, %c0_36] : memref<1152x128xbf16, #tpu.memory_space<vmem>>, vector<128x128xbf16>
    %cst_37 = arith.constant dense<0.000000e+00> : vector<512x128xf32>
    %34 = tpu.matmul %32, %33, %cst_37 {dimension_numbers = #tpu.dot_dimension_numbers<[1], [0], [0], [1], [0, 0, 1, 1], [], []>} : vector<512x128xbf16>, vector<128x128xbf16>, vector<512x128xf32> -> vector<512x128xf32>
    %c0_38 = arith.constant 0 : index
    %c0_39 = arith.constant 0 : index
    %35 = vector.load %arg9[%c0_38, %c0_39] : memref<512x128xf32, #tpu.memory_space<vmem>>, vector<512x128xf32>
    %36 = arith.addf %35, %34 : vector<512x128xf32>
    %c0_40 = arith.constant 0 : index
    %c0_41 = arith.constant 0 : index
    %37 = vector.load %arg9[%c0_40, %c0_41] : memref<512x128xf32, #tpu.memory_space<vmem>>, vector<512x128xf32>
    tpu.vector_store %arg9[%c0_40, %c0_41], %36 {strides = array<i32>} : memref<512x128xf32, #tpu.memory_space<vmem>>, vector<512x128xf32>,
    %c1_42 = arith.constant 1 : index
    %c0_43 = arith.constant 0 : index
    %c0_44 = arith.constant 0 : index
    %38 = vector.load %arg8[%c1_42, %c0_43, %c0_44] : memref<18x34x128xbf16, #tpu.memory_space<vmem>>, vector<16x32x128xbf16>
    %39 = vector.shape_cast %38 : vector<16x32x128xbf16> to vector<512x128xbf16>
    %c384 = arith.constant 384 : index
    %c0_45 = arith.constant 0 : index
    %40 = vector.load %arg5[%c384, %c0_45] : memref<1152x128xbf16, #tpu.memory_space<vmem>>, vector<128x128xbf16>
    %cst_46 = arith.constant dense<0.000000e+00> : vector<512x128xf32>
    %41 = tpu.matmul %39, %40, %cst_46 {dimension_numbers = #tpu.dot_dimension_numbers<[1], [0], [0], [1], [0, 0, 1, 1], [], []>} : vector<512x128xbf16>, vector<128x128xbf16>, vector<512x128xf32> -> vector<512x128xf32>
    %c0_47 = arith.constant 0 : index
    %c0_48 = arith.constant 0 : index
    %42 = vector.load %arg9[%c0_47, %c0_48] : memref<512x128xf32, #tpu.memory_space<vmem>>, vector<512x128xf32>
    %43 = arith.addf %42, %41 : vector<512x128xf32>
    %c0_49 = arith.constant 0 : index
    %c0_50 = arith.constant 0 : index
    %44 = vector.load %arg9[%c0_49, %c0_50] : memref<512x128xf32, #tpu.memory_space<vmem>>, vector<512x128xf32>
    tpu.vector_store %arg9[%c0_49, %c0_50], %43 {strides = array<i32>} : memref<512x128xf32, #tpu.memory_space<vmem>>, vector<512x128xf32>,
    %c1_51 = arith.constant 1 : index
    %c1_52 = arith.constant 1 : index
    %c0_53 = arith.constant 0 : index
    %45 = vector.load %arg8[%c1_51, %c1_52, %c0_53] : memref<18x34x128xbf16, #tpu.memory_space<vmem>>, vector<16x32x128xbf16>
    %46 = vector.shape_cast %45 : vector<16x32x128xbf16> to vector<512x128xbf16>
    %c512 = arith.constant 512 : index
    %c0_54 = arith.constant 0 : index
    %47 = vector.load %arg5[%c512, %c0_54] : memref<1152x128xbf16, #tpu.memory_space<vmem>>, vector<128x128xbf16>
    %cst_55 = arith.constant dense<0.000000e+00> : vector<512x128xf32>
    %48 = tpu.matmul %46, %47, %cst_55 {dimension_numbers = #tpu.dot_dimension_numbers<[1], [0], [0], [1], [0, 0, 1, 1], [], []>} : vector<512x128xbf16>, vector<128x128xbf16>, vector<512x128xf32> -> vector<512x128xf32>
    %c0_56 = arith.constant 0 : index
    %c0_57 = arith.constant 0 : index
    %49 = vector.load %arg9[%c0_56, %c0_57] : memref<512x128xf32, #tpu.memory_space<vmem>>, vector<512x128xf32>
    %50 = arith.addf %49, %48 : vector<512x128xf32>
    %c0_58 = arith.constant 0 : index
    %c0_59 = arith.constant 0 : index
    %51 = vector.load %arg9[%c0_58, %c0_59] : memref<512x128xf32, #tpu.memory_space<vmem>>, vector<512x128xf32>
    tpu.vector_store %arg9[%c0_58, %c0_59], %50 {strides = array<i32>} : memref<512x128xf32, #tpu.memory_space<vmem>>, vector<512x128xf32>,
    %c1_60 = arith.constant 1 : index
    %c2_61 = arith.constant 2 : index
    %c0_62 = arith.constant 0 : index
    %52 = vector.load %arg8[%c1_60, %c2_61, %c0_62] : memref<18x34x128xbf16, #tpu.memory_space<vmem>>, vector<16x32x128xbf16>
    %53 = vector.shape_cast %52 : vector<16x32x128xbf16> to vector<512x128xbf16>
    %c640 = arith.constant 640 : index
    %c0_63 = arith.constant 0 : index
    %54 = vector.load %arg5[%c640, %c0_63] : memref<1152x128xbf16, #tpu.memory_space<vmem>>, vector<128x128xbf16>
    %cst_64 = arith.constant dense<0.000000e+00> : vector<512x128xf32>
    %55 = tpu.matmul %53, %54, %cst_64 {dimension_numbers = #tpu.dot_dimension_numbers<[1], [0], [0], [1], [0, 0, 1, 1], [], []>} : vector<512x128xbf16>, vector<128x128xbf16>, vector<512x128xf32> -> vector<512x128xf32>
    %c0_65 = arith.constant 0 : index
    %c0_66 = arith.constant 0 : index
    %56 = vector.load %arg9[%c0_65, %c0_66] : memref<512x128xf32, #tpu.memory_space<vmem>>, vector<512x128xf32>
    %57 = arith.addf %56, %55 : vector<512x128xf32>
    %c0_67 = arith.constant 0 : index
    %c0_68 = arith.constant 0 : index
    %58 = vector.load %arg9[%c0_67, %c0_68] : memref<512x128xf32, #tpu.memory_space<vmem>>, vector<512x128xf32>
    tpu.vector_store %arg9[%c0_67, %c0_68], %57 {strides = array<i32>} : memref<512x128xf32, #tpu.memory_space<vmem>>, vector<512x128xf32>,
    %c2_69 = arith.constant 2 : index
    %c0_70 = arith.constant 0 : index
    %c0_71 = arith.constant 0 : index
    %59 = vector.load %arg8[%c2_69, %c0_70, %c0_71] : memref<18x34x128xbf16, #tpu.memory_space<vmem>>, vector<16x32x128xbf16>
    %60 = vector.shape_cast %59 : vector<16x32x128xbf16> to vector<512x128xbf16>
    %c768 = arith.constant 768 : index
    %c0_72 = arith.constant 0 : index
    %61 = vector.load %arg5[%c768, %c0_72] : memref<1152x128xbf16, #tpu.memory_space<vmem>>, vector<128x128xbf16>
    %cst_73 = arith.constant dense<0.000000e+00> : vector<512x128xf32>
    %62 = tpu.matmul %60, %61, %cst_73 {dimension_numbers = #tpu.dot_dimension_numbers<[1], [0], [0], [1], [0, 0, 1, 1], [], []>} : vector<512x128xbf16>, vector<128x128xbf16>, vector<512x128xf32> -> vector<512x128xf32>
    %c0_74 = arith.constant 0 : index
    %c0_75 = arith.constant 0 : index
    %63 = vector.load %arg9[%c0_74, %c0_75] : memref<512x128xf32, #tpu.memory_space<vmem>>, vector<512x128xf32>
    %64 = arith.addf %63, %62 : vector<512x128xf32>
    %c0_76 = arith.constant 0 : index
    %c0_77 = arith.constant 0 : index
    %65 = vector.load %arg9[%c0_76, %c0_77] : memref<512x128xf32, #tpu.memory_space<vmem>>, vector<512x128xf32>
    tpu.vector_store %arg9[%c0_76, %c0_77], %64 {strides = array<i32>} : memref<512x128xf32, #tpu.memory_space<vmem>>, vector<512x128xf32>,
    %c2_78 = arith.constant 2 : index
    %c1_79 = arith.constant 1 : index
    %c0_80 = arith.constant 0 : index
    %66 = vector.load %arg8[%c2_78, %c1_79, %c0_80] : memref<18x34x128xbf16, #tpu.memory_space<vmem>>, vector<16x32x128xbf16>
    %67 = vector.shape_cast %66 : vector<16x32x128xbf16> to vector<512x128xbf16>
    %c896 = arith.constant 896 : index
    %c0_81 = arith.constant 0 : index
    %68 = vector.load %arg5[%c896, %c0_81] : memref<1152x128xbf16, #tpu.memory_space<vmem>>, vector<128x128xbf16>
    %cst_82 = arith.constant dense<0.000000e+00> : vector<512x128xf32>
    %69 = tpu.matmul %67, %68, %cst_82 {dimension_numbers = #tpu.dot_dimension_numbers<[1], [0], [0], [1], [0, 0, 1, 1], [], []>} : vector<512x128xbf16>, vector<128x128xbf16>, vector<512x128xf32> -> vector<512x128xf32>
    %c0_83 = arith.constant 0 : index
    %c0_84 = arith.constant 0 : index
    %70 = vector.load %arg9[%c0_83, %c0_84] : memref<512x128xf32, #tpu.memory_space<vmem>>, vector<512x128xf32>
    %71 = arith.addf %70, %69 : vector<512x128xf32>
    %c0_85 = arith.constant 0 : index
    %c0_86 = arith.constant 0 : index
    %72 = vector.load %arg9[%c0_85, %c0_86] : memref<512x128xf32, #tpu.memory_space<vmem>>, vector<512x128xf32>
    tpu.vector_store %arg9[%c0_85, %c0_86], %71 {strides = array<i32>} : memref<512x128xf32, #tpu.memory_space<vmem>>, vector<512x128xf32>,
    %c2_87 = arith.constant 2 : index
    %c2_88 = arith.constant 2 : index
    %c0_89 = arith.constant 0 : index
    %73 = vector.load %arg8[%c2_87, %c2_88, %c0_89] : memref<18x34x128xbf16, #tpu.memory_space<vmem>>, vector<16x32x128xbf16>
    %74 = vector.shape_cast %73 : vector<16x32x128xbf16> to vector<512x128xbf16>
    %c1024 = arith.constant 1024 : index
    %c0_90 = arith.constant 0 : index
    %75 = vector.load %arg5[%c1024, %c0_90] : memref<1152x128xbf16, #tpu.memory_space<vmem>>, vector<128x128xbf16>
    %cst_91 = arith.constant dense<0.000000e+00> : vector<512x128xf32>
    %76 = tpu.matmul %74, %75, %cst_91 {dimension_numbers = #tpu.dot_dimension_numbers<[1], [0], [0], [1], [0, 0, 1, 1], [], []>} : vector<512x128xbf16>, vector<128x128xbf16>, vector<512x128xf32> -> vector<512x128xf32>
    %c0_92 = arith.constant 0 : index
    %c0_93 = arith.constant 0 : index
    %77 = vector.load %arg9[%c0_92, %c0_93] : memref<512x128xf32, #tpu.memory_space<vmem>>, vector<512x128xf32>
    %78 = arith.addf %77, %76 : vector<512x128xf32>
    %c0_94 = arith.constant 0 : index
    %c0_95 = arith.constant 0 : index
    %79 = vector.load %arg9[%c0_94, %c0_95] : memref<512x128xf32, #tpu.memory_space<vmem>>, vector<512x128xf32>
    tpu.vector_store %arg9[%c0_94, %c0_95], %78 {strides = array<i32>} : memref<512x128xf32, #tpu.memory_space<vmem>>, vector<512x128xf32>,
    %c0_96 = arith.constant 0 : index
    %c0_97 = arith.constant 0 : index
    %80 = vector.load %arg9[%c0_96, %c0_97] : memref<512x128xf32, #tpu.memory_space<vmem>>, vector<512x128xf32>
    %c0_98 = arith.constant 0 : index
    %c0_99 = arith.constant 0 : index
    %81 = vector.load %arg6[%c0_98, %c0_99] : memref<1x128xf32, #tpu.memory_space<vmem>>, vector<1x128xf32>
    %82 = vector.shape_cast %81 : vector<1x128xf32> to vector<128xf32>
    %83 = vector.shape_cast %82 : vector<128xf32> to vector<1x128xf32>
    %84 = vector.broadcast %83 : vector<1x128xf32> to vector<512x128xf32>
    %85 = arith.addf %80, %84 : vector<512x128xf32>
    %cst_100 = arith.constant 0.000000e+00 : f32
    %86 = vector.broadcast %cst_100 : f32 to vector<512x128xf32>
    %87 = arith.maximumf %85, %86 : vector<512x128xf32>
    %88 = vector.shape_cast %87 : vector<512x128xf32> to vector<16x32x128xf32>
    %89 = arith.truncf %88 : vector<16x32x128xf32> to vector<16x32x128xbf16>
    %c0_101 = arith.constant 0 : index
    %c0_102 = arith.constant 0 : index
    %c0_103 = arith.constant 0 : index
    %c0_104 = arith.constant 0 : index
    %90 = vector.load %arg7[%c0_101, %c0_102, %c0_103, %c0_104] : memref<1x16x32x128xbf16, #tpu.memory_space<vmem>>, vector<1x16x32x128xbf16>
    %91 = vector.shape_cast %90 : vector<1x16x32x128xbf16> to vector<16x32x128xbf16>
    %92 = vector.shape_cast %89 : vector<16x32x128xbf16> to vector<1x16x32x128xbf16>
    tpu.vector_store %arg7[%c0_101, %c0_102, %c0_103, %c0_104], %92 {strides = array<i32>} : memref<1x16x32x128xbf16, #tpu.memory_space<vmem>>, vector<1x16x32x128xbf16>,
    return
  }
  func.func @transform_0(%arg0: i32, %arg1: i32) -> (i32, i32, i32, i32) {
    %c0_i32 = arith.constant 0 : i32
    %c0_i32_0 = arith.constant 0 : i32
    %c0_i32_1 = arith.constant 0 : i32
    return %arg0, %arg1, %c0_i32, %c0_i32_0 : i32, i32, i32, i32
  }
  func.func @transform_1(%arg0: i32, %arg1: i32) -> (i32, i32, i32, i32) {
    %c16_i32 = arith.constant 16 : i32
    %0 = arith.muli %arg1, %c16_i32 : i32
    %c1_i32 = arith.constant 1 : i32
    %1 = arith.subi %0, %c1_i32 : i32
    %c0_i32 = arith.constant 0 : i32
    %2 = arith.maxsi %1, %c0_i32 : i32
    %c0_i32_0 = arith.constant 0 : i32
    %c0_i32_1 = arith.constant 0 : i32
    %c0_i32_2 = arith.constant 0 : i32
    return %arg0, %2, %c0_i32_0, %c0_i32_1 : i32, i32, i32, i32
  }
  func.func @transform_2(%arg0: i32, %arg1: i32) -> (i32, i32, i32, i32) {
    %c1_i32 = arith.constant 1 : i32
    %0 = arith.addi %arg1, %c1_i32 : i32
    %c16_i32 = arith.constant 16 : i32
    %1 = arith.muli %0, %c16_i32 : i32
    %c31_i32 = arith.constant 31 : i32
    %2 = arith.minsi %1, %c31_i32 : i32
    %c0_i32 = arith.constant 0 : i32
    %c0_i32_0 = arith.constant 0 : i32
    %c0_i32_1 = arith.constant 0 : i32
    return %arg0, %2, %c0_i32, %c0_i32_0 : i32, i32, i32, i32
  }
  func.func @transform_3(%arg0: i32, %arg1: i32) -> (i32, i32) {
    %c0_i32 = arith.constant 0 : i32
    %c0_i32_0 = arith.constant 0 : i32
    %c0_i32_1 = arith.constant 0 : i32
    return %c0_i32, %c0_i32_0 : i32, i32
  }
  func.func @transform_4(%arg0: i32, %arg1: i32) -> (i32, i32) {
    %c0_i32 = arith.constant 0 : i32
    %c0_i32_0 = arith.constant 0 : i32
    %c0_i32_1 = arith.constant 0 : i32
    return %c0_i32, %c0_i32_0 : i32, i32
  }
  func.func @transform_5(%arg0: i32, %arg1: i32) -> (i32, i32, i32, i32) {
    %c0_i32 = arith.constant 0 : i32
    %c0_i32_0 = arith.constant 0 : i32
    %c0_i32_1 = arith.constant 0 : i32
    return %arg0, %arg1, %c0_i32, %c0_i32_0 : i32, i32, i32, i32
  }
}

</mosaic_0001>

<bundles_post_ra>
// kernel: tpu_custom_call.1
= control target key start
LH: loop header
LB: loop body
LE: loop exit
PB: predicated region body
PF: predicated region fallthrough
CT: control target
= control target key end

     0   :  { %s17559_s0 = inlined_call_operand.hbm [shape: bf16[2,32,32,128], index: 0, kind: input, shape index: {}]   ;;  %s17560_s1 = inlined_call_operand.hbm [shape: bf16[2,32,32,128], index: 1, kind: input, shape index: {}]   ;;  %s17561_s2 = inlined_call_operand.hbm [shape: bf16[2,32,32,128], index: 2, kind: input, shape index: {}]   ;;  %s17562_s3 = inlined_call_operand.hbm [shape: bf16[1152,128], index: 3, kind: input, shape index: {}]   ;;  %s17563_s4 = inlined_call_operand.vmem [shape: f32[1,128], index: 4, kind: input, shape index: {}]   ;;  %s17564_s5 = inlined_call_operand.hbm [shape: bf16[2,32,32,128], index: 5, kind: output, shape index: {}]  }
   0x1   :  { %17590 = sst [smem:[#allocation34_spill]] %s17559_s0 }
   0x2   :  { %17591 = sst [smem:[#allocation35_spill]] %s17560_s1 }
   0x3   :  { %17592 = sst [smem:[#allocation36_spill]] %s17561_s2 }
   0x4   :  { %17593 = sst [smem:[#allocation37_spill]] %s17562_s3 }
   0x5   :  { %17594 = sst [smem:[#allocation38_spill]] %s17563_s4 }
   0x6   :  { %17595 = sst [smem:[#allocation39_spill]] %s17564_s5 }
   0x7   :  { %10 = vsyncpa [#allocation5], 0 }
   0x8   :  { %12 = vsyncpa [#allocation5 + $0x1], 0 }
   0x9   :  { %13 = vsyncpa [#allocation8], 0 }
   0xa   :  { %15 = vsyncpa [#allocation8 + $0x1], 0 }
   0xb   :  { %16 = vsyncpa [#allocation11], 0 }
   0xc   :  { %17 = vsyncpa [#allocation6], 0 }
   0xd   :  { %19 = vsyncpa [#allocation6 + $0x1], 0  ;;  %s15006_s18 = smov 0   ;;  %s15008_s19 = smov 0  }
   0xe   :  { %s15010_s20 = smov 0   ;;  %s15012_s21 = smov 0  }
   0xf   :  { %s15014_s22 = smov 0   ;;  %s15016_s23 = smov 0  }
  0x10   :  { %s15018_s24 = smov 0   ;;  %s15020_s25 = smov 0  }
  0x11   :  { %s15022_s26 = smov 0   ;;  %s15024_s27 = smov 0  }
  0x12   :  { %s15026_s28 = smov 0   ;;  %s15028_s29 = smov 0  }
  0x13   :  { %s15030_s30 = smov 0   ;;  %s15032_s6 = smov 0  }
  0x14 LB: > { %17596 = sst [smem:[#allocation18_spill]] %s14911_s18  ;;  %s34_s7 = sadd.s32 1, %s14955_s29  ;;  %s14963_s6 = sphi %s15032_s6, %s25_s6   ;;  %s14959_s30 = sphi %s15030_s30, %s17685_s30   ;;  %s14955_s29 = sphi %s15028_s29, %s17684_s29   ;;  %s14951_s28 = sphi %s15026_s28, %s17683_s28   ;;  %s14947_s27 = sphi %s15024_s27, %s17682_s27   ;;  %s14943_s26 = sphi %s15022_s26, %s17681_s26   ;;  %s14939_s25 = sphi %s15020_s25, %s17690_s25   ;;  %s14935_s24 = sphi %s15018_s24, %s17689_s24   ;;  %s14931_s23 = sphi %s15016_s23, %s17679_s23   ;;  %s14927_s22 = sphi %s15014_s22, %s17688_s22   ;;  %s14923_s21 = sphi %s15012_s21, %s17687_s21   ;;  %s14919_s20 = sphi %s15010_s20, %s17686_s20   ;;  %s14915_s19 = sphi %s15008_s19, %s17677_s19   ;;  %s14911_s18 = sphi %s15006_s18, %s17676_s18  }
  0x15   : > { %17597 = sst [smem:[#allocation19_spill]] %s14915_s19  ;;  %s37_s8 = sadd.s32 1, %s14959_s30 }
  0x16   : > { %17598 = sst [smem:[#allocation20_spill]] %s14919_s20  ;;  %p35_p0 = scmp.ge.s32.totalorder %s34_s7, 2 }
  0x17   : > { %17599 = sst [smem:[#allocation21_spill]] %s14931_s23  ;;  %p17575_p1 = scmp.eq.s32.totalorder %s14963_s6, 0 }
  0x18   : > { %17600 = sst [smem:[#allocation22_spill]] %s14943_s26  ;;  %s11968_s9 = sshll.u32 %s14955_s29, 4 }
  0x19   : > { %17601 = sst [smem:[#allocation23_spill]] %s14947_s27  ;;  %s82_s10 = sadd.s32 1, %s14931_s23 }
  0x1a   : > { %17602 = sst [smem:[#allocation24_spill]] %s14951_s28  ;;  %s17692_s7 = smov (%p35_p0, %s34_s7), 0 }
  0x1b   : > { %17603 = sst [smem:[#allocation25_spill]] %s14955_s29  ;;  %s17694_s8 = smov (!%p35_p0, %s37_s8), %s14959_s30 }
  0x1c   : > { %17604 = sst [smem:[#allocation26_spill]] %s14959_s30  ;;  %s42_s11 = ssub.s32 %s14955_s29, %s17692_s7 }
  0x1d   : > { %17605 = sst [smem:[#allocation27_spill]] %s17692_s7  ;;  %s11969_s12 = sadd.s32 4294967295, %s11968_s9 }
  0x1e   : > { %p39_p2 = scmp.ge.s32.totalorder %s17694_s8, 2  ;;  %p71_p3 = scmp.gt.s32.totalorder %s11969_s12, 0 }
  0x1f   : > { %s11970_s13 = sshll.u32 %s17692_s7, 4  ;;  %p89_p4 = scmp.ne.s32.totalorder %s14931_s23, %s14927_s22 }
  0x20   : > { %s17696_s8 = smov (%p39_p2, %s17694_s8), 0  ;;  %s17698_s12 = smov (!%p71_p3, %s11969_s12), 0 }
  0x21   : > { %17606 = sst [smem:[#allocation28_spill]] %s17696_s8  ;;  %s15093_s14 = ssub.s32 %s14959_s30, %s17696_s8 }
  0x22   : > { %17607 = sst [smem:[#allocation29_spill]] %s15093_s14  ;;  %s11971_s15 = sadd.s32 4294967295, %s11970_s13 }
  0x23   : > { %s15096_s16 = sor.u32 %s42_s11, %s15093_s14  ;;  %p75_p5 = scmp.gt.s32.totalorder %s11971_s15, 0 }
  0x24   : > { %p15101_p7 = por %p89_p4, %p17575_p1  ;;  %p95_p8 = scmp.ne.s32.totalorder %s14927_s22, %s14923_s21 }
  0x25   : > { %s17700_s15 = smov (!%p75_p5, %s11971_s15), 0  ;;  %s15107_s8 = sadd.s32 16, %s11968_s9 }
  0x26   : > { %17609 = sst [smem:[#allocation30_spill]] %s15107_s8  ;;  %s78_s7 = ssub.s32 %s17698_s12, %s17700_s15 }
  0x27   : > { %s79_s5 = sor.u32 %s78_s7, %s15093_s14  ;;  %s15111_s11 = sadd.s32 16, %s11970_s13 }
  0x28   : > { %p80_p10 = scmp.eq.s32.totalorder %s79_s5, 0  ;;  %p17574_p12 = scmp.lt.s32.totalorder %s14963_s6, 4 }
  0x29   : > { %s15119_s4 = sshll.u32 %s14959_s30, 7  ;;  %s265_s27 = sand.u32 1, %s14963_s6  }
  0x2a   : > { %s15115_s28 = scalar_select %p80_p10, %s14931_s23, %s82_s10  }
  0x2b   : > { %s267_s9 = sand.u32 1, %s14931_s23   ;;  %s11985_s18 = sshll.u32 %s17698_s12, 2 }
  0x2c   : > { %17610 = sst [smem:[#allocation31_spill]] %s15115_s28  ;;  %s11982_s2 = sshll.u32 %s267_s9, 4 }
  0x2d   : > { %s279_s15 = sadd.s32 %s11985_s18, %s15119_s4  ;;  %s269_s7 = scalar_lea.vmem [#allocation7], %s11982_s2 }
  0x2e   : > { %s11987_s19 = sshll.u32 %s279_s15, 6  ;;  %s282_s13 = sshll.u32 %s269_s7, 4  ;;  %s15129_s13 = int_to_ptr.vmem [resolvable:$true] %s282_s13 }
  0x2f   : > { %s17611_s1 = sld [smem:[#allocation35_spill]]  ;;  %p15135_p13 = pnand %p17574_p12, %p15101_p7 }
  0x30   : > { %s15139_s2 = scalar_lea.sflag [#allocation8], %s265_s27 }
  0x31   : > { %p14689_p2 = pneg %p15135_p13 }
  0x35   : > { %s15127_s20 = scalar_lea.hbm %s17611_s1, %s11987_s19  ;;  %s14692_s10 = scalar_lea.hbm %s17611_s1, 16384 }
  0x36   : > { %s14687_s18 = scalar_lea.hbm %s15127_s20, 256  ;;  %p14693_p5 = scmp.lt.u32.totalorder %s15127_s20, %s17611_s1 }
  0x37   : > { %p14688_p0 = scmp.ne.s32.totalorder %s15127_s20, %s14687_s18  ;;  %p14694_p7 = scmp.lt.u32.totalorder %s14692_s10, %s14687_s18 }
  0x38   : > { %p14696_p11 = scmp.lt.u32.totalorder %s14687_s18, %s15127_s20 }
  0x39   : > { %p14690_p3 = pnand %p14689_p2, %p14688_p0  ;;  %p14695_p10 = por %p14694_p7, %p14693_p5 }
  0x3b   : > { %p14691_p4 = pneg %p14690_p3  ;;  %p14697_p9 = por %p14696_p11, %p14695_p10 }
  0x3d   : > { %p14698_p12 = pnand %p14697_p9, %p14691_p4 }
  0x3f   : > { %14701 = shalt.err (!%p14698_p12)
}
  0x40   : > { %s14702_s27 = scalar_lea.vmem %s15129_s13, 256  ;;  %s14965_s17 = smov [#allocation7]  }
  0x41   : > { %p14703_p0 = scmp.ne.s32.totalorder %s15129_s13, %s14702_s27  ;;  %s14707_s9 = sshll.u32 %s14965_s17, 4  ;;  %s14708_s9 = int_to_ptr.vmem [resolvable:$false] %s14707_s9 }
  0x42   : > { %s14709_s15 = scalar_lea.vmem %s14708_s9, 512  ;;  %p14710_p6 = scmp.lt.s32.totalorder %s15129_s13, %s14708_s9 }
  0x43   : > { %p14705_p3 = pnand %p14703_p0, %p14689_p2  ;;  %p14711_p5 = scmp.lt.s32.totalorder %s14709_s15, %s14702_s27 }
  0x45   : > { %p14706_p1 = pneg %p14705_p3  ;;  %p14712_p7 = por %p14711_p5, %p14710_p6 }
  0x47   : > { %p14713_p11 = pnand %p14712_p7, %p14706_p1 }
  0x49   : > { %14716 = shalt.err (!%p14713_p11)
}
  0x4a   : > { %s17576_s7 = smov 64   ;;  %s17578_s18 = smov 4  }
  0x4b   : > { %14376 = dma.hbm_to_vmem [thread:$0]  (!%p15135_p13), %s15127_s20, 256, %s15129_s13, %s15139_s2, %s17576_s7, %s17576_s7, %s17578_s18  }
  0x4c   : > { %s15171_s19 = sadd.s32 4294967295, %s14963_s6   ;;  %p11974_p1 = scmp.ge.s32.totalorder %s14963_s6, 1 }
  0x4d   : > { %p17580_p6 = scmp.eq.s32.totalorder %s15171_s19, 0  ;;  %p212_p12 = scmp.lt.s32.totalorder %s14963_s6, 5 }
  0x4e   : > { %s14968_s20 = smov [#allocation10]   ;;  %s11967_s21 = sadd.s32 4294967294, %s14963_s6  }
  0x4f   : > { %p15182_p2 = por %p95_p8, %p17580_p6  ;;  %p15186_p4 = pnand %p11974_p1, %p212_p12 }
  0x50   : > { %s224_s13 = sshll.u32 %s14968_s20, 4  ;;  %s46_s12 = sadd.s32 1, %s14943_s26  ;;  %s225_s13 = int_to_ptr.vmem [resolvable:$true] %s224_s13 }
  0x51   : > { %s17613_s8 = scalar_select %p15182_p2, 1, 0 }
  0x52   : > { %s17614_s5 = scalar_select %p15186_p4, 1, 0 }
  0x53   : > { %p14366_p13 = pneg %p15186_p4  ;;  %s17616_s3 = sld [smem:[#allocation37_spill]] }
  0x55   : > { %p15194_p10 = pnand %p14366_p13, %p17580_p6 }
  0x57   : > { %p14719_p0 = pneg %p15194_p10 }
  0x59   : > { %s14717_s17 = scalar_lea.hbm %s17616_s3, 9216 }
  0x5a   : > { %p14718_p8 = scmp.ne.s32.totalorder %s17616_s3, %s14717_s17  ;;  %p14724_p7 = scmp.lt.u32.totalorder %s14717_s17, %s17616_s3 }
  0x5c   : > { %p14720_p3 = pnand %p14719_p0, %p14718_p8 }
  0x5e   : > { %p14721_p5 = pneg %p14720_p3 }
  0x60   : > { %p14726_p11 = pnand %p14724_p7, %p14721_p5 }
  0x62   : > { %14729 = shalt.err (!%p14726_p11)
}
  0x63   : > { %s14730_s18 = scalar_lea.vmem %s225_s13, 9216  ;;  %p14738_p9 = scmp.lt.s32.totalorder %s225_s13, %s225_s13 }
  0x64   : > { %p14731_p1 = scmp.ne.s32.totalorder %s225_s13, %s14730_s18  ;;  %p14739_p6 = scmp.lt.s32.totalorder %s14730_s18, %s14730_s18 }
  0x66   : > { %p14733_p12 = pnand %p14731_p1, %p14719_p0  ;;  %p14740_p2 = por %p14739_p6, %p14738_p9 }
  0x68   : > { %p14734_p13 = pneg %p14733_p12 }
  0x6a   : > { %p14741_p4 = pnand %p14740_p2, %p14734_p13 }
  0x6c   : > { %14744 = shalt.err (!%p14741_p4)
}
  0x6d   : > { %s17617_s14 = smov 4   ;;  %s17618_s27 = smov 64  }
  0x6e   : > { %14369 = dma.hbm_to_vmem [thread:$0]  (!%p15194_p10), %s17616_s3, 9216, %s225_s13, [#allocation11], %s17618_s27, %s17618_s27, %s17617_s14  }
  0x6f   : > { %p17619_p6 = scmp.eq.s32.totalorder %s15096_s16, 0  ;;  %p53_p9 = scmp.ne.s32.totalorder %s14943_s26, %s14939_s25 }
  0x70   : > { %p59_p2 = scmp.ne.s32.totalorder %s14939_s25, %s14935_s24  ;;  %p205_p4 = scmp.eq.s32.totalorder %s11967_s21, 3 }
  0x71   : > { %s15222_s7 = scalar_select %p17619_p6, %s14943_s26, %s46_s12  }
  0x72   : > { %s241_s18 = sand.u32 1, %s14943_s26   ;;  %p17621_p8 = scmp.eq.s32.totalorder %s14963_s6, 0 }
  0x73   : > { %17620 = sst [smem:[#allocation32_spill]] %s15222_s7  ;;  %p17622_p3 = scmp.eq.s32.totalorder %s15171_s19, 0 }
  0x74   : > { %p55_p0 = por %p17621_p8, %p53_p9  ;;  %p17624_p7 = scmp.eq.s32.totalorder %s15171_s19, 3 }
  0x75   : > { %p15233_p5 = por %p17622_p3, %p59_p2  ;;  %p15243_p10 = por %p205_p4, %p59_p2 }
  0x76   : > { %p15239_p11 = por %p17624_p7, %p53_p9  ;;  %s11977_s13 = sshll.u32 %s241_s18, 8 }
  0x77   : > { %s17626_s16 = scalar_select %p15243_p10, 1, 0 }
  0x78   : > { %s17625_s17 = scalar_select %p15239_p11, 1, 0 }
  0x79   : > { %17627 = sst [smem:[#allocation33_spill]] %s17626_s16  ;;  %s12487_s12 = sshll.u32 %s14955_s29, 6 }
  0x7a   : > { %s252_s21 = sadd.s32 %s12487_s12, %s15119_s4  ;;  %s245_s20 = scalar_lea.vmem [#allocation4], %s11977_s13 }
  0x7b   : > { %s255_s9 = sshll.u32 %s245_s20, 4  ;;  %s11981_s15 = sshll.u32 %s252_s21, 6  ;;  %s15249_s9 = int_to_ptr.vmem [resolvable:$true] %s255_s9 }
  0x7c   : > { %s17628_s0 = sld [smem:[#allocation34_spill]]  ;;  %p17629_p1 = scmp.lt.s32.totalorder %s14963_s6, 4 }
  0x7d   : > { %s15262_s13 = scalar_lea.sflag [#allocation5], %s241_s18 }
  0x7e   : > { %p15258_p12 = pnand %p17629_p1, %p55_p0 }
  0x80   : > { %p14747_p6 = pneg %p15258_p12 }
  0x82   : > { %s15254_s30 = scalar_lea.hbm %s17628_s0, %s11981_s15  ;;  %s14750_s21 = scalar_lea.hbm %s17628_s0, 16384 }
  0x83   : > { %s14745_s12 = scalar_lea.hbm %s15254_s30, 4096  ;;  %p14751_p4 = scmp.lt.u32.totalorder %s15254_s30, %s17628_s0 }
  0x84   : > { %p14746_p13 = scmp.ne.s32.totalorder %s15254_s30, %s14745_s12  ;;  %p14752_p8 = scmp.lt.u32.totalorder %s14750_s21, %s14745_s12 }
  0x85   : > { %p14754_p3 = scmp.lt.u32.totalorder %s14745_s12, %s15254_s30 }
  0x86   : > { %p14748_p9 = pnand %p14747_p6, %p14746_p13  ;;  %p14753_p0 = por %p14752_p8, %p14751_p4 }
  0x88   : > { %p14749_p2 = pneg %p14748_p9  ;;  %p14755_p7 = por %p14754_p3, %p14753_p0 }
  0x8a   : > { %p14756_p1 = pnand %p14755_p7, %p14749_p2 }
  0x8c   : > { %14759 = shalt.err (!%p14756_p1)
}
  0x8d   : > { %s14760_s18 = scalar_lea.vmem %s15249_s9, 4096  ;;  %s14969_s1 = smov [#allocation4]  }
  0x8e   : > { %p14761_p13 = scmp.ne.s32.totalorder %s15249_s9, %s14760_s18  ;;  %s14765_s3 = sshll.u32 %s14969_s1, 4  ;;  %s14766_s3 = int_to_ptr.vmem [resolvable:$false] %s14765_s3 }
  0x8f   : > { %s14767_s20 = scalar_lea.vmem %s14766_s3, 8192  ;;  %p14768_p11 = scmp.lt.s32.totalorder %s15249_s9, %s14766_s3 }
  0x90   : > { %p14763_p9 = pnand %p14761_p13, %p14747_p6  ;;  %p14769_p4 = scmp.lt.s32.totalorder %s14767_s20, %s14760_s18 }
  0x92   : > { %p14764_p10 = pneg %p14763_p9  ;;  %p14770_p8 = por %p14769_p4, %p14768_p11 }
  0x94   : > { %p14771_p0 = pnand %p14770_p8, %p14764_p10 }
  0x96   : > { %14774 = shalt.err (!%p14771_p0)
}
  0x97   : > { %s17631_s12 = sld [smem:[#allocation20_spill]]  ;;  %s17632_s21 = sld [smem:[#allocation30_spill]] }
  0x98   : > { %s17633_s15 = sld [smem:[#allocation19_spill]]  ;;  %s17634_s1 = sld [smem:[#allocation18_spill]] }
  0x99   : > { %s17635_s18 = sld [smem:[#allocation29_spill]]  ;;  %p17637_p10 = scmp.lt.s32.totalorder %s15111_s11, 31 }
  0x9a   : > { %14373 = dma.hbm_to_vmem [thread:$0]  (!%p15258_p12), %s15254_s30, 4096, %s15249_s9, %s15262_s13, %s17618_s27, %s17618_s27, %s17617_s14  }
  0x9b   : > { %s17704_s11 = smov (!%p17637_p10, %s15111_s11), 31  ;;  %p17638_p3 = scmp.eq.s32.totalorder %s14963_s6, 0 }
  0x9c   : > { %p17639_p13 = scmp.eq.s32.totalorder %s15171_s19, 0  ;;  %s17641_s23 = sld [smem:[#allocation36_spill]] }
  0x9d   : > { %s118_s7 = sadd.s32 1, %s17631_s12  ;;  %p17636_p11 = scmp.lt.s32.totalorder %s17632_s21, 31 }
  0x9e   : > { %p125_p6 = scmp.ne.s32.totalorder %s17631_s12, %s17633_s15  ;;  %p131_p2 = scmp.ne.s32.totalorder %s17633_s15, %s17634_s1 }
  0x9f   : > { %s17702_s21 = smov (!%p17636_p11, %s17632_s21), 31  ;;  %s294_s20 = sand.u32 1, %s17631_s12  }
  0xa0   : > { %s114_s3 = ssub.s32 %s17702_s21, %s17704_s11  ;;  %p127_p7 = por %p125_p6, %p17638_p3 }
  0xa1   : > { %s115_s0 = sor.u32 %s114_s3, %s17635_s18  ;;  %p15310_p9 = por %p131_p2, %p17639_p13 }
  0xa2   : > { %p116_p1 = scmp.eq.s32.totalorder %s115_s0, 0  ;;  %s11988_s30 = sshll.u32 %s294_s20, 4 }
  0xa3   : > { %s17640_s29 = scalar_select %p15310_p9, 1, 0 }
  0xa4   : > { %s11990_s9 = sshll.u32 %s17702_s21, 2  ;;  %s17706_s12 = smov (!%p116_p1, %s17631_s12), %s118_s7 }
  0xa5   : > { %s306_s13 = sadd.s32 %s11990_s9, %s15119_s4  ;;  %s296_s28 = scalar_lea.vmem [#allocation9], %s11988_s30 }
  0xa6   : > { %s11992_s26 = sshll.u32 %s306_s13, 6  ;;  %s309_s15 = sshll.u32 %s296_s28, 4  ;;  %s15323_s15 = int_to_ptr.vmem [resolvable:$true] %s309_s15 }
  0xa7   : > { %s17642_s16 = smov %s17641_s23  ;;  %s15321_s18 = scalar_lea.hbm %s17641_s23, %s11992_s26 }
  0xa8   : > { %p17643_p12 = scmp.lt.s32.totalorder %s14963_s6, 4  ;;  %s14775_s4 = scalar_lea.hbm %s15321_s18, 256 }
  0xa9   : > { %p14776_p8 = scmp.ne.s32.totalorder %s15321_s18, %s14775_s4  ;;  %s14780_s28 = scalar_lea.hbm %s17642_s16, 16384 }
  0xaa   : > { %p15327_p4 = pnand %p17643_p12, %p127_p7  ;;  %p14781_p6 = scmp.lt.u32.totalorder %s15321_s18, %s17642_s16 }
  0xab   : > { %p14782_p2 = scmp.lt.u32.totalorder %s14780_s28, %s14775_s4  ;;  %p14784_p7 = scmp.lt.u32.totalorder %s14775_s4, %s15321_s18 }
  0xac   : > { %p14777_p0 = pneg %p15327_p4 }
  0xad   : > { %p14783_p3 = por %p14782_p2, %p14781_p6 }
  0xae   : > { %p14778_p11 = pnand %p14777_p0, %p14776_p8 }
  0xaf   : > { %p14785_p1 = por %p14784_p7, %p14783_p3 }
  0xb0   : > { %p14779_p10 = pneg %p14778_p11 }
  0xb2   : > { %p14786_p13 = pnand %p14785_p1, %p14779_p10 }
  0xb4   : > { %14789 = shalt.err (!%p14786_p13)
}
  0xb5   : > { %s14790_s3 = scalar_lea.vmem %s15323_s15, 256  ;;  %s14970_s20 = smov [#allocation9]  }
  0xb6   : > { %p14791_p12 = scmp.ne.s32.totalorder %s15323_s15, %s14790_s3  ;;  %s14795_s30 = sshll.u32 %s14970_s20, 4  ;;  %s14796_s30 = int_to_ptr.vmem [resolvable:$false] %s14795_s30 }
  0xb7   : > { %s14797_s9 = scalar_lea.vmem %s14796_s30, 512  ;;  %p14798_p9 = scmp.lt.s32.totalorder %s15323_s15, %s14796_s30 }
  0xb8   : > { %p14793_p8 = pnand %p14791_p12, %p14777_p0  ;;  %p14799_p6 = scmp.lt.s32.totalorder %s14797_s9, %s14790_s3 }
  0xba   : > { %p14794_p11 = pneg %p14793_p8  ;;  %p14800_p2 = por %p14799_p6, %p14798_p9 }
  0xbc   : > { %p14801_p3 = pnand %p14800_p2, %p14794_p11 }
  0xbe   : > { %14804 = shalt.err (!%p14801_p3)
}
  0xbf   : > { %14379 = dma.hbm_to_vmem [thread:$0]  (!%p15327_p4), %s15321_s18, 256, %s15323_s15, %s15139_s2, %s17618_s27, %s17618_s27, %s17617_s14  }
  0xc0   : > { %p17645_p0 = scmp.ne.s32.totalorder %s17614_s5, 0 }
  0xc1   : > { %s15363_s13 = sand.u32 (!%p17645_p0), 1, %s14939_s25  }
  0xc2   : > { %321 = sbr.rel (%p17645_p0) target bundleno = 1259 (0x4eb), region = 40  ;;  %s11994_s1 = sshll.u32 (!%p17645_p0), %s15363_s13, 8 }
  0xc3   : > { %s324_s11 = scalar_lea.sflag (!%p17645_p0), [#allocation5], %s15363_s13  ;;  %s15369_s0 = scalar_lea.vmem (!%p17645_p0), [#allocation4], %s11994_s1 }
  0xc9   : > { %14890 = dma.done.wait (%p15233_p5), %s324_s11, 4096  }
  0xca   : > { %14892 = vsyncadd (%p15233_p5), %s324_s11, 4294963200  ;;  %s332_s2 = sand.u32 1, %s15171_s19   ;;  %s334_s5 = sand.u32 1, %s14927_s22  }
  0xcb   : > { %s11995_s14 = sshll.u32 %s334_s5, 4  ;;  %s333_s27 = scalar_lea.sflag [#allocation8], %s332_s2 }
  0xcc   : > { %s15377_s15 = scalar_lea.vmem [#allocation7], %s11995_s14  ;;  %p17646_p9 = scmp.ne.s32.totalorder %s17613_s8, 0 }
  0xce   : > { %14894 = dma.done.wait (%p17646_p9), %s333_s27, 256  }
  0xcf   : > { %14896 = vsyncadd (%p17646_p9), %s333_s27, 4294967040  ;;  %s17647_s18 = sld [smem:[#allocation19_spill]]  ;;  %p17648_p5 = scmp.ne.s32.totalorder %s17640_s29, 0 }
  0xd5   : > { %s343_s4 = sand.u32 1, %s17647_s18  }
  0xd6   : > { %s11996_s23 = sshll.u32 %s343_s4, 4 }
  0xd7   : > { %s15384_s10 = scalar_lea.vmem [#allocation9], %s11996_s23 }
  0xd8   : > { %14898 = dma.done.wait (%p17648_p5), %s333_s27, 256  }
  0xd9   : > { %14900 = vsyncadd (%p17648_p5), %s333_s27, 4294967040  ;;  %p17649_p4 = scmp.eq.s32.totalorder %s15171_s19, 0 }
  0xdb   : > { %14902 = dma.done.wait (%p17649_p4), [#allocation11], 9216   ;;  %p17650_p10 = pmov %p17649_p4 }
  0xdc   : > { %vm397_vm0 = vcmask 1040384   ;;  %vm398_vm1 = vsmask.f32 256  ;;  %vm454_vm3 = vsmask.f32 7938  ;;  %vm1217_vm6 = vcmask 1043456  }
  0xdd   : > { %14904 = vsyncadd (%p17650_p10), [#allocation11], 4294958080  ;;  %v403_v1 = vld [vmem:[#allocation2 + $0x14] sm:$0x1]  ;;  %v406_v2 = vld [vmem:[#allocation2 + $0x28] sm:$0x1] }
  0xde   : > { %vm15396_vm2 = vmand %vm397_vm0, %vm398_vm1  ;;  %v409_v3 = vld [vmem:[#allocation2 + $0x3c] sm:$0x1]  ;;  %v412_v7 = vld [vmem:[#allocation2 + $0x50] sm:$0x1]  ;;  %vm574_vm5 = vsmask.f32 4368 }
  0xdf   : > { %v404_v4 = vsel %vm15396_vm2, 0, %v403_v1  ;;  %v407_v5 = vsel %vm15396_vm2, 0, %v406_v2  ;;  %v410_v6 = vsel %vm15396_vm2, 0, %v409_v3  ;;  %v413_v8 = vsel %vm15396_vm2, 0, %v412_v7  ;;  %v415_v9 = vld [vmem:[#allocation2 + $0x64] sm:$0x1]  ;;  %vm15426_vm4 = vmand %vm397_vm0, %vm454_vm3 }
  0xe0   : > { %405 = vst [vmem:[#allocation2 + $0x14] sm:$0x1] %v404_v4  ;;  %408 = vst [vmem:[#allocation2 + $0x28] sm:$0x1] %v407_v5  ;;  %v418_v10 = vld [vmem:[#allocation2 + $0x78] sm:$0x1] }
  0xe1   : > { %411 = vst [vmem:[#allocation2 + $0x3c] sm:$0x1] %v410_v6  ;;  %414 = vst [vmem:[#allocation2 + $0x50] sm:$0x1] %v413_v8  ;;  %v416_v11 = vsel %vm15396_vm2, 0, %v415_v9  ;;  %v419_v12 = vsel %vm15396_vm2, 0, %v418_v10 }
  0xe2   : > { %v421_v13 = vld [vmem:[#allocation2 + $0x8c] sm:$0x1]  ;;  %v424_v14 = vld [vmem:[#allocation2 + $0xa0] sm:$0x1]  ;;  %417 = vst [vmem:[#allocation2 + $0x64] sm:$0x1] %v416_v11  ;;  %vm15484_vm7 = vmand %vm1217_vm6, %vm454_vm3 }
  0xe3   : > { %420 = vst [vmem:[#allocation2 + $0x78] sm:$0x1] %v419_v12  ;;  %v422_v15 = vsel %vm15396_vm2, 0, %v421_v13  ;;  %v425_v16 = vsel %vm15396_vm2, 0, %v424_v14  ;;  %v427_v17 = vld [vmem:[#allocation2 + $0xb4] sm:$0x1]  ;;  %vm15491_vm8 = vmor %vm398_vm1, %vm574_vm5 }
  0xe4   : > { %v430_v18 = vld [vmem:[#allocation2 + $0xc8] sm:$0x1]  ;;  %423 = vst [vmem:[#allocation2 + $0x8c] sm:$0x1] %v422_v15  ;;  %426 = vst [vmem:[#allocation2 + $0xa0] sm:$0x1] %v425_v16 }
  0xe5   : > { %v428_v19 = vsel %vm15396_vm2, 0, %v427_v17  ;;  %v431_v20 = vsel %vm15396_vm2, 0, %v430_v18  ;;  %v433_v21 = vld [vmem:[#allocation2 + $0xdc] sm:$0x1]  ;;  %v436_v22 = vld [vmem:[#allocation2 + $0xf0] sm:$0x1] }
  0xe6   : > { %429 = vst [vmem:[#allocation2 + $0xb4] sm:$0x1] %v428_v19  ;;  %432 = vst [vmem:[#allocation2 + $0xc8] sm:$0x1] %v431_v20  ;;  %v434_v23 = vsel %vm15396_vm2, 0, %v433_v21  ;;  %v437_v24 = vsel %vm15396_vm2, 0, %v436_v22 }
  0xe7   : > { %v439_v25 = vld [vmem:[#allocation2 + $0x104] sm:$0x1]  ;;  %v442_v26 = vld [vmem:[#allocation2 + $0x118] sm:$0x1]  ;;  %435 = vst [vmem:[#allocation2 + $0xdc] sm:$0x1] %v434_v23 }
  0xe8   : > { %438 = vst [vmem:[#allocation2 + $0xf0] sm:$0x1] %v437_v24  ;;  %v440_v28 = vsel %vm15396_vm2, 0, %v439_v25  ;;  %v443_v29 = vsel %vm15396_vm2, 0, %v442_v26  ;;  %v445_v30 = vld [vmem:[#allocation2 + $0x12c] sm:$0x1] }
  0xe9   : > { %v448_v31 = vld [vmem:[#allocation2 + $0x140] sm:$0x1]  ;;  %441 = vst [vmem:[#allocation2 + $0x104] sm:$0x1] %v440_v28  ;;  %444 = vst [vmem:[#allocation2 + $0x118] sm:$0x1] %v443_v29 }
  0xea   : > { %v446_v32 = vsel %vm15396_vm2, 0, %v445_v30  ;;  %v449_v33 = vsel %vm15396_vm2, 0, %v448_v31  ;;  %v459_v34 = vld [vmem:[#allocation2 + $0x24] sm:$0x1]  ;;  %v462_v35 = vld [vmem:[#allocation2 + $0x38] sm:$0x1] }
  0xeb   : > { %447 = vst [vmem:[#allocation2 + $0x12c] sm:$0x1] %v446_v32  ;;  %450 = vst [vmem:[#allocation2 + $0x140] sm:$0x1] %v449_v33  ;;  %v460_v36 = vsel %vm15426_vm4, 0, %v459_v34  ;;  %v463_v37 = vsel %vm15426_vm4, 0, %v462_v35 }
  0xec   : > { %v465_v38 = vld [vmem:[#allocation2 + $0x4c] sm:$0x1]  ;;  %v468_v39 = vld [vmem:[#allocation2 + $0x60] sm:$0x1]  ;;  %461 = vst [vmem:[#allocation2 + $0x24] sm:$0x1] %v460_v36 }
  0xed   : > { %464 = vst [vmem:[#allocation2 + $0x38] sm:$0x1] %v463_v37  ;;  %v466_v40 = vsel %vm15426_vm4, 0, %v465_v38  ;;  %v469_v41 = vsel %vm15426_vm4, 0, %v468_v39  ;;  %v471_v42 = vld [vmem:[#allocation2 + $0x74] sm:$0x1] }
  0xee   : > { %v474_v43 = vld [vmem:[#allocation2 + $0x88] sm:$0x1]  ;;  %467 = vst [vmem:[#allocation2 + $0x4c] sm:$0x1] %v466_v40  ;;  %470 = vst [vmem:[#allocation2 + $0x60] sm:$0x1] %v469_v41 }
  0xef   : > { %v472_v44 = vsel %vm15426_vm4, 0, %v471_v42  ;;  %v475_v45 = vsel %vm15426_vm4, 0, %v474_v43  ;;  %v477_v46 = vld [vmem:[#allocation2 + $0x9c] sm:$0x1]  ;;  %v480_v47 = vld [vmem:[#allocation2 + $0xb0] sm:$0x1] }
  0xf0   : > { %473 = vst [vmem:[#allocation2 + $0x74] sm:$0x1] %v472_v44  ;;  %476 = vst [vmem:[#allocation2 + $0x88] sm:$0x1] %v475_v45  ;;  %v478_v48 = vsel %vm15426_vm4, 0, %v477_v46  ;;  %v481_v49 = vsel %vm15426_vm4, 0, %v480_v47 }
  0xf1   : > { %v483_v50 = vld [vmem:[#allocation2 + $0xc4] sm:$0x1]  ;;  %v486_v51 = vld [vmem:[#allocation2 + $0xd8] sm:$0x1]  ;;  %479 = vst [vmem:[#allocation2 + $0x9c] sm:$0x1] %v478_v48 }
  0xf2   : > { %482 = vst [vmem:[#allocation2 + $0xb0] sm:$0x1] %v481_v49  ;;  %v484_v52 = vsel %vm15426_vm4, 0, %v483_v50  ;;  %v487_v53 = vsel %vm15426_vm4, 0, %v486_v51  ;;  %v489_v54 = vld [vmem:[#allocation2 + $0xec] sm:$0x1] }
  0xf3   : > { %v492_v55 = vld [vmem:[#allocation2 + $0x100] sm:$0x1]  ;;  %485 = vst [vmem:[#allocation2 + $0xc4] sm:$0x1] %v484_v52  ;;  %488 = vst [vmem:[#allocation2 + $0xd8] sm:$0x1] %v487_v53 }
  0xf4   : > { %v490_v56 = vsel %vm15426_vm4, 0, %v489_v54  ;;  %v493_v57 = vsel %vm15426_vm4, 0, %v492_v55  ;;  %v495_v58 = vld [vmem:[#allocation2 + $0x114] sm:$0x1]  ;;  %v498_v59 = vld [vmem:[#allocation2 + $0x128] sm:$0x1] }
  0xf5   : > { %491 = vst [vmem:[#allocation2 + $0xec] sm:$0x1] %v490_v56  ;;  %494 = vst [vmem:[#allocation2 + $0x100] sm:$0x1] %v493_v57  ;;  %v496_v60 = vsel %vm15426_vm4, 0, %v495_v58  ;;  %v499_v61 = vsel %vm15426_vm4, 0, %v498_v59 }
  0xf6   : > { %v501_v62 = vld [vmem:[#allocation2 + $0x13c] sm:$0x1]  ;;  %v504_v63 = vld [vmem:[#allocation2 + $0x150] sm:$0x1]  ;;  %497 = vst [vmem:[#allocation2 + $0x114] sm:$0x1] %v496_v60 }
  0xf7   : > { %500 = vst [vmem:[#allocation2 + $0x128] sm:$0x1] %v499_v61  ;;  %v502_v1 = vsel %vm15426_vm4, 0, %v501_v62  ;;  %v505_v2 = vsel %vm15426_vm4, 0, %v504_v63  ;;  %v400_v3 = vld [vmem:[#allocation2] sm:$0x1] }
  0xf8   : > { %v451_v4 = vld [vmem:[#allocation2 + $0x154] sm:$0x1]  ;;  %503 = vst [vmem:[#allocation2 + $0x13c] sm:$0x1] %v502_v1  ;;  %506 = vst [vmem:[#allocation2 + $0x150] sm:$0x1] %v505_v2 }
  0xf9   : > { %v401_v5 = vsel %vm15396_vm2, 0, %v400_v3  ;;  %v452_v6 = vsel %vm15396_vm2, 0, %v451_v4  ;;  %v456_v7 = vld [vmem:[#allocation2 + $0x10] sm:$0x1]  ;;  %v507_v8 = vld [vmem:[#allocation2 + $0x164] sm:$0x1] }
  0xfa   : > { %402 = vst [vmem:[#allocation2] sm:$0x1] %v401_v5  ;;  %453 = vst [vmem:[#allocation2 + $0x154] sm:$0x1] %v452_v6  ;;  %v457_v9 = vsel %vm15426_vm4, 0, %v456_v7  ;;  %v508_v10 = vsel %vm15426_vm4, 0, %v507_v8 }
  0xfb   : > { %v510_v11 = vld [vmem:[%s15369_s0] sm:$0xf]  ;;  %458 = vst [vmem:[#allocation2 + $0x10] sm:$0x1] %v457_v9  ;;  %509 = vst [vmem:[#allocation2 + $0x164] sm:$0x1] %v508_v10 }
  0xfc   : > { %v577_v12 = vshrl.u32 %v510_v11, 16  ;;  %v580_v13 = vshll.u32 %v510_v11, 16  ;;  %v511_v14 = vld [vmem:[%s15369_s0 + $0x4] sm:$0xf]  ;;  %v512_v15 = vld [vmem:[%s15369_s0 + $0x8] sm:$0xf] }
  0xfd   : > { %v585_v16 = vshrl.u32 %v511_v14, 16  ;;  %v588_v17 = vshll.u32 %v511_v14, 16  ;;  %v594_v18 = vshrl.u32 %v512_v15, 16  ;;  %v597_v19 = vshll.u32 %v512_v15, 16  ;;  %v513_v20 = vld [vmem:[%s15369_s0 + $0xc] sm:$0xf] }
  0xfe   : > { %v579_v21 = vrot.slane %v577_v12, 7  ;;  %v603_v22 = vshrl.u32 %v513_v20, 16  ;;  %v606_v23 = vshll.u32 %v513_v20, 16  ;;  %v1219_v25 = vld [vmem:[#allocation2 + $0x14] sm:$0xf]  ;;  %s15716_s29 = scalar_lea.vmem [#allocation12], %s11994_s1 }
  0xff   : > { %v587_v26 = vrot.slane %v585_v16, 7  ;;  %v596_v27 = vrot.slane %v594_v18, 7  ;;  %v514_v28 = vld [vmem:[%s15369_s0 + $0x10] sm:$0xf]  ;;  %v515_v34 = vld [vmem:[%s15369_s0 + $0x14] sm:$0xf] }
 0x100   : > { %v582_v30 = vor.u32 %v580_v13, %v579_v21  ;;  %v583_v31 = vrot.slane %v579_v21, 4  ;;  %v605_v32 = vrot.slane %v603_v22, 7  ;;  %v612_v33 = vshrl.u32 %v514_v28, 16  ;;  %v1225_v39 = vld [vmem:[#allocation2 + $0x24] sm:$0x1]  ;;  %s17659_s19 = sld [smem:[#allocation23_spill]] }
 0x101   : > { %v590_v35 = vor.u32 %v588_v17, %v587_v26  ;;  %v592_v36 = vrot.slane %v587_v26, 4  ;;  %v599_v37 = vor.u32 %v597_v19, %v596_v27  ;;  %v601_v38 = vrot.slane %v596_v27, 4  ;;  %v516_v44 = vld [vmem:[%s15369_s0 + $0x18] sm:$0xf]  ;;  %v517_v49 = vld [vmem:[%s15369_s0 + $0x1c] sm:$0xf] }
 0x102   : > { %v1220_v40 = vsel %vm15484_vm7, %v582_v30, %v1219_v25  ;;  %v608_v41 = vor.u32 %v606_v23, %v605_v32  ;;  %v610_v42 = vrot.slane %v605_v32, 4  ;;  %v614_v43 = vrot.slane %v612_v33, 7  ;;  %v518_v50 = vld [vmem:[%s15369_s0 + $0x20] sm:$0xf]  ;;  %v519_v60 = vld [vmem:[%s15369_s0 + $0x24] sm:$0xf] }
 0x103   : > { %1221 = vst [vmem:[#allocation2 + $0x14] sm:$0xf] %v1220_v40  ;;  %v591_v45 = vsel %vm15491_vm8, %v583_v31, %v590_v35  ;;  %v600_v46 = vsel %vm15491_vm8, %v592_v36, %v599_v37  ;;  %v615_v47 = vshll.u32 %v514_v28, 16  ;;  %v620_v48 = vshrl.u32 %v515_v34, 16  ;;  %v1228_v53 = vld [vmem:[#allocation2 + $0x28] sm:$0xf] }
 0x104   : > { %1222 = vst [vmem:[#allocation2 + $0x18] sm:$0xf] %v591_v45  ;;  %1223 = vst [vmem:[#allocation2 + $0x1c] sm:$0xf] %v600_v46  ;;  %v609_v51 = vsel %vm15491_vm8, %v601_v38, %v608_v41  ;;  %v1226_v52 = vsel %vm15396_vm2, %v610_v42, %v1225_v39  ;;  %v618_v54 = vrot.slane %v614_v43, 4  ;;  %v623_v55 = vshll.u32 %v515_v34, 16 }
 0x105   : > { %1224 = vst [vmem:[#allocation2 + $0x20] sm:$0xf] %v609_v51  ;;  %1227 = vst [vmem:[#allocation2 + $0x24] sm:$0x1] %v1226_v52  ;;  %v617_v56 = vor.u32 %v615_v47, %v614_v43  ;;  %v622_v57 = vrot.slane %v620_v48, 7  ;;  %v629_v58 = vshrl.u32 %v516_v44, 16 }
 0x106   : > { %v632_v59 = vshll.u32 %v516_v44, 16  ;;  %v638_v61 = vshrl.u32 %v517_v49, 16  ;;  %v641_v62 = vshll.u32 %v517_v49, 16  ;;  %v647_v63 = vshrl.u32 %v518_v50, 16  ;;  %v520_v2 = vld [vmem:[%s15369_s0 + $0x28] sm:$0xf] }
 0x107   : > { %v650_v1 = vshll.u32 %v518_v50, 16  ;;  %v1229_v3 = vsel %vm15484_vm7, %v617_v56, %v1228_v53  ;;  %v625_v4 = vor.u32 %v623_v55, %v622_v57  ;;  %v627_v5 = vrot.slane %v622_v57, 4  ;;  %v1234_v8 = vld [vmem:[#allocation2 + $0x38] sm:$0x1]  ;;  %v1237_v15 = vld [vmem:[#allocation2 + $0x3c] sm:$0xf] }
 0x108   : > { %v631_v6 = vrot.slane %v629_v58, 7  ;;  %1230 = vst [vmem:[#allocation2 + $0x28] sm:$0xf] %v1229_v3  ;;  %v640_v7 = vrot.slane %v638_v61, 7  ;;  %v649_v9 = vrot.slane %v647_v63, 7  ;;  %v655_v10 = vshrl.u32 %v519_v60, 16 }
 0x109   : > { %v658_v11 = vshll.u32 %v519_v60, 16  ;;  %v626_v12 = vsel %vm15491_vm8, %v618_v54, %v625_v4  ;;  %v664_v16 = vshrl.u32 %v520_v2, 16  ;;  %v521_v17 = vld [vmem:[%s15369_s0 + $0x2c] sm:$0xf]  ;;  %v667_v26 = vshll.u32 %v520_v2, 16  ;;  %p11999_p7 = scmp.ne.s32.totalorder %s17659_s19, 0 }
 0x10a   : > { %v634_v13 = vor.u32 %v632_v59, %v631_v6  ;;  %v636_v14 = vrot.slane %v631_v6, 4  ;;  %1231 = vst [vmem:[#allocation2 + $0x2c] sm:$0xf] %v626_v12  ;;  %v643_v18 = vor.u32 %v641_v62, %v640_v7  ;;  %v645_v19 = vrot.slane %v640_v7, 4  ;;  %v522_v27 = vld [vmem:[%s15369_s0 + $0x30] sm:$0xf] }
 0x10b   : > { %v652_v20 = vor.u32 %v650_v1, %v649_v9  ;;  %v653_v21 = vrot.slane %v649_v9, 4  ;;  %v657_v23 = vrot.slane %v655_v10, 7  ;;  %v666_v25 = vrot.slane %v664_v16, 7  ;;  %v523_v33 = vld [vmem:[%s15369_s0 + $0x34] sm:$0xf] }
 0x10c   : > { %v635_v22 = vsel %vm15491_vm8, %v627_v5, %v634_v13  ;;  %v644_v28 = vsel %vm15491_vm8, %v636_v14, %v643_v18  ;;  %v1235_v30 = vsel %vm15396_vm2, %v645_v19, %v1234_v8  ;;  %v673_v32 = vshrl.u32 %v521_v17, 16  ;;  %v524_v38 = vld [vmem:[%s15369_s0 + $0x38] sm:$0xf]  ;;  %v525_v43 = vld [vmem:[%s15369_s0 + $0x3c] sm:$0xf] }
 0x10d   : > { %1232 = vst [vmem:[#allocation2 + $0x30] sm:$0xf] %v635_v22  ;;  %v1238_v31 = vsel %vm15484_vm7, %v652_v20, %v1237_v15  ;;  %1233 = vst [vmem:[#allocation2 + $0x34] sm:$0xf] %v644_v28  ;;  %v660_v34 = vor.u32 %v658_v11, %v657_v23  ;;  %v662_v35 = vrot.slane %v657_v23, 4  ;;  %v669_v36 = vor.u32 %v667_v26, %v666_v25 }
 0x10e   : > { %1236 = vst [vmem:[#allocation2 + $0x38] sm:$0x1] %v1235_v30  ;;  %1239 = vst [vmem:[#allocation2 + $0x3c] sm:$0xf] %v1238_v31  ;;  %v671_v37 = vrot.slane %v666_v25, 4  ;;  %v675_v39 = vrot.slane %v673_v32, 7 }
 0x10f   : > { %v676_v40 = vshll.u32 %v521_v17, 16  ;;  %v682_v41 = vshrl.u32 %v522_v27, 16  ;;  %v685_v42 = vshll.u32 %v522_v27, 16  ;;  %v661_v44 = vsel %vm15491_vm8, %v653_v21, %v660_v34  ;;  %v1243_v46 = vld [vmem:[#allocation2 + $0x4c] sm:$0x1] }
 0x110   : > { %v670_v45 = vsel %vm15491_vm8, %v662_v35, %v669_v36  ;;  %v1246_v47 = vld [vmem:[#allocation2 + $0x50] sm:$0xf]  ;;  %v690_v48 = vshrl.u32 %v523_v33, 16  ;;  %v693_v49 = vshll.u32 %v523_v33, 16  ;;  %1240 = vst [vmem:[#allocation2 + $0x40] sm:$0xf] %v661_v44 }
 0x111   : > { %1241 = vst [vmem:[#allocation2 + $0x44] sm:$0xf] %v670_v45  ;;  %v678_v50 = vor.u32 %v676_v40, %v675_v39  ;;  %v680_v51 = vrot.slane %v675_v39, 4  ;;  %v684_v52 = vrot.slane %v682_v41, 7  ;;  %v699_v53 = vshrl.u32 %v524_v38, 16 }
 0x112   : > { %v526_v54 = vld [vmem:[%s15369_s0 + $0x40] sm:$0xf]  ;;  %v692_v55 = vrot.slane %v690_v48, 7  ;;  %v702_v56 = vshll.u32 %v524_v38, 16  ;;  %v708_v57 = vshrl.u32 %v525_v43, 16  ;;  %v711_v58 = vshll.u32 %v525_v43, 16 }
 0x113   : > { %v527_v59 = vld [vmem:[%s15369_s0 + $0x44] sm:$0xf]  ;;  %v679_v60 = vsel %vm15491_vm8, %v671_v37, %v678_v50  ;;  %v1244_v61 = vsel %vm15396_vm2, %v680_v51, %v1243_v46  ;;  %v687_v62 = vor.u32 %v685_v42, %v684_v52  ;;  %v688_v63 = vrot.slane %v684_v52, 4  ;;  %v528_v9 = vld [vmem:[%s15369_s0 + $0x48] sm:$0xf] }
 0x114   : > { %1242 = vst [vmem:[#allocation2 + $0x48] sm:$0xf] %v679_v60  ;;  %1245 = vst [vmem:[#allocation2 + $0x4c] sm:$0x1] %v1244_v61  ;;  %v695_v1 = vor.u32 %v693_v49, %v692_v55  ;;  %v697_v2 = vrot.slane %v692_v55, 4  ;;  %v701_v3 = vrot.slane %v699_v53, 7 }
 0x115   : > { %v710_v4 = vrot.slane %v708_v57, 7  ;;  %v1247_v5 = vsel %vm15484_vm7, %v687_v62, %v1246_v47  ;;  %v717_v6 = vshrl.u32 %v526_v54, 16  ;;  %v720_v7 = vshll.u32 %v526_v54, 16  ;;  %v1252_v14 = vld [vmem:[#allocation2 + $0x60] sm:$0x1] }
 0x116   : > { %v725_v8 = vshrl.u32 %v527_v59, 16  ;;  %1248 = vst [vmem:[#allocation2 + $0x50] sm:$0xf] %v1247_v5  ;;  %v696_v10 = vsel %vm15491_vm8, %v688_v63, %v695_v1  ;;  %v704_v11 = vor.u32 %v702_v56, %v701_v3  ;;  %v706_v12 = vrot.slane %v701_v3, 4  ;;  %v529_v19 = vld [vmem:[%s15369_s0 + $0x4c] sm:$0xf] }
 0x117   : > { %v713_v13 = vor.u32 %v711_v58, %v710_v4  ;;  %1249 = vst [vmem:[#allocation2 + $0x54] sm:$0xf] %v696_v10  ;;  %v715_v15 = vrot.slane %v710_v4, 4  ;;  %v719_v16 = vrot.slane %v717_v6, 7  ;;  %v728_v18 = vshll.u32 %v527_v59, 16 }
 0x118   : > { %v727_v17 = vrot.slane %v725_v8, 7  ;;  %v705_v20 = vsel %vm15491_vm8, %v697_v2, %v704_v11  ;;  %v1255_v22 = vld [vmem:[#allocation2 + $0x64] sm:$0xf]  ;;  %v734_v23 = vshrl.u32 %v528_v9, 16  ;;  %v737_v25 = vshll.u32 %v528_v9, 16 }
 0x119   : > { %v714_v21 = vsel %vm15491_vm8, %v706_v12, %v713_v13  ;;  %v530_v26 = vld [vmem:[%s15369_s0 + $0x50] sm:$0xf]  ;;  %1250 = vst [vmem:[#allocation2 + $0x58] sm:$0xf] %v705_v20  ;;  %v1253_v27 = vsel %vm15396_vm2, %v715_v15, %v1252_v14  ;;  %v722_v28 = vor.u32 %v720_v7, %v719_v16  ;;  %v723_v30 = vrot.slane %v719_v16, 4 }
 0x11a   : > { %1251 = vst [vmem:[#allocation2 + $0x5c] sm:$0xf] %v714_v21  ;;  %v730_v31 = vor.u32 %v728_v18, %v727_v17  ;;  %v531_v32 = vld [vmem:[%s15369_s0 + $0x54] sm:$0xf]  ;;  %1254 = vst [vmem:[#allocation2 + $0x60] sm:$0x1] %v1253_v27 }
 0x11b   : > { %v732_v33 = vrot.slane %v727_v17, 4  ;;  %v736_v34 = vrot.slane %v734_v23, 7  ;;  %v743_v35 = vshrl.u32 %v529_v19, 16  ;;  %v746_v36 = vshll.u32 %v529_v19, 16  ;;  %v532_v37 = vld [vmem:[%s15369_s0 + $0x58] sm:$0xf] }
 0x11c   : > { %v1256_v38 = vsel %vm15484_vm7, %v722_v28, %v1255_v22  ;;  %v731_v39 = vsel %vm15491_vm8, %v723_v30, %v730_v31  ;;  %v752_v40 = vshrl.u32 %v530_v26, 16  ;;  %v755_v41 = vshll.u32 %v530_v26, 16  ;;  %v533_v46 = vld [vmem:[%s15369_s0 + $0x5c] sm:$0xf]  ;;  %v1261_v47 = vld [vmem:[#allocation2 + $0x74] sm:$0x1] }
 0x11d   : > { %1257 = vst [vmem:[#allocation2 + $0x64] sm:$0xf] %v1256_v38  ;;  %1258 = vst [vmem:[#allocation2 + $0x68] sm:$0xf] %v731_v39  ;;  %v739_v42 = vor.u32 %v737_v25, %v736_v34  ;;  %v741_v43 = vrot.slane %v736_v34, 4  ;;  %v745_v44 = vrot.slane %v743_v35, 7 }
 0x11e   : > { %v760_v45 = vshrl.u32 %v531_v32, 16  ;;  %v754_v48 = vrot.slane %v752_v40, 7  ;;  %v763_v49 = vshll.u32 %v531_v32, 16  ;;  %v769_v50 = vshrl.u32 %v532_v37, 16  ;;  %v1264_v55 = vld [vmem:[#allocation2 + $0x78] sm:$0xf] }
 0x11f   : > { %v772_v51 = vshll.u32 %v532_v37, 16  ;;  %v740_v52 = vsel %vm15491_vm8, %v732_v33, %v739_v42  ;;  %v748_v53 = vor.u32 %v746_v36, %v745_v44  ;;  %v750_v54 = vrot.slane %v745_v44, 4  ;;  %v534_v61 = vld [vmem:[%s15369_s0 + $0x60] sm:$0xf]  ;;  %v535_v3 = vld [vmem:[%s15369_s0 + $0x64] sm:$0xf] }
 0x120   : > { %v762_v56 = vrot.slane %v760_v45, 7  ;;  %1259 = vst [vmem:[#allocation2 + $0x6c] sm:$0xf] %v740_v52  ;;  %v757_v57 = vor.u32 %v755_v41, %v754_v48  ;;  %v758_v58 = vrot.slane %v754_v48, 4  ;;  %v771_v59 = vrot.slane %v769_v50, 7 }
 0x121   : > { %v778_v60 = vshrl.u32 %v533_v46, 16  ;;  %v749_v62 = vsel %vm15491_vm8, %v741_v43, %v748_v53  ;;  %v1262_v63 = vsel %vm15396_vm2, %v750_v54, %v1261_v47  ;;  %v1270_v8 = vld [vmem:[#allocation2 + $0x88] sm:$0x1]  ;;  %v536_v9 = vld [vmem:[%s15369_s0 + $0x68] sm:$0xf]  ;;  %v781_v11 = vshll.u32 %v533_v46, 16 }
 0x122   : > { %v765_v1 = vor.u32 %v763_v49, %v762_v56  ;;  %v767_v2 = vrot.slane %v762_v56, 4  ;;  %1260 = vst [vmem:[#allocation2 + $0x70] sm:$0xf] %v749_v62  ;;  %1263 = vst [vmem:[#allocation2 + $0x74] sm:$0x1] %v1262_v63  ;;  %v1265_v4 = vsel %vm15484_vm7, %v757_v57, %v1264_v55  ;;  %v774_v5 = vor.u32 %v772_v51, %v771_v59 }
 0x123   : > { %v776_v6 = vrot.slane %v771_v59, 4  ;;  %v780_v7 = vrot.slane %v778_v60, 7  ;;  %1266 = vst [vmem:[#allocation2 + $0x78] sm:$0xf] %v1265_v4  ;;  %v787_v12 = vshrl.u32 %v534_v61, 16  ;;  %v790_v13 = vshll.u32 %v534_v61, 16 }
 0x124   : > { %v766_v10 = vsel %vm15491_vm8, %v758_v58, %v765_v1  ;;  %v537_v14 = vld [vmem:[%s15369_s0 + $0x6c] sm:$0xf]  ;;  %v775_v15 = vsel %vm15491_vm8, %v767_v2, %v774_v5  ;;  %v795_v17 = vshrl.u32 %v535_v3, 16  ;;  %v798_v18 = vshll.u32 %v535_v3, 16  ;;  %v538_v23 = vld [vmem:[%s15369_s0 + $0x70] sm:$0xf] }
 0x125   : > { %1267 = vst [vmem:[#allocation2 + $0x7c] sm:$0xf] %v766_v10  ;;  %v785_v16 = vrot.slane %v780_v7, 4  ;;  %1268 = vst [vmem:[#allocation2 + $0x80] sm:$0xf] %v775_v15  ;;  %v783_v19 = vor.u32 %v781_v11, %v780_v7  ;;  %v789_v20 = vrot.slane %v787_v12, 7 }
 0x126   : > { %v804_v21 = vshrl.u32 %v536_v9, 16  ;;  %v807_v22 = vshll.u32 %v536_v9, 16  ;;  %v1273_v26 = vld [vmem:[#allocation2 + $0x8c] sm:$0xf]  ;;  %v797_v27 = vrot.slane %v795_v17, 7  ;;  %v813_v28 = vshrl.u32 %v537_v14, 16 }
 0x127   : > { %v1271_v25 = vsel %vm15396_vm2, %v785_v16, %v1270_v8  ;;  %v816_v30 = vshll.u32 %v537_v14, 16  ;;  %v784_v31 = vsel %vm15491_vm8, %v776_v6, %v783_v19  ;;  %v792_v32 = vor.u32 %v790_v13, %v789_v20  ;;  %v539_v35 = vld [vmem:[%s15369_s0 + $0x74] sm:$0xf]  ;;  %v540_v40 = vld [vmem:[%s15369_s0 + $0x78] sm:$0xf] }
 0x128   : > { %1272 = vst [vmem:[#allocation2 + $0x88] sm:$0x1] %v1271_v25  ;;  %v793_v33 = vrot.slane %v789_v20, 4  ;;  %v806_v34 = vrot.slane %v804_v21, 7  ;;  %1269 = vst [vmem:[#allocation2 + $0x84] sm:$0xf] %v784_v31  ;;  %v800_v36 = vor.u32 %v798_v18, %v797_v27 }
 0x129   : > { %v802_v37 = vrot.slane %v797_v27, 4  ;;  %v815_v38 = vrot.slane %v813_v28, 7  ;;  %v822_v39 = vshrl.u32 %v538_v23, 16  ;;  %v1274_v41 = vsel %vm15484_vm7, %v792_v32, %v1273_v26  ;;  %v1279_v44 = vld [vmem:[#allocation2 + $0x9c] sm:$0x1] }
 0x12a   : > { %v809_v42 = vor.u32 %v807_v22, %v806_v34  ;;  %v811_v43 = vrot.slane %v806_v34, 4  ;;  %v825_v45 = vshll.u32 %v538_v23, 16  ;;  %1275 = vst [vmem:[#allocation2 + $0x8c] sm:$0xf] %v1274_v41  ;;  %v801_v46 = vsel %vm15491_vm8, %v793_v33, %v800_v36  ;;  %v1282_v50 = vld [vmem:[#allocation2 + $0xa0] sm:$0xf] }
 0x12b   : > { %v818_v47 = vor.u32 %v816_v30, %v815_v38  ;;  %v820_v48 = vrot.slane %v815_v38, 4  ;;  %v824_v49 = vrot.slane %v822_v39, 7  ;;  %v541_v51 = vld [vmem:[%s15369_s0 + $0x7c] sm:$0xf]  ;;  %1276 = vst [vmem:[#allocation2 + $0x90] sm:$0xf] %v801_v46 }
 0x12c   : > { %v810_v52 = vsel %vm15491_vm8, %v802_v37, %v809_v42  ;;  %v830_v53 = vshrl.u32 %v539_v35, 16  ;;  %v833_v54 = vshll.u32 %v539_v35, 16  ;;  %v839_v55 = vshrl.u32 %v540_v40, 16  ;;  %v542_v56 = vld [vmem:[%s15369_s0 + $0x80] sm:$0xf] }
 0x12d   : > { %1277 = vst [vmem:[#allocation2 + $0x94] sm:$0xf] %v810_v52  ;;  %v819_v57 = vsel %vm15491_vm8, %v811_v43, %v818_v47  ;;  %v1280_v58 = vsel %vm15396_vm2, %v820_v48, %v1279_v44  ;;  %v827_v59 = vor.u32 %v825_v45, %v824_v49  ;;  %v828_v60 = vrot.slane %v824_v49, 4  ;;  %v543_v2 = vld [vmem:[%s15369_s0 + $0x84] sm:$0xf] }
 0x12e   : > { %1278 = vst [vmem:[#allocation2 + $0x98] sm:$0xf] %v819_v57  ;;  %1281 = vst [vmem:[#allocation2 + $0x9c] sm:$0x1] %v1280_v58  ;;  %v832_v61 = vrot.slane %v830_v53, 7  ;;  %v841_v62 = vrot.slane %v839_v55, 7 }
 0x12f   : > { %v842_v63 = vshll.u32 %v540_v40, 16  ;;  %v848_v1 = vshrl.u32 %v541_v51, 16  ;;  %v1283_v3 = vsel %vm15484_vm7, %v827_v59, %v1282_v50  ;;  %v851_v4 = vshll.u32 %v541_v51, 16  ;;  %v544_v7 = vld [vmem:[%s15369_s0 + $0x88] sm:$0xf] }
 0x130   : > { %v857_v5 = vshrl.u32 %v542_v56, 16  ;;  %v860_v6 = vshll.u32 %v542_v56, 16  ;;  %1284 = vst [vmem:[#allocation2 + $0xa0] sm:$0xf] %v1283_v3  ;;  %v835_v8 = vor.u32 %v833_v54, %v832_v61  ;;  %v837_v9 = vrot.slane %v832_v61, 4 }
 0x131   : > { %v844_v10 = vor.u32 %v842_v63, %v841_v62  ;;  %v846_v11 = vrot.slane %v841_v62, 4  ;;  %v1288_v12 = vld [vmem:[#allocation2 + $0xb0] sm:$0x1]  ;;  %v850_v13 = vrot.slane %v848_v1, 7  ;;  %v865_v15 = vshrl.u32 %v543_v2, 16 }
 0x132   : > { %v859_v14 = vrot.slane %v857_v5, 7  ;;  %v868_v16 = vshll.u32 %v543_v2, 16  ;;  %v545_v17 = vld [vmem:[%s15369_s0 + $0x8c] sm:$0xf]  ;;  %v836_v18 = vsel %vm15491_vm8, %v828_v60, %v835_v8  ;;  %v874_v21 = vshrl.u32 %v544_v7, 16 }
 0x133   : > { %v845_v19 = vsel %vm15491_vm8, %v837_v9, %v844_v10  ;;  %v1291_v20 = vld [vmem:[#allocation2 + $0xb4] sm:$0xf]  ;;  %v877_v22 = vshll.u32 %v544_v7, 16  ;;  %v546_v23 = vld [vmem:[%s15369_s0 + $0x90] sm:$0xf]  ;;  %v853_v25 = vor.u32 %v851_v4, %v850_v13  ;;  %v855_v26 = vrot.slane %v850_v13, 4 }
 0x134   : > { %1285 = vst [vmem:[#allocation2 + $0xa4] sm:$0xf] %v836_v18  ;;  %1286 = vst [vmem:[#allocation2 + $0xa8] sm:$0xf] %v845_v19  ;;  %v862_v27 = vor.u32 %v860_v6, %v859_v14  ;;  %v863_v28 = vrot.slane %v859_v14, 4  ;;  %v867_v30 = vrot.slane %v865_v15, 7 }
 0x135   : > { %v876_v31 = vrot.slane %v874_v21, 7  ;;  %v883_v32 = vshrl.u32 %v545_v17, 16  ;;  %v886_v33 = vshll.u32 %v545_v17, 16  ;;  %v547_v34 = vld [vmem:[%s15369_s0 + $0x94] sm:$0xf]  ;;  %v854_v35 = vsel %vm15491_vm8, %v846_v11, %v853_v25 }
 0x136   : > { %v1289_v36 = vsel %vm15396_vm2, %v855_v26, %v1288_v12  ;;  %v1292_v37 = vsel %vm15484_vm7, %v862_v27, %v1291_v20  ;;  %v892_v38 = vshrl.u32 %v546_v23, 16  ;;  %v548_v39 = vld [vmem:[%s15369_s0 + $0x98] sm:$0xf]  ;;  %1287 = vst [vmem:[#allocation2 + $0xac] sm:$0xf] %v854_v35  ;;  %v870_v40 = vor.u32 %v868_v16, %v867_v30 }
 0x137   : > { %1290 = vst [vmem:[#allocation2 + $0xb0] sm:$0x1] %v1289_v36  ;;  %1293 = vst [vmem:[#allocation2 + $0xb4] sm:$0xf] %v1292_v37  ;;  %v872_v41 = vrot.slane %v867_v30, 4  ;;  %v879_v42 = vor.u32 %v877_v22, %v876_v31  ;;  %v881_v43 = vrot.slane %v876_v31, 4 }
 0x138   : > { %v885_v44 = vrot.slane %v883_v32, 7  ;;  %v894_v45 = vrot.slane %v892_v38, 7  ;;  %v895_v46 = vshll.u32 %v546_v23, 16  ;;  %v900_v47 = vshrl.u32 %v547_v34, 16  ;;  %v549_v48 = vld [vmem:[%s15369_s0 + $0x9c] sm:$0xf] }
 0x139   : > { %v871_v49 = vsel %vm15491_vm8, %v863_v28, %v870_v40  ;;  %v880_v50 = vsel %vm15491_vm8, %v872_v41, %v879_v42  ;;  %v1297_v51 = vld [vmem:[#allocation2 + $0xc4] sm:$0x1]  ;;  %v1300_v52 = vld [vmem:[#allocation2 + $0xc8] sm:$0xf]  ;;  %v903_v53 = vshll.u32 %v547_v34, 16  ;;  %v909_v54 = vshrl.u32 %v548_v39, 16 }
 0x13a   : > { %1294 = vst [vmem:[#allocation2 + $0xb8] sm:$0xf] %v871_v49  ;;  %1295 = vst [vmem:[#allocation2 + $0xbc] sm:$0xf] %v880_v50  ;;  %v888_v55 = vor.u32 %v886_v33, %v885_v44  ;;  %v890_v56 = vrot.slane %v885_v44, 4  ;;  %v897_v57 = vor.u32 %v895_v46, %v894_v45  ;;  %v898_v58 = vrot.slane %v894_v45, 4 }
 0x13b   : > { %v550_v59 = vld [vmem:[%s15369_s0 + $0xa0] sm:$0xf]  ;;  %v902_v60 = vrot.slane %v900_v47, 7  ;;  %v911_v61 = vrot.slane %v909_v54, 7  ;;  %v912_v62 = vshll.u32 %v548_v39, 16  ;;  %v918_v63 = vshrl.u32 %v549_v48, 16 }
 0x13c   : > { %v551_v1 = vld [vmem:[%s15369_s0 + $0xa4] sm:$0xf]  ;;  %v889_v2 = vsel %vm15491_vm8, %v881_v43, %v888_v55  ;;  %v1298_v3 = vsel %vm15396_vm2, %v890_v56, %v1297_v51  ;;  %v1301_v4 = vsel %vm15484_vm7, %v897_v57, %v1300_v52  ;;  %v921_v5 = vshll.u32 %v549_v48, 16  ;;  %v552_v6 = vld [vmem:[%s15369_s0 + $0xa8] sm:$0xf] }
 0x13d   : > { %1296 = vst [vmem:[#allocation2 + $0xc0] sm:$0xf] %v889_v2  ;;  %1299 = vst [vmem:[#allocation2 + $0xc4] sm:$0x1] %v1298_v3  ;;  %v905_v7 = vor.u32 %v903_v53, %v902_v60  ;;  %v907_v8 = vrot.slane %v902_v60, 4  ;;  %v914_v9 = vor.u32 %v912_v62, %v911_v61  ;;  %v916_v10 = vrot.slane %v911_v61, 4 }
 0x13e   : > { %1302 = vst [vmem:[#allocation2 + $0xc8] sm:$0xf] %v1301_v4  ;;  %v920_v11 = vrot.slane %v918_v63, 7  ;;  %v927_v12 = vshrl.u32 %v550_v59, 16  ;;  %v930_v13 = vshll.u32 %v550_v59, 16  ;;  %v935_v14 = vshrl.u32 %v551_v1, 16 }
 0x13f   : > { %v553_v15 = vld [vmem:[%s15369_s0 + $0xac] sm:$0xf]  ;;  %v906_v16 = vsel %vm15491_vm8, %v898_v58, %v905_v7  ;;  %v915_v17 = vsel %vm15491_vm8, %v907_v8, %v914_v9  ;;  %v1306_v18 = vld [vmem:[#allocation2 + $0xd8] sm:$0x1]  ;;  %v938_v19 = vshll.u32 %v551_v1, 16  ;;  %v944_v20 = vshrl.u32 %v552_v6, 16 }
 0x140   : > { %1303 = vst [vmem:[#allocation2 + $0xcc] sm:$0xf] %v906_v16  ;;  %1304 = vst [vmem:[#allocation2 + $0xd0] sm:$0xf] %v915_v17  ;;  %v923_v21 = vor.u32 %v921_v5, %v920_v11  ;;  %v925_v22 = vrot.slane %v920_v11, 4  ;;  %v929_v23 = vrot.slane %v927_v12, 7 }
 0x141   : > { %v1309_v25 = vld [vmem:[#allocation2 + $0xdc] sm:$0xf]  ;;  %v937_v26 = vrot.slane %v935_v14, 7  ;;  %v946_v27 = vrot.slane %v944_v20, 7  ;;  %v947_v28 = vshll.u32 %v552_v6, 16  ;;  %v953_v30 = vshrl.u32 %v553_v15, 16 }
 0x142   : > { %v956_v31 = vshll.u32 %v553_v15, 16  ;;  %v554_v32 = vld [vmem:[%s15369_s0 + $0xb0] sm:$0xf]  ;;  %v924_v33 = vsel %vm15491_vm8, %v916_v10, %v923_v21  ;;  %v1307_v34 = vsel %vm15396_vm2, %v925_v22, %v1306_v18  ;;  %v932_v35 = vor.u32 %v930_v13, %v929_v23  ;;  %v555_v37 = vld [vmem:[%s15369_s0 + $0xb4] sm:$0xf] }
 0x143   : > { %v933_v36 = vrot.slane %v929_v23, 4  ;;  %1305 = vst [vmem:[#allocation2 + $0xd4] sm:$0xf] %v924_v33  ;;  %1308 = vst [vmem:[#allocation2 + $0xd8] sm:$0x1] %v1307_v34  ;;  %v940_v38 = vor.u32 %v938_v19, %v937_v26  ;;  %v942_v39 = vrot.slane %v937_v26, 4  ;;  %v949_v40 = vor.u32 %v947_v28, %v946_v27 }
 0x144   : > { %v951_v41 = vrot.slane %v946_v27, 4  ;;  %v556_v42 = vld [vmem:[%s15369_s0 + $0xb8] sm:$0xf]  ;;  %v1310_v43 = vsel %vm15484_vm7, %v932_v35, %v1309_v25  ;;  %v955_v44 = vrot.slane %v953_v30, 7  ;;  %v962_v45 = vshrl.u32 %v554_v32, 16 }
 0x145   : > { %v965_v46 = vshll.u32 %v554_v32, 16  ;;  %v557_v47 = vld [vmem:[%s15369_s0 + $0xbc] sm:$0xf]  ;;  %1311 = vst [vmem:[#allocation2 + $0xdc] sm:$0xf] %v1310_v43  ;;  %v941_v48 = vsel %vm15491_vm8, %v933_v36, %v940_v38  ;;  %v950_v49 = vsel %vm15491_vm8, %v942_v39, %v949_v40  ;;  %v970_v52 = vshrl.u32 %v555_v37, 16 }
 0x146   : > { %v1315_v50 = vld [vmem:[#allocation2 + $0xec] sm:$0x1]  ;;  %v1318_v51 = vld [vmem:[#allocation2 + $0xf0] sm:$0xf]  ;;  %v973_v53 = vshll.u32 %v555_v37, 16  ;;  %v958_v54 = vor.u32 %v956_v31, %v955_v44  ;;  %v960_v55 = vrot.slane %v955_v44, 4 }
 0x147   : > { %1312 = vst [vmem:[#allocation2 + $0xe0] sm:$0xf] %v941_v48  ;;  %1313 = vst [vmem:[#allocation2 + $0xe4] sm:$0xf] %v950_v49  ;;  %v964_v56 = vrot.slane %v962_v45, 7  ;;  %v979_v57 = vshrl.u32 %v556_v42, 16 }
 0x148   : > { %v558_v58 = vld [vmem:[%s15369_s0 + $0xc0] sm:$0xf]  ;;  %v972_v59 = vrot.slane %v970_v52, 7  ;;  %v982_v60 = vshll.u32 %v556_v42, 16  ;;  %v988_v61 = vshrl.u32 %v557_v47, 16  ;;  %v991_v62 = vshll.u32 %v557_v47, 16 }
 0x149   : > { %v559_v63 = vld [vmem:[%s15369_s0 + $0xc4] sm:$0xf]  ;;  %v959_v1 = vsel %vm15491_vm8, %v951_v41, %v958_v54  ;;  %v1316_v2 = vsel %vm15396_vm2, %v960_v55, %v1315_v50  ;;  %v967_v3 = vor.u32 %v965_v46, %v964_v56  ;;  %v968_v4 = vrot.slane %v964_v56, 4  ;;  %v560_v13 = vld [vmem:[%s15369_s0 + $0xc8] sm:$0xf] }
 0x14a   : > { %1314 = vst [vmem:[#allocation2 + $0xe8] sm:$0xf] %v959_v1  ;;  %1317 = vst [vmem:[#allocation2 + $0xec] sm:$0x1] %v1316_v2  ;;  %v975_v5 = vor.u32 %v973_v53, %v972_v59  ;;  %v977_v6 = vrot.slane %v972_v59, 4  ;;  %v981_v7 = vrot.slane %v979_v57, 7 }
 0x14b   : > { %v990_v8 = vrot.slane %v988_v61, 7  ;;  %v1319_v9 = vsel %vm15484_vm7, %v967_v3, %v1318_v51  ;;  %v997_v10 = vshrl.u32 %v558_v58, 16  ;;  %v1000_v11 = vshll.u32 %v558_v58, 16  ;;  %v1324_v18 = vld [vmem:[#allocation2 + $0x100] sm:$0x1] }
 0x14c   : > { %v1005_v12 = vshrl.u32 %v559_v63, 16  ;;  %1320 = vst [vmem:[#allocation2 + $0xf0] sm:$0xf] %v1319_v9  ;;  %v976_v14 = vsel %vm15491_vm8, %v968_v4, %v975_v5  ;;  %v984_v15 = vor.u32 %v982_v60, %v981_v7  ;;  %v986_v16 = vrot.slane %v981_v7, 4  ;;  %v561_v23 = vld [vmem:[%s15369_s0 + $0xcc] sm:$0xf] }
 0x14d   : > { %v993_v17 = vor.u32 %v991_v62, %v990_v8  ;;  %1321 = vst [vmem:[#allocation2 + $0xf4] sm:$0xf] %v976_v14  ;;  %v995_v19 = vrot.slane %v990_v8, 4  ;;  %v999_v20 = vrot.slane %v997_v10, 7  ;;  %v1008_v22 = vshll.u32 %v559_v63, 16 }
 0x14e   : > { %v1007_v21 = vrot.slane %v1005_v12, 7  ;;  %v985_v25 = vsel %vm15491_vm8, %v977_v6, %v984_v15  ;;  %v1327_v27 = vld [vmem:[#allocation2 + $0x104] sm:$0xf]  ;;  %v1014_v28 = vshrl.u32 %v560_v13, 16  ;;  %v1017_v30 = vshll.u32 %v560_v13, 16 }
 0x14f   : > { %v994_v26 = vsel %vm15491_vm8, %v986_v16, %v993_v17  ;;  %v562_v31 = vld [vmem:[%s15369_s0 + $0xd0] sm:$0xf]  ;;  %1322 = vst [vmem:[#allocation2 + $0xf8] sm:$0xf] %v985_v25  ;;  %v1325_v32 = vsel %vm15396_vm2, %v995_v19, %v1324_v18  ;;  %v1002_v33 = vor.u32 %v1000_v11, %v999_v20  ;;  %v1003_v34 = vrot.slane %v999_v20, 4 }
 0x150   : > { %1323 = vst [vmem:[#allocation2 + $0xfc] sm:$0xf] %v994_v26  ;;  %v1010_v35 = vor.u32 %v1008_v22, %v1007_v21  ;;  %v563_v36 = vld [vmem:[%s15369_s0 + $0xd4] sm:$0xf]  ;;  %1326 = vst [vmem:[#allocation2 + $0x100] sm:$0x1] %v1325_v32 }
 0x151   : > { %v1012_v37 = vrot.slane %v1007_v21, 4  ;;  %v1016_v38 = vrot.slane %v1014_v28, 7  ;;  %v1023_v39 = vshrl.u32 %v561_v23, 16  ;;  %v1026_v40 = vshll.u32 %v561_v23, 16  ;;  %v564_v41 = vld [vmem:[%s15369_s0 + $0xd8] sm:$0xf] }
 0x152   : > { %v1328_v42 = vsel %vm15484_vm7, %v1002_v33, %v1327_v27  ;;  %v1011_v43 = vsel %vm15491_vm8, %v1003_v34, %v1010_v35  ;;  %v1032_v44 = vshrl.u32 %v562_v31, 16  ;;  %v1035_v45 = vshll.u32 %v562_v31, 16  ;;  %v565_v50 = vld [vmem:[%s15369_s0 + $0xdc] sm:$0xf]  ;;  %v1333_v51 = vld [vmem:[#allocation2 + $0x114] sm:$0x1] }
 0x153   : > { %1329 = vst [vmem:[#allocation2 + $0x104] sm:$0xf] %v1328_v42  ;;  %1330 = vst [vmem:[#allocation2 + $0x108] sm:$0xf] %v1011_v43  ;;  %v1019_v46 = vor.u32 %v1017_v30, %v1016_v38  ;;  %v1021_v47 = vrot.slane %v1016_v38, 4  ;;  %v1025_v48 = vrot.slane %v1023_v39, 7 }
 0x154   : > { %v1040_v49 = vshrl.u32 %v563_v36, 16  ;;  %v1034_v52 = vrot.slane %v1032_v44, 7  ;;  %v1043_v53 = vshll.u32 %v563_v36, 16  ;;  %v1049_v54 = vshrl.u32 %v564_v41, 16  ;;  %v1336_v59 = vld [vmem:[#allocation2 + $0x118] sm:$0xf] }
 0x155   : > { %v1052_v55 = vshll.u32 %v564_v41, 16  ;;  %v1020_v56 = vsel %vm15491_vm8, %v1012_v37, %v1019_v46  ;;  %v1028_v57 = vor.u32 %v1026_v40, %v1025_v48  ;;  %v1030_v58 = vrot.slane %v1025_v48, 4  ;;  %v566_v2 = vld [vmem:[%s15369_s0 + $0xe0] sm:$0xf]  ;;  %v567_v7 = vld [vmem:[%s15369_s0 + $0xe4] sm:$0xf] }
 0x156   : > { %v1042_v60 = vrot.slane %v1040_v49, 7  ;;  %1331 = vst [vmem:[#allocation2 + $0x10c] sm:$0xf] %v1020_v56  ;;  %v1037_v61 = vor.u32 %v1035_v45, %v1034_v52  ;;  %v1038_v62 = vrot.slane %v1034_v52, 4  ;;  %v1051_v63 = vrot.slane %v1049_v54, 7 }
 0x157   : > { %v1058_v1 = vshrl.u32 %v565_v50, 16  ;;  %v1029_v3 = vsel %vm15491_vm8, %v1021_v47, %v1028_v57  ;;  %v1334_v4 = vsel %vm15396_vm2, %v1030_v58, %v1333_v51  ;;  %v1342_v12 = vld [vmem:[#allocation2 + $0x128] sm:$0x1]  ;;  %v568_v13 = vld [vmem:[%s15369_s0 + $0xe8] sm:$0xf]  ;;  %v1061_v15 = vshll.u32 %v565_v50, 16 }
 0x158   : > { %v1045_v5 = vor.u32 %v1043_v53, %v1042_v60  ;;  %v1047_v6 = vrot.slane %v1042_v60, 4  ;;  %1332 = vst [vmem:[#allocation2 + $0x110] sm:$0xf] %v1029_v3  ;;  %1335 = vst [vmem:[#allocation2 + $0x114] sm:$0x1] %v1334_v4  ;;  %v1337_v8 = vsel %vm15484_vm7, %v1037_v61, %v1336_v59  ;;  %v1054_v9 = vor.u32 %v1052_v55, %v1051_v63 }
 0x159   : > { %v1056_v10 = vrot.slane %v1051_v63, 4  ;;  %v1060_v11 = vrot.slane %v1058_v1, 7  ;;  %1338 = vst [vmem:[#allocation2 + $0x118] sm:$0xf] %v1337_v8  ;;  %v1067_v16 = vshrl.u32 %v566_v2, 16  ;;  %v1070_v17 = vshll.u32 %v566_v2, 16 }
 0x15a   : > { %v1046_v14 = vsel %vm15491_vm8, %v1038_v62, %v1045_v5  ;;  %v569_v18 = vld [vmem:[%s15369_s0 + $0xec] sm:$0xf]  ;;  %v1055_v19 = vsel %vm15491_vm8, %v1047_v6, %v1054_v9  ;;  %v1075_v21 = vshrl.u32 %v567_v7, 16  ;;  %v1078_v22 = vshll.u32 %v567_v7, 16  ;;  %v570_v28 = vld [vmem:[%s15369_s0 + $0xf0] sm:$0xf] }
 0x15b   : > { %1339 = vst [vmem:[#allocation2 + $0x11c] sm:$0xf] %v1046_v14  ;;  %v1065_v20 = vrot.slane %v1060_v11, 4  ;;  %1340 = vst [vmem:[#allocation2 + $0x120] sm:$0xf] %v1055_v19  ;;  %v1063_v23 = vor.u32 %v1061_v15, %v1060_v11  ;;  %v1069_v25 = vrot.slane %v1067_v16, 7 }
 0x15c   : > { %v1084_v26 = vshrl.u32 %v568_v13, 16  ;;  %v1087_v27 = vshll.u32 %v568_v13, 16  ;;  %v1345_v31 = vld [vmem:[#allocation2 + $0x12c] sm:$0xf]  ;;  %v1077_v32 = vrot.slane %v1075_v21, 7  ;;  %v1093_v33 = vshrl.u32 %v569_v18, 16 }
 0x15d   : > { %v1343_v30 = vsel %vm15396_vm2, %v1065_v20, %v1342_v12  ;;  %v1096_v34 = vshll.u32 %v569_v18, 16  ;;  %v1064_v35 = vsel %vm15491_vm8, %v1056_v10, %v1063_v23  ;;  %v1072_v36 = vor.u32 %v1070_v17, %v1069_v25  ;;  %v571_v39 = vld [vmem:[%s15369_s0 + $0xf4] sm:$0xf]  ;;  %v572_v44 = vld [vmem:[%s15369_s0 + $0xf8] sm:$0xf] }
 0x15e   : > { %1344 = vst [vmem:[#allocation2 + $0x128] sm:$0x1] %v1343_v30  ;;  %v1073_v37 = vrot.slane %v1069_v25, 4  ;;  %v1086_v38 = vrot.slane %v1084_v26, 7  ;;  %1341 = vst [vmem:[#allocation2 + $0x124] sm:$0xf] %v1064_v35  ;;  %v1080_v40 = vor.u32 %v1078_v22, %v1077_v32 }
 0x15f   : > { %v1082_v41 = vrot.slane %v1077_v32, 4  ;;  %v1095_v42 = vrot.slane %v1093_v33, 7  ;;  %v1102_v43 = vshrl.u32 %v570_v28, 16  ;;  %v1346_v45 = vsel %vm15484_vm7, %v1072_v36, %v1345_v31  ;;  %v1351_v48 = vld [vmem:[#allocation2 + $0x13c] sm:$0x1] }
 0x160   : > { %v1089_v46 = vor.u32 %v1087_v27, %v1086_v38  ;;  %v1091_v47 = vrot.slane %v1086_v38, 4  ;;  %v1105_v49 = vshll.u32 %v570_v28, 16  ;;  %1347 = vst [vmem:[#allocation2 + $0x12c] sm:$0xf] %v1346_v45  ;;  %v1081_v50 = vsel %vm15491_vm8, %v1073_v37, %v1080_v40  ;;  %v573_v54 = vld [vmem:[%s15369_s0 + $0xfc] sm:$0xf] }
 0x161   : > { %v1098_v51 = vor.u32 %v1096_v34, %v1095_v42  ;;  %v1100_v52 = vrot.slane %v1095_v42, 4  ;;  %v1104_v53 = vrot.slane %v1102_v43, 7  ;;  %1348 = vst [vmem:[#allocation2 + $0x130] sm:$0xf] %v1081_v50  ;;  %v1354_v56 = vld [vmem:[#allocation2 + $0x140] sm:$0xf] }
 0x162   : > { %v1090_v55 = vsel %vm15491_vm8, %v1082_v41, %v1089_v46  ;;  %v1110_v57 = vshrl.u32 %v571_v39, 16  ;;  %v1113_v58 = vshll.u32 %v571_v39, 16  ;;  %v1119_v59 = vshrl.u32 %v572_v44, 16  ;;  %v1360_v14 = vld [vmem:[#allocation2 + $0x150] sm:$0x1] }
 0x163   : > { %1349 = vst [vmem:[#allocation2 + $0x134] sm:$0xf] %v1090_v55  ;;  %v1099_v60 = vsel %vm15491_vm8, %v1091_v47, %v1098_v51  ;;  %v1352_v61 = vsel %vm15396_vm2, %v1100_v52, %v1351_v48  ;;  %v1107_v62 = vor.u32 %v1105_v49, %v1104_v53  ;;  %v1108_v63 = vrot.slane %v1104_v53, 4  ;;  %v1367_v19 = vld [vmem:[#allocation2] sm:$0xf] (!%p11999_p7) }
 0x164   : > { %1350 = vst [vmem:[#allocation2 + $0x138] sm:$0xf] %v1099_v60  ;;  %1353 = vst [vmem:[#allocation2 + $0x13c] sm:$0x1] %v1352_v61  ;;  %v1112_v1 = vrot.slane %v1110_v57, 7  ;;  %v1121_v2 = vrot.slane %v1119_v59, 7 }
 0x165   : > { %v1122_v3 = vshll.u32 %v572_v44, 16  ;;  %v1128_v4 = vshrl.u32 %v573_v54, 16  ;;  %v1355_v5 = vsel %vm15484_vm7, %v1107_v62, %v1354_v56  ;;  %v1131_v6 = vshll.u32 %v573_v54, 16  ;;  %v1373_v20 = vld [vmem:[#allocation2 + $0x10] sm:$0x1] (!%p11999_p7) }
 0x166   : > { %1356 = vst [vmem:[#allocation2 + $0x140] sm:$0xf] %v1355_v5  ;;  %v1115_v7 = vor.u32 %v1113_v58, %v1112_v1  ;;  %v1117_v8 = vrot.slane %v1112_v1, 4  ;;  %v1126_v10 = vrot.slane %v1121_v2, 4  ;;  %1366 = sbr.rel (%p11999_p7) target bundleno = 365 (0x16d), region = 60  ;;  %v1368_v21 = vsel (!%p11999_p7), %vm15484_vm7, 0, %v1367_v19 }
 0x167   : > { %v1124_v9 = vor.u32 %v1122_v3, %v1121_v2  ;;  %v1130_v11 = vrot.slane %v1128_v4, 7  ;;  %v14971_v22 = vmov (!%p11999_p7), 0   ;;  %v1374_v23 = vsel (!%p11999_p7), %vm15396_vm2, 0, %v1373_v20  ;;  %1369 = vst [vmem:[#allocation2] sm:$0xf] (!%p11999_p7), %v1368_v21 }
 0x168   : > { %v1116_v12 = vsel %vm15491_vm8, %v1108_v63, %v1115_v7  ;;  %1370 = vst [vmem:[#allocation2 + $0x4] sm:$0xf] (!%p11999_p7), %v14971_v22  ;;  %1371 = vst [vmem:[#allocation2 + $0x8] sm:$0xf] (!%p11999_p7), %v14971_v22 }
 0x169   : > { %v1125_v13 = vsel %vm15491_vm8, %v1117_v8, %v1124_v9  ;;  %1357 = vst [vmem:[#allocation2 + $0x144] sm:$0xf] %v1116_v12  ;;  %v1133_v15 = vor.u32 %v1131_v6, %v1130_v11  ;;  %v1135_v16 = vrot.slane %v1130_v11, 4  ;;  %1372 = vst [vmem:[#allocation2 + $0xc] sm:$0xf] (!%p11999_p7), %v14971_v22 }
 0x16a   : > { %1358 = vst [vmem:[#allocation2 + $0x148] sm:$0xf] %v1125_v13  ;;  %1375 = vst [vmem:[#allocation2 + $0x10] sm:$0x1] (!%p11999_p7), %v1374_v23 }
 0x16b   : > { %v1134_v17 = vsel %vm15491_vm8, %v1126_v10, %v1133_v15  ;;  %v1361_v18 = vsel %vm15396_vm2, %v1135_v16, %v1360_v14 }
 0x16c   : > { %1359 = vst [vmem:[#allocation2 + $0x14c] sm:$0xf] %v1134_v17  ;;  %1362 = vst [vmem:[#allocation2 + $0x150] sm:$0x1] %v1361_v18 }
 0x16d PF: > { %s17660_s8 = sld [smem:[#allocation23_spill]] }
 0x173   : > { %p12000_p1 = scmp.le.s32.totalorder %s17660_s8, 0 }
 0x174   : > { %v1380_v25 = vld [vmem:[%s15377_s15] sm:$0xf] (!%p12000_p1)  ;;  %v1381_v26 = vld [vmem:[%s15377_s15 + $0x4] sm:$0xf] (!%p12000_p1)  ;;  %v1382_v32 = vld [vmem:[%s15377_s15 + $0x8] sm:$0xf] (!%p12000_p1) }
 0x175   : > { %1379 = sbr.rel (%p12000_p1) target bundleno = 384 (0x180), region = 64  ;;  %v1385_v27 = vshrl.u32 (!%p12000_p1), %v1380_v25, 16  ;;  %v1388_v28 = vshll.u32 (!%p12000_p1), %v1380_v25, 16  ;;  %v1393_v30 = vshrl.u32 (!%p12000_p1), %v1381_v26, 16  ;;  %v1396_v31 = vshll.u32 (!%p12000_p1), %v1381_v26, 16 }
 0x176   : > { %v1402_v33 = vshrl.u32 (!%p12000_p1), %v1382_v32, 16  ;;  %v1405_v34 = vshll.u32 (!%p12000_p1), %v1382_v32, 16  ;;  %v1383_v35 = vld [vmem:[%s15377_s15 + $0xc] sm:$0xf] (!%p12000_p1)  ;;  %v1424_v39 = vld [vmem:[#allocation2] sm:$0xf] (!%p12000_p1) }
 0x177   : > { %v1387_v36 = vrot.slane (!%p12000_p1), %v1385_v27, 7  ;;  %v1395_v37 = vrot.slane (!%p12000_p1), %v1393_v30, 7  ;;  %v1411_v38 = vshrl.u32 (!%p12000_p1), %v1383_v35, 16  ;;  %v1414_v41 = vshll.u32 (!%p12000_p1), %v1383_v35, 16  ;;  %v1430_v51 = vld [vmem:[#allocation2 + $0x10] sm:$0x1] (!%p12000_p1) }
 0x178   : > { %v1404_v40 = vrot.slane (!%p12000_p1), %v1402_v33, 7 }
 0x179   : > { %v1390_v42 = vor.u32 (!%p12000_p1), %v1388_v28, %v1387_v36  ;;  %v1391_v43 = vrot.slane (!%p12000_p1), %v1387_v36, 4  ;;  %v1398_v44 = vor.u32 (!%p12000_p1), %v1396_v31, %v1395_v37  ;;  %v1400_v45 = vrot.slane (!%p12000_p1), %v1395_v37, 4 }
 0x17a   : > { %v1407_v46 = vor.u32 (!%p12000_p1), %v1405_v34, %v1404_v40  ;;  %v1409_v47 = vrot.slane (!%p12000_p1), %v1404_v40, 4  ;;  %v1413_v48 = vrot.slane (!%p12000_p1), %v1411_v38, 7 }
 0x17b   : > { %v1425_v49 = vsel (!%p12000_p1), %vm15484_vm7, %v1390_v42, %v1424_v39  ;;  %v1399_v50 = vsel (!%p12000_p1), %vm15491_vm8, %v1391_v43, %v1398_v44 }
 0x17c   : > { %1426 = vst [vmem:[#allocation2] sm:$0xf] %v1425_v49  ;;  %1427 = vst [vmem:[#allocation2 + $0x4] sm:$0xf] %v1399_v50  ;;  %v1408_v52 = vsel %vm15491_vm8, %v1400_v45, %v1407_v46  ;;  %v1416_v53 = vor.u32 %v1414_v41, %v1413_v48  ;;  %v1418_v54 = vrot.slane %v1413_v48, 4 }
 0x17d   : > { %1428 = vst [vmem:[#allocation2 + $0x8] sm:$0xf] %v1408_v52 }
 0x17e   : > { %v1417_v55 = vsel %vm15491_vm8, %v1409_v47, %v1416_v53  ;;  %v1431_v56 = vsel %vm15396_vm2, %v1418_v54, %v1430_v51 }
 0x17f   : > { %1429 = vst [vmem:[#allocation2 + $0xc] sm:$0xf] %v1417_v55  ;;  %1432 = vst [vmem:[#allocation2 + $0x10] sm:$0x1] %v1431_v56 }
 0x180 PF: > { %s17661_s26 = sld [smem:[#allocation23_spill]] }
 0x186   : > { %p12001_p13 = scmp.ne.s32.totalorder %s17661_s26, 1 }
 0x187   : > { %v1438_v57 = vld [vmem:[#allocation2 + $0x154] sm:$0xf] (!%p12001_p13)  ;;  %v1444_v58 = vld [vmem:[#allocation2 + $0x164] sm:$0x1] (!%p12001_p13)  ;;  %v14972_v60 = vmov (!%p12001_p13), 0  }
 0x188   : > { %1436 = sbr.rel (%p12001_p13) target bundleno = 399 (0x18f), region = 68  ;;  %v1439_v59 = vsel (!%p12001_p13), %vm15484_vm7, 0, %v1438_v57  ;;  %1441 = vst [vmem:[#allocation2 + $0x158] sm:$0xf] (!%p12001_p13), %v14972_v60  ;;  %1442 = vst [vmem:[#allocation2 + $0x15c] sm:$0xf] (!%p12001_p13), %v14972_v60 }
 0x189   : > { %1443 = vst [vmem:[#allocation2 + $0x160] sm:$0xf] (!%p12001_p13), %v14972_v60  ;;  %v1445_v61 = vsel (!%p12001_p13), %vm15396_vm2, 0, %v1444_v58  ;;  %1440 = vst [vmem:[#allocation2 + $0x154] sm:$0xf] (!%p12001_p13), %v1439_v59 }
 0x18a   : > { %1446 = vst [vmem:[#allocation2 + $0x164] sm:$0x1] (!%p12001_p13), %v1445_v61 }
 0x18f PF: > { %s17662_s28 = sld [smem:[#allocation23_spill]] }
 0x195   : > { %p12002_p12 = scmp.ge.s32.totalorder %s17662_s28, 1 }
 0x196   : > { %v1451_v62 = vld [vmem:[%s15384_s10] sm:$0xf] (!%p12002_p12)  ;;  %v1452_v63 = vld [vmem:[%s15384_s10 + $0x4] sm:$0xf] (!%p12002_p12)  ;;  %v1453_v5 = vld [vmem:[%s15384_s10 + $0x8] sm:$0xf] (!%p12002_p12) }
 0x197   : > { %1450 = sbr.rel (%p12002_p12) target bundleno = 418 (0x1a2), region = 72  ;;  %v1456_v1 = vshrl.u32 (!%p12002_p12), %v1451_v62, 16  ;;  %v1459_v2 = vshll.u32 (!%p12002_p12), %v1451_v62, 16  ;;  %v1464_v3 = vshrl.u32 (!%p12002_p12), %v1452_v63, 16  ;;  %v1467_v4 = vshll.u32 (!%p12002_p12), %v1452_v63, 16 }
 0x198   : > { %v1473_v6 = vshrl.u32 (!%p12002_p12), %v1453_v5, 16  ;;  %v1476_v7 = vshll.u32 (!%p12002_p12), %v1453_v5, 16  ;;  %v1454_v8 = vld [vmem:[%s15384_s10 + $0xc] sm:$0xf] (!%p12002_p12) }
 0x199   : > { %v1458_v9 = vrot.slane (!%p12002_p12), %v1456_v1, 7  ;;  %v1466_v10 = vrot.slane (!%p12002_p12), %v1464_v3, 7  ;;  %v1482_v11 = vshrl.u32 (!%p12002_p12), %v1454_v8, 16  ;;  %v1496_v12 = vld [vmem:[#allocation2 + $0x154] sm:$0xf] (!%p12002_p12)  ;;  %v1485_v14 = vshll.u32 (!%p12002_p12), %v1454_v8, 16 }
 0x19a   : > { %v1475_v13 = vrot.slane (!%p12002_p12), %v1473_v6, 7  ;;  %v1502_v25 = vld [vmem:[#allocation2 + $0x164] sm:$0x1] (!%p12002_p12) }
 0x19b   : > { %v1461_v15 = vor.u32 (!%p12002_p12), %v1459_v2, %v1458_v9  ;;  %v1462_v16 = vrot.slane (!%p12002_p12), %v1458_v9, 4  ;;  %v1469_v17 = vor.u32 (!%p12002_p12), %v1467_v4, %v1466_v10  ;;  %v1471_v18 = vrot.slane (!%p12002_p12), %v1466_v10, 4 }
 0x19c   : > { %v1478_v19 = vor.u32 (!%p12002_p12), %v1476_v7, %v1475_v13  ;;  %v1480_v20 = vrot.slane (!%p12002_p12), %v1475_v13, 4  ;;  %v1484_v21 = vrot.slane (!%p12002_p12), %v1482_v11, 7 }
 0x19d   : > { %v1497_v22 = vsel (!%p12002_p12), %vm15484_vm7, %v1461_v15, %v1496_v12  ;;  %v1470_v23 = vsel (!%p12002_p12), %vm15491_vm8, %v1462_v16, %v1469_v17 }
 0x19e   : > { %1498 = vst [vmem:[#allocation2 + $0x154] sm:$0xf] %v1497_v22  ;;  %1499 = vst [vmem:[#allocation2 + $0x158] sm:$0xf] %v1470_v23  ;;  %v1479_v26 = vsel %vm15491_vm8, %v1471_v18, %v1478_v19  ;;  %v1487_v27 = vor.u32 %v1485_v14, %v1484_v21  ;;  %v1489_v28 = vrot.slane %v1484_v21, 4 }
 0x19f   : > { %1500 = vst [vmem:[#allocation2 + $0x15c] sm:$0xf] %v1479_v26 }
 0x1a0   : > { %v1488_v30 = vsel %vm15491_vm8, %v1480_v20, %v1487_v27  ;;  %v1503_v31 = vsel %vm15396_vm2, %v1489_v28, %v1502_v25 }
 0x1a1   : > { %1501 = vst [vmem:[#allocation2 + $0x160] sm:$0xf] %v1488_v30  ;;  %1504 = vst [vmem:[#allocation2 + $0x164] sm:$0x1] %v1503_v31 }
 0x1a2 PF: > { %v14507_v24 = vld [vmem:[#allocation10] sm:$0xff]   ;;  %v14509_v33 = vld [vmem:[#allocation10 + $0x8] sm:$0xff]   ;;  %v14511_v35 = vld [vmem:[#allocation10 + $0x10] sm:$0xff]   ;;  %vm2258_vm9 = vsmask.f32 3328  ;;  %vm3798_vm12 = vcmask 1042432  }
 0x1a3   : > { %v14508_v32 = vld [vmem:[#allocation10 + $0x100] sm:$0xff]   ;;  %13106 = vmatprep.subr.bf16.mxu1 %v14507_v24  ;;  %v14510_v34 = vld [vmem:[#allocation10 + $0x108] sm:$0xff]   ;;  %v14512_v36 = vld [vmem:[#allocation10 + $0x110] sm:$0xff]   ;;  %vm2259_vm10 = vsmask.f32 7440  ;;  %vm3799_vm13 = vcmask 1046532  }
 0x1a4   : > { %13426 = vmatprep.subr.bf16.mxu0 %v14508_v32  ;;  %13107 = vmatpush3.bf16.msra.mxu1 %v14507_v24  ;;  %v14513_v0 = vld [vmem:[#allocation10 + $0x18] sm:$0xff]   ;;  %v14515_v37 = vld [vmem:[#allocation10 + $0x20] sm:$0xff]   ;;  %v14517_v39 = vld [vmem:[#allocation10 + $0x28] sm:$0xff]   ;;  %s17667_s3 = sld [smem:[#allocation38_spill]]  ;;  %s17668_s20 = sld [smem:[#allocation23_spill]] }
 0x1a5   : > { %13427 = vmatpush3.bf16.msra.mxu0 %v14508_v32  ;;  %13108 = vmatprep.subr.bf16.mxu1 %v14509_v33  ;;  %v14514_v29 = vld [vmem:[#allocation10 + $0x118] sm:$0xff]   ;;  %v14516_v38 = vld [vmem:[#allocation10 + $0x120] sm:$0xff]   ;;  %v14518_v41 = vld [vmem:[#allocation10 + $0x128] sm:$0xff]   ;;  %s17669_s30 = sld [smem:[#allocation24_spill]]  ;;  %s11817_s2 = sshll.u32 %s15716_s29, 4  ;;  %s17479_s2 = int_to_ptr.vmem [resolvable:$true] %s11817_s2 }
 0x1a6   : > { %13428 = vmatprep.subr.bf16.mxu0 %v14510_v34  ;;  %v14523_v40 = vld [vmem:[#allocation2] sm:$0xff]   ;;  %v5483_v42 = vld [vmem:[#allocation2 + $0x14] sm:$0xf]  ;;  %v14519_v43 = vld [vmem:[#allocation10 + $0x30] sm:$0xff]   ;;  %s17670_s27 = sld [smem:[#allocation39_spill]]  ;;  %s11801_s4 = scalar_lea.sflag [#allocation6], %s15363_s13 }
 0x1a7   : > { %13122 = vmatprep.mubr.bf16.mxu1 %v14523_v40  ;;  %v5484_v44 = vld [vmem:[#allocation2 + $0x18] sm:$0xf]  ;;  %v5485_v45 = vld [vmem:[#allocation2 + $0x1c] sm:$0xf]  ;;  %v5564_v46 = vshrl.u32 %v5483_v42, 16  ;;  %v5567_v47 = vshll.u32 %v5483_v42, 16  ;;  %vm15759_vm11 = vmor %vm2258_vm9, %vm2259_vm10 }
 0x1a8   : > { %13109 = vmatpush3.bf16.msra.mxu1 %v14509_v33  ;;  %v14520_v48 = vld [vmem:[#allocation10 + $0x130] sm:$0xff]   ;;  %v5573_v49 = vshll.u32 %v5484_v44, 16  ;;  %v5577_v50 = vshrl.u32 %v5484_v44, 16  ;;  %v5583_v51 = vshll.u32 %v5485_v45, 16  ;;  %v5587_v52 = vshrl.u32 %v5485_v45, 16  ;;  %v14521_v4 = vld [vmem:[#allocation10 + $0x38] sm:$0xff]   ;;  %vm15823_vm14 = vmor %vm3798_vm12, %vm3799_vm13 }
 0x1a9   : > { %13429 = vmatpush3.bf16.msra.mxu0 %v14510_v34  ;;  %13110 = vmatprep.subr.bf16.mxu1 %v14511_v35  ;;  %v5566_v53 = vrot.slane %v5564_v46, 4  ;;  %v5569_v54 = vrot.slane %v5567_v47, 5  ;;  %v5486_v60 = vld [vmem:[#allocation2 + $0x20] sm:$0xf]  ;;  %v5487_v61 = vld [vmem:[#allocation2 + $0x24] sm:$0x1] }
 0x1aa   : > { %13430 = vmatprep.subr.bf16.mxu0 %v14512_v36  ;;  %v5575_v55 = vrot.slane %v5573_v49, 5  ;;  %v5579_v56 = vrot.slane %v5577_v50, 4  ;;  %v5585_v57 = vrot.slane %v5583_v51, 5  ;;  %v5589_v58 = vrot.slane %v5587_v52, 4  ;;  %v14522_v5 = vld [vmem:[#allocation10 + $0x138] sm:$0xff]   ;;  %v14525_v17 = vld [vmem:[#allocation10 + $0x40] sm:$0xff]  }
 0x1ab   : > { %v5570_v59 = vor.u32 %v5569_v54, %v5566_v53  ;;  %v5593_v2 = vshll.u32 %v5486_v60, 16  ;;  %v5597_v3 = vshrl.u32 %v5486_v60, 16  ;;  %v5603_v7 = vshll.u32 %v5487_v61, 16  ;;  %v5488_v14 = vld [vmem:[#allocation2 + $0x28] sm:$0xf]  ;;  %v14527_v34 = vld [vmem:[#allocation2 + $0x14] sm:$0xff]  }
 0x1ac   : > { %13111 = vmatpush3.bf16.msra.mxu1 %v14511_v35  ;;  %v5580_v63 = vor.u32 %v5579_v56, %v5575_v55  ;;  %v5590_v1 = vor.u32 %v5589_v58, %v5585_v57  ;;  %v5489_v15 = vld [vmem:[#allocation2 + $0x2c] sm:$0xf]  ;;  %v5490_v20 = vld [vmem:[#allocation2 + $0x30] sm:$0xf]  ;;  %v5608_v21 = vshrl.u32 %v5488_v14, 16  ;;  %v5611_v26 = vshll.u32 %v5488_v14, 16  ;;  %s17671_s15 = smov %s17670_s27 }
 0x1ad   : > { %13431 = vmatpush3.bf16.msra.mxu0 %v14512_v36  ;;  %13112 = vmatprep.subr.bf16.mxu1 %v14513_v0  ;;  %v5571_v6 = vrot.slane %v5570_v59, 4  ;;  %v5595_v10 = vrot.slane %v5593_v2, 5  ;;  %v5599_v11 = vrot.slane %v5597_v3, 4  ;;  %v5605_v13 = vrot.slane %v5603_v7, 5  ;;  %v14524_v23 = vld [vmem:[#allocation2 + $0x8] sm:$0xff]   ;;  %v14529_v42 = vld [vmem:[#allocation10 + $0x148] sm:$0xff]  }
 0x1ae   : > { %13432 = vmatprep.subr.bf16.mxu0 %v14514_v29  ;;  %v5581_v8 = vrot.slane %v5580_v63, 4  ;;  %v5591_v9 = vrot.slane %v5590_v1, 4  ;;  %v14526_v25 = vld [vmem:[#allocation10 + $0x140] sm:$0xff]   ;;  %v5617_v27 = vshll.u32 %v5489_v15, 16  ;;  %v5621_v28 = vshrl.u32 %v5489_v15, 16  ;;  %v14532_v47 = vld [vmem:[#allocation10 + $0x48] sm:$0xff]  }
 0x1af   : > { %v5576_v12 = vsel %vm15759_vm11, %v5571_v6, %v5575_v55  ;;  %v5600_v19 = vor.u32 %v5599_v11, %v5595_v10  ;;  %v5610_v31 = vrot.slane %v5608_v21, 4  ;;  %v5627_v24 = vshll.u32 %v5490_v20, 16  ;;  %v5491_v33 = vld [vmem:[#allocation2 + $0x34] sm:$0xf]  ;;  %v5493_v51 = vld [vmem:[#allocation2 + $0x3c] sm:$0xf] }
 0x1b0   : > { %13113 = vmatpush3.bf16.msra.mxu1 %v14513_v0  ;;  %v5586_v16 = vsel %vm15759_vm11, %v5581_v8, %v5585_v57  ;;  %v5596_v18 = vsel %vm15759_vm11, %v5591_v9, %v5595_v10  ;;  %v5631_v32 = vshrl.u32 %v5490_v20, 16  ;;  %v5613_v35 = vrot.slane %v5611_v26, 5  ;;  %v5494_v54 = vld [vmem:[#allocation2 + $0x40] sm:$0xf]  ;;  %v5495_v55 = vld [vmem:[#allocation2 + $0x44] sm:$0xf] }
 0x1b1   : > { %13433 = vmatpush3.bf16.msra.mxu0 %v14514_v29  ;;  %13114 = vmatprep.subr.bf16.mxu1 %v14515_v37  ;;  %v12179_v22 = vcombine.low %v5576_v12, %v5586_v16  ;;  %v5601_v30 = vrot.slane %v5600_v19, 4  ;;  %v5619_v36 = vrot.slane %v5617_v27, 5  ;;  %v5623_v0 = vrot.slane %v5621_v28, 4  ;;  %v5492_v29 = vld [vmem:[#allocation2 + $0x38] sm:$0x1]  ;;  %v14528_v1 = vld [vmem:[#allocation2 + $0x1c] sm:$0xff]  }
 0x1b2   : > { %13434 = vmatprep.subr.bf16.mxu0 %v14516_v38  ;;  %v5633_v40 = vrot.slane %v5631_v32, 4  ;;  %v5614_v44 = vor.u32 %v5613_v35, %v5610_v31  ;;  %v5647_v50 = vshll.u32 %v5492_v29, 16  ;;  %v5652_v59 = vshrl.u32 %v5493_v51, 16  ;;  %v14533_v60 = vld [vmem:[#allocation10 + $0x150] sm:$0xff]   ;;  %v5496_v8 = vld [vmem:[#allocation2 + $0x48] sm:$0xf] }
 0x1b3   : > { %13442 = vmatprep.mubr.bf16.mxu0 %v12179_v22  ;;  %v5624_v45 = vor.u32 %v5623_v0, %v5619_v36  ;;  %v5655_v2 = vshll.u32 %v5493_v51, 16  ;;  %v5661_v3 = vshll.u32 %v5494_v54, 16  ;;  %v5665_v11 = vshrl.u32 %v5494_v54, 16  ;;  %v14530_v15 = vld [vmem:[#allocation2 + $0x28] sm:$0xff]   ;;  %v5498_v31 = vld [vmem:[#allocation2 + $0x50] sm:$0xf] }
 0x1b4   : > { %13115 = vmatpush3.bf16.msra.mxu1 %v14515_v37  ;;  %v5637_v37 = vshll.u32 %v5491_v33, 16  ;;  %v5615_v52 = vrot.slane %v5614_v44, 4  ;;  %v5649_v58 = vrot.slane %v5647_v50, 5  ;;  %v5654_v7 = vrot.slane %v5652_v59, 4  ;;  %v5500_v35 = vld [vmem:[#allocation2 + $0x58] sm:$0xf] }
 0x1b5   : > { %13435 = vmatpush3.bf16.msra.mxu0 %v14516_v38  ;;  %13116 = vmatprep.subr.bf16.mxu1 %v14517_v39  ;;  %v5606_v38 = vsel %vm15759_vm11, %v5601_v30, %v5605_v13  ;;  %v5625_v53 = vrot.slane %v5624_v45, 4  ;;  %v5657_v9 = vrot.slane %v5655_v2, 5  ;;  %v5663_v10 = vrot.slane %v5661_v3, 5  ;;  %v5497_v13 = vld [vmem:[#allocation2 + $0x4c] sm:$0x1]  ;;  %v14534_v54 = vld [vmem:[#allocation2 + $0x3c] sm:$0xff]  }
 0x1b6   : > { %13436 = vmatprep.subr.bf16.mxu0 %v14518_v41  ;;  %v5639_v46 = vrot.slane %v5637_v37, 5  ;;  %v5620_v61 = vsel %vm15759_vm11, %v5615_v52, %v5619_v36  ;;  %v5671_v12 = vshll.u32 %v5495_v55, 16  ;;  %v5675_v16 = vshrl.u32 %v5495_v55, 16  ;;  %v5501_v44 = vld [vmem:[#allocation2 + $0x5c] sm:$0xf]  ;;  %s12554_s9 = sshll.u32 %s17668_s20, 6 }
 0x1b7   : > { %v5658_v20 = vor.u32 %v5657_v9, %v5654_v7  ;;  %v5667_v21 = vrot.slane %v5665_v11, 4  ;;  %v5691_v27 = vshll.u32 %v5497_v13, 16  ;;  %v5696_v36 = vshrl.u32 %v5498_v31, 16  ;;  %v5502_v50 = vld [vmem:[#allocation2 + $0x60] sm:$0x1]  ;;  %v14539_v3 = vld [vmem:[#allocation10 + $0x50] sm:$0xff]  }
 0x1b8   : > { %13117 = vmatpush3.bf16.msra.mxu1 %v14517_v39  ;;  %v5629_v39 = vrot.slane %v5627_v24, 5  ;;  %v5673_v22 = vrot.slane %v5671_v12, 5  ;;  %v5499_v24 = vld [vmem:[#allocation2 + $0x54] sm:$0xf]  ;;  %v5699_v37 = vshll.u32 %v5498_v31, 16  ;;  %v5719_v59 = vshrl.u32 %v5500_v35, 16 }
 0x1b9   : > { %13437 = vmatpush3.bf16.msra.mxu0 %v14518_v41  ;;  %13118 = vmatprep.subr.bf16.mxu1 %v14519_v43  ;;  %v5641_v41 = vshrl.u32 %v5491_v33, 16  ;;  %v5659_v28 = vrot.slane %v5658_v20, 4  ;;  %v5668_v30 = vor.u32 %v5667_v21, %v5663_v10  ;;  %v5503_v2 = vld [vmem:[#allocation2 + $0x64] sm:$0xf]  ;;  %v5505_v7 = vld [vmem:[#allocation2 + $0x6c] sm:$0xf] }
 0x1ba   : > { %13438 = vmatprep.subr.bf16.mxu0 %v14520_v48  ;;  %v5630_v63 = vsel %vm15759_vm11, %v5625_v53, %v5629_v39  ;;  %v14535_v13 = vld [vmem:[#allocation2 + $0x44] sm:$0xff]   ;;  %s12479_s1 = sshll.u32 %s17669_s30, 7  ;;  %s14805_s23 = scalar_lea.vmem %s17479_s2, 4096 }
 0x1bb   : > { %v5643_v49 = vrot.slane %v5641_v41, 4  ;;  %v5664_v0 = vsel %vm15759_vm11, %v5659_v28, %v5663_v10  ;;  %v5669_v29 = vrot.slane %v5668_v30, 4  ;;  %v5507_v28 = vld [vmem:[#allocation2 + $0x74] sm:$0x1]  ;;  %v14540_v30 = vld [vmem:[#allocation10 + $0x160] sm:$0xff]   ;;  %s11814_s11 = sadd.s32 %s12554_s9, %s12479_s1  ;;  %p14806_p8 = scmp.ne.s32.totalorder %s17479_s2, %s14805_s23 }
 0x1bc   : > { %13119 = vmatpush3.bf16.msra.mxu1 %v14519_v43  ;;  %v12180_v43 = vcombine.low %v5596_v18, %v5606_v38  ;;  %v5685_v18 = vshrl.u32 %v5496_v8, 16  ;;  %v5705_v38 = vshll.u32 %v5499_v24, 16  ;;  %s12480_s0 = sshll.u32 %s11814_s11, 6  ;;  %p17672_p11 = scmp.ne.s32.totalorder %s17625_s17, 0 }
 0x1bd   : > { %13439 = vmatpush3.bf16.msra.mxu0 %v14520_v48  ;;  %13120 = vmatprep.subr.bf16.mxu1 %v14521_v4  ;;  %v5634_v48 = vor.u32 %v5633_v40, %v5629_v39  ;;  %v5644_v57 = vor.u32 %v5643_v49, %v5639_v46  ;;  %v14536_v39 = vld [vmem:[#allocation10 + $0x158] sm:$0xff]   ;;  %v5674_v45 = vsel %vm15759_vm11, %v5669_v29, %v5673_v22  ;;  %v5715_v49 = vshll.u32 %v5500_v35, 16  ;;  %s17477_s18 = scalar_lea.hbm %s17670_s27, %s12480_s0  ;;  %s14973_s10 = smov [#allocation12]  }
 0x1be   : > { %13440 = vmatprep.subr.bf16.mxu0 %v14522_v5  ;;  %v5687_v26 = vrot.slane %v5685_v18, 4  ;;  %v12183_v51 = vcombine.low %v5664_v0, %v5674_v45  ;;  %v14543_v45 = vld [vmem:[#allocation10 + $0x168] sm:$0xff]   ;;  %p14807_p6 = pnand %p14806_p8, %p17672_p11  ;;  %s14809_s19 = sshll.u32 %s14973_s10, 4  ;;  %s14810_s19 = int_to_ptr.vmem [resolvable:$false] %s14809_s19 }
 0x1bf   : > { %v5635_v56 = vrot.slane %v5634_v48, 4  ;;  %v5645_v6 = vrot.slane %v5644_v57, 4  ;;  %v5707_v48 = vrot.slane %v5705_v38, 5  ;;  %s14811_s8 = scalar_lea.vmem %s14810_s19, 8192  ;;  %p14812_p3 = scmp.lt.s32.totalorder %s17479_s2, %s14810_s19 }
 0x1c0   : > { %13121 = vmatpush3.bf16.msra.mxu1 %v14521_v4  ;;  %v12181_v4 = vcombine.low %v5620_v61, %v5630_v63  ;;  %v5725_v61 = vshll.u32 %v5501_v44, 16  ;;  %v5729_v63 = vshrl.u32 %v5501_v44, 16  ;;  %v5508_v44 = vld [vmem:[#allocation2 + $0x78] sm:$0xf]  ;;  %p14808_p2 = pneg %p14807_p6  ;;  %p14813_p0 = scmp.lt.s32.totalorder %s14811_s8, %s14805_s23 }
 0x1c1   : > { %13441 = vmatpush3.bf16.msra.mxu0 %v14522_v5  ;;  %13186 = vmatprep.subr.bf16.mxu1 %v14525_v17  ;;  %v5640_v5 = vsel %vm15759_vm11, %v5635_v56, %v5639_v46  ;;  %v5650_v14 = vsel %vm15759_vm11, %v5645_v6, %v5649_v58  ;;  %v14531_v46 = vld [vmem:[#allocation2 + $0x30] sm:$0xff]   ;;  %v5717_v58 = vrot.slane %v5715_v49, 5  ;;  %v5504_v6 = vld [vmem:[#allocation2 + $0x68] sm:$0xf]  ;;  %v5509_v49 = vld [vmem:[#allocation2 + $0x7c] sm:$0xf] }
 0x1c2   : > { %13506 = vmatprep.subr.bf16.mxu0 %v14526_v25  ;;  %v12182_v19 = vcombine.low %v5640_v5, %v5650_v14  ;;  %v5721_v5 = vrot.slane %v5719_v59, 4  ;;  %v5727_v9 = vrot.slane %v5725_v61, 5  ;;  %v5731_v10 = vrot.slane %v5729_v63, 4  ;;  %v5511_v61 = vld [vmem:[#allocation2 + $0x84] sm:$0xf]  ;;  %p14814_p9 = por %p14813_p0, %p14812_p3 }
 0x1c3   : > { %13123 = vmatmul.mubr.bf16.vlgmr.msra.gmra.mrb[0].mxu1 %v14524_v23  ;;  %v5677_v23 = vrot.slane %v5675_v16, 4  ;;  %v5743_v16 = vshll.u32 %v5503_v2, 16  ;;  %v5749_v20 = vshll.u32 %v5504_v6, 16  ;;  %v5753_v21 = vshrl.u32 %v5504_v6, 16 }
 0x1c4   : > { %13443 = vmatmul.mubr.bf16.vlgmr.msra.gmra.mrb[0].mxu0 %v12180_v43  ;;  %13187 = vmatpush3.bf16.msra.mxu1 %v14525_v17  ;;  %v5681_v17 = vshll.u32 %v5496_v8, 16  ;;  %v5709_v43 = vshrl.u32 %v5499_v24, 16  ;;  %v5722_v14 = vor.u32 %v5721_v5, %v5717_v58  ;;  %v5732_v18 = vor.u32 %v5731_v10, %v5727_v9  ;;  %v5512_v5 = vld [vmem:[#allocation2 + $0x88] sm:$0x1]  ;;  %p14815_p5 = pnand %p14814_p9, %p14808_p2 }
 0x1c5   : > { %13507 = vmatpush3.bf16.msra.mxu0 %v14526_v25  ;;  %13126 = vmatprep.mubr.bf16.mxu1 %v14527_v34  ;;  %v5678_v32 = vor.u32 %v5677_v23, %v5673_v22  ;;  %v5693_v34 = vrot.slane %v5691_v27, 5  ;;  %v5506_v22 = vld [vmem:[#allocation2 + $0x70] sm:$0xf]  ;;  %v5745_v27 = vrot.slane %v5743_v16, 5  ;;  %v5751_v24 = vrot.slane %v5749_v20, 5 }
 0x1c6   : > { %13508 = vmatprep.subr.bf16.mxu0 %v14529_v42  ;;  %13188 = vmatprep.subr.bf16.mxu1 %v14532_v47  ;;  %v5683_v25 = vrot.slane %v5681_v17, 5  ;;  %v5711_v55 = vrot.slane %v5709_v43, 4  ;;  %v5733_v31 = vrot.slane %v5732_v18, 4  ;;  %v5769_v0 = vshll.u32 %v5506_v22, 16 }
 0x1c7   : > { %13446 = vmatprep.mubr.bf16.mxu0 %v12181_v4  ;;  %v5679_v40 = vrot.slane %v5678_v32, 4  ;;  %v5755_v32 = vrot.slane %v5753_v21, 4 }
 0x1c8   : > { %13189 = vmatpush3.bf16.msra.mxu1 %v14532_v47  ;;  %v5688_v33 = vor.u32 %v5687_v26, %v5683_v25  ;;  %v5701_v47 = vrot.slane %v5699_v37, 5  ;;  %v5771_v43 = vrot.slane %v5769_v0, 5 }
 0x1c9   : > { %13509 = vmatpush3.bf16.msra.mxu0 %v14529_v42  ;;  %v5698_v42 = vrot.slane %v5696_v36, 4  ;;  %v5684_v52 = vsel %vm15759_vm11, %v5679_v40, %v5683_v25  ;;  %13190 = vmatprep.subr.bf16.mxu1 %v14539_v3  ;;  %v5723_v25 = vrot.slane %v5722_v14, 4  ;;  %v5763_v36 = vshrl.u32 %v5505_v7, 16 }
 0x1ca   : > { %13510 = vmatprep.subr.bf16.mxu0 %v14533_v60  ;;  %v5689_v41 = vrot.slane %v5688_v33, 4  ;;  %v5759_v33 = vshll.u32 %v5505_v7, 16  ;;  %v5756_v37 = vor.u32 %v5755_v32, %v5751_v24  ;;  %v5797_v7 = vshrl.u32 %v5509_v49, 16  ;;  %v14542_v32 = vld [vmem:[#allocation2 + $0x6c] sm:$0xff]  }
 0x1cb   : > { %13127 = vmatmul.mubr.bf16.gmra.mrb[4].mxu1 %v14528_v1  ;;  %v5702_v57 = vor.u32 %v5701_v47, %v5698_v42  ;;  %v5735_v1 = vshll.u32 %v5502_v50, 16  ;;  %v5765_v42 = vrot.slane %v5763_v36, 4  ;;  %v5784_v50 = vshrl.u32 %v5508_v44, 16 }
 0x1cc   : > { %13447 = vmatmul.mubr.bf16.gmra.mrb[4].mxu0 %v12182_v19  ;;  %13130 = vmatprep.mubr.bf16.mxu1 %v14530_v15  ;;  %v5694_v53 = vsel %vm15759_vm11, %v5689_v41, %v5693_v34  ;;  %v5740_v15 = vshrl.u32 %v5503_v2, 16  ;;  %v14537_v19 = vld [vmem:[#allocation2 + $0x50] sm:$0xff]   ;;  %v5728_v34 = vsel %vm15759_vm11, %v5723_v25, %v5727_v9  ;;  %v5761_v38 = vrot.slane %v5759_v33, 5  ;;  %v14541_v2 = vld [vmem:[#allocation2 + $0x64] sm:$0xff]  }
 0x1cd   : > { %13511 = vmatpush3.bf16.msra.mxu0 %v14533_v60  ;;  %v12184_v56 = vcombine.low %v5684_v52, %v5694_v53  ;;  %13450 = vmatprep.mubr.bf16.mxu0 %v12183_v51  ;;  %v5712_v60 = vor.u32 %v5711_v55, %v5707_v48  ;;  %v5703_v4 = vrot.slane %v5702_v57, 4  ;;  %v5737_v11 = vrot.slane %v5735_v1, 5  ;;  %v14538_v52 = vld [vmem:[#allocation2 + $0x58] sm:$0xff]  }
 0x1ce   : > { %13512 = vmatprep.subr.bf16.mxu0 %v14536_v39  ;;  %13191 = vmatpush3.bf16.msra.mxu1 %v14539_v3  ;;  %v5742_v26 = vrot.slane %v5740_v15, 4  ;;  %v5766_v53 = vor.u32 %v5765_v42, %v5761_v38  ;;  %v5787_v55 = vshll.u32 %v5508_v44, 16  ;;  %v5799_v15 = vrot.slane %v5797_v7, 4  ;;  %v14545_v7 = vld [vmem:[#allocation2 + $0x80] sm:$0xff]  }
 0x1cf   : > { %v5713_v8 = vrot.slane %v5712_v60, 4  ;;  %v5708_v12 = vsel %vm15759_vm11, %v5703_v4, %v5707_v48  ;;  %v5738_v29 = vsel %vm15759_vm11, %v5733_v31, %v5737_v11  ;;  %v5779_v48 = vshll.u32 %v5507_v28, 16  ;;  %v5514_v28 = vld [vmem:[#allocation2 + $0x90] sm:$0xf] }
 0x1d0   : > { %v5746_v35 = vor.u32 %v5745_v27, %v5742_v26  ;;  %v12186_v40 = vcombine.low %v5728_v34, %v5738_v29  ;;  %v5786_v60 = vrot.slane %v5784_v50, 4  ;;  %v5767_v1 = vrot.slane %v5766_v53, 4  ;;  %v14547_v53 = vld [vmem:[#allocation10 + $0x170] sm:$0xff]  }
 0x1d1   : > { %13513 = vmatpush3.bf16.msra.mxu0 %v14536_v39  ;;  %v5718_v17 = vsel %vm15759_vm11, %v5713_v8, %v5717_v58  ;;  %v5773_v39 = vshrl.u32 %v5506_v22, 16  ;;  %v5781_v59 = vrot.slane %v5779_v48, 5  ;;  %v5789_v3 = vrot.slane %v5787_v55, 5  ;;  %v5513_v22 = vld [vmem:[#allocation2 + $0x8c] sm:$0xf] }
 0x1d2   : > { %v12185_v23 = vcombine.low %v5708_v12, %v5718_v17  ;;  %13514 = vmatprep.subr.bf16.mxu0 %v14540_v30  ;;  %v5747_v41 = vrot.slane %v5746_v35, 4  ;;  %v5772_v10 = vsel %vm15759_vm11, %v5767_v1, %v5771_v43  ;;  %v5813_v12 = vshll.u32 %v5511_v61, 16  ;;  %v5517_v48 = vld [vmem:[#allocation2 + $0x9c] sm:$0x1] }
 0x1d3   : > { %13131 = vmatmul.mubr.bf16.gmra.mrb[8].mxu1 %v14531_v46  ;;  %v5757_v46 = vrot.slane %v5756_v37, 4  ;;  %v5775_v47 = vrot.slane %v5773_v39, 4  ;;  %v5790_v11 = vor.u32 %v5789_v3, %v5786_v60  ;;  %v5823_v27 = vshll.u32 %v5512_v5, 16  ;;  %v14544_v37 = vld [vmem:[#allocation2 + $0x78] sm:$0xff]   ;;  %v5519_v3 = vld [vmem:[#allocation2 + $0xa4] sm:$0xf] }
 0x1d4   : > { %13451 = vmatmul.mubr.bf16.gmra.mrb[8].mxu0 %v12184_v56  ;;  %13134 = vmatprep.mubr.bf16.mxu1 %v14534_v54  ;;  %v5752_v51 = vsel %vm15759_vm11, %v5747_v41, %v5751_v24  ;;  %v5510_v54 = vld [vmem:[#allocation2 + $0x80] sm:$0xf]  ;;  %v5793_v56 = vshll.u32 %v5509_v49, 16  ;;  %v5815_v20 = vrot.slane %v5813_v12, 5  ;;  %v5828_v31 = vshrl.u32 %v5513_v22, 16  ;;  %v14548_v12 = vld [vmem:[#allocation2 + $0x8c] sm:$0xff]  }
 0x1d5   : > { %13454 = vmatprep.mubr.bf16.mxu0 %v12185_v23  ;;  %13515 = vmatpush3.bf16.msra.mxu0 %v14540_v30  ;;  %v5762_v57 = vsel %vm15759_vm11, %v5757_v46, %v5761_v38  ;;  %v5776_v58 = vor.u32 %v5775_v47, %v5771_v43  ;;  %v5803_v8 = vshll.u32 %v5510_v54, 16  ;;  %v5807_v9 = vshrl.u32 %v5510_v54, 16  ;;  %v14546_v23 = vld [vmem:[#allocation10 + $0x58] sm:$0xff]   ;;  %v5515_v30 = vld [vmem:[#allocation2 + $0x94] sm:$0xf] }
 0x1d6   : > { %13516 = vmatprep.subr.bf16.mxu0 %v14543_v45  ;;  %v12187_v63 = vcombine.low %v5752_v51, %v5762_v57  ;;  %v5795_v4 = vrot.slane %v5793_v56, 5  ;;  %v5831_v34 = vshll.u32 %v5513_v22, 16  ;;  %v5837_v35 = vshll.u32 %v5514_v28, 16  ;;  %13192 = vmatprep.subr.bf16.mxu1 %v14546_v23  ;;  %v5516_v47 = vld [vmem:[#allocation2 + $0x98] sm:$0xf] }
 0x1d7   : > { %v5777_v6 = vrot.slane %v5776_v58, 4  ;;  %v5805_v16 = vrot.slane %v5803_v8, 5  ;;  %v5809_v17 = vrot.slane %v5807_v9, 4  ;;  %v5825_v29 = vrot.slane %v5823_v27, 5  ;;  %13193 = vmatpush3.bf16.msra.mxu1 %v14546_v23 }
 0x1d8   : > { %v5800_v25 = vor.u32 %v5799_v15, %v5795_v4  ;;  %v5830_v38 = vrot.slane %v5828_v31, 4  ;;  %v5839_v41 = vrot.slane %v5837_v35, 5  ;;  %v5841_v42 = vshrl.u32 %v5514_v28, 16 }
 0x1d9   : > { %13517 = vmatpush3.bf16.msra.mxu0 %v14543_v45  ;;  %v5782_v14 = vsel %vm15759_vm11, %v5777_v6, %v5781_v59  ;;  %v5810_v26 = vor.u32 %v5809_v17, %v5805_v16  ;;  %v5847_v45 = vshll.u32 %v5515_v30, 16  ;;  %v5851_v46 = vshrl.u32 %v5515_v30, 16 }
 0x1da   : > { %v12188_v18 = vcombine.low %v5772_v10, %v5782_v14  ;;  %v5801_v36 = vrot.slane %v5800_v25, 4  ;;  %v5857_v57 = vshll.u32 %v5516_v47, 16  ;;  %v5861_v60 = vshrl.u32 %v5516_v47, 16  ;;  %13518 = vmatprep.subr.bf16.mxu0 %v14547_v53  ;;  %v5520_v10 = vld [vmem:[#allocation2 + $0xa8] sm:$0xf] }
 0x1db   : > { %13135 = vmatmul.mubr.bf16.gmra.mrb[12].mxu1 %v14535_v13  ;;  %v5817_v13 = vshrl.u32 %v5511_v61, 16  ;;  %v5811_v0 = vrot.slane %v5810_v26, 4  ;;  %v5849_v55 = vrot.slane %v5847_v45, 5  ;;  %v5853_v56 = vrot.slane %v5851_v46, 4  ;;  %v5522_v26 = vld [vmem:[#allocation2 + $0xb0] sm:$0x1] }
 0x1dc   : > { %13138 = vmatprep.mubr.bf16.mxu1 %v14537_v19  ;;  %13455 = vmatmul.mubr.bf16.gmra.mrb[12].mxu0 %v12186_v40  ;;  %v5791_v19 = vrot.slane %v5790_v11, 4  ;;  %v5833_v40 = vrot.slane %v5831_v34, 5  ;;  %v5806_v43 = vsel %vm15759_vm11, %v5801_v36, %v5805_v16  ;;  %v5867_v61 = vshll.u32 %v5517_v48, 16  ;;  %v14549_v45 = vld [vmem:[#allocation2 + $0x94] sm:$0xff]  }
 0x1dd   : > { %13458 = vmatprep.mubr.bf16.mxu0 %v12187_v63  ;;  %v5819_v21 = vrot.slane %v5817_v13, 4  ;;  %v5816_v44 = vsel %vm15759_vm11, %v5811_v0, %v5815_v20  ;;  %v5854_v63 = vor.u32 %v5853_v56, %v5849_v55  ;;  %v5859_v1 = vrot.slane %v5857_v57, 5  ;;  %13519 = vmatpush3.bf16.msra.mxu0 %v14547_v53  ;;  %v14551_v53 = vld [vmem:[#allocation2 + $0xa0] sm:$0xff]  }
 0x1de   : > { %v5796_v24 = vsel %vm15759_vm11, %v5791_v19, %v5795_v4  ;;  %v5834_v51 = vor.u32 %v5833_v40, %v5830_v38  ;;  %v14550_v4 = vld [vmem:[#allocation10 + $0x178] sm:$0xff]   ;;  %v5863_v8 = vrot.slane %v5861_v60, 4  ;;  %v5869_v9 = vrot.slane %v5867_v61, 5 }
 0x1df   : > { %v5820_v33 = vor.u32 %v5819_v21, %v5815_v20  ;;  %v12189_v49 = vcombine.low %v5796_v24, %v5806_v43  ;;  %v5855_v11 = vrot.slane %v5854_v63, 4  ;;  %v5881_v15 = vshll.u32 %v5519_v3, 16  ;;  %v5521_v20 = vld [vmem:[#allocation2 + $0xac] sm:$0xf]  ;;  %13520 = vmatprep.subr.bf16.mxu0 %v14550_v4 }
 0x1e0   : > { %v5835_v58 = vrot.slane %v5834_v51, 4  ;;  %v5864_v17 = vor.u32 %v5863_v8, %v5859_v1  ;;  %v5891_v19 = vshll.u32 %v5520_v10, 16  ;;  %v5905_v34 = vshrl.u32 %v5521_v20, 16  ;;  %v15819_v43 = vld [vmem:[#allocation10 + $0x180] sm:$0xff]  }
 0x1e1   : > { %v5821_v39 = vrot.slane %v5820_v33, 4  ;;  %v5860_v22 = vsel %vm15759_vm11, %v5855_v11, %v5859_v1  ;;  %v5883_v28 = vrot.slane %v5881_v15, 5  ;;  %v5901_v33 = vshll.u32 %v5521_v20, 16  ;;  %13521 = vmatpush3.bf16.msra.mxu0 %v14550_v4  ;;  %v6944_v1 = vld [vmem:[#allocation2 + $0x24] sm:$0x1] }
 0x1e2   : > { %v5840_v5 = vsel %vm15759_vm11, %v5835_v58, %v5839_v41  ;;  %v5865_v27 = vrot.slane %v5864_v17, 4  ;;  %v5893_v31 = vrot.slane %v5891_v19, 5  ;;  %v5911_v0 = vshll.u32 %v5522_v26, 16  ;;  %13586 = vmatprep.subr.bf16.mxu0 %v15819_v43  ;;  %v6943_v58 = vld [vmem:[#allocation2 + $0x20] sm:$0xf]  ;;  %v14552_v19 = vld [vmem:[#allocation2 + $0xa8] sm:$0xff]  }
 0x1e3   : > { %13139 = vmatmul.mubr.bf16.gmra.mrb[16].mxu1 %v14538_v52  ;;  %v5826_v50 = vsel %vm15759_vm11, %v5821_v39, %v5825_v29  ;;  %v5843_v52 = vrot.slane %v5841_v42, 4  ;;  %v6940_v29 = vld [vmem:[#allocation2 + $0x14] sm:$0xe]  ;;  %v6941_v42 = vld [vmem:[#allocation2 + $0x18] sm:$0xf]  ;;  %v5907_v46 = vrot.slane %v5905_v34, 4 }
 0x1e4   : > { %13142 = vmatprep.mubr.bf16.mxu1 %v14541_v2  ;;  %13459 = vmatmul.mubr.bf16.gmra.mrb[16].mxu0 %v12188_v18  ;;  %v12190_v54 = vcombine.low %v5816_v44, %v5826_v50  ;;  %v5518_v2 = vld [vmem:[#allocation2 + $0xa0] sm:$0xf]  ;;  %v5885_v18 = vshrl.u32 %v5519_v3, 16  ;;  %v5870_v35 = vsel %vm15759_vm11, %v5865_v27, %v5869_v9  ;;  %v5913_v47 = vrot.slane %v5911_v0, 5  ;;  %v6945_v11 = vld [vmem:[#allocation2 + $0x28] sm:$0xe] }
 0x1e5   : > { %13462 = vmatprep.mubr.bf16.mxu0 %v12189_v49  ;;  %v5844_v59 = vor.u32 %v5843_v52, %v5839_v41  ;;  %v5872_v13 = vshrl.u32 %v5518_v2, 16  ;;  %v5875_v14 = vshll.u32 %v5518_v2, 16  ;;  %v12192_v38 = vcombine.low %v5860_v22, %v5870_v35  ;;  %v6942_v49 = vld [vmem:[#allocation2 + $0x1c] sm:$0xf] }
 0x1e6   : > { %v5887_v30 = vrot.slane %v5885_v18, 4  ;;  %v5903_v41 = vrot.slane %v5901_v33, 5  ;;  %v12219_v50 = vrot.slane %v6940_v29, 9  ;;  %v7108_v3 = vrot.slane %v6943_v58, 5  ;;  %v6948_v18 = vld [vmem:[#allocation2 + $0x34] sm:$0xf] }
 0x1e7   : > { %v5845_v6 = vrot.slane %v5844_v59, 4  ;;  %v5874_v23 = vrot.slane %v5872_v13, 4  ;;  %v5877_v25 = vrot.slane %v5875_v14, 5  ;;  %v6947_v14 = vld [vmem:[#allocation2 + $0x30] sm:$0xf]  ;;  %v12220_v15 = vrot.slane %v6945_v11, 9 }
 0x1e8   : > { %v5888_v36 = vor.u32 %v5887_v30, %v5883_v28  ;;  %v5908_v57 = vor.u32 %v5907_v46, %v5903_v41  ;;  %v7110_v9 = vrot.slane %v7108_v3, 4  ;;  %v7118_v17 = vrot.slane %v6947_v14, 5  ;;  %v6950_v30 = vld [vmem:[#allocation2 + $0x3c] sm:$0xe]  ;;  %v6956_v46 = vld [vmem:[#allocation2 + $0x54] sm:$0xf] }
 0x1e9   : > { %v5850_v16 = vsel %vm15759_vm11, %v5845_v6, %v5849_v55  ;;  %v5878_v24 = vor.u32 %v5877_v25, %v5874_v23  ;;  %v7105_v55 = vrot.slane %v6942_v49, 5  ;;  %v14555_v23 = vld [vmem:[#allocation2 + $0xb4] sm:$0xff]   ;;  %v7121_v26 = vrot.slane %v6948_v18, 5 }
 0x1ea   : > { %v12191_v21 = vcombine.low %v5840_v5, %v5850_v16  ;;  %v5889_v44 = vrot.slane %v5888_v36, 4  ;;  %v5909_v2 = vrot.slane %v5908_v57, 4  ;;  %v6949_v25 = vld [vmem:[#allocation2 + $0x38] sm:$0x1]  ;;  %v7120_v34 = vrot.slane %v7118_v17, 4 }
 0x1eb   : > { %13143 = vmatmul.mubr.bf16.gmra.mrb[20].mxu1 %v14542_v32  ;;  %v5895_v32 = vshrl.u32 %v5520_v10, 16  ;;  %v5879_v39 = vrot.slane %v5878_v24, 4  ;;  %v7107_v6 = vrot.slane %v7105_v55, 4  ;;  %v7111_v10 = vrot.slane %v6944_v1, 5  ;;  %v6952_v24 = vld [vmem:[#allocation2 + $0x44] sm:$0xf] }
 0x1ec   : > { %13146 = vmatprep.mubr.bf16.mxu1 %v14544_v37  ;;  %13463 = vmatmul.mubr.bf16.gmra.mrb[20].mxu0 %v12190_v54  ;;  %v14553_v37 = vld [vmem:[#allocation10 + $0x60] sm:$0xff]   ;;  %v7102_v54 = vrot.slane %v6941_v42, 5  ;;  %v5894_v56 = vsel %vm15759_vm11, %v5889_v44, %v5893_v31  ;;  %v7123_v36 = vrot.slane %v7121_v26, 4  ;;  %v7124_v0 = vrot.slane %v6949_v25, 5  ;;  %v14560_v42 = vld [vmem:[#allocation10 + $0x188] sm:$0xff]   ;;  %v14556_v44 = vld [vmem:[#allocation2 + $0xbc] sm:$0xff]  }
 0x1ed   : > { %13466 = vmatprep.mubr.bf16.mxu0 %v12191_v21  ;;  %v5897_v40 = vrot.slane %v5895_v32, 4  ;;  %13194 = vmatprep.subr.bf16.mxu1 %v14553_v37  ;;  %v5884_v51 = vsel %vm15759_vm11, %v5879_v39, %v5883_v28  ;;  %v7109_v21 = vsel %vm15823_vm14, %v7107_v6, %v7108_v3  ;;  %v7112_v22 = vsel %vm15823_vm14, %v7110_v9, %v7111_v10  ;;  %v6960_v3 = vld [vmem:[#allocation2 + $0x64] sm:$0xe]  ;;  %v14558_v9 = vld [vmem:[#allocation2 + $0xd0] sm:$0xff]   ;;  %v14566_v11 = vld [vmem:[#allocation10 + $0x190] sm:$0xff]  }
 0x1ee   : > { %13195 = vmatpush3.bf16.msra.mxu1 %v14553_v37  ;;  %v12193_v59 = vcombine.low %v5884_v51, %v5894_v56  ;;  %v7103_v61 = vsel %vm15823_vm14, %v12219_v50, %v7102_v54  ;;  %v7104_v63 = vrot.slane %v7102_v54, 4  ;;  %v12236_v33 = vcombine.low %v7109_v21, %v7112_v22  ;;  %v14559_v37 = vld [vmem:[#allocation10 + $0x68] sm:$0xff]   ;;  %v6957_v51 = vld [vmem:[#allocation2 + $0x58] sm:$0xf]  ;;  %v6958_v56 = vld [vmem:[#allocation2 + $0x5c] sm:$0xf] }
 0x1ef   : > { %v5898_v52 = vor.u32 %v5897_v40, %v5893_v31  ;;  %v6951_v31 = vld [vmem:[#allocation2 + $0x40] sm:$0xf]  ;;  %v12221_v29 = vrot.slane %v6950_v30, 9  ;;  %v7131_v40 = vrot.slane %v6952_v24, 5  ;;  %13196 = vmatprep.subr.bf16.mxu1 %v14559_v37  ;;  %v7125_v49 = vsel %vm15823_vm14, %v7123_v36, %v7124_v0  ;;  %v6955_v50 = vld [vmem:[#allocation2 + $0x50] sm:$0xe] }
 0x1f0   : > { %v7106_v5 = vsel %vm15823_vm14, %v7104_v63, %v7105_v55  ;;  %v7128_v32 = vrot.slane %v6951_v31, 5  ;;  %v7141_v55 = vrot.slane %v6956_v46, 5  ;;  %v6959_v63 = vld [vmem:[#allocation2 + $0x60] sm:$0x1]  ;;  %v6966_v24 = vld [vmem:[#allocation2 + $0x7c] sm:$0xf] }
 0x1f1   : > { %v5899_v60 = vrot.slane %v5898_v52, 4  ;;  %v12235_v8 = vcombine.low %v7103_v61, %v7106_v5  ;;  %v14557_v52 = vld [vmem:[#allocation2 + $0xc8] sm:$0xff]   ;;  %v7144_v61 = vrot.slane %v6957_v51, 5  ;;  %v14565_v5 = vld [vmem:[#allocation10 + $0x70] sm:$0xff]   ;;  %v7150_v14 = vrot.slane %v6959_v63, 5 }
 0x1f2   : > { %v7130_v39 = vrot.slane %v7128_v32, 4  ;;  %13197 = vmatpush3.bf16.msra.mxu1 %v14559_v37  ;;  %v7143_v6 = vrot.slane %v7141_v55, 4  ;;  %v6968_v0 = vld [vmem:[#allocation2 + $0x84] sm:$0xf]  ;;  %v6971_v51 = vld [vmem:[#allocation2 + $0x90] sm:$0xf] }
 0x1f3   : > { %13147 = vmatmul.mubr.bf16.gmra.mrb[24].mxu1 %v14545_v7  ;;  %v5904_v4 = vsel %vm15759_vm11, %v5899_v60, %v5903_v41  ;;  %v5914_v7 = vsel %vm15759_vm11, %v5909_v2, %v5913_v47  ;;  %v7122_v47 = vsel %vm15823_vm14, %v7120_v34, %v7121_v26  ;;  %v12222_v60 = vrot.slane %v6955_v50, 9  ;;  %13198 = vmatprep.subr.bf16.mxu1 %v14565_v5  ;;  %v14562_v37 = vld [vmem:[#allocation2 + $0xe4] sm:$0xff]   ;;  %v6970_v50 = vld [vmem:[#allocation2 + $0x8c] sm:$0xe] }
 0x1f4   : > { %13150 = vmatprep.mubr.bf16.mxu1 %v14548_v12  ;;  %13467 = vmatmul.mubr.bf16.gmra.mrb[24].mxu0 %v12192_v38  ;;  %v6946_v12 = vld [vmem:[#allocation2 + $0x2c] sm:$0xf]  ;;  %v12194_v13 = vcombine.low %v5904_v4, %v5914_v7  ;;  %v6953_v38 = vld [vmem:[#allocation2 + $0x48] sm:$0xf]  ;;  %v7132_v54 = vsel %vm15823_vm14, %v7130_v39, %v7131_v40  ;;  %v7147_v2 = vrot.slane %v6958_v56, 5  ;;  %v7145_v22 = vsel %vm15823_vm14, %v7143_v6, %v7144_v61 }
 0x1f5   : > { %13470 = vmatprep.mubr.bf16.mxu0 %v12193_v59  ;;  %v7115_v16 = vrot.slane %v6946_v12, 5  ;;  %v7134_v41 = vrot.slane %v6953_v38, 5  ;;  %v12238_v59 = vcombine.low %v7122_v47, %v7125_v49  ;;  %v6961_v4 = vld [vmem:[#allocation2 + $0x68] sm:$0xf]  ;;  %v6962_v7 = vld [vmem:[#allocation2 + $0x6c] sm:$0xf]  ;;  %v7142_v21 = vsel %vm15823_vm14, %v12222_v60, %v7141_v55 }
 0x1f6   : > { %v7157_v10 = vrot.slane %v6962_v7, 5  ;;  %v14561_v12 = vld [vmem:[#allocation2 + $0xdc] sm:$0xff]   ;;  %13199 = vmatpush3.bf16.msra.mxu1 %v14565_v5  ;;  %v7149_v18 = vrot.slane %v7147_v2, 4  ;;  %v12241_v34 = vcombine.low %v7142_v21, %v7145_v22  ;;  %v12225_v55 = vrot.slane %v6970_v50, 9  ;;  %v15911_v22 = vld [vmem:[#allocation10 + $0x80] sm:$0xff]  }
 0x1f7   : > { %v7117_v20 = vrot.slane %v7115_v16, 4  ;;  %v7116_v27 = vsel %vm15823_vm14, %v12220_v15, %v7115_v16  ;;  %v7136_v57 = vrot.slane %v7134_v41, 4  ;;  %v6963_v15 = vld [vmem:[#allocation2 + $0x70] sm:$0xf]  ;;  %v7180_v56 = vrot.slane %v6971_v51, 5 }
 0x1f8   : > { %v7159_v26 = vrot.slane %v7157_v10, 4  ;;  %v6974_v60 = vld [vmem:[#allocation2 + $0x9c] sm:$0x1] }
 0x1f9   : > { %v7119_v28 = vsel %vm15823_vm14, %v7117_v20, %v7118_v17  ;;  %v7160_v20 = vrot.slane %v6963_v15, 5  ;;  %v7189_v6 = vrot.slane %v6974_v60, 5 }
 0x1fa   : > { %v12237_v35 = vcombine.low %v7116_v27, %v7119_v28  ;;  %v6965_v28 = vld [vmem:[#allocation2 + $0x78] sm:$0xe] }
 0x1fb   : > { %13151 = vmatmul.mubr.bf16.gmra.mrb[28].mxu1 %v14549_v45  ;;  %v6954_v45 = vld [vmem:[#allocation2 + $0x4c] sm:$0x1]  ;;  %v7162_v31 = vrot.slane %v7160_v20, 4 }
 0x1fc   : > { %13154 = vmatprep.mubr.bf16.mxu1 %v14551_v53  ;;  %13471 = vmatmul.mubr.bf16.gmra.mrb[28].mxu0 %v12194_v13  ;;  %v7129_v53 = vsel %vm15823_vm14, %v12221_v29, %v7128_v32  ;;  %v7137_v58 = vrot.slane %v6954_v45, 5  ;;  %v7146_v13 = vrot.slane %v7144_v61, 4  ;;  %v6967_v32 = vld [vmem:[#allocation2 + $0x80] sm:$0xf]  ;;  %v6969_v29 = vld [vmem:[#allocation2 + $0x88] sm:$0x1]  ;;  %v15875_v61 = vsel %vm15823_vm14, %v7159_v26, %v7160_v20 }
 0x1fd   : > { %13522 = vmatprep.mubr.bf16.mxu0 %v12235_v8  ;;  %v12239_v1 = vcombine.low %v7129_v53, %v7132_v54  ;;  %v7154_v8 = vrot.slane %v6961_v4, 5  ;;  %v7170_v36 = vrot.slane %v6967_v32, 5  ;;  %v14563_v45 = vld [vmem:[#allocation2 + $0xf0] sm:$0xff]   ;;  %v7176_v49 = vrot.slane %v6969_v29, 5 }
 0x1fe   : > { %v7138_v17 = vsel %vm15823_vm14, %v7136_v57, %v7137_v58  ;;  %v7148_v38 = vsel %vm15823_vm14, %v7146_v13, %v7147_v2  ;;  %v6972_v54 = vld [vmem:[#allocation2 + $0x94] sm:$0xf]  ;;  %v14564_v13 = vld [vmem:[#allocation2 + $0xf8] sm:$0xff]  }
 0x1ff   : > { %v7156_v25 = vrot.slane %v7154_v8, 4 }
 0x201   : > { %v7158_v47 = vsel %vm15823_vm14, %v7156_v25, %v7157_v10 }
 0x203   : > { %13155 = vmatmul.mubr.bf16.gmra.mrb[32].mxu1 %v14552_v19  ;;  %v6964_v19 = vld [vmem:[#allocation2 + $0x74] sm:$0x1] }
 0x204   : > { %13158 = vmatprep.mubr.bf16.mxu1 %v14555_v23  ;;  %13523 = vmatmul.mubr.bf16.vlgmr.msra.gmra.mrb[0].mxu0 %v12236_v33  ;;  %v12223_v23 = vrot.slane %v6960_v3, 9  ;;  %v7163_v27 = vrot.slane %v6964_v19, 5  ;;  %v12224_v33 = vrot.slane %v6965_v28, 9  ;;  %v14567_v19 = vld [vmem:[#allocation2 + $0x104] sm:$0xff]   ;;  %v6978_v28 = vld [vmem:[#allocation2 + $0xac] sm:$0xf] }
 0x205   : > { %13587 = vmatpush3.bf16.msra.mxu0 %v15819_v43  ;;  %13526 = vmatprep.mubr.bf16.mxu0 %v12237_v35  ;;  %v7133_v43 = vrot.slane %v7131_v40, 4  ;;  %v7167_v35 = vrot.slane %v6966_v24, 5  ;;  %v7172_v40 = vrot.slane %v7170_v36, 4 }
 0x206   : > { %13588 = vmatprep.subr.bf16.mxu0 %v14560_v42  ;;  %v7155_v46 = vsel %vm15823_vm14, %v12223_v23, %v7154_v8  ;;  %v15879_v63 = vsel %vm15823_vm14, %v7162_v31, %v7163_v27  ;;  %v2178_v31 = vld [vmem:[#allocation2] sm:$0xf] }
 0x207   : > { %v7135_v16 = vsel %vm15823_vm14, %v7133_v43, %v7134_v41  ;;  %v7169_v39 = vrot.slane %v7167_v35, 4  ;;  %v7173_v41 = vrot.slane %v6968_v0, 5  ;;  %v7183_v43 = vrot.slane %v6972_v54, 5 }
 0x208   : > { %v12240_v30 = vcombine.low %v7135_v16, %v7138_v17  ;;  %v12243_v58 = vcombine.low %v7155_v46, %v7158_v47  ;;  %v15883_v3 = vsel %vm15823_vm14, %v12224_v33, %v7167_v35  ;;  %v6977_v16 = vld [vmem:[#allocation2 + $0xa8] sm:$0xf]  ;;  %v2179_v35 = vld [vmem:[#allocation2 + $0x4] sm:$0xf]  ;;  %v7199_v0 = vrot.slane %v6978_v28, 5 }
 0x209   : > { %13589 = vmatpush3.bf16.msra.mxu0 %v14560_v42  ;;  %v14571_v42 = vld [vmem:[#allocation10 + $0x78] sm:$0xff]   ;;  %v7175_v53 = vrot.slane %v7173_v41, 4  ;;  %v7185_v2 = vrot.slane %v7183_v43, 4  ;;  %v15887_v4 = vsel %vm15823_vm14, %v7169_v39, %v7170_v36  ;;  %v15891_v7 = vsel %vm15823_vm14, %v7172_v40, %v7173_v41  ;;  %v2180_v36 = vld [vmem:[#allocation2 + $0x8] sm:$0xf] }
 0x20a   : > { %13590 = vmatprep.subr.bf16.mxu0 %v14566_v11  ;;  %13200 = vmatprep.subr.bf16.mxu1 %v14571_v42  ;;  %v7196_v21 = vrot.slane %v6977_v16, 5  ;;  %v12245_v23 = vcombine.low %v15883_v3, %v15887_v4  ;;  %v6980_v39 = vld [vmem:[#allocation2 + $0xb4] sm:$0xe]  ;;  %v2271_v41 = vshll.u32 %v2179_v35, 16  ;;  %v14576_v46 = vld [vmem:[#allocation10 + $0x1a0] sm:$0xff]   ;;  %v7201_v50 = vrot.slane %v7199_v0, 4 }
 0x20b   : > { %13159 = vmatmul.mubr.bf16.gmra.mrb[36].mxu1 %v14556_v44  ;;  %v7151_v44 = vsel %vm15823_vm14, %v7149_v18, %v7150_v14  ;;  %v15895_v8 = vsel %vm15823_vm14, %v7175_v53, %v7176_v49  ;;  %v12244_v18 = vcombine.low %v15875_v61, %v15879_v63  ;;  %v2181_v53 = vld [vmem:[#allocation2 + $0xc] sm:$0xf]  ;;  %v2285_v60 = vshrl.u32 %v2180_v36, 16 }
 0x20c   : > { %13162 = vmatprep.mubr.bf16.mxu1 %v14557_v52  ;;  %13527 = vmatmul.mubr.bf16.gmra.mrb[4].mxu0 %v12238_v59  ;;  %v14572_v52 = vld [vmem:[#allocation10 + $0x198] sm:$0xff]   ;;  %v12242_v57 = vcombine.low %v7148_v38, %v7151_v44  ;;  %v6973_v59 = vld [vmem:[#allocation2 + $0x98] sm:$0xf]  ;;  %v12246_v25 = vcombine.low %v15891_v7, %v15895_v8  ;;  %v2265_v38 = vshll.u32 %v2178_v31, 16  ;;  %v2281_v44 = vshll.u32 %v2180_v36, 16  ;;  %v14573_v8 = vld [vmem:[#allocation2 + $0x12c] sm:$0xff]  }
 0x20d   : > { %13530 = vmatprep.mubr.bf16.mxu0 %v12239_v1  ;;  %13591 = vmatpush3.bf16.msra.mxu0 %v14566_v11  ;;  %v7182_v1 = vrot.slane %v7180_v56, 4  ;;  %v7186_v5 = vrot.slane %v6973_v59, 5  ;;  %v6975_v11 = vld [vmem:[#allocation2 + $0xa0] sm:$0xe]  ;;  %v12227_v61 = vrot.slane %v6980_v39, 9  ;;  %v2291_v16 = vshll.u32 %v2181_v53, 16 }
 0x20e   : > { %13592 = vmatprep.subr.bf16.mxu0 %v14572_v52  ;;  %13201 = vmatpush3.bf16.msra.mxu1 %v14571_v42  ;;  %v12226_v17 = vrot.slane %v6975_v11, 9  ;;  %v2275_v42 = vshrl.u32 %v2179_v35, 16  ;;  %v2267_v54 = vrot.slane %v2265_v38, 5  ;;  %v14569_v11 = vld [vmem:[#allocation2 + $0x118] sm:$0xff]   ;;  %v6987_v7 = vld [vmem:[#allocation2 + $0xd0] sm:$0xf] }
 0x20f   : > { %v15903_v10 = vsel %vm15823_vm14, %v7182_v1, %v7183_v43  ;;  %v15907_v14 = vsel %vm15823_vm14, %v7185_v2, %v7186_v5  ;;  %v7188_v15 = vrot.slane %v7186_v5, 4  ;;  %13266 = vmatprep.subr.bf16.mxu1 %v15911_v22  ;;  %v2283_v43 = vrot.slane %v2281_v44, 5  ;;  %v6983_v5 = vld [vmem:[#allocation2 + $0xc0] sm:$0xf] }
 0x211   : > { %13593 = vmatpush3.bf16.msra.mxu0 %v14572_v52  ;;  %v15921_v27 = vsel %vm15823_vm14, %v7188_v15, %v7189_v6  ;;  %v6982_v52 = vld [vmem:[#allocation2 + $0xbc] sm:$0xf]  ;;  %v14578_v6 = vld [vmem:[#allocation10 + $0x1a8] sm:$0xff]  }
 0x212   : > { %v12248_v24 = vcombine.low %v15907_v14, %v15921_v27  ;;  %13594 = vmatprep.subr.bf16.mxu0 %v14576_v46  ;;  %v7209_v4 = vrot.slane %v6982_v52, 5  ;;  %v14582_v52 = vld [vmem:[#allocation10 + $0x1b8] sm:$0xff]   ;;  %v2190_v14 = vld [vmem:[#allocation2 + $0x30] sm:$0xf] }
 0x213   : > { %13163 = vmatmul.mubr.bf16.gmra.mrb[40].mxu1 %v14558_v9  ;;  %v15899_v9 = vsel %vm15823_vm14, %v12225_v55, %v7180_v56  ;;  %v2273_v55 = vrot.slane %v2271_v41, 5  ;;  %v2277_v56 = vrot.slane %v2275_v42, 4  ;;  %v7212_v42 = vrot.slane %v6983_v5, 5 }
 0x214   : > { %13166 = vmatprep.mubr.bf16.mxu1 %v14561_v12  ;;  %13531 = vmatmul.mubr.bf16.gmra.mrb[8].mxu0 %v12240_v30  ;;  %v6976_v12 = vld [vmem:[#allocation2 + $0xa4] sm:$0xf]  ;;  %v12247_v26 = vcombine.low %v15899_v9, %v15903_v10  ;;  %v6979_v30 = vld [vmem:[#allocation2 + $0xb0] sm:$0x1]  ;;  %v2186_v9 = vld [vmem:[#allocation2 + $0x20] sm:$0xf] }
 0x215   : > { %13534 = vmatprep.mubr.bf16.mxu0 %v12241_v34  ;;  %v7193_v20 = vrot.slane %v6976_v12, 5  ;;  %v7198_v34 = vrot.slane %v7196_v21, 4  ;;  %v7202_v29 = vrot.slane %v6979_v30, 5  ;;  %13595 = vmatpush3.bf16.msra.mxu0 %v14576_v46  ;;  %v2278_v3 = vor.u32 %v2277_v56, %v2273_v55  ;;  %v2185_v46 = vld [vmem:[#allocation2 + $0x1c] sm:$0xf] }
 0x216   : > { %v2287_v12 = vrot.slane %v2285_v60, 4  ;;  %13596 = vmatprep.subr.bf16.mxu0 %v14578_v6  ;;  %v2325_v5 = vshll.u32 %v2185_v46, 16 }
 0x217   : > { %v15927_v32 = vsel %vm15823_vm14, %v12226_v17, %v7193_v20  ;;  %v7195_v33 = vrot.slane %v7193_v20, 4  ;;  %v15938_v49 = vsel %vm15823_vm14, %v7198_v34, %v7199_v0  ;;  %v15942_v59 = vsel %vm15823_vm14, %v7201_v50, %v7202_v29  ;;  %v6984_v17 = vld [vmem:[#allocation2 + $0xc4] sm:$0x1]  ;;  %v2184_v29 = vld [vmem:[#allocation2 + $0x18] sm:$0xf] }
 0x218   : > { %v12250_v1 = vcombine.low %v15938_v49, %v15942_v59  ;;  %v2295_v20 = vshrl.u32 %v2181_v53, 16  ;;  %v2288_v28 = vor.u32 %v2287_v12, %v2283_v43  ;;  %v2315_v56 = vshll.u32 %v2184_v29, 16 }
 0x219   : > { %v15932_v40 = vsel %vm15823_vm14, %v7195_v33, %v7196_v21  ;;  %v2183_v33 = vld [vmem:[#allocation2 + $0x14] sm:$0xf]  ;;  %13597 = vmatpush3.bf16.msra.mxu0 %v14578_v6  ;;  %v2329_v6 = vshrl.u32 %v2185_v46, 16 }
 0x21a   : > { %v12249_v47 = vcombine.low %v15927_v32, %v15932_v40  ;;  %v2297_v0 = vrot.slane %v2295_v20, 4  ;;  %v2289_v38 = vrot.slane %v2288_v28, 4  ;;  %v2306_v50 = vshrl.u32 %v2183_v33, 16 }
 0x21b   : > { %13167 = vmatmul.mubr.bf16.gmra.mrb[44].mxu1 %v14562_v37  ;;  %v2262_v37 = vshrl.u32 %v2178_v31, 16  ;;  %v7211_v31 = vrot.slane %v7209_v4, 4  ;;  %v2331_v28 = vrot.slane %v2329_v6, 4  ;;  %v6991_v6 = vld [vmem:[#allocation2 + $0xe0] sm:$0xf] }
 0x21c   : > { %13170 = vmatprep.mubr.bf16.mxu1 %v14563_v45  ;;  %13535 = vmatmul.mubr.bf16.gmra.mrb[12].mxu0 %v12242_v57  ;;  %v6981_v45 = vld [vmem:[#allocation2 + $0xb8] sm:$0xf]  ;;  %v2182_v57 = vld [vmem:[#allocation2 + $0x10] sm:$0x1] }
 0x21d   : > { %13538 = vmatprep.mubr.bf16.mxu0 %v12243_v58  ;;  %v2264_v51 = vrot.slane %v2262_v37, 4  ;;  %v14568_v58 = vld [vmem:[#allocation2 + $0x10c] sm:$0xff]   ;;  %v7206_v63 = vrot.slane %v6981_v45, 5  ;;  %v2301_v21 = vshll.u32 %v2182_v57, 16  ;;  %v14580_v37 = vld [vmem:[#allocation10 + $0x1b0] sm:$0xff]   ;;  %v7215_v45 = vrot.slane %v6984_v17, 5 }
 0x21e   : > { %13598 = vmatprep.subr.bf16.mxu0 %v14580_v37 }
 0x21f   : > { %v2268_v2 = vor.u32 %v2267_v54, %v2264_v51  ;;  %v7208_v15 = vrot.slane %v7206_v63, 4  ;;  %v2303_v41 = vrot.slane %v2301_v21, 5  ;;  %v2309_v51 = vshll.u32 %v2183_v33, 16  ;;  %13599 = vmatpush3.bf16.msra.mxu0 %v14580_v37 }
 0x220   : > { %v15966_v54 = vsel %vm15823_vm14, %v7211_v31, %v7212_v42  ;;  %13600 = vmatprep.subr.bf16.mxu0 %v14582_v52  ;;  %v7222_v21 = vrot.slane %v6987_v7, 5  ;;  %v6992_v7 = vld [vmem:[#allocation2 + $0xe4] sm:$0xf] }
 0x221   : > { %v15952_v30 = vsel %vm15823_vm14, %v7208_v15, %v7209_v4  ;;  %v2311_v60 = vrot.slane %v2309_v51, 5  ;;  %v2317_v4 = vrot.slane %v2315_v56, 5 }
 0x222   : > { %v7224_v51 = vrot.slane %v7222_v21, 4 }
 0x223   : > { %13171 = vmatmul.mubr.bf16.gmra.mrb[48].mxu1 %v14564_v13  ;;  %v15948_v13 = vsel %vm15823_vm14, %v12227_v61, %v7206_v63  ;;  %v2319_v61 = vshrl.u32 %v2184_v29, 16  ;;  %v6986_v63 = vld [vmem:[#allocation2 + $0xcc] sm:$0xf]  ;;  %13601 = vmatpush3.bf16.msra.mxu0 %v14582_v52 }
 0x224   : > { %13174 = vmatprep.mubr.bf16.mxu1 %v14567_v19  ;;  %13539 = vmatmul.mubr.bf16.gmra.mrb[16].mxu0 %v12244_v18  ;;  %v2269_v19 = vrot.slane %v2268_v2, 4  ;;  %v2279_v18 = vrot.slane %v2278_v3, 4  ;;  %v12251_v36 = vcombine.low %v15948_v13, %v15952_v30  ;;  %v14570_v2 = vld [vmem:[#allocation2 + $0x120] sm:$0xff]   ;;  %v7219_v17 = vrot.slane %v6986_v63, 5  ;;  %v2189_v52 = vld [vmem:[#allocation2 + $0x2c] sm:$0xf] }
 0x225   : > { %13542 = vmatprep.mubr.bf16.mxu0 %v12245_v23  ;;  %v2293_v23 = vrot.slane %v2291_v16, 5  ;;  %v2321_v15 = vrot.slane %v2319_v61, 4 }
 0x226   : > { %v2274_v34 = vsel %vm15759_vm11, %v2269_v19, %v2273_v55  ;;  %v2284_v35 = vsel %vm15759_vm11, %v2279_v18, %v2283_v43  ;;  %v7214_v55 = vrot.slane %v7212_v42, 4  ;;  %v6985_v43 = vld [vmem:[#allocation2 + $0xc8] sm:$0xe]  ;;  %v2187_v19 = vld [vmem:[#allocation2 + $0x24] sm:$0x1]  ;;  %v7221_v33 = vrot.slane %v7219_v17, 4 }
 0x227   : > { %v15960_v39 = vcombine.low %v2274_v34, %v2284_v35  ;;  %v2298_v44 = vor.u32 %v2297_v0, %v2293_v23  ;;  %v2294_v53 = vsel %vm15759_vm11, %v2289_v38, %v2293_v23  ;;  %v12228_v16 = vrot.slane %v6985_v43, 9  ;;  %v14586_v23 = vld [vmem:[#allocation10 + $0x1c0] sm:$0xff]   ;;  %v6988_v0 = vld [vmem:[#allocation2 + $0xd4] sm:$0xf]  ;;  %v6989_v42 = vld [vmem:[#allocation2 + $0xd8] sm:$0x1] }
 0x228   : > { %v15976_v3 = vsel %vm15823_vm14, %v7214_v55, %v7215_v45  ;;  %v2322_v20 = vor.u32 %v2321_v15, %v2317_v4  ;;  %v2335_v34 = vshll.u32 %v2186_v9, 16  ;;  %v2339_v35 = vshrl.u32 %v2186_v9, 16  ;;  %13666 = vmatprep.subr.bf16.mxu0 %v14586_v23 }
 0x229   : > { %v2299_v57 = vrot.slane %v2298_v44, 4  ;;  %v15986_v31 = vsel %vm15823_vm14, %v12228_v16, %v7219_v17  ;;  %v2188_v44 = vld [vmem:[#allocation2 + $0x28] sm:$0xf]  ;;  %v15992_v45 = vsel %vm15823_vm14, %v7221_v33, %v7222_v21  ;;  %v7225_v61 = vrot.slane %v6988_v0, 5  ;;  %v2192_v33 = vld [vmem:[#allocation2 + $0x38] sm:$0x1] }
 0x22a   : > { %v2323_v37 = vrot.slane %v2322_v20, 4  ;;  %v2337_v46 = vrot.slane %v2335_v34, 5  ;;  %v12253_v56 = vcombine.low %v15986_v31, %v15992_v45  ;;  %v7228_v63 = vrot.slane %v6989_v42, 5 }
 0x22b   : > { %13175 = vmatmul.mubr.bf16.gmra.mrb[52].mxu1 %v14568_v58  ;;  %v2308_v58 = vrot.slane %v2306_v50, 4  ;;  %v2341_v50 = vrot.slane %v2339_v35, 4  ;;  %v16010_v32 = vsel %vm15823_vm14, %v7224_v51, %v7225_v61  ;;  %v7227_v40 = vrot.slane %v7225_v61, 4  ;;  %v6993_v51 = vld [vmem:[#allocation2 + $0xe8] sm:$0xf] }
 0x22c   : > { %13178 = vmatprep.mubr.bf16.mxu1 %v14569_v11  ;;  %13543 = vmatmul.mubr.bf16.gmra.mrb[20].mxu0 %v12246_v25  ;;  %v2304_v25 = vsel %vm15759_vm11, %v2299_v57, %v2303_v41  ;;  %v12252_v11 = vcombine.low %v15966_v54, %v15976_v3  ;;  %v2345_v41 = vshll.u32 %v2187_v19, 16  ;;  %v2369_v9 = vshll.u32 %v2190_v14, 16  ;;  %v2197_v3 = vld [vmem:[#allocation2 + $0x4c] sm:$0x1] }
 0x22d   : > { %13546 = vmatprep.mubr.bf16.mxu0 %v12247_v26  ;;  %v2312_v12 = vor.u32 %v2311_v60, %v2308_v58  ;;  %v15982_v10 = vcombine.low %v2294_v53, %v2304_v25  ;;  %v2327_v26 = vrot.slane %v2325_v5, 5  ;;  %v14574_v53 = vld [vmem:[#allocation2 + $0x134] sm:$0xff]   ;;  %v2342_v60 = vor.u32 %v2341_v50, %v2337_v46  ;;  %v6990_v5 = vld [vmem:[#allocation2 + $0xdc] sm:$0xe] }
 0x22e   : > { %v2347_v57 = vrot.slane %v2345_v41, 5  ;;  %v16016_v16 = vsel %vm15823_vm14, %v7227_v40, %v7228_v63  ;;  %v2373_v19 = vshrl.u32 %v2190_v14, 16  ;;  %v2371_v23 = vrot.slane %v2369_v9, 5 }
 0x22f   : > { %v2313_v18 = vrot.slane %v2312_v12, 4  ;;  %v2332_v38 = vor.u32 %v2331_v28, %v2327_v26  ;;  %v2328_v55 = vsel %vm15759_vm11, %v2323_v37, %v2327_v26  ;;  %v12254_v21 = vcombine.low %v16010_v32, %v16016_v16 }
 0x230   : > { %v12229_v35 = vrot.slane %v6990_v5, 9  ;;  %v7232_v0 = vrot.slane %v6991_v6, 5  ;;  %v2389_v50 = vshll.u32 %v2192_v33, 16 }
 0x231   : > { %v2318_v29 = vsel %vm15759_vm11, %v2313_v18, %v2317_v4  ;;  %v2333_v43 = vrot.slane %v2332_v38, 4  ;;  %v2359_v4 = vshll.u32 %v2189_v52, 16  ;;  %v2191_v18 = vld [vmem:[#allocation2 + $0x34] sm:$0xf]  ;;  %v2375_v38 = vrot.slane %v2373_v19, 4  ;;  %v14579_v19 = vld [vmem:[#allocation10 + $0x90] sm:$0xff]  }
 0x232   : > { %v16004_v58 = vcombine.low %v2318_v29, %v2328_v55  ;;  %v7235_v29 = vrot.slane %v6992_v7, 5  ;;  %v2379_v41 = vshll.u32 %v2191_v18, 16  ;;  %v2193_v55 = vld [vmem:[#allocation2 + $0x3c] sm:$0xf]  ;;  %v6995_v7 = vld [vmem:[#allocation2 + $0xf0] sm:$0xe] }
 0x233   : > { %13179 = vmatmul.mubr.bf16.gmra.mrb[56].mxu1 %v14570_v2  ;;  %v2338_v27 = vsel %vm15759_vm11, %v2333_v43, %v2337_v46  ;;  %v2353_v2 = vshll.u32 %v2188_v44, 16  ;;  %v2361_v15 = vrot.slane %v2359_v4, 5  ;;  %v7234_v46 = vrot.slane %v7232_v0, 4  ;;  %v14577_v43 = vld [vmem:[#allocation10 + $0x88] sm:$0xff]  }
 0x234   : > { %13182 = vmatprep.mubr.bf16.mxu1 %v14573_v8  ;;  %13547 = vmatmul.mubr.bf16.gmra.mrb[24].mxu0 %v12248_v24  ;;  %v2350_v24 = vshrl.u32 %v2188_v44, 16  ;;  %v2343_v8 = vrot.slane %v2342_v60, 4  ;;  %v16031_v44 = vsel %vm15823_vm14, %v12229_v35, %v7232_v0  ;;  %v2376_v59 = vor.u32 %v2375_v38, %v2371_v23  ;;  %v2194_v60 = vld [vmem:[#allocation2 + $0x40] sm:$0xf] }
 0x235   : > { %13550 = vmatprep.mubr.bf16.mxu0 %v12249_v47  ;;  %v2363_v47 = vshrl.u32 %v2189_v52, 16  ;;  %v2355_v12 = vrot.slane %v2353_v2, 5  ;;  %v16039_v30 = vsel %vm15823_vm14, %v7234_v46, %v7235_v29  ;;  %v7238_v2 = vrot.slane %v6993_v51, 5  ;;  %v14581_v38 = vld [vmem:[#allocation10 + $0x98] sm:$0xff]  }
 0x236   : > { %v2352_v25 = vrot.slane %v2350_v24, 4  ;;  %v2348_v26 = vsel %vm15759_vm11, %v2343_v8, %v2347_v57  ;;  %v7237_v57 = vrot.slane %v7235_v29, 4  ;;  %v12255_v63 = vcombine.low %v16031_v44, %v16039_v30  ;;  %v2195_v24 = vld [vmem:[#allocation2 + $0x44] sm:$0xf] }
 0x237   : > { %v2365_v17 = vrot.slane %v2363_v47, 4  ;;  %v16019_v20 = vcombine.low %v2338_v27, %v2348_v26  ;;  %v2377_v14 = vrot.slane %v2376_v59, 4  ;;  %v2394_v5 = vshrl.u32 %v2193_v55, 16 }
 0x238   : > { %v2356_v28 = vor.u32 %v2355_v12, %v2352_v25  ;;  %v2397_v6 = vshll.u32 %v2193_v55, 16  ;;  %v2403_v47 = vshll.u32 %v2194_v60, 16  ;;  %v2407_v25 = vshrl.u32 %v2194_v60, 16  ;;  %v6996_v12 = vld [vmem:[#allocation2 + $0xf4] sm:$0xf] }
 0x239   : > { %v2366_v34 = vor.u32 %v2365_v17, %v2361_v15  ;;  %v2396_v9 = vrot.slane %v2394_v5, 4  ;;  %v6997_v17 = vld [vmem:[#allocation2 + $0xf8] sm:$0xf]  ;;  %v2417_v54 = vshrl.u32 %v2195_v24, 16  ;;  %v7245_v31 = vrot.slane %v6996_v12, 5 }
 0x23a   : > { %v2357_v37 = vrot.slane %v2356_v28, 4  ;;  %v2399_v26 = vrot.slane %v2397_v6, 5  ;;  %v2413_v28 = vshll.u32 %v2195_v24, 16  ;;  %v7248_v45 = vrot.slane %v6997_v17, 5  ;;  %v2198_v55 = vld [vmem:[#allocation2 + $0x50] sm:$0xf] }
 0x23b   : > { %13183 = vmatmul.mubr.bf16.gmra.mrb[60].mxu1 %v14574_v53  ;;  %v2367_v42 = vrot.slane %v2366_v34, 4  ;;  %v6994_v53 = vld [vmem:[#allocation2 + $0xec] sm:$0x1]  ;;  %v2199_v60 = vld [vmem:[#allocation2 + $0x54] sm:$0xf] }
 0x23c   : > { %13202 = vmatprep.mubr.bf16.mxu1 %v15960_v39  ;;  %13551 = vmatmul.mubr.bf16.gmra.mrb[28].mxu0 %v12250_v1  ;;  %v2383_v39 = vshrl.u32 %v2191_v18, 16  ;;  %v2362_v49 = vsel %vm15759_vm11, %v2357_v37, %v2361_v15  ;;  %v2381_v1 = vrot.slane %v2379_v41, 5  ;;  %v7241_v4 = vrot.slane %v6994_v53, 5  ;;  %v7000_v12 = vld [vmem:[#allocation2 + $0x104] sm:$0xe] }
 0x23d   : > { %13554 = vmatprep.mubr.bf16.mxu0 %v12251_v36  ;;  %v2372_v13 = vsel %vm15759_vm11, %v2367_v42, %v2371_v23  ;;  %v2391_v36 = vrot.slane %v2389_v50, 5  ;;  %v7240_v15 = vrot.slane %v7238_v2, 4  ;;  %v2409_v18 = vrot.slane %v2407_v25, 4  ;;  %v2196_v23 = vld [vmem:[#allocation2 + $0x48] sm:$0xf] }
 0x23e   : > { %v2385_v52 = vrot.slane %v2383_v39, 4  ;;  %v12047_v61 = vcombine.low %v2362_v49, %v2372_v13  ;;  %v2382_v8 = vsel %vm15759_vm11, %v2377_v14, %v2381_v1  ;;  %v2400_v35 = vor.u32 %v2399_v26, %v2396_v9  ;;  %v6998_v39 = vld [vmem:[#allocation2 + $0xfc] sm:$0xf]  ;;  %v6999_v42 = vld [vmem:[#allocation2 + $0x100] sm:$0x1]  ;;  %v14590_v26 = vld [vmem:[#allocation10 + $0xa8] sm:$0xff]  }
 0x23f   : > { %v16064_v34 = vsel %vm15823_vm14, %v7240_v15, %v7241_v4  ;;  %v2415_v29 = vrot.slane %v2413_v28, 5  ;;  %v12230_v37 = vrot.slane %v6995_v7, 9  ;;  %v2423_v50 = vshll.u32 %v2196_v23, 16  ;;  %v2200_v7 = vld [vmem:[#allocation2 + $0x58] sm:$0xf] }
 0x240   : > { %v2386_v27 = vor.u32 %v2385_v52, %v2381_v1  ;;  %v2401_v41 = vrot.slane %v2400_v35, 4  ;;  %v2427_v51 = vshrl.u32 %v2196_v23, 16  ;;  %v2433_v49 = vshll.u32 %v2197_v3, 16  ;;  %v7001_v9 = vld [vmem:[#allocation2 + $0x108] sm:$0xf] }
 0x241   : > { %v16073_v1 = vsel %vm15823_vm14, %v12230_v37, %v7245_v31  ;;  %v7247_v52 = vrot.slane %v7245_v31, 4  ;;  %v7250_v24 = vrot.slane %v7248_v45, 4  ;;  %v7251_v5 = vrot.slane %v6998_v39, 5  ;;  %v2201_v23 = vld [vmem:[#allocation2 + $0x5c] sm:$0xf] }
 0x242   : > { %v2387_v40 = vrot.slane %v2386_v27, 4  ;;  %v7254_v6 = vrot.slane %v6999_v42, 5  ;;  %v2447_v25 = vshll.u32 %v2199_v60, 16  ;;  %v2461_v28 = vshrl.u32 %v2200_v7, 16 }
 0x243   : > { %13203 = vmatmul.mubr.bf16.vlgmr.msra.gmra.mrb[0].mxu1 %v15982_v10  ;;  %v16050_v10 = vsel %vm15823_vm14, %v7237_v57, %v7238_v2  ;;  %v2435_v57 = vrot.slane %v2433_v49, 5  ;;  %v7249_v14 = vsel %vm15823_vm14, %v7247_v52, %v7248_v45  ;;  %v14584_v2 = vld [vmem:[#allocation10 + $0xa0] sm:$0xff]   ;;  %v16090_v32 = vsel %vm15823_vm14, %v7250_v24, %v7251_v5  ;;  %v14596_v45 = vld [vmem:[#allocation10 + $0xb0] sm:$0xff]  }
 0x244   : > { %13267 = vmatpush3.bf16.msra.mxu1 %v15911_v22  ;;  %13206 = vmatprep.mubr.bf16.mxu1 %v16004_v58  ;;  %v2392_v22 = vsel %vm15759_vm11, %v2387_v40, %v2391_v36  ;;  %v2405_v58 = vrot.slane %v2403_v47, 5  ;;  %v2425_v36 = vrot.slane %v2423_v50, 5  ;;  %v2438_v40 = vshrl.u32 %v2198_v55, 16  ;;  %v7003_v50 = vld [vmem:[#allocation2 + $0x110] sm:$0xf] }
 0x245   : > { %13268 = vmatprep.subr.bf16.mxu1 %v14577_v43  ;;  %13555 = vmatmul.mubr.bf16.gmra.mrb[32].mxu0 %v12252_v11  ;;  %v16060_v33 = vcombine.low %v2382_v8, %v2392_v22  ;;  %v12256_v11 = vcombine.low %v16050_v10, %v16064_v34  ;;  %v2441_v47 = vshll.u32 %v2198_v55, 16  ;;  %v7253_v16 = vrot.slane %v7251_v5, 4  ;;  %v2205_v24 = vld [vmem:[#allocation2 + $0x6c] sm:$0xf] }
 0x246   : > { %13558 = vmatprep.mubr.bf16.mxu0 %v12253_v56  ;;  %v2410_v0 = vor.u32 %v2409_v18, %v2405_v58  ;;  %v2419_v56 = vrot.slane %v2417_v54, 4  ;;  %v2406_v59 = vsel %vm15759_vm11, %v2401_v41, %v2405_v58  ;;  %v2440_v17 = vrot.slane %v2438_v40, 4 }
 0x247   : > { %v2443_v44 = vrot.slane %v2441_v47, 5  ;;  %v2449_v30 = vrot.slane %v2447_v25, 5  ;;  %v16096_v58 = vsel %vm15823_vm14, %v7253_v16, %v7254_v6  ;;  %v7258_v41 = vrot.slane %v7001_v9, 5  ;;  %v7006_v9 = vld [vmem:[#allocation2 + $0x11c] sm:$0xf] }
 0x248   : > { %13269 = vmatpush3.bf16.msra.mxu1 %v14577_v43  ;;  %v2411_v46 = vrot.slane %v2410_v0, 4  ;;  %v2420_v53 = vor.u32 %v2419_v56, %v2415_v29  ;;  %v2429_v43 = vrot.slane %v2427_v51, 4  ;;  %v12258_v54 = vcombine.low %v16090_v32, %v16096_v58 }
 0x249   : > { %13270 = vmatprep.subr.bf16.mxu1 %v14579_v19  ;;  %v2444_v3 = vor.u32 %v2443_v44, %v2440_v17  ;;  %v2463_v39 = vrot.slane %v2461_v28, 4  ;;  %v2467_v42 = vshll.u32 %v2201_v23, 16  ;;  %v7260_v49 = vrot.slane %v7258_v41, 4 }
 0x24a   : > { %v2416_v13 = vsel %vm15759_vm11, %v2411_v46, %v2415_v29  ;;  %v2421_v27 = vrot.slane %v2420_v53, 4  ;;  %v2430_v4 = vor.u32 %v2429_v43, %v2425_v36  ;;  %v2202_v29 = vld [vmem:[#allocation2 + $0x60] sm:$0x1]  ;;  %v2471_v46 = vshrl.u32 %v2201_v23, 16  ;;  %v2204_v43 = vld [vmem:[#allocation2 + $0x68] sm:$0xf] }
 0x24b   : > { %13207 = vmatmul.mubr.bf16.gmra.mrb[4].mxu1 %v16019_v20  ;;  %v12049_v20 = vcombine.low %v2406_v59, %v2416_v13  ;;  %v2445_v56 = vrot.slane %v2444_v3, 4  ;;  %v2477_v59 = vshll.u32 %v2202_v29, 16  ;;  %v2469_v55 = vrot.slane %v2467_v42, 5  ;;  %v2207_v3 = vld [vmem:[#allocation2 + $0x74] sm:$0x1] }
 0x24c   : > { %13210 = vmatprep.mubr.bf16.mxu1 %v12047_v61  ;;  %13271 = vmatpush3.bf16.msra.mxu1 %v14579_v19  ;;  %v12257_v61 = vcombine.low %v16073_v1, %v7249_v14  ;;  %v2426_v8 = vsel %vm15759_vm11, %v2421_v27, %v2425_v36  ;;  %v2431_v15 = vrot.slane %v2430_v4, 4  ;;  %v7002_v19 = vld [vmem:[#allocation2 + $0x10c] sm:$0xf]  ;;  %v7004_v1 = vld [vmem:[#allocation2 + $0x114] sm:$0x1]  ;;  %v2473_v13 = vrot.slane %v2471_v46, 4 }
 0x24d   : > { %13272 = vmatprep.subr.bf16.mxu1 %v14581_v38  ;;  %13559 = vmatmul.mubr.bf16.gmra.mrb[36].mxu0 %v12254_v21  ;;  %v2451_v21 = vshrl.u32 %v2199_v60, 16  ;;  %v7261_v31 = vrot.slane %v7002_v19, 5  ;;  %v2450_v52 = vsel %vm15759_vm11, %v2445_v56, %v2449_v30  ;;  %v2203_v36 = vld [vmem:[#allocation2 + $0x64] sm:$0xf]  ;;  %v7267_v4 = vrot.slane %v7004_v1, 5  ;;  %v14608_v19 = vld [vmem:[#allocation10 + $0xc0] sm:$0xff]  }
 0x24e   : > { %13562 = vmatprep.mubr.bf16.mxu0 %v12255_v63  ;;  %v2457_v63 = vshll.u32 %v2200_v7, 16  ;;  %v2436_v22 = vsel %vm15759_vm11, %v2431_v15, %v2435_v57  ;;  %v2474_v27 = vor.u32 %v2473_v13, %v2469_v55  ;;  %v2482_v5 = vshrl.u32 %v2203_v36, 16  ;;  %v7005_v7 = vld [vmem:[#allocation2 + $0x118] sm:$0xe]  ;;  %v7008_v42 = vld [vmem:[#allocation2 + $0x124] sm:$0xf] }
 0x24f   : > { %v2453_v18 = vrot.slane %v2451_v21, 4  ;;  %v12050_v35 = vcombine.low %v2426_v8, %v2436_v22  ;;  %v7262_v34 = vsel %vm15823_vm14, %v7260_v49, %v7261_v31  ;;  %v7263_v57 = vrot.slane %v7261_v31, 4  ;;  %v7009_v49 = vld [vmem:[#allocation2 + $0x128] sm:$0x1]  ;;  %v2209_v13 = vld [vmem:[#allocation2 + $0x7c] sm:$0xf] }
 0x250   : > { %13273 = vmatpush3.bf16.msra.mxu1 %v14581_v38  ;;  %v2459_v0 = vrot.slane %v2457_v63, 5  ;;  %v12231_v38 = vrot.slane %v7000_v12, 9  ;;  %v2485_v6 = vshll.u32 %v2203_v36, 16  ;;  %v2475_v40 = vrot.slane %v2474_v27, 4  ;;  %v7007_v63 = vld [vmem:[#allocation2 + $0x120] sm:$0xf] }
 0x251   : > { %13274 = vmatprep.subr.bf16.mxu1 %v14584_v2  ;;  %v2454_v37 = vor.u32 %v2453_v18, %v2449_v30  ;;  %v2491_v47 = vshll.u32 %v2204_v43, 16  ;;  %v2495_v25 = vshrl.u32 %v2204_v43, 16  ;;  %v2484_v16 = vrot.slane %v2482_v5, 4  ;;  %v7011_v5 = vld [vmem:[#allocation2 + $0x130] sm:$0xf] }
 0x252   : > { %v7259_v51 = vsel %vm15823_vm14, %v12231_v38, %v7258_v41  ;;  %v2464_v53 = vor.u32 %v2463_v39, %v2459_v0  ;;  %v2487_v21 = vrot.slane %v2485_v6, 5  ;;  %v2501_v30 = vshll.u32 %v2205_v24, 16  ;;  %v7012_v6 = vld [vmem:[#allocation2 + $0x134] sm:$0xf] }
 0x253   : > { %13211 = vmatmul.mubr.bf16.gmra.mrb[8].mxu1 %v16060_v33  ;;  %v2455_v33 = vrot.slane %v2454_v37, 4  ;;  %v2493_v17 = vrot.slane %v2491_v47, 5  ;;  %v2497_v44 = vrot.slane %v2495_v25, 4  ;;  %v2505_v23 = vshrl.u32 %v2205_v24, 16  ;;  %v2211_v25 = vld [vmem:[#allocation2 + $0x84] sm:$0xf] }
 0x254   : > { %13214 = vmatprep.mubr.bf16.mxu1 %v12049_v20  ;;  %13275 = vmatpush3.bf16.msra.mxu1 %v14584_v2  ;;  %v12259_v20 = vcombine.low %v7259_v51, %v7262_v34  ;;  %v2465_v14 = vrot.slane %v2464_v53, 4  ;;  %v14602_v2 = vld [vmem:[#allocation10 + $0xb8] sm:$0xff]   ;;  %v2488_v28 = vor.u32 %v2487_v21, %v2484_v16  ;;  %v2503_v37 = vrot.slane %v2501_v30, 5 }
 0x255   : > { %13276 = vmatprep.subr.bf16.mxu1 %v14590_v26  ;;  %13563 = vmatmul.mubr.bf16.gmra.mrb[40].mxu0 %v12256_v11  ;;  %v2460_v10 = vsel %vm15759_vm11, %v2455_v33, %v2459_v0  ;;  %v2479_v11 = vrot.slane %v2477_v59, 5  ;;  %v2498_v29 = vor.u32 %v2497_v44, %v2493_v17  ;;  %v12232_v38 = vrot.slane %v7005_v7, 9  ;;  %v2208_v59 = vld [vmem:[#allocation2 + $0x78] sm:$0xf] }
 0x256   : > { %13566 = vmatprep.mubr.bf16.mxu0 %v12257_v61  ;;  %v12051_v60 = vcombine.low %v2450_v52, %v2460_v10  ;;  %v7264_v61 = vrot.slane %v7003_v50, 5  ;;  %v2470_v8 = vsel %vm15759_vm11, %v2465_v14, %v2469_v55  ;;  %v2489_v41 = vrot.slane %v2488_v28, 4 }
 0x257   : > { %v7271_v31 = vrot.slane %v7006_v9, 5  ;;  %v2507_v56 = vrot.slane %v2505_v23, 4  ;;  %v2499_v32 = vrot.slane %v2498_v29, 4  ;;  %v2521_v39 = vshll.u32 %v2207_v3, 16  ;;  %v2212_v9 = vld [vmem:[#allocation2 + $0x88] sm:$0x1] }
 0x258   : > { %13277 = vmatpush3.bf16.msra.mxu1 %v14590_v26  ;;  %v7265_v12 = vsel %vm15823_vm14, %v7263_v57, %v7264_v61  ;;  %v7266_v15 = vrot.slane %v7264_v61, 4  ;;  %v2480_v26 = vsel %vm15759_vm11, %v2475_v40, %v2479_v11  ;;  %v2494_v46 = vsel %vm15759_vm11, %v2489_v41, %v2493_v17  ;;  %v2210_v11 = vld [vmem:[#allocation2 + $0x80] sm:$0xf]  ;;  %v7013_v41 = vld [vmem:[#allocation2 + $0x138] sm:$0xf] }
 0x259   : > { %13278 = vmatprep.subr.bf16.mxu1 %v14596_v45  ;;  %v12052_v22 = vcombine.low %v2470_v8, %v2480_v26  ;;  %v7272_v50 = vsel %vm15823_vm14, %v12232_v38, %v7271_v31  ;;  %v7273_v33 = vrot.slane %v7271_v31, 4  ;;  %v2508_v51 = vor.u32 %v2507_v56, %v2503_v37 }
 0x25a   : > { %v7268_v18 = vsel %vm15823_vm14, %v7266_v15, %v7267_v4  ;;  %v2504_v1 = vsel %vm15759_vm11, %v2499_v32, %v2503_v37  ;;  %v2523_v55 = vrot.slane %v2521_v39, 5  ;;  %v7280_v14 = vrot.slane %v7009_v49, 5  ;;  %v7010_v4 = vld [vmem:[#allocation2 + $0x12c] sm:$0xe] }
 0x25b   : > { %13215 = vmatmul.mubr.bf16.gmra.mrb[12].mxu1 %v12050_v35  ;;  %v2206_v35 = vld [vmem:[#allocation2 + $0x70] sm:$0xf]  ;;  %v12260_v0 = vcombine.low %v7265_v12, %v7268_v18  ;;  %v12053_v36 = vcombine.low %v2494_v46, %v2504_v1  ;;  %v2509_v10 = vrot.slane %v2508_v51, 4  ;;  %v2526_v24 = vshrl.u32 %v2208_v59, 16 }
 0x25c   : > { %13218 = vmatprep.mubr.bf16.mxu1 %v12051_v60  ;;  %13279 = vmatpush3.bf16.msra.mxu1 %v14596_v45  ;;  %v7274_v45 = vrot.slane %v7007_v63, 5  ;;  %v2511_v58 = vshll.u32 %v2206_v35, 16  ;;  %v2535_v61 = vshll.u32 %v2209_v13, 16  ;;  %v2539_v47 = vshrl.u32 %v2209_v13, 16  ;;  %v2214_v1 = vld [vmem:[#allocation2 + $0x90] sm:$0xf] }
 0x25d   : > { %13280 = vmatprep.subr.bf16.mxu1 %v14602_v2  ;;  %13567 = vmatmul.mubr.bf16.gmra.mrb[44].mxu0 %v12258_v54  ;;  %v2515_v54 = vshrl.u32 %v2206_v35, 16  ;;  %v2528_v12 = vrot.slane %v2526_v24, 4  ;;  %v2545_v21 = vshll.u32 %v2210_v11, 16  ;;  %v2549_v30 = vshrl.u32 %v2210_v11, 16  ;;  %v7016_v24 = vld [vmem:[#allocation2 + $0x144] sm:$0xf] }
 0x25e   : > { %13570 = vmatprep.mubr.bf16.mxu0 %v12259_v20  ;;  %v2513_v52 = vrot.slane %v2511_v58, 5  ;;  %v7275_v43 = vsel %vm15823_vm14, %v7273_v33, %v7274_v45  ;;  %v7276_v34 = vrot.slane %v7274_v45, 4  ;;  %v7277_v20 = vrot.slane %v7008_v42, 5  ;;  %v7014_v58 = vld [vmem:[#allocation2 + $0x13c] sm:$0x1] }
 0x25f   : > { %v2517_v53 = vrot.slane %v2515_v54, 4  ;;  %v12261_v57 = vcombine.low %v7272_v50, %v7275_v43  ;;  %v2537_v16 = vrot.slane %v2535_v61, 5  ;;  %v2541_v44 = vrot.slane %v2539_v47, 4  ;;  %v2213_v50 = vld [vmem:[#allocation2 + $0x8c] sm:$0xf] }
 0x260   : > { %13281 = vmatpush3.bf16.msra.mxu1 %v14602_v2  ;;  %v2514_v27 = vsel %vm15759_vm11, %v2509_v10, %v2513_v52  ;;  %v2529_v2 = vshll.u32 %v2208_v59, 16  ;;  %v7278_v8 = vsel %vm15823_vm14, %v7276_v34, %v7277_v20  ;;  %v7279_v40 = vrot.slane %v7277_v20, 4 }
 0x261   : > { %13346 = vmatprep.subr.bf16.mxu1 %v14608_v19  ;;  %v2518_v60 = vor.u32 %v2517_v53, %v2513_v52  ;;  %v2547_v18 = vrot.slane %v2545_v21, 5  ;;  %v2542_v28 = vor.u32 %v2541_v44, %v2537_v16  ;;  %v12233_v23 = vrot.slane %v7010_v4, 9 }
 0x262   : > { %v2531_v15 = vrot.slane %v2529_v2, 5  ;;  %v7281_v17 = vsel %vm15823_vm14, %v7279_v40, %v7280_v14  ;;  %v7284_v35 = vrot.slane %v7011_v5, 5  ;;  %v7287_v3 = vrot.slane %v7012_v6, 5  ;;  %v7017_v2 = vld [vmem:[#allocation2 + $0x148] sm:$0xf] }
 0x263   : > { %13219 = vmatmul.mubr.bf16.gmra.mrb[16].mxu1 %v12052_v22  ;;  %v2519_v7 = vrot.slane %v2518_v60, 4  ;;  %v12262_v19 = vcombine.low %v7278_v8, %v7281_v17  ;;  %v2551_v29 = vrot.slane %v2549_v30, 4  ;;  %v2555_v37 = vshll.u32 %v2211_v25, 16 }
 0x264   : > { %13222 = vmatprep.mubr.bf16.mxu1 %v12053_v36  ;;  %v2532_v22 = vor.u32 %v2531_v15, %v2528_v12  ;;  %v2559_v38 = vshrl.u32 %v2211_v25, 16  ;;  %v2543_v31 = vrot.slane %v2542_v28, 4  ;;  %v7285_v45 = vsel %vm15823_vm14, %v12233_v23, %v7284_v35  ;;  %v2215_v36 = vld [vmem:[#allocation2 + $0x94] sm:$0xf]  ;;  %v2217_v12 = vld [vmem:[#allocation2 + $0x9c] sm:$0x1] }
 0x265   : > { %13571 = vmatmul.mubr.bf16.gmra.mrb[48].mxu0 %v12260_v0  ;;  %v2524_v26 = vsel %vm15759_vm11, %v2519_v7, %v2523_v55  ;;  %v7286_v56 = vrot.slane %v7284_v35, 4  ;;  %v2565_v32 = vshll.u32 %v2212_v9, 16  ;;  %v2552_v39 = vor.u32 %v2551_v29, %v2547_v18  ;;  %v2216_v7 = vld [vmem:[#allocation2 + $0x98] sm:$0xf]  ;;  %v7018_v28 = vld [vmem:[#allocation2 + $0x14c] sm:$0xf] }
 0x266   : > { %13574 = vmatprep.mubr.bf16.mxu0 %v12261_v57  ;;  %v12054_v63 = vcombine.low %v2514_v27, %v2524_v26  ;;  %v2533_v0 = vrot.slane %v2532_v22, 4  ;;  %v2557_v42 = vrot.slane %v2555_v37, 5  ;;  %v2561_v46 = vrot.slane %v2559_v38, 4  ;;  %v7015_v57 = vld [vmem:[#allocation2 + $0x140] sm:$0xe] }
 0x267   : > { %v2548_v33 = vsel %vm15759_vm11, %v2543_v31, %v2547_v18  ;;  %v7288_v51 = vsel %vm15823_vm14, %v7286_v56, %v7287_v3  ;;  %v2567_v49 = vrot.slane %v2565_v32, 5  ;;  %v7289_v59 = vrot.slane %v7287_v3, 4  ;;  %v7019_v23 = vld [vmem:[#allocation2 + $0x150] sm:$0x1]  ;;  %v2218_v37 = vld [vmem:[#allocation2 + $0xa0] sm:$0xf] }
 0x268   : > { %v2538_v54 = vsel %vm15759_vm11, %v2533_v0, %v2537_v16  ;;  %v12263_v53 = vcombine.low %v7285_v45, %v7288_v51  ;;  %v2553_v55 = vrot.slane %v2552_v39, 4  ;;  %v2562_v13 = vor.u32 %v2561_v46, %v2557_v42  ;;  %v2219_v38 = vld [vmem:[#allocation2 + $0xa4] sm:$0xf] }
 0x269   : > { %v12055_v52 = vcombine.low %v2538_v54, %v2548_v33  ;;  %v7290_v43 = vrot.slane %v7013_v41, 5  ;;  %v7293_v10 = vrot.slane %v7014_v58, 5  ;;  %v2570_v34 = vshrl.u32 %v2213_v50, 16 }
 0x26a   : > { %v2573_v11 = vshll.u32 %v2213_v50, 16  ;;  %v2558_v60 = vsel %vm15759_vm11, %v2553_v55, %v2557_v42  ;;  %v2563_v20 = vrot.slane %v2562_v13, 4  ;;  %v2579_v14 = vshll.u32 %v2214_v1, 16 }
 0x26b   : > { %13223 = vmatmul.mubr.bf16.gmra.mrb[20].mxu1 %v12054_v63  ;;  %v2583_v27 = vshrl.u32 %v2214_v1, 16  ;;  %v7291_v61 = vsel %vm15823_vm14, %v7289_v59, %v7290_v43  ;;  %v7292_v4 = vrot.slane %v7290_v43, 4  ;;  %v2572_v5 = vrot.slane %v2570_v34, 4  ;;  %v2221_v43 = vld [vmem:[#allocation2 + $0xac] sm:$0xf] }
 0x26c   : > { %13226 = vmatprep.mubr.bf16.mxu1 %v12055_v52  ;;  %v2575_v6 = vrot.slane %v2573_v11, 5  ;;  %v2568_v8 = vsel %vm15759_vm11, %v2563_v20, %v2567_v49  ;;  %v2581_v40 = vrot.slane %v2579_v14, 5  ;;  %v2589_v25 = vshll.u32 %v2215_v36, 16  ;;  %v2220_v52 = vld [vmem:[#allocation2 + $0xa8] sm:$0xf] }
 0x26d   : > { %13575 = vmatmul.mubr.bf16.gmra.mrb[52].mxu0 %v12262_v19  ;;  %v2585_v47 = vrot.slane %v2583_v27, 4  ;;  %v12056_v15 = vcombine.low %v2558_v60, %v2568_v8  ;;  %v7294_v16 = vsel %vm15823_vm14, %v7292_v4, %v7293_v10  ;;  %v2593_v9 = vshrl.u32 %v2215_v36, 16  ;;  %v14583_v60 = vld [vmem:[#allocation2 + $0x28] sm:$0xff]  }
 0x26e   : > { %13578 = vmatprep.mubr.bf16.mxu0 %v12263_v53  ;;  %v2576_v21 = vor.u32 %v2575_v6, %v2572_v5  ;;  %v12264_v26 = vcombine.low %v7291_v61, %v7294_v16  ;;  %v2591_v44 = vrot.slane %v2589_v25, 5  ;;  %v12234_v30 = vrot.slane %v7015_v57, 9 }
 0x26f   : > { %v2586_v17 = vor.u32 %v2585_v47, %v2581_v40  ;;  %v7297_v19 = vrot.slane %v7016_v24, 5  ;;  %v7300_v22 = vrot.slane %v7017_v2, 5  ;;  %v2595_v18 = vrot.slane %v2593_v9, 4  ;;  %v2222_v2 = vld [vmem:[#allocation2 + $0xb0] sm:$0x1] }
 0x270   : > { %v2577_v63 = vrot.slane %v2576_v21, 4  ;;  %v2599_v3 = vshll.u32 %v2216_v7, 16  ;;  %v2603_v0 = vshrl.u32 %v2216_v7, 16  ;;  %v2609_v29 = vshll.u32 %v2217_v12, 16  ;;  %v2223_v7 = vld [vmem:[#allocation2 + $0xb4] sm:$0xf] }
 0x271   : > { %v2587_v35 = vrot.slane %v2586_v17, 4  ;;  %v7298_v31 = vsel %vm15823_vm14, %v12234_v30, %v7297_v19  ;;  %v7299_v45 = vrot.slane %v7297_v19, 4  ;;  %v2596_v56 = vor.u32 %v2595_v18, %v2591_v44  ;;  %v2224_v9 = vld [vmem:[#allocation2 + $0xb8] sm:$0xf] }
 0x272   : > { %v2582_v41 = vsel %vm15759_vm11, %v2577_v63, %v2581_v40  ;;  %v2601_v58 = vrot.slane %v2599_v3, 5  ;;  %v2605_v54 = vrot.slane %v2603_v0, 4  ;;  %v2611_v39 = vrot.slane %v2609_v29, 5  ;;  %v14585_v3 = vld [vmem:[#allocation2 + $0x30] sm:$0xff]  }
 0x273   : > { %13227 = vmatmul.mubr.bf16.gmra.mrb[24].mxu1 %v12056_v15  ;;  %v2592_v32 = vsel %vm15759_vm11, %v2587_v35, %v2591_v44  ;;  %v7301_v46 = vsel %vm15823_vm14, %v7299_v45, %v7300_v22  ;;  %v2597_v50 = vrot.slane %v2596_v56, 4  ;;  %v7302_v33 = vrot.slane %v7300_v22, 4  ;;  %v2225_v44 = vld [vmem:[#allocation2 + $0xbc] sm:$0xf]  ;;  %v2226_v56 = vld [vmem:[#allocation2 + $0xc0] sm:$0xf] }
 0x274   : > { %v12057_v42 = vcombine.low %v2582_v41, %v2592_v32  ;;  %v12265_v51 = vcombine.low %v7298_v31, %v7301_v46  ;;  %v2606_v49 = vor.u32 %v2605_v54, %v2601_v58  ;;  %v7303_v59 = vrot.slane %v7018_v28, 5  ;;  %v14587_v45 = vld [vmem:[#allocation2 + $0x3c] sm:$0xff]   ;;  %v2227_v32 = vld [vmem:[#allocation2 + $0xc4] sm:$0x1]  ;;  %v2228_v46 = vld [vmem:[#allocation2 + $0xc8] sm:$0xf] }
 0x275   : > { %13579 = vmatmul.mubr.bf16.gmra.mrb[56].mxu0 %v12264_v26  ;;  %v7306_v1 = vrot.slane %v7019_v23, 5  ;;  %v2602_v53 = vsel %vm15759_vm11, %v2597_v50, %v2601_v58  ;;  %v2614_v55 = vshrl.u32 %v2218_v37, 16  ;;  %v2617_v13 = vshll.u32 %v2218_v37, 16 }
 0x276   : > { %13230 = vmatprep.mubr.bf16.mxu1 %v12057_v42  ;;  %v2623_v36 = vshll.u32 %v2219_v38, 16  ;;  %13582 = vmatprep.mubr.bf16.mxu0 %v12265_v51  ;;  %v2607_v10 = vrot.slane %v2606_v49, 4  ;;  %v7304_v34 = vsel %vm15823_vm14, %v7302_v33, %v7303_v59  ;;  %v7305_v11 = vrot.slane %v7303_v59, 4  ;;  %v2229_v59 = vld [vmem:[#allocation2 + $0xcc] sm:$0xf] }
 0x277   : > { %v2627_v57 = vshrl.u32 %v2219_v38, 16  ;;  %v2616_v20 = vrot.slane %v2614_v55, 4  ;;  %v2619_v14 = vrot.slane %v2617_v13, 5  ;;  %v2633_v24 = vshll.u32 %v2220_v52, 16 }
 0x278   : > { %v2625_v27 = vrot.slane %v2623_v36, 5  ;;  %v2612_v61 = vsel %vm15759_vm11, %v2607_v10, %v2611_v39  ;;  %v7307_v4 = vsel %vm15823_vm14, %v7305_v11, %v7306_v1  ;;  %v2637_v6 = vshrl.u32 %v2220_v52, 16  ;;  %v14592_v1 = vld [vmem:[#allocation10 + $0x1c8] sm:$0xff]  }
 0x279   : > { %v2629_v5 = vrot.slane %v2627_v57, 4  ;;  %v12058_v8 = vcombine.low %v2602_v53, %v2612_v61  ;;  %v12266_v40 = vcombine.low %v7304_v34, %v7307_v4  ;;  %v2620_v47 = vor.u32 %v2619_v14, %v2616_v20  ;;  %v2230_v14 = vld [vmem:[#allocation2 + $0xd0] sm:$0xf] }
 0x27a   : > { %v2635_v25 = vrot.slane %v2633_v24, 5  ;;  %v2639_v15 = vrot.slane %v2637_v6, 4  ;;  %v2643_v16 = vshll.u32 %v2221_v43, 16  ;;  %v2647_v21 = vshrl.u32 %v2221_v43, 16  ;;  %v14598_v6 = vld [vmem:[#allocation10 + $0x1d0] sm:$0xff]  }
 0x27b   : > { %v2630_v12 = vor.u32 %v2629_v5, %v2625_v27  ;;  %13231 = vmatmul.mubr.bf16.gmra.mrb[28].mxu1 %v12058_v8  ;;  %v2621_v26 = vrot.slane %v2620_v47, 4  ;;  %v2653_v17 = vshll.u32 %v2222_v2, 16  ;;  %v2658_v30 = vshrl.u32 %v2223_v7, 16  ;;  %v2231_v5 = vld [vmem:[#allocation2 + $0xd4] sm:$0xf] }
 0x27c   : > { %v2661_v63 = vshll.u32 %v2223_v7, 16  ;;  %v2640_v22 = vor.u32 %v2639_v15, %v2635_v25  ;;  %v2645_v18 = vrot.slane %v2643_v16, 5  ;;  %v2649_v28 = vrot.slane %v2647_v21, 4 }
 0x27d   : > { %13583 = vmatmul.mubr.bf16.gmra.mrb[60].mxu0 %v12266_v40  ;;  %v2631_v19 = vrot.slane %v2630_v12, 4  ;;  %v2626_v23 = vsel %vm15759_vm11, %v2621_v26, %v2625_v27  ;;  %v2655_v35 = vrot.slane %v2653_v17, 5  ;;  %v2660_v0 = vrot.slane %v2658_v30, 4  ;;  %v14675_v27 = vld [vmem:[#allocation10 + $0x1c0] sm:$0xff]   ;;  %v2233_v12 = vld [vmem:[#allocation2 + $0xdc] sm:$0xf] }
 0x27e   : > { %13602 = vmatprep.mubr.bf16.mxu0 %v14583_v60  ;;  %v2663_v29 = vrot.slane %v2661_v63, 5  ;;  %v2641_v38 = vrot.slane %v2640_v22, 4  ;;  %v2650_v41 = vor.u32 %v2649_v28, %v2645_v18  ;;  %v2667_v31 = vshll.u32 %v2224_v9, 16  ;;  %v14588_v17 = vld [vmem:[#allocation2 + $0x44] sm:$0xff]  }
 0x27f   : > { %v2636_v37 = vsel %vm15759_vm11, %v2631_v19, %v2635_v25  ;;  %v2671_v39 = vshrl.u32 %v2224_v9, 16  ;;  %v2677_v42 = vshll.u32 %v2225_v44, 16  ;;  %v2681_v49 = vshrl.u32 %v2225_v44, 16  ;;  %v2232_v25 = vld [vmem:[#allocation2 + $0xd8] sm:$0x1] }
 0x280   : > { %v12059_v58 = vcombine.low %v2626_v23, %v2636_v37  ;;  %v2664_v54 = vor.u32 %v2663_v29, %v2660_v0  ;;  %v2646_v50 = vsel %vm15759_vm11, %v2641_v38, %v2645_v18  ;;  %v2651_v33 = vrot.slane %v2650_v41, 4  ;;  %v14589_v23 = vld [vmem:[#allocation2 + $0x50] sm:$0xff]  }
 0x281   : > { %v2669_v51 = vrot.slane %v2667_v31, 5  ;;  %v2673_v53 = vrot.slane %v2671_v39, 4  ;;  %v2679_v55 = vrot.slane %v2677_v42, 5  ;;  %v2687_v13 = vshll.u32 %v2226_v56, 16  ;;  %v2235_v42 = vld [vmem:[#allocation2 + $0xe4] sm:$0xf] }
 0x282   : > { %13234 = vmatprep.mubr.bf16.mxu1 %v12059_v58  ;;  %v2665_v52 = vrot.slane %v2664_v54, 4  ;;  %v2656_v36 = vsel %vm15759_vm11, %v2651_v33, %v2655_v35  ;;  %v2683_v43 = vrot.slane %v2681_v49, 4  ;;  %v2691_v10 = vshrl.u32 %v2226_v56, 16  ;;  %v14604_v35 = vld [vmem:[#allocation10 + $0x1d8] sm:$0xff]   ;;  %v2236_v49 = vld [vmem:[#allocation2 + $0xe8] sm:$0xf] }
 0x283   : > { %v2697_v34 = vshll.u32 %v2227_v32, 16  ;;  %v12060_v11 = vcombine.low %v2646_v50, %v2656_v36  ;;  %v2674_v60 = vor.u32 %v2673_v53, %v2669_v51  ;;  %v2689_v20 = vrot.slane %v2687_v13, 5 }
 0x284   : > { %v2670_v57 = vsel %vm15759_vm11, %v2665_v52, %v2669_v51  ;;  %v2684_v24 = vor.u32 %v2683_v43, %v2679_v55  ;;  %v2693_v2 = vrot.slane %v2691_v10, 4  ;;  %v2702_v4 = vshrl.u32 %v2228_v46, 16  ;;  %v14591_v43 = vld [vmem:[#allocation2 + $0x58] sm:$0xff]  }
 0x285   : > { %13603 = vmatmul.mubr.bf16.vlgmr.msra.gmra.mrb[0].mxu0 %v14585_v3  ;;  %v2699_v61 = vrot.slane %v2697_v34, 5  ;;  %13235 = vmatmul.mubr.bf16.gmra.mrb[32].mxu1 %v12060_v11  ;;  %v2675_v7 = vrot.slane %v2674_v60, 4  ;;  %v2705_v8 = vshll.u32 %v2228_v46, 16  ;;  %v2711_v40 = vshll.u32 %v2229_v59, 16  ;;  %v14593_v11 = vld [vmem:[#allocation2 + $0x64] sm:$0xff]  }
 0x286   : > { %13667 = vmatpush3.bf16.msra.mxu0 %v14675_v27  ;;  %13606 = vmatprep.mubr.bf16.mxu0 %v14587_v45  ;;  %v2715_v47 = vshrl.u32 %v2229_v59, 16  ;;  %v2685_v15 = vrot.slane %v2684_v24, 4  ;;  %v2694_v16 = vor.u32 %v2693_v2, %v2689_v20  ;;  %v2704_v21 = vrot.slane %v2702_v4, 4  ;;  %v2234_v45 = vld [vmem:[#allocation2 + $0xe0] sm:$0xf]  ;;  %v14616_v2 = vld [vmem:[#allocation10 + $0x1e8] sm:$0xff]  }
 0x287   : > { %13668 = vmatprep.subr.bf16.mxu0 %v14592_v1  ;;  %v2721_v9 = vshll.u32 %v2230_v14, 16  ;;  %v2680_v26 = vsel %vm15759_vm11, %v2675_v7, %v2679_v55  ;;  %v2707_v44 = vrot.slane %v2705_v8, 5  ;;  %v2713_v30 = vrot.slane %v2711_v40, 5  ;;  %v14610_v55 = vld [vmem:[#allocation10 + $0x1e0] sm:$0xff]   ;;  %v2238_v24 = vld [vmem:[#allocation2 + $0xf0] sm:$0xf] }
 0x288   : > { %v2717_v63 = vrot.slane %v2715_v47, 4  ;;  %v12061_v19 = vcombine.low %v2670_v57, %v2680_v26  ;;  %v2690_v22 = vsel %vm15759_vm11, %v2685_v15, %v2689_v20  ;;  %v2695_v18 = vrot.slane %v2694_v16, 4  ;;  %v2237_v57 = vld [vmem:[#allocation2 + $0xec] sm:$0x1]  ;;  %v2239_v7 = vld [vmem:[#allocation2 + $0xf4] sm:$0xf] }
 0x289   : > { %v2723_v28 = vrot.slane %v2721_v9, 5  ;;  %v2708_v3 = vor.u32 %v2707_v44, %v2704_v21  ;;  %v2725_v29 = vshrl.u32 %v2230_v14, 16  ;;  %v2731_v37 = vshll.u32 %v2231_v5, 16 }
 0x28a   : > { %13669 = vmatpush3.bf16.msra.mxu0 %v14592_v1  ;;  %v2718_v0 = vor.u32 %v2717_v63, %v2713_v30  ;;  %13238 = vmatprep.mubr.bf16.mxu1 %v12061_v19  ;;  %v2700_v38 = vsel %vm15759_vm11, %v2695_v18, %v2699_v61  ;;  %v2735_v41 = vshrl.u32 %v2231_v5, 16  ;;  %v2741_v31 = vshll.u32 %v2232_v25, 16 }
 0x28b   : > { %13670 = vmatprep.subr.bf16.mxu0 %v14598_v6  ;;  %v2746_v56 = vshrl.u32 %v2233_v12, 16  ;;  %v12062_v32 = vcombine.low %v2690_v22, %v2700_v38  ;;  %v2709_v58 = vrot.slane %v2708_v3, 4  ;;  %v2727_v39 = vrot.slane %v2725_v29, 4  ;;  %v14622_v29 = vld [vmem:[#allocation10 + $0x1f0] sm:$0xff]  }
 0x28c   : > { %v2719_v54 = vrot.slane %v2718_v0, 4  ;;  %v2733_v46 = vrot.slane %v2731_v37, 5  ;;  %v2737_v50 = vrot.slane %v2735_v41, 4  ;;  %v2743_v33 = vrot.slane %v2741_v31, 5 }
 0x28d   : > { %13607 = vmatmul.mubr.bf16.gmra.mrb[4].mxu0 %v14588_v17  ;;  %v2748_v51 = vrot.slane %v2746_v56, 4  ;;  %13239 = vmatmul.mubr.bf16.gmra.mrb[36].mxu1 %v12062_v32  ;;  %v2714_v59 = vsel %vm15759_vm11, %v2709_v58, %v2713_v30  ;;  %v2728_v52 = vor.u32 %v2727_v39, %v2723_v28  ;;  %v2749_v53 = vshll.u32 %v2233_v12, 16  ;;  %v2240_v30 = vld [vmem:[#allocation2 + $0xf8] sm:$0xf]  ;;  %v14594_v58 = vld [vmem:[#allocation2 + $0x6c] sm:$0xff]  }
 0x28e   : > { %13610 = vmatprep.mubr.bf16.mxu0 %v14589_v23  ;;  %13671 = vmatpush3.bf16.msra.mxu0 %v14598_v6  ;;  %v2724_v1 = vsel %vm15759_vm11, %v2719_v54, %v2723_v28  ;;  %v2738_v36 = vor.u32 %v2737_v50, %v2733_v46  ;;  %v2755_v10 = vshll.u32 %v2234_v45, 16  ;;  %v2759_v34 = vshrl.u32 %v2234_v45, 16  ;;  %v2241_v28 = vld [vmem:[#allocation2 + $0xfc] sm:$0xf]  ;;  %v2242_v45 = vld [vmem:[#allocation2 + $0x100] sm:$0x1] }
 0x28f   : > { %13672 = vmatprep.subr.bf16.mxu0 %v14604_v35  ;;  %v12063_v13 = vcombine.low %v2714_v59, %v2724_v1  ;;  %v2729_v60 = vrot.slane %v2728_v52, 4  ;;  %v2751_v20 = vrot.slane %v2749_v53, 5  ;;  %v2765_v14 = vshll.u32 %v2235_v42, 16 }
 0x290   : > { %v2769_v27 = vshrl.u32 %v2235_v42, 16  ;;  %v2739_v61 = vrot.slane %v2738_v36, 4  ;;  %v2757_v4 = vrot.slane %v2755_v10, 5  ;;  %v2761_v5 = vrot.slane %v2759_v34, 4  ;;  %v14595_v42 = vld [vmem:[#allocation2 + $0x78] sm:$0xff]  }
 0x291   : > { %13242 = vmatprep.mubr.bf16.mxu1 %v12063_v13  ;;  %v2775_v6 = vshll.u32 %v2236_v49, 16  ;;  %v2734_v8 = vsel %vm15759_vm11, %v2729_v60, %v2733_v46  ;;  %v2752_v40 = vor.u32 %v2751_v20, %v2748_v51  ;;  %v2767_v47 = vrot.slane %v2765_v14, 5  ;;  %v2244_v34 = vld [vmem:[#allocation2 + $0x108] sm:$0xf]  ;;  %v2245_v14 = vld [vmem:[#allocation2 + $0x10c] sm:$0xf] }
 0x292   : > { %13673 = vmatpush3.bf16.msra.mxu0 %v14604_v35  ;;  %v2771_v25 = vrot.slane %v2769_v27, 4  ;;  %v2744_v12 = vsel %vm15759_vm11, %v2739_v61, %v2743_v33  ;;  %v2762_v15 = vor.u32 %v2761_v5, %v2757_v4  ;;  %v2779_v21 = vshrl.u32 %v2236_v49, 16  ;;  %v14628_v49 = vld [vmem:[#allocation10 + $0x1f8] sm:$0xff]  }
 0x293   : > { %13674 = vmatprep.subr.bf16.mxu0 %v14610_v55  ;;  %v2777_v16 = vrot.slane %v2775_v6, 5  ;;  %v12064_v9 = vcombine.low %v2734_v8, %v2744_v12  ;;  %v2753_v26 = vrot.slane %v2752_v40, 4  ;;  %v2785_v44 = vshll.u32 %v2237_v57, 16 }
 0x294   : > { %v2772_v17 = vor.u32 %v2771_v25, %v2767_v47  ;;  %v2763_v63 = vrot.slane %v2762_v15, 4  ;;  %v2781_v19 = vrot.slane %v2779_v21, 4  ;;  %v2790_v22 = vshrl.u32 %v2238_v24, 16  ;;  %v14632_v25 = vld [vmem:[#allocation10 + $0x200] sm:$0xff]  }
 0x295   : > { %13611 = vmatmul.mubr.bf16.gmra.mrb[8].mxu0 %v14591_v43  ;;  %v2793_v18 = vshll.u32 %v2238_v24, 16  ;;  %13243 = vmatmul.mubr.bf16.gmra.mrb[40].mxu1 %v12064_v9  ;;  %v2758_v23 = vsel %vm15759_vm11, %v2753_v26, %v2757_v4  ;;  %v2787_v3 = vrot.slane %v2785_v44, 5  ;;  %v2799_v0 = vshll.u32 %v2239_v7, 16  ;;  %v2246_v4 = vld [vmem:[#allocation2 + $0x110] sm:$0xf] }
 0x296   : > { %13614 = vmatprep.mubr.bf16.mxu0 %v14593_v11  ;;  %13675 = vmatpush3.bf16.msra.mxu0 %v14610_v55  ;;  %v2773_v35 = vrot.slane %v2772_v17, 4  ;;  %v2768_v37 = vsel %vm15759_vm11, %v2763_v63, %v2767_v47  ;;  %v2782_v38 = vor.u32 %v2781_v19, %v2777_v16  ;;  %v2792_v41 = vrot.slane %v2790_v22, 4  ;;  %v2243_v55 = vld [vmem:[#allocation2 + $0x104] sm:$0xf]  ;;  %v2247_v47 = vld [vmem:[#allocation2 + $0x114] sm:$0x1] }
 0x297   : > { %13676 = vmatprep.subr.bf16.mxu0 %v14616_v2  ;;  %v2795_v31 = vrot.slane %v2793_v18, 5  ;;  %v12065_v56 = vcombine.low %v2758_v23, %v2768_v37  ;;  %v2801_v54 = vrot.slane %v2799_v0, 5  ;;  %v2803_v39 = vshrl.u32 %v2239_v7, 16  ;;  %v14597_v7 = vld [vmem:[#allocation2 + $0x80] sm:$0xff]   ;;  %v2248_v9 = vld [vmem:[#allocation2 + $0x118] sm:$0xf] }
 0x298   : > { %v2778_v32 = vsel %vm15759_vm11, %v2773_v35, %v2777_v16  ;;  %v2783_v46 = vrot.slane %v2782_v38, 4  ;;  %v2809_v33 = vshll.u32 %v2240_v30, 16  ;;  %v2813_v51 = vshrl.u32 %v2240_v30, 16  ;;  %v14599_v63 = vld [vmem:[#allocation2 + $0x8c] sm:$0xff]  }
 0x299   : > { %v2796_v50 = vor.u32 %v2795_v31, %v2792_v41  ;;  %13246 = vmatprep.mubr.bf16.mxu1 %v12065_v56  ;;  %v2805_v59 = vrot.slane %v2803_v39, 4  ;;  %v2819_v1 = vshll.u32 %v2241_v28, 16  ;;  %v2823_v52 = vshrl.u32 %v2241_v28, 16  ;;  %v2249_v31 = vld [vmem:[#allocation2 + $0x11c] sm:$0xf] }
 0x29a   : > { %13677 = vmatpush3.bf16.msra.mxu0 %v14616_v2  ;;  %v2829_v53 = vshll.u32 %v2242_v45, 16  ;;  %v2788_v13 = vsel %vm15759_vm11, %v2783_v46, %v2787_v3  ;;  %v2811_v43 = vrot.slane %v2809_v33, 5  ;;  %v2815_v10 = vrot.slane %v2813_v51, 4 }
 0x29b   : > { %13678 = vmatprep.subr.bf16.mxu0 %v14622_v29  ;;  %v2797_v36 = vrot.slane %v2796_v50, 4  ;;  %v12066_v11 = vcombine.low %v2778_v32, %v2788_v13  ;;  %v2806_v57 = vor.u32 %v2805_v59, %v2801_v54  ;;  %v2821_v60 = vrot.slane %v2819_v1, 5  ;;  %v2251_v13 = vld [vmem:[#allocation2 + $0x124] sm:$0xf] }
 0x29c   : > { %v2825_v20 = vrot.slane %v2823_v52, 4  ;;  %v2816_v24 = vor.u32 %v2815_v10, %v2811_v43  ;;  %v2831_v2 = vrot.slane %v2829_v53, 5  ;;  %v2834_v61 = vshrl.u32 %v2243_v55, 16  ;;  %v14600_v10 = vld [vmem:[#allocation2 + $0x94] sm:$0xff]  }
 0x29d   : > { %13615 = vmatmul.mubr.bf16.gmra.mrb[12].mxu0 %v14594_v58  ;;  %v2802_v27 = vsel %vm15759_vm11, %v2797_v36, %v2801_v54  ;;  %13247 = vmatmul.mubr.bf16.gmra.mrb[44].mxu1 %v12066_v11  ;;  %v2807_v5 = vrot.slane %v2806_v57, 4  ;;  %v2837_v8 = vshll.u32 %v2243_v55, 16  ;;  %v2843_v40 = vshll.u32 %v2244_v34, 16  ;;  %v2250_v58 = vld [vmem:[#allocation2 + $0x120] sm:$0xf] }
 0x29e   : > { %13618 = vmatprep.mubr.bf16.mxu0 %v14595_v42  ;;  %13679 = vmatpush3.bf16.msra.mxu0 %v14622_v29  ;;  %v2826_v6 = vor.u32 %v2825_v20, %v2821_v60  ;;  %v2817_v12 = vrot.slane %v2816_v24, 4  ;;  %v2836_v15 = vrot.slane %v2834_v61, 4  ;;  %v2847_v16 = vshrl.u32 %v2244_v34, 16  ;;  %v2252_v24 = vld [vmem:[#allocation2 + $0x128] sm:$0x1] }
 0x29f   : > { %13680 = vmatprep.subr.bf16.mxu0 %v14628_v49  ;;  %v2853_v21 = vshll.u32 %v2245_v14, 16  ;;  %v2812_v26 = vsel %vm15759_vm11, %v2807_v5, %v2811_v43  ;;  %v2839_v44 = vrot.slane %v2837_v8, 5  ;;  %v2845_v30 = vrot.slane %v2843_v40, 5 }
 0x2a0   : > { %v2827_v17 = vrot.slane %v2826_v6, 4  ;;  %v12067_v19 = vcombine.low %v2802_v27, %v2812_v26  ;;  %v2822_v22 = vsel %vm15759_vm11, %v2817_v12, %v2821_v60  ;;  %v2849_v18 = vrot.slane %v2847_v16, 4  ;;  %v14601_v27 = vld [vmem:[#allocation2 + $0xa0] sm:$0xff]   ;;  %v2253_v6 = vld [vmem:[#allocation2 + $0x12c] sm:$0xf] }
 0x2a1   : > { %v2855_v28 = vrot.slane %v2853_v21, 5  ;;  %v2840_v35 = vor.u32 %v2839_v44, %v2836_v15  ;;  %v2857_v3 = vshrl.u32 %v2245_v14, 16  ;;  %v2863_v0 = vshll.u32 %v2246_v4, 16  ;;  %v2255_v44 = vld [vmem:[#allocation2 + $0x134] sm:$0xf] }
 0x2a2   : > { %13681 = vmatpush3.bf16.msra.mxu0 %v14628_v49  ;;  %v2832_v23 = vsel %vm15759_vm11, %v2827_v17, %v2831_v2  ;;  %13250 = vmatprep.mubr.bf16.mxu1 %v12067_v19  ;;  %v2850_v37 = vor.u32 %v2849_v18, %v2845_v30  ;;  %v2867_v38 = vshrl.u32 %v2246_v4, 16  ;;  %v2873_v41 = vshll.u32 %v2247_v47, 16 }
 0x2a3   : > { %13746 = vmatprep.subr.bf16.mxu0 %v14632_v25  ;;  %v12068_v29 = vcombine.low %v2822_v22, %v2832_v23  ;;  %v2841_v45 = vrot.slane %v2840_v35, 4  ;;  %v2859_v56 = vrot.slane %v2857_v3, 4  ;;  %v2865_v32 = vrot.slane %v2863_v0, 5  ;;  %v2254_v25 = vld [vmem:[#allocation2 + $0x130] sm:$0xf] }
 0x2a4   : > { %v2878_v54 = vshrl.u32 %v2248_v9, 16  ;;  %v2851_v39 = vrot.slane %v2850_v37, 4  ;;  %v2869_v42 = vrot.slane %v2867_v38, 4  ;;  %v2875_v46 = vrot.slane %v2873_v41, 5  ;;  %v14603_v41 = vld [vmem:[#allocation2 + $0xa8] sm:$0xff]  }
 0x2a5   : > { %13619 = vmatmul.mubr.bf16.gmra.mrb[16].mxu0 %v14597_v7  ;;  %v2881_v50 = vshll.u32 %v2248_v9, 16  ;;  %13251 = vmatmul.mubr.bf16.gmra.mrb[48].mxu1 %v12068_v29  ;;  %v2846_v33 = vsel %vm15759_vm11, %v2841_v45, %v2845_v30  ;;  %v2860_v51 = vor.u32 %v2859_v56, %v2855_v28  ;;  %v2887_v59 = vshll.u32 %v2249_v31, 16  ;;  %v2257_v29 = vld [vmem:[#allocation2 + $0x13c] sm:$0x1]  ;;  %v3638_v56 = vld [vmem:[#allocation2] sm:$0xe] }
 0x2a6   : > { %13622 = vmatprep.mubr.bf16.mxu0 %v14599_v63  ;;  %v2880_v49 = vrot.slane %v2878_v54, 4  ;;  %v2856_v1 = vsel %vm15759_vm11, %v2851_v39, %v2855_v28  ;;  %v2870_v52 = vor.u32 %v2869_v42, %v2865_v32  ;;  %v2891_v55 = vshrl.u32 %v2249_v31, 16  ;;  %v2256_v63 = vld [vmem:[#allocation2 + $0x138] sm:$0xf] }
 0x2a7   : > { %v2883_v53 = vrot.slane %v2881_v50, 5  ;;  %v12069_v36 = vcombine.low %v2846_v33, %v2856_v1  ;;  %v2861_v43 = vrot.slane %v2860_v51, 4  ;;  %v2889_v34 = vrot.slane %v2887_v59, 5 }
 0x2a8   : > { %v2897_v11 = vshll.u32 %v2250_v58, 16  ;;  %v2871_v57 = vrot.slane %v2870_v52, 4  ;;  %v2893_v20 = vrot.slane %v2891_v55, 4  ;;  %v2901_v14 = vshrl.u32 %v2250_v58, 16  ;;  %v3640_v55 = vld [vmem:[#allocation2 + $0x8] sm:$0xf] }
 0x2a9   : > { %v2884_v60 = vor.u32 %v2883_v53, %v2880_v49  ;;  %13254 = vmatprep.mubr.bf16.mxu1 %v12069_v36  ;;  %v2866_v2 = vsel %vm15759_vm11, %v2861_v43, %v2865_v32  ;;  %v2907_v4 = vshll.u32 %v2251_v13, 16  ;;  %v2911_v5 = vshrl.u32 %v2251_v13, 16  ;;  %v3639_v32 = vld [vmem:[#allocation2 + $0x4] sm:$0xf]  ;;  %v3641_v13 = vld [vmem:[#allocation2 + $0xc] sm:$0xf] }
 0x2aa   : > { %v2899_v61 = vrot.slane %v2897_v11, 5  ;;  %v2876_v7 = vsel %vm15759_vm11, %v2871_v57, %v2875_v46  ;;  %v2894_v40 = vor.u32 %v2893_v20, %v2889_v34  ;;  %v2903_v47 = vrot.slane %v2901_v14, 4  ;;  %v14605_v46 = vld [vmem:[#allocation2 + $0xb4] sm:$0xff]   ;;  %v3642_v11 = vld [vmem:[#allocation2 + $0x10] sm:$0x1] }
 0x2ab   : > { %v2885_v8 = vrot.slane %v2884_v60, 4  ;;  %v12070_v12 = vcombine.low %v2866_v2, %v2876_v7  ;;  %v2909_v15 = vrot.slane %v2907_v4, 5  ;;  %v2913_v16 = vrot.slane %v2911_v5, 4  ;;  %v3644_v5 = vld [vmem:[#allocation2 + $0x18] sm:$0xf] }
 0x2ac   : > { %v2917_v21 = vshll.u32 %v2252_v24, 16  ;;  %v2895_v26 = vrot.slane %v2894_v40, 4  ;;  %v2904_v17 = vor.u32 %v2903_v47, %v2899_v61  ;;  %v2922_v30 = vshrl.u32 %v2253_v6, 16 }
 0x2ad   : > { %13623 = vmatmul.mubr.bf16.gmra.mrb[20].mxu0 %v14600_v10  ;;  %v2890_v9 = vsel %vm15759_vm11, %v2885_v8, %v2889_v34  ;;  %13255 = vmatmul.mubr.bf16.gmra.mrb[52].mxu1 %v12070_v12  ;;  %v2914_v19 = vor.u32 %v2913_v16, %v2909_v15  ;;  %v2925_v18 = vshll.u32 %v2253_v6, 16  ;;  %v2931_v28 = vshll.u32 %v2254_v25, 16  ;;  %v3645_v6 = vld [vmem:[#allocation2 + $0x1c] sm:$0xf] }
 0x2ae   : > { %13626 = vmatprep.mubr.bf16.mxu0 %v14601_v27  ;;  %v2919_v22 = vrot.slane %v2917_v21, 5  ;;  %v2900_v23 = vsel %vm15759_vm11, %v2895_v26, %v2899_v61  ;;  %v2905_v35 = vrot.slane %v2904_v17, 4  ;;  %v2924_v3 = vrot.slane %v2922_v30, 4  ;;  %v3643_v27 = vld [vmem:[#allocation2 + $0x14] sm:$0xe]  ;;  %v14606_v16 = vld [vmem:[#allocation2 + $0xbc] sm:$0xff]  }
 0x2af   : > { %v2935_v0 = vshrl.u32 %v2254_v25, 16  ;;  %v12071_v37 = vcombine.low %v2890_v9, %v2900_v23  ;;  %v2915_v38 = vrot.slane %v2914_v19, 4  ;;  %v2927_v31 = vrot.slane %v2925_v18, 5  ;;  %v3646_v25 = vld [vmem:[#allocation2 + $0x20] sm:$0xf]  ;;  %v14607_v30 = vld [vmem:[#allocation2 + $0xc8] sm:$0xff]  }
 0x2b0   : > { %v2933_v45 = vrot.slane %v2931_v28, 5  ;;  %v2910_v58 = vsel %vm15759_vm11, %v2905_v35, %v2909_v15  ;;  %v2941_v39 = vshll.u32 %v2255_v44, 16  ;;  %v2945_v42 = vshrl.u32 %v2255_v44, 16  ;;  %v3647_v26 = vld [vmem:[#allocation2 + $0x24] sm:$0x1] }
 0x2b1   : > { %v2937_v54 = vrot.slane %v2935_v0, 4  ;;  %13258 = vmatprep.mubr.bf16.mxu1 %v12071_v37  ;;  %v2920_v50 = vsel %vm15759_vm11, %v2915_v38, %v2919_v22  ;;  %v2928_v33 = vor.u32 %v2927_v31, %v2924_v3  ;;  %v2951_v51 = vshll.u32 %v2256_v63, 16  ;;  %v3648_v19 = vld [vmem:[#allocation2 + $0x28] sm:$0xe]  ;;  %v3649_v22 = vld [vmem:[#allocation2 + $0x2c] sm:$0xf] }
 0x2b2   : > { %v2955_v49 = vshrl.u32 %v2256_v63, 16  ;;  %v12072_v59 = vcombine.low %v2910_v58, %v2920_v50  ;;  %v2943_v52 = vrot.slane %v2941_v39, 5  ;;  %v2947_v53 = vrot.slane %v2945_v42, 4  ;;  %v3650_v3 = vld [vmem:[#allocation2 + $0x30] sm:$0xf] }
 0x2b3   : > { %v2938_v1 = vor.u32 %v2937_v54, %v2933_v45  ;;  %v2929_v36 = vrot.slane %v2928_v33, 4  ;;  %v2953_v43 = vrot.slane %v2951_v51, 5  ;;  %v2961_v34 = vshll.u32 %v2257_v29, 16  ;;  %v3655_v50 = vld [vmem:[#allocation2 + $0x44] sm:$0xf]  ;;  %v14609_v51 = vld [vmem:[#allocation2 + $0xd0] sm:$0xff]  }
 0x2b4   : > { %v2957_v10 = vrot.slane %v2955_v49, 4  ;;  %v2948_v60 = vor.u32 %v2947_v53, %v2943_v52  ;;  %v12083_v20 = vrot.slane %v3638_v56, 9  ;;  %v3803_v14 = vrot.slane %v3639_v32, 5  ;;  %v3651_v56 = vld [vmem:[#allocation2 + $0x34] sm:$0xf] }
 0x2b5   : > { %13627 = vmatmul.mubr.bf16.gmra.mrb[24].mxu0 %v14603_v41  ;;  %v2939_v57 = vrot.slane %v2938_v1, 4  ;;  %13259 = vmatmul.mubr.bf16.gmra.mrb[56].mxu1 %v12072_v59  ;;  %v2934_v24 = vsel %vm15759_vm11, %v2929_v36, %v2933_v45  ;;  %v2963_v61 = vrot.slane %v2961_v34, 5  ;;  %v3806_v4 = vrot.slane %v3640_v55, 5  ;;  %v3652_v32 = vld [vmem:[#allocation2 + $0x38] sm:$0x1] }
 0x2b6   : > { %13630 = vmatprep.mubr.bf16.mxu0 %v14605_v46  ;;  %v2958_v2 = vor.u32 %v2957_v10, %v2953_v43  ;;  %v2949_v8 = vrot.slane %v2948_v60, 4  ;;  %v3804_v40 = vsel %vm15823_vm14, %v12083_v20, %v3803_v14  ;;  %v3805_v47 = vrot.slane %v3803_v14, 4  ;;  %v3654_v46 = vld [vmem:[#allocation2 + $0x40] sm:$0xf]  ;;  %v16243_v33 = vld [vmem:[#allocation2 + $0x48] sm:$0xf] }
 0x2b7   : > { %v2944_v7 = vsel %vm15759_vm11, %v2939_v57, %v2943_v52  ;;  %v3808_v21 = vrot.slane %v3806_v4, 4  ;;  %v3809_v9 = vrot.slane %v3641_v13, 5  ;;  %v3812_v63 = vrot.slane %v3642_v11, 5  ;;  %v3653_v52 = vld [vmem:[#allocation2 + $0x3c] sm:$0xe] }
 0x2b8   : > { %v12073_v12 = vcombine.low %v2934_v24, %v2944_v7  ;;  %v2959_v15 = vrot.slane %v2958_v2, 4  ;;  %v2954_v17 = vsel %vm15759_vm11, %v2949_v8, %v2953_v43  ;;  %v3807_v44 = vsel %vm15823_vm14, %v3805_v47, %v3806_v4  ;;  %v3658_v53 = vld [vmem:[#allocation2 + $0x50] sm:$0xe]  ;;  %v14611_v13 = vld [vmem:[#allocation2 + $0xdc] sm:$0xff]   ;;  %v3659_v57 = vld [vmem:[#allocation2 + $0x54] sm:$0xf] }
 0x2b9   : > { %v12099_v28 = vcombine.low %v3804_v40, %v3807_v44  ;;  %v3811_v23 = vrot.slane %v3809_v9, 4  ;;  %v12084_v35 = vrot.slane %v3643_v27, 9  ;;  %v3816_v29 = vrot.slane %v3644_v5, 5  ;;  %v3657_v24 = vld [vmem:[#allocation2 + $0x4c] sm:$0x1] }
 0x2ba   : > { %13262 = vmatprep.mubr.bf16.mxu1 %v12073_v12  ;;  %v2964_v18 = vsel %vm15759_vm11, %v2959_v15, %v2963_v61  ;;  %v3819_v37 = vrot.slane %v3645_v6, 5  ;;  %v3822_v38 = vrot.slane %v3646_v25, 5  ;;  %v3810_v41 = vsel %vm15823_vm14, %v3808_v21, %v3809_v9  ;;  %v3660_v2 = vld [vmem:[#allocation2 + $0x58] sm:$0xf]  ;;  %v16262_v7 = vld [vmem:[#allocation2 + $0x5c] sm:$0xf] }
 0x2bb   : > { %v12074_v0 = vcombine.low %v2954_v17, %v2964_v18  ;;  %v12085_v31 = vrot.slane %v3648_v19, 9  ;;  %v3829_v45 = vrot.slane %v3649_v22, 5  ;;  %v3813_v58 = vsel %vm15823_vm14, %v3811_v23, %v3812_v63  ;;  %v16268_v12 = vld [vmem:[#allocation2 + $0x60] sm:$0x1]  ;;  %v14614_v15 = vld [vmem:[#allocation10 + $0xc8] sm:$0xff]  }
 0x2bc   : > { %v3818_v54 = vrot.slane %v3816_v29, 4  ;;  %v3821_v39 = vrot.slane %v3819_v37, 4  ;;  %v3825_v42 = vrot.slane %v3647_v26, 5  ;;  %v3817_v49 = vsel %vm15823_vm14, %v12084_v35, %v3816_v29  ;;  %v16270_v26 = vld [vmem:[#allocation2 + $0x68] sm:$0xf] }
 0x2bd   : > { %13631 = vmatmul.mubr.bf16.gmra.mrb[28].mxu0 %v14606_v16  ;;  %13263 = vmatmul.mubr.bf16.gmra.mrb[60].mxu1 %v12074_v0  ;;  %v3824_v59 = vrot.slane %v3822_v38, 4  ;;  %v3832_v1 = vrot.slane %v3650_v3, 5  ;;  %v3831_v36 = vrot.slane %v3829_v45, 4  ;;  %v3835_v43 = vrot.slane %v3651_v56, 5  ;;  %v16272_v17 = vld [vmem:[#allocation2 + $0x6c] sm:$0xf] }
 0x2be   : > { %13634 = vmatprep.mubr.bf16.mxu0 %v14607_v30  ;;  %13282 = vmatprep.mubr.bf16.mxu1 %v12099_v28  ;;  %v3820_v55 = vsel %vm15823_vm14, %v3818_v54, %v3819_v37  ;;  %v12100_v10 = vcombine.low %v3810_v41, %v3813_v58  ;;  %v16251_v34 = vsel %vm15823_vm14, %v3821_v39, %v3822_v38  ;;  %v3838_v27 = vrot.slane %v3652_v32, 5  ;;  %v3663_v22 = vld [vmem:[#allocation2 + $0x64] sm:$0xe]  ;;  %v3666_v18 = vld [vmem:[#allocation2 + $0x70] sm:$0xf]  ;;  %v14676_v29 = vld [vmem:[#allocation10 + $0xc0] sm:$0xff]  }
 0x2bf   : > { %v16255_v11 = vsel %vm15823_vm14, %v12085_v31, %v3829_v45  ;;  %v12101_v60 = vcombine.low %v3817_v49, %v3820_v55  ;;  %v16259_v20 = vsel %vm15823_vm14, %v3824_v59, %v3825_v42  ;;  %v3834_v14 = vrot.slane %v3832_v1, 4  ;;  %v14612_v28 = vld [vmem:[#allocation2 + $0xe4] sm:$0xff]   ;;  %v14613_v37 = vld [vmem:[#allocation2 + $0xf0] sm:$0xff]   ;;  %v3668_v56 = vld [vmem:[#allocation2 + $0x78] sm:$0xe] }
 0x2c0   : > { %v3837_v61 = vrot.slane %v3835_v43, 4  ;;  %v3842_v4 = vrot.slane %v3654_v46, 5  ;;  %v3845_v5 = vrot.slane %v3655_v50, 5  ;;  %v3848_v6 = vrot.slane %v16243_v33, 5  ;;  %v3667_v45 = vld [vmem:[#allocation2 + $0x74] sm:$0x1] }
 0x2c1   : > { %v16266_v8 = vsel %vm15823_vm14, %v3831_v36, %v3832_v1  ;;  %v12086_v40 = vrot.slane %v3653_v52, 9  ;;  %v12087_v47 = vrot.slane %v3658_v53, 9  ;;  %v3855_v25 = vrot.slane %v3659_v57, 5  ;;  %v3669_v32 = vld [vmem:[#allocation2 + $0x7c] sm:$0xf]  ;;  %v14626_v36 = vld [vmem:[#allocation10 + $0xd8] sm:$0xff]  }
 0x2c2   : > { %v3844_v16 = vrot.slane %v3842_v4, 4  ;;  %v3847_v21 = vrot.slane %v3845_v5, 4  ;;  %v3851_v9 = vrot.slane %v3657_v24, 5  ;;  %v12102_v44 = vcombine.low %v16251_v34, %v16259_v20  ;;  %v14620_v46 = vld [vmem:[#allocation10 + $0xd0] sm:$0xff]   ;;  %v3670_v50 = vld [vmem:[#allocation2 + $0x80] sm:$0xf] }
 0x2c3   : > { %v3850_v30 = vrot.slane %v3848_v6, 4  ;;  %v3857_v63 = vrot.slane %v3855_v25, 4  ;;  %v3858_v19 = vrot.slane %v3660_v2, 5  ;;  %v12103_v23 = vcombine.low %v16255_v11, %v16266_v8  ;;  %v3672_v57 = vld [vmem:[#allocation2 + $0x88] sm:$0x1] }
 0x2c4   : > { %v16280_v35 = vsel %vm15823_vm14, %v3834_v14, %v3835_v43  ;;  %v16284_v3 = vsel %vm15823_vm14, %v3837_v61, %v3838_v27  ;;  %v3861_v0 = vrot.slane %v16262_v7, 5  ;;  %v16289_v38 = vsel %vm15823_vm14, %v12086_v40, %v3842_v4 }
 0x2c5   : > { %13635 = vmatmul.mubr.bf16.gmra.mrb[32].mxu0 %v14609_v51  ;;  %13283 = vmatmul.mubr.bf16.vlgmr.msra.gmra.mrb[0].mxu1 %v12100_v10  ;;  %v16293_v41 = vsel %vm15823_vm14, %v3844_v16, %v3845_v5  ;;  %v16297_v31 = vsel %vm15823_vm14, %v12087_v47, %v3855_v25  ;;  %v16301_v58 = vsel %vm15823_vm14, %v3847_v21, %v3848_v6  ;;  %v3864_v42 = vrot.slane %v16268_v12, 5  ;;  %v14615_v5 = vld [vmem:[#allocation2 + $0xf8] sm:$0xff]   ;;  %v3673_v16 = vld [vmem:[#allocation2 + $0x8c] sm:$0xe]  ;;  %v3674_v21 = vld [vmem:[#allocation2 + $0x90] sm:$0xf] }
 0x2c6   : > { %13638 = vmatprep.mubr.bf16.mxu0 %v14611_v13  ;;  %13347 = vmatpush3.bf16.msra.mxu1 %v14676_v29  ;;  %v16305_v54 = vsel %vm15823_vm14, %v3850_v30, %v3851_v9  ;;  %v16309_v39 = vsel %vm15823_vm14, %v3857_v63, %v3858_v19  ;;  %v3860_v33 = vrot.slane %v3858_v19, 4  ;;  %v3868_v51 = vrot.slane %v16270_v26, 5  ;;  %v3671_v13 = vld [vmem:[#allocation2 + $0x84] sm:$0xf]  ;;  %v14631_v9 = vld [vmem:[#allocation10 + $0xe0] sm:$0xff]  }
 0x2c7   : > { %13286 = vmatprep.mubr.bf16.mxu1 %v12101_v60  ;;  %13348 = vmatprep.subr.bf16.mxu1 %v14614_v15  ;;  %v3871_v49 = vrot.slane %v16272_v17, 5  ;;  %v3874_v59 = vrot.slane %v3666_v18, 5  ;;  %v3863_v1 = vrot.slane %v3861_v0, 4  ;;  %v12088_v52 = vrot.slane %v3663_v22, 9  ;;  %v14617_v19 = vld [vmem:[#allocation2 + $0x104] sm:$0xff]  }
 0x2c8   : > { %v12089_v53 = vrot.slane %v3668_v56, 9  ;;  %v3881_v55 = vrot.slane %v3669_v32, 5  ;;  %v12104_v43 = vcombine.low %v16280_v35, %v16284_v3  ;;  %v12105_v10 = vcombine.low %v16289_v38, %v16293_v41  ;;  %v3677_v56 = vld [vmem:[#allocation2 + $0x9c] sm:$0x1] }
 0x2c9   : > { %v3870_v34 = vrot.slane %v3868_v51, 4  ;;  %v3873_v11 = vrot.slane %v3871_v49, 4  ;;  %v3876_v60 = vrot.slane %v3874_v59, 4  ;;  %v3877_v20 = vrot.slane %v3667_v45, 5 }
 0x2ca   : > { %13349 = vmatpush3.bf16.msra.mxu1 %v14614_v15  ;;  %v3883_v14 = vrot.slane %v3881_v55, 4  ;;  %v3884_v27 = vrot.slane %v3670_v50, 5  ;;  %v12106_v24 = vcombine.low %v16301_v58, %v16305_v54  ;;  %v12107_v2 = vcombine.low %v16297_v31, %v16309_v39  ;;  %v14623_v31 = vld [vmem:[#allocation2 + $0x12c] sm:$0xff]  }
 0x2cb   : > { %13350 = vmatprep.subr.bf16.mxu1 %v14620_v46  ;;  %v3887_v61 = vrot.slane %v3671_v13, 5  ;;  %v3890_v4 = vrot.slane %v3672_v57, 5  ;;  %v16324_v6 = vsel %vm15823_vm14, %v3860_v33, %v3861_v0  ;;  %v16328_v7 = vsel %vm15823_vm14, %v3863_v1, %v3864_v42  ;;  %v3676_v0 = vld [vmem:[#allocation2 + $0x98] sm:$0xf]  ;;  %v14633_v42 = vld [vmem:[#allocation10 + $0xe8] sm:$0xff]  }
 0x2cc   : > { %v16332_v8 = vsel %vm15823_vm14, %v12088_v52, %v3868_v51  ;;  %v3886_v40 = vrot.slane %v3884_v27, 4  ;;  %v16336_v47 = vsel %vm15823_vm14, %v3870_v34, %v3871_v49  ;;  %v16340_v25 = vsel %vm15823_vm14, %v3873_v11, %v3874_v59  ;;  %v3678_v49 = vld [vmem:[#allocation2 + $0xa0] sm:$0xe] }
 0x2cd   : > { %13639 = vmatmul.mubr.bf16.gmra.mrb[36].mxu0 %v14612_v28  ;;  %13287 = vmatmul.mubr.bf16.gmra.mrb[4].mxu1 %v12102_v44  ;;  %v16344_v12 = vsel %vm15823_vm14, %v12089_v53, %v3881_v55  ;;  %v3889_v15 = vrot.slane %v3887_v61, 4  ;;  %v16348_v26 = vsel %vm15823_vm14, %v3876_v60, %v3877_v20  ;;  %v16352_v17 = vsel %vm15823_vm14, %v3883_v14, %v3884_v27  ;;  %v3675_v44 = vld [vmem:[#allocation2 + $0x94] sm:$0xf]  ;;  %v3679_v53 = vld [vmem:[#allocation2 + $0xa4] sm:$0xf]  ;;  %v14618_v14 = vld [vmem:[#allocation2 + $0x10c] sm:$0xff]  }
 0x2ce   : > { %13642 = vmatprep.mubr.bf16.mxu0 %v14613_v37  ;;  %13290 = vmatprep.mubr.bf16.mxu1 %v12103_v23  ;;  %v12090_v30 = vrot.slane %v3673_v16, 9  ;;  %v3894_v63 = vrot.slane %v3674_v21, 5  ;;  %v12108_v22 = vcombine.low %v16324_v6, %v16328_v7  ;;  %v16358_v18 = vsel %vm15823_vm14, %v3886_v40, %v3887_v61  ;;  %v3680_v55 = vld [vmem:[#allocation2 + $0xa8] sm:$0xf]  ;;  %v8784_v20 = vld [vmem:[#allocation2 + $0x2c] sm:$0xf] }
 0x2cf   : > { %13351 = vmatpush3.bf16.msra.mxu1 %v14620_v46  ;;  %v16362_v28 = vsel %vm15823_vm14, %v3889_v15, %v3890_v4  ;;  %v3897_v23 = vrot.slane %v3675_v44, 5  ;;  %v12109_v29 = vcombine.low %v16332_v8, %v16336_v47  ;;  %v3900_v32 = vrot.slane %v3676_v0, 5  ;;  %v8783_v60 = vld [vmem:[#allocation2 + $0x28] sm:$0xf]  ;;  %v8785_v61 = vld [vmem:[#allocation2 + $0x30] sm:$0xf] }
 0x2d0   : > { %13352 = vmatprep.subr.bf16.mxu1 %v14626_v36  ;;  %v16368_v37 = vsel %vm15823_vm14, %v12090_v30, %v3894_v63  ;;  %v3896_v45 = vrot.slane %v3894_v63, 4  ;;  %v12110_v46 = vcombine.low %v16340_v25, %v16348_v26  ;;  %v12111_v50 = vcombine.low %v16344_v12, %v16352_v17  ;;  %v14635_v15 = vld [vmem:[#allocation10 + $0xf0] sm:$0xff]   ;;  %v3681_v21 = vld [vmem:[#allocation2 + $0xac] sm:$0xf]  ;;  %v3682_v44 = vld [vmem:[#allocation2 + $0xb0] sm:$0x1] }
 0x2d1   : > { %v3899_v33 = vrot.slane %v3897_v23, 4  ;;  %v3903_v51 = vrot.slane %v3677_v56, 5  ;;  %v12112_v59 = vcombine.low %v16358_v18, %v16362_v28  ;;  %v3902_v52 = vrot.slane %v3900_v32, 4  ;;  %v14619_v0 = vld [vmem:[#allocation2 + $0x118] sm:$0xff]   ;;  %v14627_v26 = vld [vmem:[#allocation2 + $0x148] sm:$0xff]  }
 0x2d2   : > { %v16378_v1 = vsel %vm15823_vm14, %v3896_v45, %v3897_v23  ;;  %v12091_v13 = vrot.slane %v3678_v49, 9  ;;  %v3907_v11 = vrot.slane %v3679_v53, 5  ;;  %v3910_v57 = vrot.slane %v3680_v55, 5  ;;  %v8787_v49 = vld [vmem:[#allocation2 + $0x38] sm:$0x1]  ;;  %v14630_v28 = vld [vmem:[#allocation2 + $0x15c] sm:$0xff]  }
 0x2d3   : > { %13353 = vmatpush3.bf16.msra.mxu1 %v14626_v36  ;;  %v12113_v36 = vcombine.low %v16368_v37, %v16378_v1  ;;  %v16384_v34 = vsel %vm15823_vm14, %v3899_v33, %v3900_v32  ;;  %v16391_v27 = vsel %vm15823_vm14, %v3902_v52, %v3903_v51  ;;  %v8864_v4 = vshrl.u32 %v8783_v60, 16  ;;  %v3692_v25 = vld [vmem:[#allocation2 + $0xd8] sm:$0x1]  ;;  %v8800_v18 = vld [vmem:[#allocation2 + $0x6c] sm:$0xf] }
 0x2d4   : > { %13354 = vmatprep.subr.bf16.mxu1 %v14631_v9  ;;  %v8873_v40 = vshll.u32 %v8784_v20, 16  ;;  %v12114_v16 = vcombine.low %v16384_v34, %v16391_v27  ;;  %v16400_v35 = vsel %vm15823_vm14, %v12091_v13, %v3907_v11  ;;  %v3909_v3 = vrot.slane %v3907_v11, 4  ;;  %v14629_v12 = vld [vmem:[#allocation2 + $0x154] sm:$0xff]  }
 0x2d5   : > { %13643 = vmatmul.mubr.bf16.gmra.mrb[40].mxu0 %v14615_v5  ;;  %13291 = vmatmul.mubr.bf16.gmra.mrb[8].mxu1 %v12104_v43  ;;  %v8867_v5 = vshll.u32 %v8783_v60, 16  ;;  %v8877_v43 = vshrl.u32 %v8784_v20, 16  ;;  %v8866_v30 = vrot.slane %v8864_v4, 4  ;;  %v8883_v23 = vshll.u32 %v8785_v61, 16 }
 0x2d6   : > { %13646 = vmatprep.mubr.bf16.mxu0 %v14617_v19  ;;  %13294 = vmatprep.mubr.bf16.mxu1 %v12105_v10  ;;  %v8875_v19 = vrot.slane %v8873_v40, 5  ;;  %v16404_v38 = vsel %vm15823_vm14, %v3909_v3, %v3910_v57  ;;  %v8887_v10 = vshrl.u32 %v8785_v61, 16  ;;  %v3912_v45 = vrot.slane %v3910_v57, 4  ;;  %v14637_v61 = vld [vmem:[#allocation10 + $0xf8] sm:$0xff]  }
 0x2d7   : > { %13355 = vmatpush3.bf16.msra.mxu1 %v14631_v9  ;;  %v8869_v63 = vrot.slane %v8867_v5, 5  ;;  %v8879_v41 = vrot.slane %v8877_v43, 4  ;;  %v12115_v56 = vcombine.low %v16400_v35, %v16404_v38  ;;  %v8885_v33 = vrot.slane %v8883_v23, 5  ;;  %v8786_v9 = vld [vmem:[#allocation2 + $0x34] sm:$0xf] }
 0x2d8   : > { %13356 = vmatprep.subr.bf16.mxu1 %v14633_v42  ;;  %v3913_v51 = vrot.slane %v3681_v21, 5  ;;  %v8889_v53 = vrot.slane %v8887_v10, 4  ;;  %v3916_v55 = vrot.slane %v3682_v44, 5  ;;  %v8893_v13 = vshll.u32 %v8786_v9, 16  ;;  %v3683_v43 = vld [vmem:[#allocation2 + $0xb4] sm:$0xe] }
 0x2d9   : > { %v8870_v32 = vor.u32 %v8869_v63, %v8866_v30  ;;  %v8880_v52 = vor.u32 %v8879_v41, %v8875_v19  ;;  %v8897_v20 = vshrl.u32 %v8786_v9, 16  ;;  %v8903_v3 = vshll.u32 %v8787_v49, 16  ;;  %v3684_v44 = vld [vmem:[#allocation2 + $0xb8] sm:$0xf]  ;;  %v3685_v30 = vld [vmem:[#allocation2 + $0xbc] sm:$0xf] }
 0x2da   : > { %v16410_v60 = vsel %vm15823_vm14, %v3912_v45, %v3913_v51  ;;  %v3915_v57 = vrot.slane %v3913_v51, 4  ;;  %v8890_v5 = vor.u32 %v8889_v53, %v8885_v33  ;;  %v8895_v40 = vrot.slane %v8893_v13, 5  ;;  %v14621_v41 = vld [vmem:[#allocation2 + $0x120] sm:$0xff]  }
 0x2db   : > { %13357 = vmatpush3.bf16.msra.mxu1 %v14633_v42  ;;  %v8871_v11 = vrot.slane %v8870_v32, 4  ;;  %v8881_v4 = vrot.slane %v8880_v52, 4  ;;  %v8899_v21 = vrot.slane %v8897_v20, 4  ;;  %v12092_v63 = vrot.slane %v3683_v43, 9  ;;  %v8790_v9 = vld [vmem:[#allocation2 + $0x44] sm:$0xf] }
 0x2dc   : > { %13358 = vmatprep.subr.bf16.mxu1 %v14635_v15  ;;  %v8891_v58 = vrot.slane %v8890_v5, 4  ;;  %v3920_v32 = vrot.slane %v3684_v44, 5  ;;  %v3923_v51 = vrot.slane %v3685_v30, 5  ;;  %v3686_v13 = vld [vmem:[#allocation2 + $0xc0] sm:$0xf]  ;;  %v14677_v44 = vld [vmem:[#allocation10 + $0x100] sm:$0xff]  }
 0x2dd   : > { %13647 = vmatmul.mubr.bf16.gmra.mrb[44].mxu0 %v14618_v14  ;;  %13295 = vmatmul.mubr.bf16.gmra.mrb[12].mxu1 %v12106_v24  ;;  %v8876_v42 = vsel %vm15759_vm11, %v8871_v11, %v8875_v19  ;;  %v16419_v14 = vsel %vm15823_vm14, %v3915_v57, %v3916_v55  ;;  %v8886_v23 = vsel %vm15759_vm11, %v8881_v4, %v8885_v33  ;;  %v8905_v24 = vrot.slane %v8903_v3, 5  ;;  %v8788_v19 = vld [vmem:[#allocation2 + $0x3c] sm:$0xf]  ;;  %v3687_v5 = vld [vmem:[#allocation2 + $0xc4] sm:$0x1] }
 0x2de   : > { %13650 = vmatprep.mubr.bf16.mxu0 %v14619_v0  ;;  %13298 = vmatprep.mubr.bf16.mxu1 %v12107_v2  ;;  %v12116_v54 = vcombine.low %v16410_v60, %v16419_v14  ;;  %v8789_v0 = vld [vmem:[#allocation2 + $0x40] sm:$0xf]  ;;  %v16428_v10 = vcombine.low %v8876_v42, %v8886_v23  ;;  %v8900_v45 = vor.u32 %v8899_v21, %v8895_v40  ;;  %v8908_v2 = vshrl.u32 %v8788_v19, 16  ;;  %v8791_v21 = vld [vmem:[#allocation2 + $0x48] sm:$0xf] }
 0x2df   : > { %13359 = vmatpush3.bf16.msra.mxu1 %v14635_v15  ;;  %v8896_v39 = vsel %vm15759_vm11, %v8891_v58, %v8895_v40  ;;  %v8911_v33 = vshll.u32 %v8788_v19, 16  ;;  %v8917_v49 = vshll.u32 %v8789_v0, 16  ;;  %v16434_v53 = vsel %vm15823_vm14, %v12092_v63, %v3920_v32  ;;  %v8792_v58 = vld [vmem:[#allocation2 + $0x4c] sm:$0x1] }
 0x2e0   : > { %13360 = vmatprep.subr.bf16.mxu1 %v14637_v61  ;;  %v8901_v52 = vrot.slane %v8900_v45, 4  ;;  %v3922_v15 = vrot.slane %v3920_v32, 4  ;;  %v8921_v55 = vshrl.u32 %v8789_v0, 16  ;;  %v8910_v11 = vrot.slane %v8908_v2, 4  ;;  %v3688_v32 = vld [vmem:[#allocation2 + $0xc8] sm:$0xe] }
 0x2e1   : > { %v8913_v57 = vrot.slane %v8911_v33, 5  ;;  %v8919_v20 = vrot.slane %v8917_v49, 5  ;;  %v8927_v4 = vshll.u32 %v8790_v9, 16  ;;  %v8931_v42 = vshrl.u32 %v8790_v9, 16  ;;  %v3689_v33 = vld [vmem:[#allocation2 + $0xcc] sm:$0xf] }
 0x2e2   : > { %v8906_v40 = vsel %vm15759_vm11, %v8901_v52, %v8905_v24  ;;  %v16440_v3 = vsel %vm15823_vm14, %v3922_v15, %v3923_v51  ;;  %v8923_v43 = vrot.slane %v8921_v55, 4  ;;  %v14624_v24 = vld [vmem:[#allocation2 + $0x134] sm:$0xff]   ;;  %v3925_v0 = vrot.slane %v3923_v51, 4  ;;  %v14625_v49 = vld [vmem:[#allocation2 + $0x140] sm:$0xff]   ;;  %v3690_v51 = vld [vmem:[#allocation2 + $0xd0] sm:$0xf] }
 0x2e3   : > { %13361 = vmatpush3.bf16.msra.mxu1 %v14637_v61  ;;  %v16442_v30 = vcombine.low %v8896_v39, %v8906_v40  ;;  %v12117_v63 = vcombine.low %v16434_v53, %v16440_v3  ;;  %v8914_v61 = vor.u32 %v8913_v57, %v8910_v11  ;;  %v8929_v23 = vrot.slane %v8927_v4, 5 }
 0x2e4   : > { %13826 = vmatprep.subr.bf16.mxu1 %v14677_v44  ;;  %v8924_v19 = vor.u32 %v8923_v43, %v8919_v20  ;;  %v3929_v45 = vrot.slane %v3687_v5, 5  ;;  %v8937_v39 = vshll.u32 %v8791_v21, 16  ;;  %v8941_v2 = vshrl.u32 %v8791_v21, 16  ;;  %v8794_v5 = vld [vmem:[#allocation2 + $0x54] sm:$0xf] }
 0x2e5   : > { %13651 = vmatmul.mubr.bf16.gmra.mrb[48].mxu0 %v14621_v41  ;;  %13299 = vmatmul.mubr.bf16.gmra.mrb[16].mxu1 %v12108_v22  ;;  %v3926_v41 = vrot.slane %v3686_v13, 5  ;;  %v8915_v9 = vrot.slane %v8914_v61, 4  ;;  %v8947_v22 = vshll.u32 %v8792_v58, 16  ;;  %v12093_v4 = vrot.slane %v3688_v32, 9  ;;  %v8795_v21 = vld [vmem:[#allocation2 + $0x58] sm:$0xf] }
 0x2e6   : > { %13654 = vmatprep.mubr.bf16.mxu0 %v14623_v31  ;;  %13302 = vmatprep.mubr.bf16.mxu1 %v12109_v29  ;;  %v8933_v31 = vrot.slane %v8931_v42, 4  ;;  %v8925_v52 = vrot.slane %v8924_v19, 4  ;;  %v8939_v8 = vrot.slane %v8937_v39, 5  ;;  %v8943_v47 = vrot.slane %v8941_v2, 4  ;;  %v8793_v29 = vld [vmem:[#allocation2 + $0x50] sm:$0xf] }
 0x2e7   : > { %v16454_v6 = vsel %vm15823_vm14, %v3925_v0, %v3926_v41  ;;  %v3928_v7 = vrot.slane %v3926_v41, 4  ;;  %v8920_v15 = vsel %vm15759_vm11, %v8915_v9, %v8919_v20  ;;  %v8949_v57 = vrot.slane %v8947_v22, 5  ;;  %v3691_v39 = vld [vmem:[#allocation2 + $0xd4] sm:$0xf] }
 0x2e8   : > { %v8934_v55 = vor.u32 %v8933_v31, %v8929_v23  ;;  %v8930_v13 = vsel %vm15759_vm11, %v8925_v52, %v8929_v23  ;;  %v8944_v42 = vor.u32 %v8943_v47, %v8939_v8  ;;  %v3933_v44 = vrot.slane %v3689_v33, 5 }
 0x2e9   : > { %v16462_v11 = vsel %vm15823_vm14, %v3928_v7, %v3929_v45  ;;  %v16464_v40 = vcombine.low %v8920_v15, %v8930_v13  ;;  %v3936_v61 = vrot.slane %v3690_v51, 5  ;;  %v8952_v58 = vshrl.u32 %v8793_v29, 16  ;;  %v8796_v15 = vld [vmem:[#allocation2 + $0x5c] sm:$0xf] }
 0x2ea   : > { %v12118_v43 = vcombine.low %v16454_v6, %v16462_v11  ;;  %v8935_v20 = vrot.slane %v8934_v55, 4  ;;  %v8955_v23 = vshll.u32 %v8793_v29, 16  ;;  %v8945_v0 = vrot.slane %v8944_v42, 4  ;;  %v8797_v55 = vld [vmem:[#allocation2 + $0x60] sm:$0x1] }
 0x2eb   : > { %v8961_v41 = vshll.u32 %v8794_v5, 16  ;;  %v8965_v45 = vshrl.u32 %v8794_v5, 16  ;;  %v16475_v32 = vsel %vm15823_vm14, %v12093_v4, %v3933_v44  ;;  %v8954_v9 = vrot.slane %v8952_v58, 4  ;;  %v3693_v5 = vld [vmem:[#allocation2 + $0xdc] sm:$0xe] }
 0x2ec   : > { %v8940_v19 = vsel %vm15759_vm11, %v8935_v20, %v8939_v8  ;;  %v8957_v31 = vrot.slane %v8955_v23, 5  ;;  %v8950_v2 = vsel %vm15759_vm11, %v8945_v0, %v8949_v57  ;;  %v8971_v52 = vshll.u32 %v8795_v21, 16  ;;  %v3694_v23 = vld [vmem:[#allocation2 + $0xe0] sm:$0xf] }
 0x2ed   : > { %13655 = vmatmul.mubr.bf16.gmra.mrb[52].mxu0 %v14624_v24  ;;  %13303 = vmatmul.mubr.bf16.gmra.mrb[20].mxu1 %v12110_v46  ;;  %v3935_v24 = vrot.slane %v3933_v44, 4  ;;  %v8963_v33 = vrot.slane %v8961_v41, 5  ;;  %v16482_v46 = vcombine.low %v8940_v19, %v8950_v2  ;;  %v8975_v51 = vshrl.u32 %v8795_v21, 16  ;;  %v3695_v41 = vld [vmem:[#allocation2 + $0xe4] sm:$0xf] }
 0x2ee   : > { %13658 = vmatprep.mubr.bf16.mxu0 %v14625_v49  ;;  %13306 = vmatprep.mubr.bf16.mxu1 %v12111_v50  ;;  %v8967_v49 = vrot.slane %v8965_v45, 4  ;;  %v8958_v22 = vor.u32 %v8957_v31, %v8954_v9  ;;  %v8973_v8 = vrot.slane %v8971_v52, 5  ;;  %v3938_v47 = vrot.slane %v3936_v61, 4  ;;  %v8798_v45 = vld [vmem:[#allocation2 + $0x64] sm:$0xf] }
 0x2ef   : > { %v16486_v7 = vsel %vm15823_vm14, %v3935_v24, %v3936_v61  ;;  %v3939_v13 = vrot.slane %v3691_v39, 5  ;;  %v3942_v57 = vrot.slane %v3692_v25, 5  ;;  %v8977_v4 = vrot.slane %v8975_v51, 4  ;;  %v8799_v2 = vld [vmem:[#allocation2 + $0x68] sm:$0xf] }
 0x2f0   : > { %v12119_v17 = vcombine.low %v16475_v32, %v16486_v7  ;;  %v8968_v50 = vor.u32 %v8967_v49, %v8963_v33  ;;  %v8959_v29 = vrot.slane %v8958_v22, 4  ;;  %v8981_v42 = vshll.u32 %v8796_v15, 16  ;;  %v3707_v32 = vld [vmem:[#allocation2 + $0x114] sm:$0x1] }
 0x2f1   : > { %v8985_v44 = vshrl.u32 %v8796_v15, 16  ;;  %v8991_v58 = vshll.u32 %v8797_v55, 16  ;;  %v16494_v19 = vsel %vm15823_vm14, %v3938_v47, %v3939_v13  ;;  %v3941_v0 = vrot.slane %v3939_v13, 4 }
 0x2f2   : > { %v8969_v20 = vrot.slane %v8968_v50, 4  ;;  %v8964_v21 = vsel %vm15759_vm11, %v8959_v29, %v8963_v33  ;;  %v8978_v61 = vor.u32 %v8977_v4, %v8973_v8  ;;  %v8983_v9 = vrot.slane %v8981_v42, 5  ;;  %v3697_v29 = vld [vmem:[#allocation2 + $0xec] sm:$0x1] }
 0x2f3   : > { %v8987_v31 = vrot.slane %v8985_v44, 4  ;;  %v8993_v39 = vrot.slane %v8991_v58, 5  ;;  %v16505_v49 = vsel %vm15823_vm14, %v3941_v0, %v3942_v57  ;;  %v12094_v25 = vrot.slane %v3693_v5, 9 }
 0x2f4   : > { %v8974_v24 = vsel %vm15759_vm11, %v8969_v20, %v8973_v8  ;;  %v8979_v52 = vrot.slane %v8978_v61, 4  ;;  %v3946_v51 = vrot.slane %v3694_v23, 5  ;;  %v3949_v15 = vrot.slane %v3695_v41, 5  ;;  %v3696_v8 = vld [vmem:[#allocation2 + $0xe8] sm:$0xf] }
 0x2f5   : > { %13659 = vmatmul.mubr.bf16.gmra.mrb[56].mxu0 %v14627_v26  ;;  %13307 = vmatmul.mubr.bf16.gmra.mrb[24].mxu1 %v12112_v59  ;;  %v16501_v33 = vcombine.low %v8964_v21, %v8974_v24  ;;  %v12120_v26 = vcombine.low %v16494_v19, %v16505_v49  ;;  %v8988_v22 = vor.u32 %v8987_v31, %v8983_v9  ;;  %v8996_v55 = vshrl.u32 %v8798_v45, 16  ;;  %v8801_v23 = vld [vmem:[#allocation2 + $0x70] sm:$0xf]  ;;  %v8813_v49 = vld [vmem:[#allocation2 + $0xa0] sm:$0xf] }
 0x2f6   : > { %13662 = vmatprep.mubr.bf16.mxu0 %v14629_v12  ;;  %13310 = vmatprep.mubr.bf16.mxu1 %v12113_v36  ;;  %v8984_v59 = vsel %vm15759_vm11, %v8979_v52, %v8983_v9  ;;  %v8999_v12 = vshll.u32 %v8798_v45, 16  ;;  %v9005_v50 = vshll.u32 %v8799_v2, 16  ;;  %v16516_v37 = vsel %vm15823_vm14, %v12094_v25, %v3946_v51  ;;  %v8802_v45 = vld [vmem:[#allocation2 + $0x74] sm:$0x1] }
 0x2f7   : > { %v8989_v47 = vrot.slane %v8988_v22, 4  ;;  %v3948_v1 = vrot.slane %v3946_v51, 4  ;;  %v9009_v36 = vshrl.u32 %v8799_v2, 16  ;;  %v8998_v13 = vrot.slane %v8996_v55, 4  ;;  %v3698_v51 = vld [vmem:[#allocation2 + $0xf0] sm:$0xe] }
 0x2f8   : > { %v9001_v57 = vrot.slane %v8999_v12, 5  ;;  %v9007_v4 = vrot.slane %v9005_v50, 5  ;;  %v9015_v5 = vshll.u32 %v8800_v18, 16  ;;  %v9019_v58 = vshrl.u32 %v8800_v18, 16  ;;  %v3700_v12 = vld [vmem:[#allocation2 + $0xf8] sm:$0xf] }
 0x2f9   : > { %v8994_v20 = vsel %vm15759_vm11, %v8989_v47, %v8993_v39  ;;  %v16522_v42 = vsel %vm15823_vm14, %v3948_v1, %v3949_v15  ;;  %v9011_v44 = vrot.slane %v9009_v36, 4  ;;  %v3951_v9 = vrot.slane %v3949_v15, 4  ;;  %v8803_v50 = vld [vmem:[#allocation2 + $0x78] sm:$0xf]  ;;  %v8804_v47 = vld [vmem:[#allocation2 + $0x7c] sm:$0xf] }
 0x2fa   : > { %v16524_v21 = vcombine.low %v8984_v59, %v8994_v20  ;;  %v12121_v0 = vcombine.low %v16516_v37, %v16522_v42  ;;  %v9002_v61 = vor.u32 %v9001_v57, %v8998_v13  ;;  %v9017_v41 = vrot.slane %v9015_v5, 5  ;;  %v3699_v59 = vld [vmem:[#allocation2 + $0xf4] sm:$0xf]  ;;  %v8805_v20 = vld [vmem:[#allocation2 + $0x80] sm:$0xf] }
 0x2fb   : > { %v9012_v24 = vor.u32 %v9011_v44, %v9007_v4  ;;  %v3952_v31 = vrot.slane %v3696_v8, 5  ;;  %v3955_v39 = vrot.slane %v3697_v29, 5  ;;  %v9021_v52 = vrot.slane %v9019_v58, 4  ;;  %v14634_v1 = vld [vmem:[#allocation10 + $0x208] sm:$0xff]  }
 0x2fc   : > { %v9003_v2 = vrot.slane %v9002_v61, 4  ;;  %v9025_v25 = vshll.u32 %v8801_v23, 16  ;;  %v9029_v22 = vshrl.u32 %v8801_v23, 16  ;;  %v12095_v8 = vrot.slane %v3698_v51, 9 }
 0x2fd   : > { %13663 = vmatmul.mubr.bf16.gmra.mrb[60].mxu0 %v14630_v28  ;;  %13311 = vmatmul.mubr.bf16.gmra.mrb[28].mxu1 %v12114_v16  ;;  %v9013_v18 = vrot.slane %v9012_v24, 4  ;;  %v3954_v15 = vrot.slane %v3952_v31, 4  ;;  %v9035_v28 = vshll.u32 %v8802_v45, 16  ;;  %v9022_v27 = vor.u32 %v9021_v52, %v9017_v41  ;;  %v14678_v24 = vld [vmem:[#allocation10 + $0x200] sm:$0xff]   ;;  %v3701_v52 = vld [vmem:[#allocation2 + $0xfc] sm:$0xf] }
 0x2fe   : > { %13682 = vmatprep.mubr.bf16.mxu0 %v16428_v10  ;;  %13314 = vmatprep.mubr.bf16.mxu1 %v12115_v56  ;;  %v16537_v10 = vsel %vm15823_vm14, %v3951_v9, %v3952_v31  ;;  %v9008_v34 = vsel %vm15759_vm11, %v9003_v2, %v9007_v4  ;;  %v9027_v16 = vrot.slane %v9025_v25, 5  ;;  %v9031_v55 = vrot.slane %v9029_v22, 4 }
 0x2ff   : > { %v9018_v35 = vsel %vm15759_vm11, %v9013_v18, %v9017_v41  ;;  %v16545_v38 = vsel %vm15823_vm14, %v3954_v15, %v3955_v39  ;;  %v9037_v56 = vrot.slane %v9035_v28, 5  ;;  %v9023_v13 = vrot.slane %v9022_v27, 4  ;;  %v14636_v18 = vld [vmem:[#allocation10 + $0x210] sm:$0xff]  }
 0x300   : > { %v16547_v36 = vcombine.low %v9008_v34, %v9018_v35  ;;  %v12122_v29 = vcombine.low %v16537_v10, %v16545_v38  ;;  %v9032_v57 = vor.u32 %v9031_v55, %v9027_v16  ;;  %v3959_v4 = vrot.slane %v3699_v59, 5  ;;  %v8807_v59 = vld [vmem:[#allocation2 + $0x88] sm:$0x1]  ;;  %v3713_v38 = vld [vmem:[#allocation2 + $0x12c] sm:$0xe] }
 0x301   : > { %v3962_v5 = vrot.slane %v3700_v12, 5  ;;  %v9040_v44 = vshrl.u32 %v8803_v50, 16  ;;  %v9043_v58 = vshll.u32 %v8803_v50, 16  ;;  %v9028_v23 = vsel %vm15759_vm11, %v9023_v13, %v9027_v16  ;;  %v3703_v12 = vld [vmem:[#allocation2 + $0x104] sm:$0xe] }
 0x302   : > { %v9033_v61 = vrot.slane %v9032_v57, 4  ;;  %v9049_v41 = vshll.u32 %v8804_v47, 16  ;;  %v9053_v45 = vshrl.u32 %v8804_v47, 16  ;;  %v16557_v9 = vsel %vm15823_vm14, %v12095_v8, %v3959_v4  ;;  %v14638_v50 = vld [vmem:[#allocation10 + $0x218] sm:$0xff]   ;;  %v3705_v8 = vld [vmem:[#allocation2 + $0x10c] sm:$0xf] }
 0x303   : > { %v3961_v31 = vrot.slane %v3959_v4, 4  ;;  %v9042_v39 = vrot.slane %v9040_v44, 4  ;;  %v9045_v2 = vrot.slane %v9043_v58, 5  ;;  %v9059_v51 = vshll.u32 %v8805_v20, 16 }
 0x304   : > { %v9051_v25 = vrot.slane %v9049_v41, 5  ;;  %v9055_v22 = vrot.slane %v9053_v45, 4  ;;  %v9063_v14 = vshrl.u32 %v8805_v20, 16  ;;  %v3964_v55 = vrot.slane %v3962_v5, 4  ;;  %v8808_v20 = vld [vmem:[#allocation2 + $0x8c] sm:$0xf] }
 0x305   : > { %13683 = vmatmul.mubr.bf16.vlgmr.msra.gmra.mrb[0].mxu0 %v16442_v30  ;;  %13315 = vmatmul.mubr.bf16.gmra.mrb[32].mxu1 %v12116_v54  ;;  %v9038_v30 = vsel %vm15759_vm11, %v9033_v61, %v9037_v56  ;;  %v16571_v28 = vsel %vm15823_vm14, %v3961_v31, %v3962_v5  ;;  %v9046_v60 = vor.u32 %v9045_v2, %v9042_v39  ;;  %v8806_v54 = vld [vmem:[#allocation2 + $0x84] sm:$0xf]  ;;  %v9061_v16 = vrot.slane %v9059_v51, 5  ;;  %v3704_v56 = vld [vmem:[#allocation2 + $0x108] sm:$0xf] }
 0x306   : > { %13747 = vmatpush3.bf16.msra.mxu0 %v14678_v24  ;;  %13686 = vmatprep.mubr.bf16.mxu0 %v16464_v40  ;;  %v3702_v40 = vld [vmem:[#allocation2 + $0x100] sm:$0x1]  ;;  %v16567_v15 = vcombine.low %v9028_v23, %v9038_v30  ;;  %v12123_v34 = vcombine.low %v16557_v9, %v16571_v28  ;;  %v9056_v27 = vor.u32 %v9055_v22, %v9051_v25  ;;  %v3965_v3 = vrot.slane %v3701_v52, 5  ;;  %v8809_v24 = vld [vmem:[#allocation2 + $0x90] sm:$0xf]  ;;  %v14641_v30 = vld [vmem:[#allocation10 + $0x220] sm:$0xff]  }
 0x307   : > { %13748 = vmatprep.subr.bf16.mxu0 %v14634_v1  ;;  %13318 = vmatprep.mubr.bf16.mxu1 %v12117_v63  ;;  %v9047_v53 = vrot.slane %v9046_v60, 4  ;;  %v3968_v63 = vrot.slane %v3702_v40, 5  ;;  %v9065_v35 = vrot.slane %v9063_v14, 4  ;;  %v9069_v13 = vshll.u32 %v8806_v54, 16  ;;  %v8810_v51 = vld [vmem:[#allocation2 + $0x94] sm:$0xf] }
 0x308   : > { %v9057_v47 = vrot.slane %v9056_v27, 4  ;;  %v9073_v57 = vshrl.u32 %v8806_v54, 16  ;;  %v9079_v4 = vshll.u32 %v8807_v59, 16  ;;  %v16579_v5 = vsel %vm15823_vm14, %v3964_v55, %v3965_v3  ;;  %v3706_v59 = vld [vmem:[#allocation2 + $0x110] sm:$0xf] }
 0x309   : > { %v9052_v44 = vsel %vm15759_vm11, %v9047_v53, %v9051_v25  ;;  %v9066_v58 = vor.u32 %v9065_v35, %v9061_v16  ;;  %v9071_v61 = vrot.slane %v9069_v13, 5  ;;  %v12096_v52 = vrot.slane %v3703_v12, 9  ;;  %v14646_v35 = vld [vmem:[#allocation10 + $0x228] sm:$0xff]  }
 0x30a   : > { %13749 = vmatpush3.bf16.msra.mxu0 %v14634_v1  ;;  %v3967_v1 = vrot.slane %v3965_v3, 4  ;;  %v9062_v23 = vsel %vm15759_vm11, %v9057_v47, %v9061_v16  ;;  %v9075_v41 = vrot.slane %v9073_v57, 4  ;;  %v9081_v45 = vrot.slane %v9079_v4, 5 }
 0x30b   : > { %13750 = vmatprep.subr.bf16.mxu0 %v14636_v18  ;;  %v16585_v31 = vcombine.low %v9052_v44, %v9062_v23  ;;  %v9067_v2 = vrot.slane %v9066_v58, 4  ;;  %v3972_v22 = vrot.slane %v3704_v56, 5  ;;  %v9087_v60 = vshll.u32 %v8808_v20, 16 }
 0x30c   : > { %v16589_v39 = vsel %vm15823_vm14, %v3967_v1, %v3968_v63  ;;  %v9076_v25 = vor.u32 %v9075_v41, %v9071_v61  ;;  %v9093_v14 = vshll.u32 %v8809_v24, 16  ;;  %v9097_v54 = vshrl.u32 %v8809_v24, 16  ;;  %v8811_v63 = vld [vmem:[#allocation2 + $0x98] sm:$0xf]  ;;  %v3710_v24 = vld [vmem:[#allocation2 + $0x120] sm:$0xf] }
 0x30d   : > { %13687 = vmatmul.mubr.bf16.gmra.mrb[4].mxu0 %v16482_v46  ;;  %13319 = vmatmul.mubr.bf16.gmra.mrb[36].mxu1 %v12118_v43  ;;  %v12124_v46 = vcombine.low %v16579_v5, %v16589_v39  ;;  %v9072_v40 = vsel %vm15759_vm11, %v9067_v2, %v9071_v61  ;;  %v16603_v11 = vsel %vm15823_vm14, %v12096_v52, %v3972_v22  ;;  %v3974_v43 = vrot.slane %v3972_v22, 4  ;;  %v3708_v1 = vld [vmem:[#allocation2 + $0x118] sm:$0xe] }
 0x30e   : > { %13690 = vmatprep.mubr.bf16.mxu0 %v16501_v33  ;;  %13751 = vmatpush3.bf16.msra.mxu0 %v14636_v18  ;;  %v3975_v33 = vrot.slane %v3705_v8, 5  ;;  %v9084_v18 = vshrl.u32 %v8808_v20, 16  ;;  %v9077_v6 = vrot.slane %v9076_v25, 4  ;;  %v9089_v16 = vrot.slane %v9087_v60, 5  ;;  %v8814_v60 = vld [vmem:[#allocation2 + $0xa4] sm:$0xf] }
 0x30f   : > { %13752 = vmatprep.subr.bf16.mxu0 %v14638_v50  ;;  %13322 = vmatprep.mubr.bf16.mxu1 %v12119_v17  ;;  %v9095_v55 = vrot.slane %v9093_v14, 5  ;;  %v9103_v12 = vshll.u32 %v8810_v51, 16  ;;  %v9099_v53 = vrot.slane %v9097_v54, 4  ;;  %v9107_v3 = vshrl.u32 %v8810_v51, 16 }
 0x310   : > { %v9086_v27 = vrot.slane %v9084_v18, 4  ;;  %v9082_v7 = vsel %vm15759_vm11, %v9077_v6, %v9081_v45  ;;  %v16609_v17 = vsel %vm15823_vm14, %v3974_v43, %v3975_v33  ;;  %v3977_v4 = vrot.slane %v3975_v33, 4  ;;  %v3709_v45 = vld [vmem:[#allocation2 + $0x11c] sm:$0xf]  ;;  %v14656_v6 = vld [vmem:[#allocation10 + $0x238] sm:$0xff]  }
 0x311   : > { %v16611_v56 = vcombine.low %v9072_v40, %v9082_v7  ;;  %v12125_v8 = vcombine.low %v16603_v11, %v16609_v17  ;;  %v9105_v13 = vrot.slane %v9103_v12, 5  ;;  %v9100_v57 = vor.u32 %v9099_v53, %v9095_v55  ;;  %v3711_v53 = vld [vmem:[#allocation2 + $0x124] sm:$0xf] }
 0x312   : > { %13753 = vmatpush3.bf16.msra.mxu0 %v14638_v50  ;;  %v9090_v47 = vor.u32 %v9089_v16, %v9086_v27  ;;  %v8812_v50 = vld [vmem:[#allocation2 + $0x9c] sm:$0x1]  ;;  %v3978_v20 = vrot.slane %v3706_v59, 5  ;;  %v3981_v44 = vrot.slane %v3707_v32, 5  ;;  %v9109_v23 = vrot.slane %v9107_v3, 4 }
 0x313   : > { %13754 = vmatprep.subr.bf16.mxu0 %v14641_v30  ;;  %v9113_v61 = vshll.u32 %v8811_v63, 16  ;;  %v9117_v41 = vshrl.u32 %v8811_v63, 16  ;;  %v9101_v2 = vrot.slane %v9100_v57, 4  ;;  %v9123_v25 = vshll.u32 %v8812_v50, 16  ;;  %v8815_v59 = vld [vmem:[#allocation2 + $0xa8] sm:$0xf] }
 0x314   : > { %v9091_v58 = vrot.slane %v9090_v47, 4  ;;  %v3980_v52 = vrot.slane %v3978_v20, 4  ;;  %v9110_v22 = vor.u32 %v9109_v23, %v9105_v13  ;;  %v12097_v18 = vrot.slane %v3708_v1, 9  ;;  %v3712_v3 = vld [vmem:[#allocation2 + $0x128] sm:$0x1] }
 0x315   : > { %13691 = vmatmul.mubr.bf16.gmra.mrb[8].mxu0 %v16524_v21  ;;  %13323 = vmatmul.mubr.bf16.gmra.mrb[40].mxu1 %v12120_v26  ;;  %v16622_v21 = vsel %vm15823_vm14, %v3977_v4, %v3978_v20  ;;  %v9115_v33 = vrot.slane %v9113_v61, 5  ;;  %v9119_v19 = vrot.slane %v9117_v41, 4  ;;  %v9106_v26 = vsel %vm15759_vm11, %v9101_v2, %v9105_v13  ;;  %v8816_v50 = vld [vmem:[#allocation2 + $0xac] sm:$0xf]  ;;  %v8817_v57 = vld [vmem:[#allocation2 + $0xb0] sm:$0x1] }
 0x316   : > { %13694 = vmatprep.mubr.bf16.mxu0 %v16547_v36  ;;  %13755 = vmatpush3.bf16.msra.mxu0 %v14641_v30  ;;  %v14651_v36 = vld [vmem:[#allocation10 + $0x230] sm:$0xff]   ;;  %v9096_v30 = vsel %vm15759_vm11, %v9091_v58, %v9095_v55  ;;  %v16633_v51 = vsel %vm15823_vm14, %v3980_v52, %v3981_v44  ;;  %v9125_v40 = vrot.slane %v9123_v25, 5  ;;  %v9111_v42 = vrot.slane %v9110_v22, 4  ;;  %v3714_v25 = vld [vmem:[#allocation2 + $0x130] sm:$0xf] }
 0x317   : > { %13756 = vmatprep.subr.bf16.mxu0 %v14646_v35  ;;  %13326 = vmatprep.mubr.bf16.mxu1 %v12121_v0  ;;  %v16635_v14 = vcombine.low %v9096_v30, %v9106_v26  ;;  %v12126_v37 = vcombine.low %v16622_v21, %v16633_v51  ;;  %v9120_v0 = vor.u32 %v9119_v19, %v9115_v33  ;;  %v3985_v43 = vrot.slane %v3709_v45, 5  ;;  %v8818_v26 = vld [vmem:[#allocation2 + $0xb4] sm:$0xf] }
 0x318   : > { %v3988_v54 = vrot.slane %v3710_v24, 5  ;;  %v9128_v27 = vshrl.u32 %v8813_v49, 16  ;;  %v9131_v16 = vshll.u32 %v8813_v49, 16  ;;  %v9116_v55 = vsel %vm15759_vm11, %v9111_v42, %v9115_v33 }
 0x319   : > { %v9121_v12 = vrot.slane %v9120_v0, 4  ;;  %v9137_v32 = vshll.u32 %v8814_v60, 16  ;;  %v9141_v7 = vshrl.u32 %v8814_v60, 16  ;;  %v16644_v63 = vsel %vm15823_vm14, %v12097_v18, %v3985_v43  ;;  %v8819_v0 = vld [vmem:[#allocation2 + $0xb8] sm:$0xf] }
 0x31a   : > { %13757 = vmatpush3.bf16.msra.mxu0 %v14646_v35  ;;  %v3987_v35 = vrot.slane %v3985_v43, 4  ;;  %v9130_v47 = vrot.slane %v9128_v27, 4  ;;  %v9133_v13 = vrot.slane %v9131_v16, 5  ;;  %v9147_v1 = vshll.u32 %v8815_v59, 16 }
 0x31b   : > { %13758 = vmatprep.subr.bf16.mxu0 %v14651_v36  ;;  %v9126_v4 = vsel %vm15759_vm11, %v9121_v12, %v9125_v40  ;;  %v9139_v20 = vrot.slane %v9137_v32, 5  ;;  %v9143_v44 = vrot.slane %v9141_v7, 4  ;;  %v9151_v61 = vshrl.u32 %v8815_v59, 16  ;;  %v8820_v32 = vld [vmem:[#allocation2 + $0xbc] sm:$0xf] }
 0x31c   : > { %v16656_v58 = vsel %vm15823_vm14, %v3987_v35, %v3988_v54  ;;  %v9134_v23 = vor.u32 %v9133_v13, %v9130_v47  ;;  %v9149_v45 = vrot.slane %v9147_v1, 5  ;;  %v3990_v10 = vrot.slane %v3988_v54, 4  ;;  %v3716_v35 = vld [vmem:[#allocation2 + $0x138] sm:$0xf]  ;;  %v3717_v47 = vld [vmem:[#allocation2 + $0x13c] sm:$0x1] }
 0x31d   : > { %13695 = vmatmul.mubr.bf16.gmra.mrb[12].mxu0 %v16567_v15  ;;  %13327 = vmatmul.mubr.bf16.gmra.mrb[44].mxu1 %v12122_v29  ;;  %v16652_v15 = vcombine.low %v9116_v55, %v9126_v4  ;;  %v9144_v41 = vor.u32 %v9143_v44, %v9139_v20  ;;  %v3991_v24 = vrot.slane %v3711_v53, 5  ;;  %v3994_v2 = vrot.slane %v3712_v3, 5  ;;  %v8822_v1 = vld [vmem:[#allocation2 + $0xc4] sm:$0x1] }
 0x31e   : > { %13698 = vmatprep.mubr.bf16.mxu0 %v16585_v31  ;;  %13759 = vmatpush3.bf16.msra.mxu0 %v14651_v36  ;;  %v12127_v31 = vcombine.low %v16644_v63, %v16656_v58  ;;  %v9135_v29 = vrot.slane %v9134_v23, 4  ;;  %v9153_v52 = vrot.slane %v9151_v61, 4  ;;  %v3715_v36 = vld [vmem:[#allocation2 + $0x134] sm:$0xf]  ;;  %v9157_v22 = vshll.u32 %v8816_v50, 16 }
 0x31f   : > { %13760 = vmatprep.subr.bf16.mxu0 %v14656_v6  ;;  %13330 = vmatprep.mubr.bf16.mxu1 %v12123_v34  ;;  %v9145_v30 = vrot.slane %v9144_v41, 4  ;;  %v9161_v33 = vshrl.u32 %v8816_v50, 16  ;;  %v9167_v19 = vshll.u32 %v8817_v57, 16  ;;  %v16667_v28 = vsel %vm15823_vm14, %v3990_v10, %v3991_v24  ;;  %v8823_v10 = vld [vmem:[#allocation2 + $0xc8] sm:$0xf] }
 0x320   : > { %v9140_v9 = vsel %vm15759_vm11, %v9135_v29, %v9139_v20  ;;  %v3993_v34 = vrot.slane %v3991_v24, 4  ;;  %v9154_v49 = vor.u32 %v9153_v52, %v9149_v45  ;;  %v9159_v18 = vrot.slane %v9157_v22, 5 }
 0x321   : > { %v9150_v40 = vsel %vm15759_vm11, %v9145_v30, %v9149_v45  ;;  %v9163_v60 = vrot.slane %v9161_v33, 4  ;;  %v9169_v42 = vrot.slane %v9167_v19, 5  ;;  %v12098_v59 = vrot.slane %v3713_v38, 9 }
 0x322   : > { %13761 = vmatpush3.bf16.msra.mxu0 %v14656_v6  ;;  %v12327_v6 = vcombine.low %v9140_v9, %v9150_v40  ;;  %v16674_v43 = vsel %vm15823_vm14, %v3993_v34, %v3994_v2  ;;  %v9155_v54 = vrot.slane %v9154_v49, 4  ;;  %v3998_v55 = vrot.slane %v3714_v25, 5  ;;  %v8824_v40 = vld [vmem:[#allocation2 + $0xcc] sm:$0xf] }
 0x323   : > { %v12128_v27 = vcombine.low %v16667_v28, %v16674_v43  ;;  %v9164_v16 = vor.u32 %v9163_v60, %v9159_v18  ;;  %v4001_v12 = vrot.slane %v3715_v36, 5  ;;  %v9172_v7 = vshrl.u32 %v8818_v26, 16  ;;  %v8832_v28 = vld [vmem:[#allocation2 + $0xec] sm:$0x1] }
 0x324   : > { %v9175_v53 = vshll.u32 %v8818_v26, 16  ;;  %v9181_v3 = vshll.u32 %v8819_v0, 16  ;;  %v16689_v13 = vsel %vm15823_vm14, %v12098_v59, %v3998_v55  ;;  %v4000_v50 = vrot.slane %v3998_v55, 4  ;;  %v8826_v59 = vld [vmem:[#allocation2 + $0xd4] sm:$0xf] }
 0x325   : > { %13699 = vmatmul.mubr.bf16.gmra.mrb[16].mxu0 %v16611_v56  ;;  %13331 = vmatmul.mubr.bf16.gmra.mrb[48].mxu1 %v12124_v46  ;;  %v9160_v56 = vsel %vm15759_vm11, %v9155_v54, %v9159_v18  ;;  %v9185_v5 = vshrl.u32 %v8819_v0, 16  ;;  %v9174_v39 = vrot.slane %v9172_v7, 4  ;;  %v9191_v4 = vshll.u32 %v8820_v32, 16  ;;  %v8825_v18 = vld [vmem:[#allocation2 + $0xd0] sm:$0xf] }
 0x326   : > { %13702 = vmatprep.mubr.bf16.mxu0 %v16635_v14  ;;  %13334 = vmatprep.mubr.bf16.mxu1 %v12125_v8  ;;  %v9165_v14 = vrot.slane %v9164_v16, 4  ;;  %v9177_v46 = vrot.slane %v9175_v53, 5  ;;  %v9183_v57 = vrot.slane %v9181_v3, 5  ;;  %v16695_v44 = vsel %vm15823_vm14, %v4000_v50, %v4001_v12  ;;  %v8821_v8 = vld [vmem:[#allocation2 + $0xc0] sm:$0xf] }
 0x327   : > { %v9187_v11 = vrot.slane %v9185_v5, 4  ;;  %v9195_v17 = vshrl.u32 %v8820_v32, 16  ;;  %v12129_v61 = vcombine.low %v16689_v13, %v16695_v44  ;;  %v9193_v45 = vrot.slane %v9191_v4, 5 }
 0x328   : > { %v9170_v20 = vsel %vm15759_vm11, %v9165_v14, %v9169_v42  ;;  %v9178_v41 = vor.u32 %v9177_v46, %v9174_v39  ;;  %v4003_v29 = vrot.slane %v4001_v12, 4  ;;  %v4004_v24 = vrot.slane %v3716_v35, 5  ;;  %v8828_v14 = vld [vmem:[#allocation2 + $0xdc] sm:$0xf] }
 0x329   : > { %v12328_v23 = vcombine.low %v9160_v56, %v9170_v20  ;;  %v9188_v38 = vor.u32 %v9187_v11, %v9183_v57  ;;  %v4007_v2 = vrot.slane %v3717_v47, 5  ;;  %v9197_v25 = vrot.slane %v9195_v17, 4 }
 0x32a   : > { %v9179_v52 = vrot.slane %v9178_v41, 4  ;;  %v9201_v36 = vshll.u32 %v8821_v8, 16  ;;  %v9205_v30 = vshrl.u32 %v8821_v8, 16  ;;  %v16702_v33 = vsel %vm15823_vm14, %v4003_v29, %v4004_v24 }
 0x32b   : > { %v9189_v22 = vrot.slane %v9188_v38, 4  ;;  %v4006_v19 = vrot.slane %v4004_v24, 4  ;;  %v9211_v9 = vshll.u32 %v8822_v1, 16  ;;  %v9216_v51 = vshrl.u32 %v8823_v10, 16 }
 0x32c   : > { %v9184_v34 = vsel %vm15759_vm11, %v9179_v52, %v9183_v57  ;;  %v9203_v49 = vrot.slane %v9201_v36, 5  ;;  %v9207_v26 = vrot.slane %v9205_v30, 4  ;;  %v9219_v55 = vshll.u32 %v8823_v10, 16  ;;  %v8829_v57 = vld [vmem:[#allocation2 + $0xe0] sm:$0xf] }
 0x32d   : > { %13703 = vmatmul.mubr.bf16.gmra.mrb[20].mxu0 %v16652_v15  ;;  %13335 = vmatmul.mubr.bf16.gmra.mrb[52].mxu1 %v12126_v37  ;;  %v9198_v15 = vor.u32 %v9197_v25, %v9193_v45  ;;  %v9194_v60 = vsel %vm15759_vm11, %v9189_v22, %v9193_v45  ;;  %v16716_v42 = vsel %vm15823_vm14, %v4006_v19, %v4007_v2  ;;  %v9213_v21 = vrot.slane %v9211_v9, 5  ;;  %v8831_v2 = vld [vmem:[#allocation2 + $0xe8] sm:$0xf] }
 0x32e   : > { %13706 = vmatprep.mubr.bf16.mxu0 %v12327_v6  ;;  %13338 = vmatprep.mubr.bf16.mxu1 %v12127_v31  ;;  %v12329_v37 = vcombine.low %v9184_v34, %v9194_v60  ;;  %v12130_v0 = vcombine.low %v16702_v33, %v16716_v42  ;;  %v9208_v54 = vor.u32 %v9207_v26, %v9203_v49  ;;  %v9218_v16 = vrot.slane %v9216_v51, 4  ;;  %v8827_v31 = vld [vmem:[#allocation2 + $0xd8] sm:$0x1] }
 0x32f   : > { %v9199_v6 = vrot.slane %v9198_v15, 4  ;;  %v9225_v63 = vshll.u32 %v8824_v40, 16  ;;  %v9229_v58 = vshrl.u32 %v8824_v40, 16  ;;  %v9235_v56 = vshll.u32 %v8825_v18, 16  ;;  %v14639_v34 = vld [vmem:[#allocation2 + $0x14] sm:$0xff]  }
 0x330   : > { %v9209_v32 = vrot.slane %v9208_v54, 4  ;;  %v9239_v7 = vshrl.u32 %v8825_v18, 16  ;;  %v9221_v53 = vrot.slane %v9219_v55, 5  ;;  %v9245_v47 = vshll.u32 %v8826_v59, 16  ;;  %v8833_v18 = vld [vmem:[#allocation2 + $0xf0] sm:$0xf] }
 0x331   : > { %v9204_v12 = vsel %vm15759_vm11, %v9199_v6, %v9203_v49  ;;  %v9227_v3 = vrot.slane %v9225_v63, 5  ;;  %v9231_v35 = vrot.slane %v9229_v58, 4  ;;  %v9237_v5 = vrot.slane %v9235_v56, 5  ;;  %v8834_v6 = vld [vmem:[#allocation2 + $0xf4] sm:$0xf] }
 0x332   : > { %v9214_v50 = vsel %vm15759_vm11, %v9209_v32, %v9213_v21  ;;  %v9241_v39 = vrot.slane %v9239_v7, 4  ;;  %v9249_v46 = vshrl.u32 %v8826_v59, 16  ;;  %v9222_v20 = vor.u32 %v9221_v53, %v9218_v16  ;;  %v8835_v63 = vld [vmem:[#allocation2 + $0xf8] sm:$0xf] }
 0x333   : > { %v12330_v4 = vcombine.low %v9204_v12, %v9214_v50  ;;  %v9232_v11 = vor.u32 %v9231_v35, %v9227_v3  ;;  %v9247_v17 = vrot.slane %v9245_v47, 5  ;;  %v9255_v41 = vshll.u32 %v8827_v31, 16  ;;  %v8836_v35 = vld [vmem:[#allocation2 + $0xfc] sm:$0xf] }
 0x334   : > { %v9242_v8 = vor.u32 %v9241_v39, %v9237_v5  ;;  %v9251_v1 = vrot.slane %v9249_v46, 4  ;;  %v9260_v45 = vshrl.u32 %v8828_v14, 16  ;;  %v9223_v10 = vrot.slane %v9222_v20, 4  ;;  %v8837_v39 = vld [vmem:[#allocation2 + $0x100] sm:$0x1] }
 0x335   : > { %13707 = vmatmul.mubr.bf16.gmra.mrb[24].mxu0 %v12328_v23  ;;  %13339 = vmatmul.mubr.bf16.gmra.mrb[56].mxu1 %v12128_v27  ;;  %v8830_v23 = vld [vmem:[#allocation2 + $0xe4] sm:$0xf]  ;;  %v9233_v38 = vrot.slane %v9232_v11, 4  ;;  %v9263_v29 = vshll.u32 %v8828_v14, 16  ;;  %v9269_v24 = vshll.u32 %v8829_v57, 16  ;;  %v9257_v36 = vrot.slane %v9255_v41, 5 }
 0x336   : > { %13710 = vmatprep.mubr.bf16.mxu0 %v12329_v37  ;;  %13342 = vmatprep.mubr.bf16.mxu1 %v12129_v61  ;;  %v9243_v52 = vrot.slane %v9242_v8, 4  ;;  %v9252_v25 = vor.u32 %v9251_v1, %v9247_v17  ;;  %v9262_v30 = vrot.slane %v9260_v45, 4  ;;  %v9228_v43 = vsel %vm15759_vm11, %v9223_v10, %v9227_v3  ;;  %v14642_v8 = vld [vmem:[#allocation2 + $0x28] sm:$0xff]   ;;  %v8838_v10 = vld [vmem:[#allocation2 + $0x104] sm:$0xf] }
 0x337   : > { %v9238_v27 = vsel %vm15759_vm11, %v9233_v38, %v9237_v5  ;;  %v9265_v22 = vrot.slane %v9263_v29, 5  ;;  %v9271_v19 = vrot.slane %v9269_v24, 5  ;;  %v9273_v9 = vshrl.u32 %v8829_v57, 16  ;;  %v14640_v57 = vld [vmem:[#allocation2 + $0x1c] sm:$0xff]  }
 0x338   : > { %v12331_v13 = vcombine.low %v9228_v43, %v9238_v27  ;;  %v9248_v44 = vsel %vm15759_vm11, %v9243_v52, %v9247_v17  ;;  %v9253_v61 = vrot.slane %v9252_v25, 4  ;;  %v9279_v49 = vshll.u32 %v8830_v23, 16  ;;  %v8839_v52 = vld [vmem:[#allocation2 + $0x108] sm:$0xf] }
 0x339   : > { %v9266_v15 = vor.u32 %v9265_v22, %v9262_v30  ;;  %v9283_v26 = vshrl.u32 %v8830_v23, 16  ;;  %v9289_v40 = vshll.u32 %v8831_v2, 16  ;;  %v9275_v21 = vrot.slane %v9273_v9, 4 }
 0x33a   : > { %v9258_v60 = vsel %vm15759_vm11, %v9253_v61, %v9257_v36  ;;  %v9293_v51 = vshrl.u32 %v8831_v2, 16  ;;  %v9299_v37 = vshll.u32 %v8832_v28, 16  ;;  %v9281_v16 = vrot.slane %v9279_v49, 5  ;;  %v8841_v49 = vld [vmem:[#allocation2 + $0x110] sm:$0xf] }
 0x33b   : > { %v12332_v54 = vcombine.low %v9248_v44, %v9258_v60  ;;  %v9267_v59 = vrot.slane %v9266_v15, 4  ;;  %v9285_v55 = vrot.slane %v9283_v26, 4  ;;  %v9276_v58 = vor.u32 %v9275_v21, %v9271_v19  ;;  %v14679_v44 = vld [vmem:[#allocation10 + $0x100] sm:$0xff]   ;;  %v14643_v26 = vld [vmem:[#allocation2 + $0x30] sm:$0xff]  }
 0x33c   : > { %v9291_v31 = vrot.slane %v9289_v40, 5  ;;  %v9295_v12 = vrot.slane %v9293_v51, 4  ;;  %v9301_v32 = vrot.slane %v9299_v37, 5  ;;  %v9304_v53 = vshrl.u32 %v8833_v18, 16 }
 0x33d   : > { %13711 = vmatmul.mubr.bf16.gmra.mrb[28].mxu0 %v12330_v4  ;;  %13343 = vmatmul.mubr.bf16.gmra.mrb[60].mxu1 %v12130_v0  ;;  %v9272_v56 = vsel %vm15759_vm11, %v9267_v59, %v9271_v19  ;;  %v9286_v7 = vor.u32 %v9285_v55, %v9281_v16  ;;  %v9307_v3 = vshll.u32 %v8833_v18, 16  ;;  %v9277_v47 = vrot.slane %v9276_v58, 4  ;;  %v8840_v19 = vld [vmem:[#allocation2 + $0x10c] sm:$0xf]  ;;  %v14680_v18 = vld [vmem:[#allocation10 + $0x108] sm:$0xff]  }
 0x33e   : > { %13714 = vmatprep.mubr.bf16.mxu0 %v12331_v13  ;;  %13362 = vmatprep.mubr.bf16.mxu1 %v14639_v34  ;;  %v9296_v14 = vor.u32 %v9295_v12, %v9291_v31  ;;  %v9313_v50 = vshll.u32 %v8834_v6, 16  ;;  %v9317_v5 = vshrl.u32 %v8834_v6, 16  ;;  %v9306_v33 = vrot.slane %v9304_v53, 4  ;;  %v14644_v12 = vld [vmem:[#allocation2 + $0x3c] sm:$0xff]  }
 0x33f   : > { %v9287_v46 = vrot.slane %v9286_v7, 4  ;;  %v9309_v42 = vrot.slane %v9307_v3, 5  ;;  %v9323_v0 = vshll.u32 %v8835_v63, 16  ;;  %v9282_v4 = vsel %vm15759_vm11, %v9277_v47, %v9281_v16  ;;  %v8843_v3 = vld [vmem:[#allocation2 + $0x118] sm:$0xf] }
 0x340   : > { %v9297_v20 = vrot.slane %v9296_v14, 4  ;;  %v9315_v11 = vrot.slane %v9313_v50, 5  ;;  %v9319_v17 = vrot.slane %v9317_v5, 4  ;;  %v12333_v1 = vcombine.low %v9272_v56, %v9282_v4  ;;  %v8844_v5 = vld [vmem:[#allocation2 + $0x11c] sm:$0xf] }
 0x341   : > { %v9292_v41 = vsel %vm15759_vm11, %v9287_v46, %v9291_v31  ;;  %v9310_v23 = vor.u32 %v9309_v42, %v9306_v33  ;;  %v9325_v45 = vrot.slane %v9323_v0, 5  ;;  %v9327_v24 = vshrl.u32 %v8835_v63, 16  ;;  %v8842_v31 = vld [vmem:[#allocation2 + $0x114] sm:$0x1] }
 0x342   : > { %v9302_v38 = vsel %vm15759_vm11, %v9297_v20, %v9301_v32  ;;  %v9320_v29 = vor.u32 %v9319_v17, %v9315_v11  ;;  %v9333_v2 = vshll.u32 %v8836_v35, 16  ;;  %v9337_v30 = vshrl.u32 %v8836_v35, 16  ;;  %v8845_v17 = vld [vmem:[#allocation2 + $0x120] sm:$0xf] }
 0x343   : > { %v12334_v25 = vcombine.low %v9292_v41, %v9302_v38  ;;  %v9311_v36 = vrot.slane %v9310_v23, 4  ;;  %v9343_v28 = vshll.u32 %v8837_v39, 16  ;;  %v9329_v27 = vrot.slane %v9327_v24, 4  ;;  %v14681_v39 = vld [vmem:[#allocation10 + $0x110] sm:$0xff]  }
 0x344   : > { %v9321_v43 = vrot.slane %v9320_v29, 4  ;;  %v9335_v22 = vrot.slane %v9333_v2, 5  ;;  %v9348_v13 = vshrl.u32 %v8838_v10, 16  ;;  %v9339_v9 = vrot.slane %v9337_v30, 4  ;;  %v14682_v2 = vld [vmem:[#allocation10 + $0x118] sm:$0xff]  }
 0x345   : > { %13715 = vmatmul.mubr.bf16.gmra.mrb[32].mxu0 %v12332_v54  ;;  %13363 = vmatmul.mubr.bf16.vlgmr.msra.gmra.mrb[0].mxu1 %v14640_v57  ;;  %v9316_v61 = vsel %vm15759_vm11, %v9311_v36, %v9315_v11  ;;  %v9345_v34 = vrot.slane %v9343_v28, 5  ;;  %v9351_v15 = vshll.u32 %v8838_v10, 16  ;;  %v9330_v60 = vor.u32 %v9329_v27, %v9325_v45  ;;  %v8847_v28 = vld [vmem:[#allocation2 + $0x128] sm:$0x1] }
 0x346   : > { %13718 = vmatprep.mubr.bf16.mxu0 %v12333_v1  ;;  %13834 = vmatpush3.bf16.msra.mxu1 %v14679_v44  ;;  %v9326_v40 = vsel %vm15759_vm11, %v9321_v43, %v9325_v45  ;;  %v9350_v21 = vrot.slane %v9348_v13, 4  ;;  %v9357_v51 = vshll.u32 %v8839_v52, 16  ;;  %v9340_v6 = vor.u32 %v9339_v9, %v9335_v22  ;;  %v8846_v45 = vld [vmem:[#allocation2 + $0x124] sm:$0xf]  ;;  %v8848_v44 = vld [vmem:[#allocation2 + $0x12c] sm:$0xf] }
 0x347   : > { %13366 = vmatprep.mubr.bf16.mxu1 %v14642_v8  ;;  %13827 = vmatprep.subr.bf16.mxu1 %v14680_v18  ;;  %v12335_v37 = vcombine.low %v9316_v61, %v9326_v40  ;;  %v9353_v54 = vrot.slane %v9351_v15, 5  ;;  %v9361_v59 = vshrl.u32 %v8839_v52, 16  ;;  %v9331_v16 = vrot.slane %v9330_v60, 4  ;;  %v14645_v43 = vld [vmem:[#allocation2 + $0x44] sm:$0xff]   ;;  %v14647_v61 = vld [vmem:[#allocation2 + $0x50] sm:$0xff]  }
 0x348   : > { %v9359_v55 = vrot.slane %v9357_v51, 5  ;;  %v9367_v63 = vshll.u32 %v8840_v19, 16  ;;  %v9371_v58 = vshrl.u32 %v8840_v19, 16  ;;  %v9341_v32 = vrot.slane %v9340_v6, 4 }
 0x349   : > { %v9354_v56 = vor.u32 %v9353_v54, %v9350_v21  ;;  %v9363_v7 = vrot.slane %v9361_v59, 4  ;;  %v9377_v53 = vshll.u32 %v8841_v49, 16  ;;  %v9336_v35 = vsel %vm15759_vm11, %v9331_v16, %v9335_v22  ;;  %v14683_v21 = vld [vmem:[#allocation10 + $0x120] sm:$0xff]   ;;  %v8849_v59 = vld [vmem:[#allocation2 + $0x130] sm:$0xf] }
 0x34a   : > { %13835 = vmatpush3.bf16.msra.mxu1 %v14680_v18  ;;  %v9369_v47 = vrot.slane %v9367_v63, 5  ;;  %v9373_v14 = vrot.slane %v9371_v58, 4  ;;  %v9381_v50 = vshrl.u32 %v8841_v49, 16  ;;  %v9346_v46 = vsel %vm15759_vm11, %v9341_v32, %v9345_v34  ;;  %v8850_v16 = vld [vmem:[#allocation2 + $0x134] sm:$0xf] }
 0x34b   : > { %13828 = vmatprep.subr.bf16.mxu1 %v14681_v39  ;;  %v9355_v33 = vrot.slane %v9354_v56, 4  ;;  %v9364_v42 = vor.u32 %v9363_v7, %v9359_v55  ;;  %v9379_v0 = vrot.slane %v9377_v53, 5  ;;  %v12336_v57 = vcombine.low %v9336_v35, %v9346_v46 }
 0x34c   : > { %v9374_v4 = vor.u32 %v9373_v14, %v9369_v47  ;;  %v9383_v20 = vrot.slane %v9381_v50, 4  ;;  %v9387_v11 = vshll.u32 %v8842_v31, 16  ;;  %v9392_v41 = vshrl.u32 %v8843_v3, 16  ;;  %v8851_v14 = vld [vmem:[#allocation2 + $0x138] sm:$0xf]  ;;  %v14684_v50 = vld [vmem:[#allocation10 + $0x128] sm:$0xff]  }
 0x34d   : > { %13719 = vmatmul.mubr.bf16.gmra.mrb[36].mxu0 %v12334_v25  ;;  %13367 = vmatmul.mubr.bf16.gmra.mrb[4].mxu1 %v14643_v26  ;;  %v9360_v8 = vsel %vm15759_vm11, %v9355_v33, %v9359_v55  ;;  %v9365_v1 = vrot.slane %v9364_v42, 4  ;;  %v9395_v23 = vshll.u32 %v8843_v3, 16  ;;  %v9401_v24 = vshll.u32 %v8844_v5, 16  ;;  %v8852_v42 = vld [vmem:[#allocation2 + $0x13c] sm:$0x1] }
 0x34e   : > { %13722 = vmatprep.mubr.bf16.mxu0 %v12335_v37  ;;  %13370 = vmatprep.mubr.bf16.mxu1 %v14644_v12  ;;  %v9375_v10 = vrot.slane %v9374_v4, 4  ;;  %v9384_v38 = vor.u32 %v9383_v20, %v9379_v0  ;;  %v9389_v29 = vrot.slane %v9387_v11, 5  ;;  %v9394_v25 = vrot.slane %v9392_v41, 4 }
 0x34f   : > { %13836 = vmatpush3.bf16.msra.mxu1 %v14681_v39  ;;  %v9370_v52 = vsel %vm15759_vm11, %v9365_v1, %v9369_v47  ;;  %v9397_v36 = vrot.slane %v9395_v23, 5  ;;  %v9405_v30 = vshrl.u32 %v8844_v5, 16  ;;  %v9403_v13 = vrot.slane %v9401_v24, 5 }
 0x350   : > { %13829 = vmatprep.subr.bf16.mxu1 %v14682_v2  ;;  %v12337_v27 = vcombine.low %v9360_v8, %v9370_v52  ;;  %v9380_v22 = vsel %vm15759_vm11, %v9375_v10, %v9379_v0  ;;  %v9385_v19 = vrot.slane %v9384_v38, 4  ;;  %v9411_v15 = vshll.u32 %v8845_v17, 16  ;;  %v8853_v0 = vld [vmem:[#allocation2 + $0x140] sm:$0xf]  ;;  %v14649_v8 = vld [vmem:[#allocation2 + $0x64] sm:$0xff]   ;;  %v14685_v52 = vld [vmem:[#allocation10 + $0x130] sm:$0xff]  }
 0x351   : > { %v9398_v9 = vor.u32 %v9397_v36, %v9394_v25  ;;  %v9407_v34 = vrot.slane %v9405_v30, 4  ;;  %v9415_v49 = vshrl.u32 %v8845_v17, 16  ;;  %v9421_v40 = vshll.u32 %v8846_v45, 16 }
 0x352   : > { %v9390_v26 = vsel %vm15759_vm11, %v9385_v19, %v9389_v29  ;;  %v9425_v18 = vshrl.u32 %v8846_v45, 16  ;;  %v9431_v60 = vshll.u32 %v8847_v28, 16  ;;  %v9413_v54 = vrot.slane %v9411_v15, 5  ;;  %v8856_v15 = vld [vmem:[#allocation2 + $0x14c] sm:$0xf] }
 0x353   : > { %13837 = vmatpush3.bf16.msra.mxu1 %v14682_v2  ;;  %v12338_v51 = vcombine.low %v9380_v22, %v9390_v26  ;;  %v9399_v37 = vrot.slane %v9398_v9, 4  ;;  %v9408_v6 = vor.u32 %v9407_v34, %v9403_v13  ;;  %v9417_v55 = vrot.slane %v9415_v49, 4  ;;  %v8854_v2 = vld [vmem:[#allocation2 + $0x144] sm:$0xf]  ;;  %v8855_v9 = vld [vmem:[#allocation2 + $0x148] sm:$0xf] }
 0x354   : > { %13830 = vmatprep.subr.bf16.mxu1 %v14683_v21  ;;  %v9423_v63 = vrot.slane %v9421_v40, 5  ;;  %v9427_v58 = vrot.slane %v9425_v18, 4  ;;  %v9433_v31 = vrot.slane %v9431_v60, 5  ;;  %v9436_v56 = vshrl.u32 %v8848_v44, 16  ;;  %v14686_v60 = vld [vmem:[#allocation10 + $0x138] sm:$0xff]  }
 0x355   : > { %13723 = vmatmul.mubr.bf16.gmra.mrb[40].mxu0 %v12336_v57  ;;  %13371 = vmatmul.mubr.bf16.gmra.mrb[8].mxu1 %v14645_v43  ;;  %v9404_v12 = vsel %vm15759_vm11, %v9399_v37, %v9403_v13  ;;  %v9409_v32 = vrot.slane %v9408_v6, 4  ;;  %v9439_v7 = vshll.u32 %v8848_v44, 16  ;;  %v9418_v53 = vor.u32 %v9417_v55, %v9413_v54  ;;  %v14648_v57 = vld [vmem:[#allocation2 + $0x58] sm:$0xff]  }
 0x356   : > { %13726 = vmatprep.mubr.bf16.mxu0 %v12337_v27  ;;  %13374 = vmatprep.mubr.bf16.mxu1 %v14647_v61  ;;  %v9428_v3 = vor.u32 %v9427_v58, %v9423_v63  ;;  %v9445_v35 = vshll.u32 %v8849_v59, 16  ;;  %v9449_v47 = vshrl.u32 %v8849_v59, 16  ;;  %v9438_v39 = vrot.slane %v9436_v56, 4  ;;  %v14652_v59 = vld [vmem:[#allocation2 + $0x78] sm:$0xff]  }
 0x357   : > { %13838 = vmatpush3.bf16.msra.mxu1 %v14683_v21  ;;  %v9414_v5 = vsel %vm15759_vm11, %v9409_v32, %v9413_v54  ;;  %v9441_v46 = vrot.slane %v9439_v7, 5  ;;  %v9455_v33 = vshll.u32 %v8850_v16, 16  ;;  %v9419_v20 = vrot.slane %v9418_v53, 4  ;;  %v14650_v21 = vld [vmem:[#allocation2 + $0x6c] sm:$0xff]   ;;  %v8858_v53 = vld [vmem:[#allocation2 + $0x154] sm:$0xf] }
 0x358   : > { %13831 = vmatprep.subr.bf16.mxu1 %v14684_v50  ;;  %v12339_v4 = vcombine.low %v9404_v12, %v9414_v5  ;;  %v9429_v11 = vrot.slane %v9428_v3, 4  ;;  %v9447_v17 = vrot.slane %v9445_v35, 5  ;;  %v9451_v41 = vrot.slane %v9449_v47, 4 }
 0x359   : > { %v9442_v1 = vor.u32 %v9441_v46, %v9438_v39  ;;  %v9457_v23 = vrot.slane %v9455_v33, 5  ;;  %v9459_v45 = vshrl.u32 %v8850_v16, 16  ;;  %v9424_v10 = vsel %vm15759_vm11, %v9419_v20, %v9423_v63  ;;  %v8859_v33 = vld [vmem:[#allocation2 + $0x158] sm:$0xf] }
 0x35a   : > { %v9434_v38 = vsel %vm15759_vm11, %v9429_v11, %v9433_v31  ;;  %v9465_v29 = vshll.u32 %v8851_v14, 16  ;;  %v9469_v24 = vshrl.u32 %v8851_v14, 16  ;;  %v9452_v30 = vor.u32 %v9451_v41, %v9447_v17  ;;  %v8857_v31 = vld [vmem:[#allocation2 + $0x150] sm:$0x1] }
 0x35b   : > { %13839 = vmatpush3.bf16.msra.mxu1 %v14684_v50  ;;  %v12340_v25 = vcombine.low %v9424_v10, %v9434_v38  ;;  %v9443_v36 = vrot.slane %v9442_v1, 4  ;;  %v9461_v28 = vrot.slane %v9459_v45, 4  ;;  %v9475_v22 = vshll.u32 %v8852_v42, 16  ;;  %v14653_v38 = vld [vmem:[#allocation2 + $0x80] sm:$0xff]  }
 0x35c   : > { %13832 = vmatprep.subr.bf16.mxu1 %v14685_v52  ;;  %v9467_v43 = vrot.slane %v9465_v29, 5  ;;  %v9471_v27 = vrot.slane %v9469_v24, 4  ;;  %v9480_v19 = vshrl.u32 %v8853_v0, 16  ;;  %v9453_v44 = vrot.slane %v9452_v30, 4 }
 0x35d   : > { %13727 = vmatmul.mubr.bf16.gmra.mrb[44].mxu0 %v12338_v51  ;;  %13375 = vmatmul.mubr.bf16.gmra.mrb[12].mxu1 %v14648_v57  ;;  %v9448_v13 = vsel %vm15759_vm11, %v9443_v36, %v9447_v17  ;;  %v9462_v61 = vor.u32 %v9461_v28, %v9457_v23  ;;  %v9483_v34 = vshll.u32 %v8853_v0, 16  ;;  %v9477_v26 = vrot.slane %v9475_v22, 5  ;;  %v14654_v36 = vld [vmem:[#allocation2 + $0x8c] sm:$0xff]  }
 0x35e   : > { %13730 = vmatprep.mubr.bf16.mxu0 %v12339_v4  ;;  %13378 = vmatprep.mubr.bf16.mxu1 %v14649_v8  ;;  %v9472_v49 = vor.u32 %v9471_v27, %v9467_v43  ;;  %v9482_v40 = vrot.slane %v9480_v19, 4  ;;  %v9489_v18 = vshll.u32 %v8854_v2, 16  ;;  %v9458_v51 = vsel %vm15759_vm11, %v9453_v44, %v9457_v23  ;;  %v8860_v4 = vld [vmem:[#allocation2 + $0x15c] sm:$0xf]  ;;  %v8862_v44 = vld [vmem:[#allocation2 + $0x164] sm:$0x1] }
 0x35f   : > { %13840 = vmatpush3.bf16.msra.mxu1 %v14685_v52  ;;  %v9463_v37 = vrot.slane %v9462_v61, 4  ;;  %v9485_v6 = vrot.slane %v9483_v34, 5  ;;  %v9493_v54 = vshrl.u32 %v8854_v2, 16  ;;  %v12341_v16 = vcombine.low %v9448_v13, %v9458_v51 }
 0x360   : > { %13833 = vmatprep.subr.bf16.mxu1 %v14686_v60  ;;  %v9473_v55 = vrot.slane %v9472_v49, 4  ;;  %v9491_v63 = vrot.slane %v9489_v18, 5  ;;  %v9499_v58 = vshll.u32 %v8855_v9, 16  ;;  %v9503_v7 = vshrl.u32 %v8855_v9, 16  ;;  %v10241_v49 = vld [vmem:[#allocation2 + $0x2c] sm:$0xf] }
 0x361   : > { %v9468_v12 = vsel %vm15759_vm11, %v9463_v37, %v9467_v43  ;;  %v9486_v32 = vor.u32 %v9485_v6, %v9482_v40  ;;  %v9495_v56 = vrot.slane %v9493_v54, 4  ;;  %v9509_v47 = vshll.u32 %v8856_v15, 16 }
 0x362   : > { %v9478_v3 = vsel %vm15759_vm11, %v9473_v55, %v9477_v26  ;;  %v9501_v35 = vrot.slane %v9499_v58, 5  ;;  %v9513_v14 = vshrl.u32 %v8856_v15, 16  ;;  %v9505_v46 = vrot.slane %v9503_v7, 4  ;;  %v10242_v55 = vld [vmem:[#allocation2 + $0x30] sm:$0xf] }
 0x363   : > { %13841 = vmatpush3.bf16.msra.mxu1 %v14686_v60  ;;  %v12342_v50 = vcombine.low %v9468_v12, %v9478_v3  ;;  %v9487_v5 = vrot.slane %v9486_v32, 4  ;;  %v9496_v39 = vor.u32 %v9495_v56, %v9491_v63  ;;  %v9511_v42 = vrot.slane %v9509_v47, 5  ;;  %v10243_v12 = vld [vmem:[#allocation2 + $0x34] sm:$0xf] }
 0x364   : > { %v9515_v0 = vrot.slane %v9513_v14, 4  ;;  %v9519_v57 = vshll.u32 %v8857_v31, 16  ;;  %v9524_v20 = vshrl.u32 %v8858_v53, 16  ;;  %v9506_v8 = vor.u32 %v9505_v46, %v9501_v35  ;;  %v14655_v3 = vld [vmem:[#allocation2 + $0x94] sm:$0xff]  }
 0x365   : > { %13731 = vmatmul.mubr.bf16.gmra.mrb[48].mxu0 %v12340_v25  ;;  %13379 = vmatmul.mubr.bf16.gmra.mrb[16].mxu1 %v14650_v21  ;;  %v9492_v11 = vsel %vm15759_vm11, %v9487_v5, %v9491_v63  ;;  %v9497_v17 = vrot.slane %v9496_v39, 4  ;;  %v9527_v1 = vshll.u32 %v8858_v53, 16  ;;  %v9533_v10 = vshll.u32 %v8859_v33, 16  ;;  %v8861_v25 = vld [vmem:[#allocation2 + $0x160] sm:$0xf] }
 0x366   : > { %13734 = vmatprep.mubr.bf16.mxu0 %v12341_v16  ;;  %13382 = vmatprep.mubr.bf16.mxu1 %v14652_v59  ;;  %v9516_v41 = vor.u32 %v9515_v0, %v9511_v42  ;;  %v9521_v23 = vrot.slane %v9519_v57, 5  ;;  %v9526_v45 = vrot.slane %v9524_v20, 4  ;;  %v9507_v24 = vrot.slane %v9506_v8, 4  ;;  %v10240_v21 = vld [vmem:[#allocation2 + $0x28] sm:$0xe]  ;;  %v14657_v5 = vld [vmem:[#allocation2 + $0xa0] sm:$0xff]  }
 0x367   : > { %v9502_v29 = vsel %vm15759_vm11, %v9497_v17, %v9501_v35  ;;  %v9529_v2 = vrot.slane %v9527_v1, 5  ;;  %v9537_v52 = vshrl.u32 %v8859_v33, 16  ;;  %v9535_v43 = vrot.slane %v9533_v10, 5  ;;  %v10246_v39 = vld [vmem:[#allocation2 + $0x40] sm:$0xf] }
 0x368   : > { %v12343_v30 = vcombine.low %v9492_v11, %v9502_v29  ;;  %v9517_v28 = vrot.slane %v9516_v41, 4  ;;  %v9543_v27 = vshll.u32 %v8860_v4, 16  ;;  %v9547_v13 = vshrl.u32 %v8860_v4, 16  ;;  %v10244_v0 = vld [vmem:[#allocation2 + $0x38] sm:$0x1] }
 0x369   : > { %v9530_v22 = vor.u32 %v9529_v2, %v9526_v45  ;;  %v9539_v19 = vrot.slane %v9537_v52, 4  ;;  %v9512_v61 = vsel %vm15759_vm11, %v9507_v24, %v9511_v42  ;;  %v9553_v34 = vshll.u32 %v8861_v25, 16  ;;  %v10245_v57 = vld [vmem:[#allocation2 + $0x3c] sm:$0xe]  ;;  %v10247_v11 = vld [vmem:[#allocation2 + $0x44] sm:$0xf] }
 0x36a   : > { %v9545_v9 = vrot.slane %v9543_v27, 5  ;;  %v9557_v15 = vshrl.u32 %v8861_v25, 16  ;;  %v9522_v26 = vsel %vm15759_vm11, %v9517_v28, %v9521_v23  ;;  %v9549_v60 = vrot.slane %v9547_v13, 4  ;;  %v10248_v8 = vld [vmem:[#allocation2 + $0x48] sm:$0xf]  ;;  %v14659_v52 = vld [vmem:[#allocation2 + $0xb4] sm:$0xff]  }
 0x36b   : > { %v9531_v40 = vrot.slane %v9530_v22, 4  ;;  %v9540_v18 = vor.u32 %v9539_v19, %v9535_v43  ;;  %v9555_v51 = vrot.slane %v9553_v34, 5  ;;  %v9563_v6 = vshll.u32 %v8862_v44, 16  ;;  %v10251_v10 = vld [vmem:[#allocation2 + $0x54] sm:$0xf]  ;;  %v14658_v2 = vld [vmem:[#allocation2 + $0xa8] sm:$0xff]  }
 0x36c   : > { %v9559_v37 = vrot.slane %v9557_v15, 4  ;;  %v9550_v16 = vor.u32 %v9549_v60, %v9545_v9  ;;  %v10402_v63 = vrot.slane %v10241_v49, 5  ;;  %v12344_v58 = vcombine.low %v9512_v61, %v9522_v26  ;;  %v10252_v28 = vld [vmem:[#allocation2 + $0x58] sm:$0xf]  ;;  %v10250_v22 = vld [vmem:[#allocation2 + $0x50] sm:$0xe] }
 0x36d   : > { %13735 = vmatmul.mubr.bf16.gmra.mrb[52].mxu0 %v12342_v50  ;;  %13383 = vmatmul.mubr.bf16.gmra.mrb[20].mxu1 %v14653_v38  ;;  %v9536_v54 = vsel %vm15759_vm11, %v9531_v40, %v9535_v43  ;;  %v9541_v59 = vrot.slane %v9540_v18, 4  ;;  %v9565_v7 = vrot.slane %v9563_v6, 5  ;;  %v12355_v53 = vrot.slane %v10240_v21, 9  ;;  %v10253_v43 = vld [vmem:[#allocation2 + $0x5c] sm:$0xf] }
 0x36e   : > { %13738 = vmatprep.mubr.bf16.mxu0 %v12343_v30  ;;  %13386 = vmatprep.mubr.bf16.mxu1 %v14654_v36  ;;  %v9560_v31 = vor.u32 %v9559_v37, %v9555_v51  ;;  %v9551_v56 = vrot.slane %v9550_v16, 4  ;;  %v10404_v14 = vrot.slane %v10402_v63, 4  ;;  %v10405_v50 = vrot.slane %v10242_v55, 5  ;;  %v10249_v36 = vld [vmem:[#allocation2 + $0x4c] sm:$0x1]  ;;  %v14660_v16 = vld [vmem:[#allocation2 + $0xbc] sm:$0xff]  }
 0x36f   : > { %v9546_v32 = vsel %vm15759_vm11, %v9541_v59, %v9545_v9  ;;  %v10408_v46 = vrot.slane %v10243_v12, 5  ;;  %v10403_v4 = vsel %vm15823_vm14, %v12355_v53, %v10402_v63  ;;  %v10415_v17 = vrot.slane %v10246_v39, 5  ;;  %v10254_v34 = vld [vmem:[#allocation2 + $0x60] sm:$0x1]  ;;  %v10256_v15 = vld [vmem:[#allocation2 + $0x68] sm:$0xf] }
 0x370   : > { %v12345_v35 = vcombine.low %v9536_v54, %v9546_v32  ;;  %v9561_v47 = vrot.slane %v9560_v31, 4  ;;  %v9556_v33 = vsel %vm15759_vm11, %v9551_v56, %v9555_v51  ;;  %v10406_v20 = vsel %vm15823_vm14, %v10404_v14, %v10405_v50  ;;  %v10255_v60 = vld [vmem:[#allocation2 + $0x64] sm:$0xe]  ;;  %v10257_v21 = vld [vmem:[#allocation2 + $0x6c] sm:$0xf] }
 0x371   : > { %v10407_v41 = vrot.slane %v10405_v50, 4  ;;  %v10410_v23 = vrot.slane %v10408_v46, 4  ;;  %v10411_v45 = vrot.slane %v10244_v0, 5  ;;  %v12371_v38 = vcombine.low %v10403_v4, %v10406_v20  ;;  %v10258_v59 = vld [vmem:[#allocation2 + $0x70] sm:$0xf] }
 0x372   : > { %v9566_v42 = vsel %vm15759_vm11, %v9561_v47, %v9565_v7  ;;  %v12356_v29 = vrot.slane %v10245_v57, 9  ;;  %v10418_v24 = vrot.slane %v10247_v11, 5  ;;  %v10417_v25 = vrot.slane %v10415_v17, 4  ;;  %v10261_v31 = vld [vmem:[#allocation2 + $0x7c] sm:$0xf] }
 0x373   : > { %v12346_v1 = vcombine.low %v9556_v33, %v9566_v42  ;;  %v10421_v30 = vrot.slane %v10248_v8, 5  ;;  %v10409_v27 = vsel %vm15823_vm14, %v10407_v41, %v10408_v46  ;;  %v10428_v19 = vrot.slane %v10251_v10, 5  ;;  %v10262_v53 = vld [vmem:[#allocation2 + $0x80] sm:$0xf]  ;;  %v10260_v57 = vld [vmem:[#allocation2 + $0x78] sm:$0xe] }
 0x374   : > { %v10412_v13 = vsel %vm15823_vm14, %v10410_v23, %v10411_v45  ;;  %v10416_v44 = vsel %vm15823_vm14, %v12356_v29, %v10415_v17  ;;  %v10420_v61 = vrot.slane %v10418_v24, 4  ;;  %v10424_v9 = vrot.slane %v10249_v36, 5  ;;  %v10264_v20 = vld [vmem:[#allocation2 + $0x88] sm:$0x1]  ;;  %v10265_v41 = vld [vmem:[#allocation2 + $0x8c] sm:$0xe] }
 0x375   : > { %13739 = vmatmul.mubr.bf16.gmra.mrb[56].mxu0 %v12344_v58  ;;  %13387 = vmatmul.mubr.bf16.gmra.mrb[24].mxu1 %v14655_v3  ;;  %v10419_v49 = vsel %vm15823_vm14, %v10417_v25, %v10418_v24  ;;  %v10423_v26 = vrot.slane %v10421_v30, 4  ;;  %v10431_v40 = vrot.slane %v10252_v28, 5  ;;  %v10434_v18 = vrot.slane %v10253_v43, 5  ;;  %v10259_v58 = vld [vmem:[#allocation2 + $0x74] sm:$0x1] }
 0x376   : > { %13742 = vmatprep.mubr.bf16.mxu0 %v12345_v35  ;;  %13390 = vmatprep.mubr.bf16.mxu1 %v14657_v5  ;;  %v12372_v51 = vcombine.low %v10409_v27, %v10412_v13  ;;  %v12357_v37 = vrot.slane %v10250_v22, 9  ;;  %v10430_v6 = vrot.slane %v10428_v19, 4  ;;  %v10441_v54 = vrot.slane %v10256_v15, 5  ;;  %v10263_v3 = vld [vmem:[#allocation2 + $0x84] sm:$0xf]  ;;  %v14661_v35 = vld [vmem:[#allocation2 + $0xc8] sm:$0xff]  }
 0x377   : > { %v12373_v55 = vcombine.low %v10416_v44, %v10419_v49  ;;  %v10437_v63 = vrot.slane %v10254_v34, 5  ;;  %v10422_v12 = vsel %vm15823_vm14, %v10420_v61, %v10421_v30  ;;  %v10425_v32 = vsel %vm15823_vm14, %v10423_v26, %v10424_v9  ;;  %v10266_v5 = vld [vmem:[#allocation2 + $0x90] sm:$0xf]  ;;  %v10267_v23 = vld [vmem:[#allocation2 + $0x94] sm:$0xf]  ;;  %v14663_v13 = vld [vmem:[#allocation2 + $0xdc] sm:$0xff]  }
 0x378   : > { %v10433_v56 = vrot.slane %v10431_v40, 4  ;;  %v10436_v7 = vrot.slane %v10434_v18, 4  ;;  %v12358_v47 = vrot.slane %v10255_v60, 9  ;;  %v10444_v14 = vrot.slane %v10257_v21, 5  ;;  %v10268_v22 = vld [vmem:[#allocation2 + $0x98] sm:$0xf] }
 0x379   : > { %v10447_v50 = vrot.slane %v10258_v59, 5  ;;  %v10429_v39 = vsel %vm15823_vm14, %v12357_v37, %v10428_v19  ;;  %v10432_v46 = vsel %vm15823_vm14, %v10430_v6, %v10431_v40  ;;  %v10443_v33 = vrot.slane %v10441_v54, 4  ;;  %v14662_v19 = vld [vmem:[#allocation2 + $0xd0] sm:$0xff]   ;;  %v10271_v15 = vld [vmem:[#allocation2 + $0xa4] sm:$0xf] }
 0x37a   : > { %v10454_v42 = vrot.slane %v10261_v31, 5  ;;  %v12374_v0 = vcombine.low %v10422_v12, %v10425_v32  ;;  %v10457_v4 = vrot.slane %v10262_v53, 5  ;;  %v10460_v11 = vrot.slane %v10263_v3, 5  ;;  %v16841_v49 = vld [vmem:[#allocation2 + $0xa8] sm:$0xf] }
 0x37b   : > { %v16819_v17 = vsel %vm15823_vm14, %v10433_v56, %v10434_v18  ;;  %v16823_v8 = vsel %vm15823_vm14, %v10436_v7, %v10437_v63  ;;  %v10467_v45 = vrot.slane %v10266_v5, 5  ;;  %v12375_v10 = vcombine.low %v10429_v39, %v10432_v46  ;;  %v16843_v26 = vld [vmem:[#allocation2 + $0xac] sm:$0xf]  ;;  %v5524_v37 = vld [vmem:[#allocation2 + $0xb8] sm:$0xf]  ;;  %v14664_v46 = vld [vmem:[#allocation2 + $0xe4] sm:$0xff]  }
 0x37c   : > { %v10446_v29 = vrot.slane %v10444_v14, 4  ;;  %v10449_v24 = vrot.slane %v10447_v50, 4  ;;  %v10456_v25 = vrot.slane %v10454_v42, 4  ;;  %v10463_v36 = vrot.slane %v10264_v20, 5  ;;  %v10270_v63 = vld [vmem:[#allocation2 + $0xa0] sm:$0xe] }
 0x37d   : > { %13743 = vmatmul.mubr.bf16.gmra.mrb[60].mxu0 %v12346_v1  ;;  %13391 = vmatmul.mubr.bf16.gmra.mrb[28].mxu1 %v14658_v2  ;;  %v10450_v1 = vrot.slane %v10259_v58, 5  ;;  %v16831_v2 = vsel %vm15823_vm14, %v10443_v33, %v10444_v14  ;;  %v10459_v30 = vrot.slane %v10457_v4, 4  ;;  %v10462_v28 = vrot.slane %v10460_v11, 4  ;;  %v10274_v32 = vld [vmem:[#allocation2 + $0xb0] sm:$0x1] }
 0x37e   : > { %13762 = vmatprep.mubr.bf16.mxu0 %v12371_v38  ;;  %13394 = vmatprep.mubr.bf16.mxu1 %v14659_v52  ;;  %v16827_v38 = vsel %vm15823_vm14, %v12358_v47, %v10441_v54  ;;  %v12359_v52 = vrot.slane %v10260_v57, 9  ;;  %v12360_v43 = vrot.slane %v10265_v41, 9  ;;  %v10470_v27 = vrot.slane %v10267_v23, 5  ;;  %v16877_v39 = vld [vmem:[#allocation2 + $0xb8] sm:$0xf] }
 0x37f   : > { %v10469_v44 = vrot.slane %v10467_v45, 4  ;;  %v12376_v61 = vcombine.low %v16819_v17, %v16823_v8  ;;  %v12377_v9 = vcombine.low %v16827_v38, %v16831_v2  ;;  %v16839_v34 = vsel %vm15823_vm14, %v10446_v29, %v10447_v50  ;;  %v5525_v20 = vld [vmem:[#allocation2 + $0xbc] sm:$0xf]  ;;  %v5526_v23 = vld [vmem:[#allocation2 + $0xc0] sm:$0xf] }
 0x380   : > { %v16847_v40 = vsel %vm15823_vm14, %v10449_v24, %v10450_v1  ;;  %v16851_v18 = vsel %vm15823_vm14, %v12359_v52, %v10454_v42  ;;  %v16855_v60 = vsel %vm15823_vm14, %v10456_v25, %v10457_v4  ;;  %v10473_v21 = vrot.slane %v10268_v22, 5  ;;  %v16885_v4 = vld [vmem:[#allocation2 + $0xbc] sm:$0xf]  ;;  %v10275_v25 = vld [vmem:[#allocation2 + $0xb4] sm:$0xe] }
 0x381   : > { %v16859_v6 = vsel %vm15823_vm14, %v10459_v30, %v10460_v11  ;;  %v16863_v54 = vsel %vm15823_vm14, %v10462_v28, %v10463_v36  ;;  %v16867_v59 = vsel %vm15823_vm14, %v12360_v43, %v10467_v45  ;;  %v16871_v58 = vsel %vm15823_vm14, %v10469_v44, %v10470_v27  ;;  %v14665_v11 = vld [vmem:[#allocation2 + $0xf0] sm:$0xff]   ;;  %v16891_v45 = vld [vmem:[#allocation2 + $0xc0] sm:$0xf]  ;;  %v10281_v28 = vld [vmem:[#allocation2 + $0xcc] sm:$0xf] }
 0x382   : > { %v10480_v31 = vrot.slane %v10271_v15, 5  ;;  %v10483_v12 = vrot.slane %v16841_v49, 5  ;;  %v10486_v56 = vrot.slane %v16843_v26, 5  ;;  %v5925_v3 = vshll.u32 %v5524_v37, 16  ;;  %v10279_v22 = vld [vmem:[#allocation2 + $0xc4] sm:$0x1] }
 0x383   : > { %v12378_v47 = vcombine.low %v16839_v34, %v16847_v40  ;;  %v10475_v14 = vrot.slane %v10473_v21, 4  ;;  %v12361_v5 = vrot.slane %v10270_v63, 9  ;;  %v12379_v33 = vcombine.low %v16851_v18, %v16855_v60 }
 0x384   : > { %v12380_v42 = vcombine.low %v16859_v6, %v16863_v54  ;;  %v10489_v57 = vrot.slane %v10274_v32, 5  ;;  %v10482_v8 = vrot.slane %v10480_v31, 4  ;;  %v10485_v1 = vrot.slane %v10483_v12, 4  ;;  %v10282_v32 = vld [vmem:[#allocation2 + $0xd0] sm:$0xf] }
 0x385   : > { %13763 = vmatmul.mubr.bf16.vlgmr.msra.gmra.mrb[0].mxu0 %v12372_v51  ;;  %13395 = vmatmul.mubr.bf16.gmra.mrb[32].mxu1 %v14660_v16  ;;  %v5523_v51 = vld [vmem:[#allocation2 + $0xb4] sm:$0xf]  ;;  %v10269_v16 = vld [vmem:[#allocation2 + $0x9c] sm:$0x1]  ;;  %v10488_v41 = vrot.slane %v10486_v56, 4  ;;  %v16893_v29 = vrot.slane %v5925_v3, 5  ;;  %v16901_v52 = vsel %vm15823_vm14, %v12361_v5, %v10480_v31 }
 0x386   : > { %13766 = vmatprep.mubr.bf16.mxu0 %v12373_v55  ;;  %13398 = vmatprep.mubr.bf16.mxu1 %v14661_v35  ;;  %v10472_v55 = vrot.slane %v10470_v27, 4  ;;  %v5916_v7 = vshrl.u32 %v5523_v51, 16  ;;  %v5919_v53 = vshll.u32 %v5523_v51, 16  ;;  %v5929_v35 = vshrl.u32 %v5524_v37, 16  ;;  %v10280_v51 = vld [vmem:[#allocation2 + $0xc8] sm:$0xe] }
 0x387   : > { %v10476_v50 = vrot.slane %v10269_v16, 5  ;;  %v5935_v36 = vshll.u32 %v5525_v20, 16  ;;  %v5939_v30 = vshrl.u32 %v5525_v20, 16  ;;  %v10493_v43 = vrot.slane %v16877_v39, 5  ;;  %v14666_v16 = vld [vmem:[#allocation2 + $0xf8] sm:$0xff]  }
 0x388   : > { %v16889_v17 = vsel %vm15823_vm14, %v10472_v55, %v10473_v21  ;;  %v5921_v38 = vrot.slane %v5919_v53, 5  ;;  %v5931_v24 = vrot.slane %v5929_v35, 4  ;;  %v10496_v27 = vrot.slane %v16885_v4, 5  ;;  %v5527_v53 = vld [vmem:[#allocation2 + $0xc4] sm:$0x1] }
 0x389   : > { %v16897_v2 = vsel %vm15823_vm14, %v10475_v14, %v10476_v50  ;;  %v16907_v44 = vsel %vm15823_vm14, %v10482_v8, %v10483_v12  ;;  %v16915_v15 = vsel %vm15823_vm14, %v10488_v41, %v10489_v57  ;;  %v10506_v37 = vrot.slane %v10281_v28, 5  ;;  %v5528_v14 = vld [vmem:[#allocation2 + $0xc8] sm:$0xf]  ;;  %v5529_v57 = vld [vmem:[#allocation2 + $0xcc] sm:$0xf] }
 0x38a   : > { %v12382_v49 = vcombine.low %v16889_v17, %v16897_v2  ;;  %v5932_v21 = vor.u32 %v5931_v24, %v16893_v29  ;;  %v12362_v55 = vrot.slane %v10275_v25, 9  ;;  %v10502_v63 = vrot.slane %v10279_v22, 5  ;;  %v14667_v4 = vld [vmem:[#allocation2 + $0x104] sm:$0xff]   ;;  %v14668_v22 = vld [vmem:[#allocation2 + $0x10c] sm:$0xff]  }
 0x38b   : > { %v5937_v31 = vrot.slane %v5935_v36, 5  ;;  %v5941_v12 = vrot.slane %v5939_v30, 4  ;;  %v10495_v50 = vrot.slane %v10493_v43, 4  ;;  %v10498_v5 = vrot.slane %v10496_v27, 4 }
 0x38c   : > { %v10508_v8 = vrot.slane %v10506_v37, 4  ;;  %v16932_v41 = vsel %vm15823_vm14, %v12362_v55, %v10493_v43  ;;  %v5955_v25 = vshll.u32 %v5527_v53, 16  ;;  %v5969_v36 = vshll.u32 %v5529_v57, 16  ;;  %v10284_v43 = vld [vmem:[#allocation2 + $0xd8] sm:$0x1] }
 0x38d   : > { %13767 = vmatmul.mubr.bf16.gmra.mrb[4].mxu0 %v12374_v0  ;;  %13399 = vmatmul.mubr.bf16.gmra.mrb[36].mxu1 %v14662_v19  ;;  %v12381_v0 = vcombine.low %v16867_v59, %v16871_v58  ;;  %v5945_v19 = vshll.u32 %v5526_v23, 16  ;;  %v5973_v30 = vshrl.u32 %v5529_v57, 16  ;;  %v16940_v34 = vsel %vm15823_vm14, %v10495_v50, %v10496_v27  ;;  %v5531_v55 = vld [vmem:[#allocation2 + $0xd4] sm:$0xf]  ;;  %v5534_v57 = vld [vmem:[#allocation2 + $0xe0] sm:$0xf] }
 0x38e   : > { %13770 = vmatprep.mubr.bf16.mxu0 %v12375_v10  ;;  %13402 = vmatprep.mubr.bf16.mxu1 %v14663_v13  ;;  %v5918_v10 = vrot.slane %v5916_v7, 4  ;;  %v5949_v13 = vshrl.u32 %v5526_v23, 16  ;;  %v5942_v23 = vor.u32 %v5941_v12, %v5937_v31 }
 0x38f   : > { %v16925_v3 = vrot.slane %v5945_v19, 5 }
 0x390   : > { %v5922_v26 = vor.u32 %v5921_v38, %v5918_v10  ;;  %v5951_v35 = vrot.slane %v5949_v13, 4  ;;  %v5960_v10 = vshrl.u32 %v5528_v14, 16  ;;  %v5963_v38 = vshll.u32 %v5528_v14, 16  ;;  %v5533_v14 = vld [vmem:[#allocation2 + $0xdc] sm:$0xf] }
 0x391   : > { %v16963_v19 = vrot.slane %v5942_v23, 4 }
 0x392   : > { %v5923_v20 = vrot.slane %v5922_v26, 4  ;;  %v5952_v24 = vor.u32 %v5951_v35, %v16925_v3  ;;  %v5962_v26 = vrot.slane %v5960_v10, 4  ;;  %v10286_v35 = vld [vmem:[#allocation2 + $0xe0] sm:$0xf]  ;;  %v10288_v10 = vld [vmem:[#allocation2 + $0xe8] sm:$0xf] }
 0x394   : > { %v5928_v60 = vsel %vm15759_vm11, %v5923_v20, %v16893_v29  ;;  %v5975_v29 = vrot.slane %v5973_v30, 4 }
 0x395   : > { %13771 = vmatmul.mubr.bf16.gmra.mrb[8].mxu0 %v12376_v61  ;;  %13403 = vmatmul.mubr.bf16.gmra.mrb[40].mxu1 %v14664_v46  ;;  %v16911_v61 = vsel %vm15823_vm14, %v10485_v1, %v10486_v56  ;;  %v12383_v56 = vcombine.low %v16901_v52, %v16907_v44  ;;  %v12363_v46 = vrot.slane %v10280_v51, 9  ;;  %v10509_v1 = vrot.slane %v10282_v32, 5  ;;  %v5536_v52 = vld [vmem:[#allocation2 + $0xe8] sm:$0xf] }
 0x396   : > { %13774 = vmatprep.mubr.bf16.mxu0 %v12377_v9  ;;  %v10499_v9 = vrot.slane %v16891_v45, 5  ;;  %13406 = vmatprep.mubr.bf16.mxu1 %v14665_v11  ;;  %v12384_v7 = vcombine.low %v16911_v61, %v16915_v15  ;;  %v5933_v11 = vrot.slane %v5932_v21, 4  ;;  %v10283_v45 = vld [vmem:[#allocation2 + $0xd4] sm:$0xf]  ;;  %v5965_v21 = vrot.slane %v5963_v38, 5 }
 0x397   : > { %v16952_v18 = vsel %vm15823_vm14, %v12363_v46, %v10506_v37  ;;  %v16961_v28 = vsel %vm15823_vm14, %v10508_v8, %v10509_v1  ;;  %v10512_v27 = vrot.slane %v10283_v45, 5  ;;  %v10511_v13 = vrot.slane %v10509_v1, 4 }
 0x398   : > { %v10501_v39 = vrot.slane %v10499_v9, 4  ;;  %v16944_v40 = vsel %vm15823_vm14, %v10498_v5, %v10499_v9  ;;  %v5530_v9 = vld [vmem:[#allocation2 + $0xd0] sm:$0xf]  ;;  %v5953_v51 = vrot.slane %v5952_v24, 4  ;;  %v5957_v37 = vrot.slane %v5955_v25, 5 }
 0x399   : > { %v12387_v53 = vcombine.low %v16952_v18, %v16961_v28  ;;  %v10514_v50 = vrot.slane %v10512_v27, 4  ;;  %v10515_v5 = vrot.slane %v10284_v43, 5  ;;  %v5983_v46 = vshrl.u32 %v5530_v9, 16 }
 0x39a   : > { %v5966_v20 = vor.u32 %v5965_v21, %v5962_v26  ;;  %v5989_v8 = vshll.u32 %v5531_v55, 16  ;;  %v5993_v1 = vshrl.u32 %v5531_v55, 16  ;;  %v5958_v23 = vsel %vm15759_vm11, %v5953_v51, %v5957_v37  ;;  %v10289_v51 = vld [vmem:[#allocation2 + $0xec] sm:$0x1] }
 0x39b   : > { %v16989_v6 = vsel %vm15823_vm14, %v10511_v13, %v10512_v27  ;;  %v10519_v45 = vrot.slane %v10286_v35, 5  ;;  %v6004_v38 = vshrl.u32 %v5533_v14, 16  ;;  %v6007_v24 = vshll.u32 %v5533_v14, 16  ;;  %v14671_v35 = vld [vmem:[#allocation2 + $0x12c] sm:$0xff]  }
 0x39c   : > { %v6013_v25 = vshll.u32 %v5534_v57, 16  ;;  %v16994_v59 = vsel %vm15823_vm14, %v10514_v50, %v10515_v5  ;;  %v5985_v30 = vrot.slane %v5983_v46, 4  ;;  %v16996_v43 = vrot.slane %v5989_v8, 5 }
 0x39d   : > { %13775 = vmatmul.mubr.bf16.gmra.mrb[12].mxu0 %v12378_v47  ;;  %13407 = vmatmul.mubr.bf16.gmra.mrb[44].mxu1 %v14666_v16  ;;  %v16948_v47 = vsel %vm15823_vm14, %v10501_v39, %v10502_v63  ;;  %v16965_v16 = vrot.slane %v5969_v36, 5  ;;  %v14669_v63 = vld [vmem:[#allocation2 + $0x118] sm:$0xff]   ;;  %v5979_v39 = vshll.u32 %v5530_v9, 16  ;;  %v6017_v36 = vshrl.u32 %v5534_v57, 16 }
 0x39e   : > { %13778 = vmatprep.mubr.bf16.mxu0 %v12379_v33  ;;  %13410 = vmatprep.mubr.bf16.mxu1 %v14667_v4  ;;  %v5938_v33 = vsel %vm15759_vm11, %v5933_v11, %v5937_v31  ;;  %v12385_v31 = vcombine.low %v16932_v41, %v16940_v34  ;;  %v12386_v12 = vcombine.low %v16944_v40, %v16948_v47  ;;  %v10285_v11 = vld [vmem:[#allocation2 + $0xdc] sm:$0xe]  ;;  %v5995_v27 = vrot.slane %v5993_v1, 4 }
 0x39f   : > { %v16971_v32 = vcombine.low %v5928_v60, %v5938_v33  ;;  %v5948_v4 = vsel %vm15759_vm11, %v16963_v19, %v16925_v3  ;;  %v5976_v54 = vor.u32 %v5975_v29, %v16965_v16  ;;  %v5532_v3 = vld [vmem:[#allocation2 + $0xd8] sm:$0x1]  ;;  %v5981_v58 = vrot.slane %v5979_v39, 5  ;;  %v5535_v19 = vld [vmem:[#allocation2 + $0xe4] sm:$0xf] }
 0x3a0   : > { %v5967_v60 = vrot.slane %v5966_v20, 4  ;;  %v10521_v9 = vrot.slane %v10519_v45, 4  ;;  %v5999_v26 = vshll.u32 %v5532_v3, 16  ;;  %v10525_v21 = vrot.slane %v10288_v10, 5  ;;  %v5538_v10 = vld [vmem:[#allocation2 + $0xf0] sm:$0xf] }
 0x3a1   : > { %v5977_v13 = vrot.slane %v5976_v54, 4  ;;  %v6006_v37 = vrot.slane %v6004_v38, 4  ;;  %v6009_v29 = vrot.slane %v6007_v24, 5  ;;  %v16998_v55 = vrot.slane %v6013_v25, 5 }
 0x3a2   : > { %v17000_v14 = vcombine.low %v5948_v4, %v5958_v23  ;;  %v5986_v50 = vor.u32 %v5985_v30, %v5981_v58  ;;  %v6023_v5 = vshll.u32 %v5535_v19, 16  ;;  %v6027_v39 = vshrl.u32 %v5535_v19, 16  ;;  %v10291_v4 = vld [vmem:[#allocation2 + $0xf4] sm:$0xf] }
 0x3a3   : > { %v5972_v46 = vsel %vm15759_vm11, %v5967_v60, %v16965_v16  ;;  %v5996_v20 = vor.u32 %v5995_v27, %v16996_v43  ;;  %v5982_v17 = vsel %vm15759_vm11, %v5977_v13, %v5981_v58  ;;  %v10528_v16 = vrot.slane %v10289_v51, 5  ;;  %v10292_v58 = vld [vmem:[#allocation2 + $0xf8] sm:$0xf]  ;;  %v5539_v19 = vld [vmem:[#allocation2 + $0xf4] sm:$0xf] }
 0x3a4   : > { %v12388_v8 = vcombine.low %v16989_v6, %v16994_v59  ;;  %v6001_v1 = vrot.slane %v5999_v26, 5  ;;  %v6010_v23 = vor.u32 %v6009_v29, %v6006_v37  ;;  %v5987_v44 = vrot.slane %v5986_v50, 4  ;;  %v14673_v37 = vld [vmem:[#allocation2 + $0x140] sm:$0xff]  }
 0x3a5   : > { %13779 = vmatmul.mubr.bf16.gmra.mrb[16].mxu0 %v12380_v42  ;;  %v10287_v42 = vld [vmem:[#allocation2 + $0xe4] sm:$0xf]  ;;  %13411 = vmatmul.mubr.bf16.gmra.mrb[48].mxu1 %v14668_v22  ;;  %v6029_v3 = vrot.slane %v6027_v39, 4  ;;  %v17025_v38 = vcombine.low %v5972_v46, %v5982_v17  ;;  %v5997_v25 = vrot.slane %v5996_v20, 4  ;;  %v6037_v27 = vshrl.u32 %v5536_v52, 16 }
 0x3a6   : > { %13782 = vmatprep.mubr.bf16.mxu0 %v12381_v0  ;;  %13414 = vmatprep.mubr.bf16.mxu1 %v14669_v63  ;;  %v12364_v0 = vrot.slane %v10285_v11, 9  ;;  %v10522_v33 = vrot.slane %v10287_v42, 5  ;;  %v14670_v22 = vld [vmem:[#allocation2 + $0x120] sm:$0xff]   ;;  %v6019_v63 = vrot.slane %v6017_v36, 4  ;;  %v10290_v42 = vld [vmem:[#allocation2 + $0xf0] sm:$0xe] }
 0x3a7   : > { %v12365_v60 = vrot.slane %v10290_v42, 9  ;;  %v6048_v26 = vshrl.u32 %v5538_v10, 16  ;;  %v6051_v51 = vshll.u32 %v5538_v10, 16  ;;  %v6002_v50 = vsel %vm15759_vm11, %v5997_v25, %v6001_v1  ;;  %v5540_v39 = vld [vmem:[#allocation2 + $0xf8] sm:$0xf] }
 0x3a8   : > { %v17010_v57 = vsel %vm15823_vm14, %v12364_v0, %v10519_v45  ;;  %v10524_v11 = vrot.slane %v10522_v33, 4  ;;  %v17020_v2 = vsel %vm15823_vm14, %v10521_v9, %v10522_v33  ;;  %v6020_v54 = vor.u32 %v6019_v63, %v16998_v55  ;;  %v14672_v0 = vld [vmem:[#allocation2 + $0x134] sm:$0xff]   ;;  %v5537_v9 = vld [vmem:[#allocation2 + $0xec] sm:$0x1]  ;;  %v10294_v10 = vld [vmem:[#allocation2 + $0x100] sm:$0x1] }
 0x3a9   : > { %v10532_v45 = vrot.slane %v10291_v4, 5  ;;  %v12389_v24 = vcombine.low %v17010_v57, %v17020_v2  ;;  %v6033_v33 = vshll.u32 %v5536_v52, 16  ;;  %v10535_v63 = vrot.slane %v10292_v58, 5  ;;  %v10296_v52 = vld [vmem:[#allocation2 + $0x108] sm:$0xf] }
 0x3aa   : > { %v17031_v36 = vsel %vm15823_vm14, %v10524_v11, %v10525_v21  ;;  %v6021_v13 = vrot.slane %v6020_v54, 4  ;;  %v6057_v46 = vshll.u32 %v5539_v19, 16  ;;  %v6061_v20 = vshrl.u32 %v5539_v19, 16  ;;  %v10295_v58 = vld [vmem:[#allocation2 + $0x104] sm:$0xe] }
 0x3ab   : > { %v10534_v29 = vrot.slane %v10532_v45, 4  ;;  %v17054_v11 = vrot.slane %v6033_v33, 5  ;;  %v6039_v61 = vrot.slane %v6037_v27, 4  ;;  %v6043_v15 = vshll.u32 %v5537_v9, 16  ;;  %v10302_v59 = vld [vmem:[#allocation2 + $0x120] sm:$0xf] }
 0x3ac   : > { %v6050_v41 = vrot.slane %v6048_v26, 4  ;;  %v6053_v34 = vrot.slane %v6051_v51, 5  ;;  %v6067_v1 = vshll.u32 %v5540_v39, 16  ;;  %v17067_v54 = vrot.slane %v6057_v46, 5 }
 0x3ad   : > { %13783 = vmatmul.mubr.bf16.gmra.mrb[20].mxu0 %v12382_v49  ;;  %v10527_v49 = vrot.slane %v10525_v21, 4  ;;  %13415 = vmatmul.mubr.bf16.gmra.mrb[52].mxu1 %v14670_v22  ;;  %v6011_v22 = vrot.slane %v6010_v23, 4  ;;  %v5992_v21 = vsel %vm15759_vm11, %v5987_v44, %v16996_v43  ;;  %v17052_v43 = vsel %vm15823_vm14, %v12365_v60, %v10532_v45 }
 0x3ae   : > { %13786 = vmatprep.mubr.bf16.mxu0 %v12383_v56  ;;  %13418 = vmatprep.mubr.bf16.mxu1 %v14671_v35  ;;  %v6025_v56 = vrot.slane %v6023_v5, 5  ;;  %v6071_v23 = vshrl.u32 %v5540_v39, 16  ;;  %v6063_v42 = vrot.slane %v6061_v20, 4  ;;  %v17069_v45 = vcombine.low %v5992_v21, %v6002_v50  ;;  %v5544_v21 = vld [vmem:[#allocation2 + $0x108] sm:$0xf] }
 0x3af   : > { %v17035_v30 = vsel %vm15823_vm14, %v10527_v49, %v10528_v16  ;;  %v6016_v4 = vsel %vm15759_vm11, %v6011_v22, %v16998_v55  ;;  %v10293_v49 = vld [vmem:[#allocation2 + $0xfc] sm:$0xf]  ;;  %v10537_v27 = vrot.slane %v10535_v63, 4  ;;  %v6054_v19 = vor.u32 %v6053_v34, %v6050_v41  ;;  %v10297_v22 = vld [vmem:[#allocation2 + $0x10c] sm:$0xf] }
 0x3b0   : > { %v6030_v35 = vor.u32 %v6029_v3, %v6025_v56  ;;  %v12390_v5 = vcombine.low %v17031_v36, %v17035_v30  ;;  %v6026_v17 = vsel %vm15759_vm11, %v6021_v13, %v6025_v56  ;;  %v6040_v56 = vor.u32 %v6039_v61, %v17054_v11  ;;  %v5543_v13 = vld [vmem:[#allocation2 + $0x104] sm:$0xf]  ;;  %v10306_v30 = vld [vmem:[#allocation2 + $0x130] sm:$0xf] }
 0x3b1   : > { %v17072_v3 = vrot.slane %v6043_v15, 5  ;;  %v10538_v25 = vrot.slane %v10293_v49, 5  ;;  %v17074_v60 = vcombine.low %v6016_v4, %v6026_v17  ;;  %v17082_v26 = vrot.slane %v6067_v1, 5  ;;  %v10299_v1 = vld [vmem:[#allocation2 + $0x114] sm:$0x1] }
 0x3b2   : > { %v17065_v16 = vrot.slane %v6030_v35, 4  ;;  %v10545_v51 = vrot.slane %v10296_v52, 5  ;;  %v5542_v35 = vld [vmem:[#allocation2 + $0x100] sm:$0x1]  ;;  %v6041_v46 = vrot.slane %v6040_v56, 4  ;;  %v6092_v61 = vshrl.u32 %v5543_v13, 16 }
 0x3b3   : > { %v10540_v20 = vrot.slane %v10538_v25, 4  ;;  %v6095_v15 = vshll.u32 %v5543_v13, 16  ;;  %v12366_v40 = vrot.slane %v10295_v58, 9  ;;  %v6101_v47 = vshll.u32 %v5544_v21, 16 }
 0x3b4   : > { %v6036_v9 = vsel %vm15759_vm11, %v17065_v16, %v17054_v11  ;;  %v10298_v11 = vld [vmem:[#allocation2 + $0x110] sm:$0xf]  ;;  %v10547_v4 = vrot.slane %v10545_v51, 4  ;;  %v10548_v17 = vrot.slane %v10297_v22, 5  ;;  %v6087_v41 = vshll.u32 %v5542_v35, 16 }
 0x3b5   : > { %13787 = vmatmul.mubr.bf16.gmra.mrb[24].mxu0 %v12384_v7  ;;  %v5541_v7 = vld [vmem:[#allocation2 + $0xfc] sm:$0xf]  ;;  %13419 = vmatmul.mubr.bf16.gmra.mrb[56].mxu1 %v14672_v0  ;;  %v14674_v0 = vld [vmem:[#allocation2 + $0x148] sm:$0xff]   ;;  %v17097_v18 = vsel %vm15823_vm14, %v10537_v27, %v10538_v25  ;;  %v10551_v34 = vrot.slane %v10298_v11, 5  ;;  %v6046_v16 = vsel %vm15759_vm11, %v6041_v46, %v17072_v3  ;;  %v17114_v56 = vrot.slane %v6101_v47, 5 }
 0x3b6   : > { %13790 = vmatprep.mubr.bf16.mxu0 %v12385_v31  ;;  %13422 = vmatprep.mubr.bf16.mxu1 %v14673_v37  ;;  %v17063_v31 = vsel %vm15823_vm14, %v10534_v29, %v10535_v63  ;;  %v6077_v55 = vshll.u32 %v5541_v7, 16  ;;  %v6081_v44 = vshrl.u32 %v5541_v7, 16  ;;  %v6073_v37 = vrot.slane %v6071_v23, 4  ;;  %v10301_v3 = vld [vmem:[#allocation2 + $0x11c] sm:$0xf] }
 0x3b7   : > { %v12391_v33 = vcombine.low %v17052_v43, %v17063_v31  ;;  %v10541_v29 = vrot.slane %v10294_v10, 5  ;;  %v6064_v63 = vor.u32 %v6063_v42, %v17067_v54  ;;  %v6055_v7 = vrot.slane %v6054_v19, 4  ;;  %v5546_v19 = vld [vmem:[#allocation2 + $0x110] sm:$0xf]  ;;  %v10300_v35 = vld [vmem:[#allocation2 + $0x118] sm:$0xe] }
 0x3b8   : > { %v17088_v50 = vrot.slane %v6077_v55, 5  ;;  %v6083_v39 = vrot.slane %v6081_v44, 4  ;;  %v6074_v49 = vor.u32 %v6073_v37, %v17082_v26  ;;  %v6094_v23 = vrot.slane %v6092_v61, 4  ;;  %v5545_v44 = vld [vmem:[#allocation2 + $0x10c] sm:$0xf] }
 0x3b9   : > { %v6065_v28 = vrot.slane %v6064_v63, 4  ;;  %v6097_v42 = vrot.slane %v6095_v15, 5  ;;  %v6060_v52 = vsel %vm15759_vm11, %v6055_v7, %v17067_v54  ;;  %v17112_v55 = vsel %vm15823_vm14, %v12366_v40, %v10545_v51  ;;  %v5547_v11 = vld [vmem:[#allocation2 + $0x114] sm:$0x1]  ;;  %v5548_v61 = vld [vmem:[#allocation2 + $0x118] sm:$0xf] }
 0x3ba   : > { %v17118_v25 = vsel %vm15823_vm14, %v10547_v4, %v10548_v17  ;;  %v6075_v58 = vrot.slane %v6074_v49, 4  ;;  %v10550_v27 = vrot.slane %v10548_v17, 4  ;;  %v10553_v13 = vrot.slane %v10551_v34, 4 }
 0x3bb   : > { %v6070_v54 = vsel %vm15759_vm11, %v6065_v28, %v17082_v26  ;;  %v10554_v51 = vrot.slane %v10299_v1, 5  ;;  %v17129_v37 = vcombine.low %v6036_v9, %v6046_v16  ;;  %v6115_v63 = vshrl.u32 %v5545_v44, 16 }
 0x3bc   : > { %v6121_v26 = vshll.u32 %v5546_v19, 16  ;;  %v17136_v2 = vcombine.low %v6060_v52, %v6070_v54  ;;  %v17147_v46 = vsel %vm15823_vm14, %v10550_v27, %v10551_v34  ;;  %v10561_v40 = vrot.slane %v10302_v59, 5  ;;  %v10303_v34 = vld [vmem:[#allocation2 + $0x124] sm:$0xf]  ;;  %v10307_v59 = vld [vmem:[#allocation2 + $0x134] sm:$0xf] }
 0x3bd   : > { %13791 = vmatmul.mubr.bf16.gmra.mrb[28].mxu0 %v12386_v12  ;;  %13423 = vmatmul.mubr.bf16.gmra.mrb[60].mxu1 %v14674_v0  ;;  %v6105_v12 = vshrl.u32 %v5544_v21, 16  ;;  %v6089_v0 = vrot.slane %v6087_v41, 5  ;;  %v6098_v21 = vor.u32 %v6097_v42, %v6094_v23  ;;  %v6117_v47 = vrot.slane %v6115_v63, 4  ;;  %v5550_v41 = vld [vmem:[#allocation2 + $0x120] sm:$0xf] }
 0x3be   : > { %13794 = vmatprep.mubr.bf16.mxu0 %v12387_v53  ;;  %13474 = vmatprep.mubr.bf16.mxu1 %v16971_v32  ;;  %v6084_v53 = vor.u32 %v6083_v39, %v17088_v50  ;;  %v17105_v32 = vsel %vm15823_vm14, %v10540_v20, %v10541_v29  ;;  %v6111_v29 = vshll.u32 %v5545_v44, 16  ;;  %v6125_v39 = vshrl.u32 %v5546_v19, 16 }
 0x3bf   : > { %v6107_v10 = vrot.slane %v6105_v12, 4  ;;  %v12392_v57 = vcombine.low %v17097_v18, %v17105_v32  ;;  %v12367_v20 = vrot.slane %v10300_v35, 9  ;;  %v6099_v15 = vrot.slane %v6098_v21, 4  ;;  %v5549_v12 = vld [vmem:[#allocation2 + $0x11c] sm:$0xf] }
 0x3c0   : > { %v6085_v22 = vrot.slane %v6084_v53, 4  ;;  %v6113_v7 = vrot.slane %v6111_v29, 5  ;;  %v17153_v17 = vrot.slane %v6121_v26, 5  ;;  %v6127_v49 = vrot.slane %v6125_v39, 4  ;;  %v10305_v21 = vld [vmem:[#allocation2 + $0x12c] sm:$0xe] }
 0x3c1   : > { %v6108_v6 = vor.u32 %v6107_v10, %v17114_v56  ;;  %v6136_v16 = vshrl.u32 %v5548_v61, 16  ;;  %v6139_v1 = vshll.u32 %v5548_v61, 16  ;;  %v6131_v42 = vshll.u32 %v5547_v11, 16  ;;  %v5551_v10 = vld [vmem:[#allocation2 + $0x124] sm:$0xf] }
 0x3c2   : > { %v6090_v9 = vsel %vm15759_vm11, %v6085_v22, %v6089_v0  ;;  %v6145_v52 = vshll.u32 %v5549_v12, 16  ;;  %v6149_v44 = vshrl.u32 %v5549_v12, 16  ;;  %v6155_v0 = vshll.u32 %v5550_v41, 16 }
 0x3c3   : > { %v6159_v36 = vshrl.u32 %v5550_v41, 16  ;;  %v6128_v43 = vor.u32 %v6127_v49, %v17153_v17  ;;  %v10564_v31 = vrot.slane %v10303_v34, 5  ;;  %v6141_v19 = vrot.slane %v6139_v1, 5  ;;  %v10308_v49 = vld [vmem:[#allocation2 + $0x138] sm:$0xf] }
 0x3c4   : > { %v6165_v54 = vshll.u32 %v5551_v10, 16  ;;  %v6169_v22 = vshrl.u32 %v5551_v10, 16  ;;  %v10571_v29 = vrot.slane %v10306_v30, 5  ;;  %v10563_v35 = vrot.slane %v10561_v40, 4  ;;  %v5555_v10 = vld [vmem:[#allocation2 + $0x134] sm:$0xf] }
 0x3c5   : > { %13795 = vmatmul.mubr.bf16.gmra.mrb[32].mxu0 %v12388_v8  ;;  %13475 = vmatmul.mubr.bf16.vlgmr.msra.gmra.mrb[32].mxu1 %v17000_v14  ;;  %v10558_v8 = vrot.slane %v10301_v3, 5  ;;  %v6080_v14 = vsel %vm15759_vm11, %v6075_v58, %v17088_v50  ;;  %v6109_v50 = vrot.slane %v6108_v6, 4  ;;  %v6104_v3 = vsel %vm15759_vm11, %v6099_v15, %v17114_v56 }
 0x3c6   : > { %13798 = vmatprep.mubr.bf16.mxu0 %v12389_v24  ;;  %13478 = vmatprep.mubr.bf16.mxu1 %v17025_v38  ;;  %v12393_v24 = vcombine.low %v17112_v55, %v17118_v25  ;;  %v17151_v38 = vsel %vm15823_vm14, %v10553_v13, %v10554_v51  ;;  %v17155_v28 = vcombine.low %v6080_v14, %v6090_v9  ;;  %v6138_v56 = vrot.slane %v6136_v16, 4  ;;  %v5552_v9 = vld [vmem:[#allocation2 + $0x128] sm:$0x1] }
 0x3c7   : > { %v10560_v4 = vrot.slane %v10558_v8, 4  ;;  %v12394_v53 = vcombine.low %v17147_v46, %v17151_v38  ;;  %v17164_v23 = vsel %vm15823_vm14, %v12367_v20, %v10558_v8  ;;  %v6118_v58 = vor.u32 %v6117_v47, %v6113_v7  ;;  %v5553_v20 = vld [vmem:[#allocation2 + $0x12c] sm:$0xf]  ;;  %v5554_v47 = vld [vmem:[#allocation2 + $0x130] sm:$0xf] }
 0x3c8   : > { %v17181_v13 = vrot.slane %v6131_v42, 5  ;;  %v6151_v51 = vrot.slane %v6149_v44, 4  ;;  %v17185_v6 = vrot.slane %v6155_v0, 5  ;;  %v6161_v8 = vrot.slane %v6159_v36, 4 }
 0x3c9   : > { %v17177_v27 = vsel %vm15823_vm14, %v10560_v4, %v10561_v40  ;;  %v6119_v63 = vrot.slane %v6118_v58, 4  ;;  %v6129_v39 = vrot.slane %v6128_v43, 4  ;;  %v10566_v11 = vrot.slane %v10564_v31, 4 }
 0x3ca   : > { %v6142_v61 = vor.u32 %v6141_v19, %v6138_v56  ;;  %v17191_v15 = vrot.slane %v6165_v54, 5  ;;  %v12368_v12 = vrot.slane %v10305_v21, 9  ;;  %v10574_v4 = vrot.slane %v10307_v59, 5  ;;  %v10312_v59 = vld [vmem:[#allocation2 + $0x148] sm:$0xf] }
 0x3cb   : > { %v6124_v41 = vsel %vm15759_vm11, %v6119_v63, %v17153_v17  ;;  %v6162_v34 = vor.u32 %v6161_v8, %v17185_v6  ;;  %v6180_v16 = vshrl.u32 %v5553_v20, 16  ;;  %v6183_v1 = vshll.u32 %v5553_v20, 16  ;;  %v10310_v63 = vld [vmem:[#allocation2 + $0x140] sm:$0xe]  ;;  %v5559_v8 = vld [vmem:[#allocation2 + $0x144] sm:$0xf] }
 0x3cc   : > { %v17207_v18 = vsel %vm15823_vm14, %v10563_v35, %v10564_v31  ;;  %v6175_v32 = vshll.u32 %v5552_v9, 16  ;;  %v6134_v55 = vsel %vm15759_vm11, %v6129_v39, %v17181_v13  ;;  %v10577_v17 = vrot.slane %v10308_v49, 5  ;;  %v10311_v31 = vld [vmem:[#allocation2 + $0x144] sm:$0xf]  ;;  %v5557_v39 = vld [vmem:[#allocation2 + $0x13c] sm:$0x1] }
 0x3cd   : > { %13799 = vmatmul.mubr.bf16.gmra.mrb[36].mxu0 %v12390_v5  ;;  %13479 = vmatmul.mubr.bf16.gmra.mrb[36].mxu1 %v17069_v45  ;;  %v6114_v5 = vsel %vm15759_vm11, %v6109_v50, %v6113_v7  ;;  %v17183_v45 = vrot.slane %v6145_v52, 5  ;;  %v6171_v7 = vrot.slane %v6169_v22, 4  ;;  %v10573_v50 = vrot.slane %v10571_v29, 4  ;;  %v5556_v22 = vld [vmem:[#allocation2 + $0x138] sm:$0xf] }
 0x3ce   : > { %13802 = vmatprep.mubr.bf16.mxu0 %v12391_v33  ;;  %13482 = vmatprep.mubr.bf16.mxu1 %v17074_v60  ;;  %v10304_v33 = vld [vmem:[#allocation2 + $0x128] sm:$0x1]  ;;  %v17187_v26 = vcombine.low %v6104_v3, %v6114_v5  ;;  %v12395_v60 = vcombine.low %v17164_v23, %v17177_v27  ;;  %v6193_v23 = vshrl.u32 %v5554_v47, 16  ;;  %v6143_v42 = vrot.slane %v6142_v61, 4 }
 0x3cf   : > { %v10567_v14 = vrot.slane %v10304_v33, 5  ;;  %v6152_v40 = vor.u32 %v6151_v51, %v17183_v45  ;;  %v17220_v44 = vsel %vm15823_vm14, %v12368_v12, %v10571_v29  ;;  %v6163_v3 = vrot.slane %v6162_v34, 4 }
 0x3d0   : > { %v10576_v58 = vrot.slane %v10574_v4, 4  ;;  %v6182_v0 = vrot.slane %v6180_v16, 4  ;;  %v6185_v36 = vrot.slane %v6183_v1, 5  ;;  %v6177_v30 = vrot.slane %v6175_v32, 5  ;;  %v10313_v1 = vld [vmem:[#allocation2 + $0x14c] sm:$0xf] }
 0x3d1   : > { %v17215_v25 = vsel %vm15823_vm14, %v10566_v11, %v10567_v14  ;;  %v6153_v52 = vrot.slane %v6152_v40, 4  ;;  %v6195_v43 = vrot.slane %v6193_v23, 4  ;;  %v10579_v56 = vrot.slane %v10577_v17, 4 }
 0x3d2   : > { %v6199_v19 = vshll.u32 %v5555_v10, 16  ;;  %v6203_v54 = vshrl.u32 %v5555_v10, 16  ;;  %v12204_v13 = vcombine.low %v6124_v41, %v6134_v55  ;;  %v12396_v51 = vcombine.low %v17207_v18, %v17215_v25  ;;  %v5560_v55 = vld [vmem:[#allocation2 + $0x148] sm:$0xf]  ;;  %v10316_v25 = vld [vmem:[#allocation2 + $0x158] sm:$0xf] }
 0x3d3   : > { %v6148_v21 = vsel %vm15759_vm11, %v6143_v42, %v17183_v45  ;;  %v6158_v29 = vsel %vm15759_vm11, %v6153_v52, %v17185_v6  ;;  %v6168_v46 = vsel %vm15759_vm11, %v6163_v3, %v17191_v15  ;;  %v17246_v38 = vsel %vm15823_vm14, %v10576_v58, %v10577_v17  ;;  %v5558_v45 = vld [vmem:[#allocation2 + $0x140] sm:$0xf]  ;;  %v5561_v52 = vld [vmem:[#allocation2 + $0x14c] sm:$0xf] }
 0x3d4   : > { %v6209_v14 = vshll.u32 %v5556_v22, 16  ;;  %v6213_v9 = vshrl.u32 %v5556_v22, 16  ;;  %v6201_v61 = vrot.slane %v6199_v19, 5  ;;  %v6237_v40 = vshrl.u32 %v5559_v8, 16 }
 0x3d5   : > { %13803 = vmatmul.mubr.bf16.gmra.mrb[40].mxu0 %v12392_v57  ;;  %13483 = vmatmul.mubr.bf16.gmra.mrb[40].mxu1 %v17129_v37  ;;  %v6189_v57 = vshll.u32 %v5554_v47, 16  ;;  %v10309_v37 = vld [vmem:[#allocation2 + $0x13c] sm:$0x1]  ;;  %v6227_v47 = vshll.u32 %v5558_v45, 16  ;;  %v6219_v49 = vshll.u32 %v5557_v39, 16  ;;  %v12205_v18 = vcombine.low %v6148_v21, %v6158_v29 }
 0x3d6   : > { %13806 = vmatprep.mubr.bf16.mxu0 %v12393_v24  ;;  %13486 = vmatprep.mubr.bf16.mxu1 %v17136_v2  ;;  %v6172_v24 = vor.u32 %v6171_v7, %v17191_v15  ;;  %v17224_v2 = vsel %vm15823_vm14, %v10573_v50, %v10574_v4  ;;  %v10580_v5 = vrot.slane %v10309_v37, 5  ;;  %v6205_v15 = vrot.slane %v6203_v54, 4 }
 0x3d7   : > { %v17226_v27 = vrot.slane %v6189_v57, 5  ;;  %v12397_v35 = vcombine.low %v17220_v44, %v17224_v2  ;;  %v6224_v7 = vshrl.u32 %v5558_v45, 16  ;;  %v12369_v50 = vrot.slane %v10310_v63, 9  ;;  %v10318_v45 = vld [vmem:[#allocation2 + $0x160] sm:$0xf] }
 0x3d8   : > { %v6173_v33 = vrot.slane %v6172_v24, 4  ;;  %v17255_v11 = vsel %vm15823_vm14, %v10579_v56, %v10580_v5  ;;  %v10587_v4 = vrot.slane %v10312_v59, 5  ;;  %v6215_v16 = vrot.slane %v6213_v9, 4  ;;  %v10315_v5 = vld [vmem:[#allocation2 + $0x154] sm:$0xe] }
 0x3d9   : > { %v6196_v6 = vor.u32 %v6195_v43, %v17226_v27  ;;  %v12398_v57 = vcombine.low %v17246_v38, %v17255_v11  ;;  %v6206_v23 = vor.u32 %v6205_v15, %v6201_v61  ;;  %v6226_v24 = vrot.slane %v6224_v7, 4 }
 0x3da   : > { %v6178_v20 = vsel %vm15759_vm11, %v6173_v33, %v6177_v30  ;;  %v6229_v37 = vrot.slane %v6227_v47, 5  ;;  %v6239_v42 = vrot.slane %v6237_v40, 4  ;;  %v6221_v10 = vrot.slane %v6219_v49, 5  ;;  %v10314_v30 = vld [vmem:[#allocation2 + $0x150] sm:$0x1] }
 0x3db   : > { %v6197_v41 = vrot.slane %v6196_v6, 4  ;;  %v12206_v32 = vcombine.low %v6168_v46, %v6178_v20  ;;  %v10590_v3 = vrot.slane %v10313_v1, 5  ;;  %v10597_v43 = vrot.slane %v10316_v25, 5  ;;  %v10317_v33 = vld [vmem:[#allocation2 + $0x15c] sm:$0xf] }
 0x3dc   : > { %v6253_v56 = vshll.u32 %v5561_v52, 16  ;;  %v6257_v19 = vshrl.u32 %v5561_v52, 16  ;;  %v6207_v54 = vrot.slane %v6206_v23, 4  ;;  %v10589_v22 = vrot.slane %v10587_v4, 4  ;;  %v5562_v20 = vld [vmem:[#allocation2 + $0x150] sm:$0x1] }
 0x3dd   : > { %13807 = vmatmul.mubr.bf16.gmra.mrb[44].mxu0 %v12394_v53  ;;  %v6186_v53 = vor.u32 %v6185_v36, %v6182_v0  ;;  %13487 = vmatmul.mubr.bf16.gmra.mrb[44].mxu1 %v17155_v28  ;;  %v6233_v28 = vshll.u32 %v5559_v8, 16  ;;  %v6202_v58 = vsel %vm15759_vm11, %v6197_v41, %v6201_v61  ;;  %v10592_v63 = vrot.slane %v10590_v3, 4  ;;  %v10319_v40 = vld [vmem:[#allocation2 + $0x164] sm:$0x1] }
 0x3de   : > { %13810 = vmatprep.mubr.bf16.mxu0 %v12395_v60  ;;  %v10584_v60 = vrot.slane %v10311_v31, 5  ;;  %13490 = vmatprep.mubr.bf16.mxu1 %v17187_v26  ;;  %v17257_v26 = vrot.slane %v6209_v14, 5  ;;  %v6243_v31 = vshll.u32 %v5560_v55, 16  ;;  %v12370_v38 = vrot.slane %v10315_v5, 9 }
 0x3df   : > { %v6187_v12 = vrot.slane %v6186_v53, 4  ;;  %v17261_v17 = vrot.slane %v6233_v28, 5  ;;  %v10599_v53 = vrot.slane %v10597_v43, 4  ;;  %v10600_v59 = vrot.slane %v10317_v33, 5 }
 0x3e0   : > { %v10586_v34 = vrot.slane %v10584_v60, 4  ;;  %v10585_v2 = vsel %vm15823_vm14, %v12369_v50, %v10584_v60  ;;  %v6216_v36 = vor.u32 %v6215_v16, %v17257_v26  ;;  %v6245_v8 = vrot.slane %v6243_v31, 5 }
 0x3e1   : > { %v6192_v44 = vsel %vm15759_vm11, %v6187_v12, %v17226_v27  ;;  %v6247_v27 = vshrl.u32 %v5560_v55, 16  ;;  %v6255_v60 = vrot.slane %v6253_v56, 5  ;;  %v6259_v39 = vrot.slane %v6257_v19, 4 }
 0x3e2   : > { %v10588_v0 = vsel %vm15823_vm14, %v10586_v34, %v10587_v4  ;;  %v12207_v21 = vcombine.low %v6192_v44, %v6202_v58  ;;  %v6217_v46 = vrot.slane %v6216_v36, 4  ;;  %v10591_v11 = vsel %vm15823_vm14, %v10589_v22, %v10590_v3 }
 0x3e3   : > { %v12399_v29 = vcombine.low %v10585_v2, %v10588_v0  ;;  %v6249_v6 = vrot.slane %v6247_v27, 4  ;;  %v10603_v15 = vrot.slane %v10318_v45, 5  ;;  %v6212_v7 = vsel %vm15759_vm11, %v6207_v54, %v17257_v26 }
 0x3e4   : > { %v10598_v47 = vsel %vm15823_vm14, %v12370_v38, %v10597_v43  ;;  %v10601_v28 = vsel %vm15823_vm14, %v10599_v53, %v10600_v59  ;;  %v6222_v12 = vsel %vm15759_vm11, %v6217_v46, %v6221_v10  ;;  %v6260_v4 = vor.u32 %v6259_v39, %v6255_v60 }
 0x3e5   : > { %13811 = vmatmul.mubr.bf16.gmra.mrb[48].mxu0 %v12396_v51  ;;  %13491 = vmatmul.mubr.bf16.gmra.mrb[48].mxu1 %v12204_v13  ;;  %v6230_v13 = vor.u32 %v6229_v37, %v6226_v24  ;;  %v6240_v51 = vor.u32 %v6239_v42, %v17261_v17  ;;  %v6250_v50 = vor.u32 %v6249_v6, %v6245_v8  ;;  %v6263_v49 = vshll.u32 %v5562_v20, 16 }
 0x3e6   : > { %13814 = vmatprep.mubr.bf16.mxu0 %v12397_v35  ;;  %13494 = vmatprep.mubr.bf16.mxu1 %v12205_v18  ;;  %v10593_v35 = vrot.slane %v10314_v30, 5  ;;  %v12401_v16 = vcombine.low %v10598_v47, %v10601_v28  ;;  %v10602_v1 = vrot.slane %v10600_v59, 4  ;;  %v10605_v18 = vrot.slane %v10603_v15, 4 }
 0x3e7   : > { %v6231_v14 = vrot.slane %v6230_v13, 4  ;;  %v6241_v9 = vrot.slane %v6240_v51, 4  ;;  %v6251_v55 = vrot.slane %v6250_v50, 4  ;;  %v6261_v25 = vrot.slane %v6260_v4, 4 }
 0x3e8   : > { %v10594_v61 = vsel %vm15823_vm14, %v10592_v63, %v10593_v35  ;;  %v6265_v24 = vrot.slane %v6263_v49, 5  ;;  %v10604_v37 = vsel %vm15823_vm14, %v10602_v1, %v10603_v15 }
 0x3e9   : > { %v12400_v41 = vcombine.low %v10591_v11, %v10594_v61  ;;  %v6236_v34 = vsel %vm15759_vm11, %v6231_v14, %v17261_v17  ;;  %v6246_v26 = vsel %vm15759_vm11, %v6241_v9, %v6245_v8  ;;  %v6256_v42 = vsel %vm15759_vm11, %v6251_v55, %v6255_v60  ;;  %v17351_v9 = vld [vmem:[%s17667_s3] ss:$0 sm:$0xff] }
 0x3ea   : > { %v12209_v23 = vcombine.low %v6236_v34, %v6246_v26  ;;  %v6266_v52 = vsel %vm15759_vm11, %v6261_v25, %v6265_v24 }
 0x3eb   : > { %v12210_v2 = vcombine.low %v6256_v42, %v6266_v52 }
 0x3ed   : > { %13815 = vmatmul.mubr.bf16.gmra.mrb[52].mxu0 %v12398_v57  ;;  %13495 = vmatmul.mubr.bf16.gmra.mrb[52].mxu1 %v12206_v32  ;;  %v10606_v32 = vrot.slane %v10319_v40, 5  ;;  %v12208_v57 = vcombine.low %v6212_v7, %v6222_v12 }
 0x3ee   : > { %13818 = vmatprep.mubr.bf16.mxu0 %v12399_v29  ;;  %13498 = vmatprep.mubr.bf16.mxu1 %v12207_v21 }
 0x3ef   : > { %v10607_v17 = vsel %vm15823_vm14, %v10605_v18, %v10606_v32 }
 0x3f0   : > { %v12402_v44 = vcombine.low %v10604_v37, %v10607_v17 }
 0x3f5   : > { %13819 = vmatmul.mubr.bf16.gmra.mrb[56].mxu0 %v12400_v41  ;;  %13499 = vmatmul.mubr.bf16.gmra.mrb[56].mxu1 %v12208_v57 }
 0x3f6   : > { %13822 = vmatprep.mubr.bf16.mxu0 %v12401_v16  ;;  %13502 = vmatprep.mubr.bf16.mxu1 %v12209_v23 }
 0x3fd   : > { %13823 = vmatmul.mubr.bf16.gmra.mrb[60].mxu0 %v12402_v44  ;;  %13503 = vmatmul.mubr.bf16.gmra.mrb[60].mxu1 %v12210_v2 }
 0x418   : > { %v13364_v10 = vpop.f32.mrb[0].mxu1 }
 0x419   : > { %v5036_v3 = vpop.f32.mrb[1].mxu1 }
 0x41a   : > { %v13365_v58 = vpop.f32.mrb[2].mxu1 }
 0x41b   : > { %v5039_v0 = vpop.f32.mrb[3].mxu1 }
 0x420   : > { %v13368_v36 = vpop.f32.mrb[4].mxu1 }
 0x421   : > { %v5052_v30 = vpop.f32.mrb[5].mxu1 }
 0x422   : > { %v13369_v48 = vpop.f32.mrb[6].mxu1 }
 0x423   : > { %v5055_v5 = vpop.f32.mrb[7].mxu1 }
 0x428   : > { %v17300_v43 = vpop.f32.mrb[8].mxu1 }
 0x429   : > { %v17302_v31 = vpop.f32.mrb[9].mxu1 }
 0x42a   : > { %v17304_v27 = vpop.f32.mrb[10].mxu1 }
 0x42b   : > { %v17306_v62 = vpop.f32.mrb[11].mxu1 }
 0x430   : > { %v17308_v33 = vpop.f32.mrb[12].mxu1 }
 0x431   : > { %v17310_v56 = vpop.f32.mrb[13].mxu1 }
 0x432   : > { %v17312_v19 = vpop.f32.mrb[14].mxu1 }
 0x433   : > { %v17314_v54 = vpop.f32.mrb[15].mxu1 }
 0x438   : > { %v17316_v22 = vpop.f32.mrb[16].mxu1 }
 0x439   : > { %v17318_v13 = vpop.f32.mrb[17].mxu1 }
 0x43a   : > { %v17320_v51 = vpop.f32.mrb[18].mxu1 }
 0x43b   : > { %v17322_v21 = vpop.f32.mrb[19].mxu1 }
 0x440   : > { %v17324_v29 = vpop.f32.mrb[20].mxu1 }
 0x441   : > { %v17326_v63 = vpop.f32.mrb[21].mxu1 }
 0x442   : > { %v17328_v35 = vpop.f32.mrb[22].mxu1 }
 0x443   : > { %v17330_v46 = vpop.f32.mrb[23].mxu1 }
 0x448   : > { %v17332_v38 = vpop.f32.mrb[24].mxu1 }
 0x449   : > { %v17334_v53 = vpop.f32.mrb[25].mxu1 }
 0x44a   : > { %v17336_v59 = vpop.f32.mrb[26].mxu1 }
 0x44b   : > { %v17338_v45 = vpop.f32.mrb[27].mxu1 }
 0x450   : > { %v17340_v8 = vpop.f32.mrb[28].mxu1 }
 0x451   : > { %v17342_v6 = vpop.f32.mrb[29].mxu1 }
 0x452   : > { %v17344_v60 = vpop.f32.mrb[30].mxu1 }
 0x453   : > { %v17346_v39 = vpop.f32.mrb[31].mxu1 }
 0x458   : > { %v13764_v14 = vpop.f32.mrb[0].mxu0 }
 0x459   : > { %v13842_v20 = vadd.f32 %v13764_v14, %v13364_v10  ;;  %v10834_v11 = vpop.f32.mrb[1].mxu0 }
 0x45a   : > { %v13843_v61 = vadd.f32 %v10834_v11, %v5036_v3  ;;  %v13765_v15 = vpop.f32.mrb[2].mxu0 }
 0x45b   : > { %v11354_v7 = vadd.f32 %v13842_v20, %v17351_v9  ;;  %v13844_v47 = vadd.f32 %v13765_v15, %v13365_v58  ;;  %v10837_v28 = vpop.f32.mrb[3].mxu0 }
 0x45c   : > { %v11352_v40 = vadd.f32 %v13843_v61, %v17351_v9  ;;  %v13845_v12 = vadd.f32 %v10837_v28, %v5039_v0 }
 0x45d   : > { %v11355_v50 = vadd.f32 %v13844_v47, %v17351_v9  ;;  %v11418_v49 = vmax.f32 %v11354_v7, 0.0 }
 0x45e   : > { %v11353_v4 = vadd.f32 %v13845_v12, %v17351_v9  ;;  %v11416_v34 = vmax.f32 %v11352_v40, 0.0 }
 0x45f   : > { %v11419_v41 = vmax.f32 %v11355_v50, 0.0 }
 0x460   : > { %v11417_v26 = vmax.f32 %v11353_v4, 0.0  ;;  %v13768_v16 = vpop.f32.mrb[4].mxu0 }
 0x461   : > { %v12563_v1 = vpack.c.bf16 %v11419_v41, %v11418_v49  ;;  %v13846_v18 = vadd.f32 %v13768_v16, %v13368_v36  ;;  %v10850_v32 = vpop.f32.mrb[5].mxu0 }
 0x462   : > { %v12558_v57 = vpack.c.bf16 %v11417_v26, %v11416_v34  ;;  %v13847_v23 = vadd.f32 %v10850_v32, %v5052_v30  ;;  %v13769_v55 = vpop.f32.mrb[6].mxu0 }
 0x463   : > { %12715 = vst [vmem:[%s15716_s29 + $0x8] sm:$0xff] %v12563_v1   ;;  %v11358_v25 = vadd.f32 %v13846_v18, %v17351_v9  ;;  %v13848_v24 = vadd.f32 %v13769_v55, %v13369_v48  ;;  %v10853_v37 = vpop.f32.mrb[7].mxu0 }
 0x464   : > { %12559 = vst [vmem:[%s15716_s29] sm:$0xff] %v12558_v57   ;;  %v11356_v17 = vadd.f32 %v13847_v23, %v17351_v9  ;;  %v13849_v42 = vadd.f32 %v10853_v37, %v5055_v5 }
 0x465   : > { %v11359_v52 = vadd.f32 %v13848_v24, %v17351_v9  ;;  %v11422_v2 = vmax.f32 %v11358_v25, 0.0 }
 0x466   : > { %v11357_v44 = vadd.f32 %v13849_v42, %v17351_v9  ;;  %v11420_v3 = vmax.f32 %v11356_v17, 0.0 }
 0x467   : > { %v11423_v10 = vmax.f32 %v11359_v52, 0.0 }
 0x468   : > { %v11421_v58 = vmax.f32 %v11357_v44, 0.0  ;;  %v13772_v0 = vpop.f32.mrb[8].mxu0 }
 0x469   : > { %v12573_v36 = vpack.c.bf16 %v11423_v10, %v11422_v2  ;;  %v13850_v30 = vadd.f32 %v13772_v0, %v17300_v43  ;;  %v10866_v48 = vpop.f32.mrb[9].mxu0 }
 0x46a   : > { %v12568_v14 = vpack.c.bf16 %v11421_v58, %v11420_v3  ;;  %v13851_v20 = vadd.f32 %v10866_v48, %v17302_v31  ;;  %v13773_v11 = vpop.f32.mrb[10].mxu0 }
 0x46b   : > { %12717 = vst [vmem:[%s15716_s29 + $0x18] sm:$0xff] %v12573_v36   ;;  %v11362_v5 = vadd.f32 %v13850_v30, %v17351_v9  ;;  %v13852_v61 = vadd.f32 %v13773_v11, %v17304_v27  ;;  %v10869_v15 = vpop.f32.mrb[11].mxu0 }
 0x46c   : > { %12716 = vst [vmem:[%s15716_s29 + $0x10] sm:$0xff] %v12568_v14   ;;  %v11360_v7 = vadd.f32 %v13851_v20, %v17351_v9  ;;  %v13853_v47 = vadd.f32 %v10869_v15, %v17306_v62 }
 0x46d   : > { %v11363_v28 = vadd.f32 %v13852_v61, %v17351_v9  ;;  %v11426_v40 = vmax.f32 %v11362_v5, 0.0 }
 0x46e   : > { %v11361_v43 = vadd.f32 %v13853_v47, %v17351_v9  ;;  %v11424_v12 = vmax.f32 %v11360_v7, 0.0 }
 0x46f   : > { %v11427_v31 = vmax.f32 %v11363_v28, 0.0 }
 0x470   : > { %v11425_v50 = vmax.f32 %v11361_v43, 0.0  ;;  %v13776_v4 = vpop.f32.mrb[12].mxu0 }
 0x471   : > { %v12583_v49 = vpack.c.bf16 %v11427_v31, %v11426_v40  ;;  %v13854_v27 = vadd.f32 %v13776_v4, %v17308_v33  ;;  %v10882_v41 = vpop.f32.mrb[13].mxu0 }
 0x472   : > { %v12578_v34 = vpack.c.bf16 %v11425_v50, %v11424_v12  ;;  %v13855_v26 = vadd.f32 %v10882_v41, %v17310_v56  ;;  %v13777_v16 = vpop.f32.mrb[14].mxu0 }
 0x473   : > { %12719 = vst [vmem:[%s15716_s29 + $0x28] sm:$0xff] %v12583_v49   ;;  %v11366_v62 = vadd.f32 %v13854_v27, %v17351_v9  ;;  %v13856_v1 = vadd.f32 %v13777_v16, %v17312_v19  ;;  %v10885_v18 = vpop.f32.mrb[15].mxu0 }
 0x474   : > { %12718 = vst [vmem:[%s15716_s29 + $0x20] sm:$0xff] %v12578_v34   ;;  %v11364_v32 = vadd.f32 %v13855_v26, %v17351_v9  ;;  %v13857_v57 = vadd.f32 %v10885_v18, %v17314_v54 }
 0x475   : > { %v11367_v23 = vadd.f32 %v13856_v1, %v17351_v9  ;;  %v11430_v55 = vmax.f32 %v11366_v62, 0.0 }
 0x476   : > { %v11365_v33 = vadd.f32 %v13857_v57, %v17351_v9  ;;  %v11428_v25 = vmax.f32 %v11364_v32, 0.0 }
 0x477   : > { %v11431_v56 = vmax.f32 %v11367_v23, 0.0 }
 0x478   : > { %v11429_v24 = vmax.f32 %v11365_v33, 0.0  ;;  %v13780_v37 = vpop.f32.mrb[16].mxu0 }
 0x479   : > { %v12593_v17 = vpack.c.bf16 %v11431_v56, %v11430_v55  ;;  %v13858_v19 = vadd.f32 %v13780_v37, %v17316_v22  ;;  %v10898_v42 = vpop.f32.mrb[17].mxu0 }
 0x47a   : > { %v12588_v52 = vpack.c.bf16 %v11429_v24, %v11428_v25  ;;  %v13859_v44 = vadd.f32 %v10898_v42, %v17318_v13  ;;  %v13781_v2 = vpop.f32.mrb[18].mxu0 }
 0x47b   : > { %12721 = vst [vmem:[%s15716_s29 + $0x38] sm:$0xff] %v12593_v17   ;;  %v11370_v54 = vadd.f32 %v13858_v19, %v17351_v9  ;;  %v13860_v10 = vadd.f32 %v13781_v2, %v17320_v51  ;;  %v10901_v3 = vpop.f32.mrb[19].mxu0 }
 0x47c   : > { %12720 = vst [vmem:[%s15716_s29 + $0x30] sm:$0xff] %v12588_v52   ;;  %v11368_v58 = vadd.f32 %v13859_v44, %v17351_v9  ;;  %v13861_v0 = vadd.f32 %v10901_v3, %v17322_v21 }
 0x47d   : > { %v11371_v36 = vadd.f32 %v13860_v10, %v17351_v9  ;;  %v11434_v30 = vmax.f32 %v11370_v54, 0.0 }
 0x47e   : > { %v11369_v22 = vadd.f32 %v13861_v0, %v17351_v9  ;;  %v11432_v48 = vmax.f32 %v11368_v58, 0.0 }
 0x47f   : > { %v11435_v13 = vmax.f32 %v11371_v36, 0.0 }
 0x480   : > { %v11433_v14 = vmax.f32 %v11369_v22, 0.0  ;;  %v13784_v20 = vpop.f32.mrb[20].mxu0 }
 0x481   : > { %v12603_v11 = vpack.c.bf16 %v11435_v13, %v11434_v30  ;;  %v13862_v51 = vadd.f32 %v13784_v20, %v17324_v29  ;;  %v10914_v5 = vpop.f32.mrb[21].mxu0 }
 0x482   : > { %v12598_v61 = vpack.c.bf16 %v11433_v14, %v11432_v48  ;;  %v13863_v15 = vadd.f32 %v10914_v5, %v17326_v63  ;;  %v13785_v7 = vpop.f32.mrb[22].mxu0 }
 0x483   : > { %12723 = vst [vmem:[%s15716_s29 + $0x48] sm:$0xff] %v12603_v11   ;;  %v11374_v21 = vadd.f32 %v13862_v51, %v17351_v9  ;;  %v13864_v47 = vadd.f32 %v13785_v7, %v17328_v35  ;;  %v10917_v28 = vpop.f32.mrb[23].mxu0 }
 0x484   : > { %12722 = vst [vmem:[%s15716_s29 + $0x40] sm:$0xff] %v12598_v61   ;;  %v11372_v43 = vadd.f32 %v13863_v15, %v17351_v9  ;;  %v13865_v40 = vadd.f32 %v10917_v28, %v17330_v46 }
 0x485   : > { %v11375_v31 = vadd.f32 %v13864_v47, %v17351_v9  ;;  %v11438_v12 = vmax.f32 %v11374_v21, 0.0 }
 0x486   : > { %v11373_v29 = vadd.f32 %v13865_v40, %v17351_v9  ;;  %v11436_v50 = vmax.f32 %v11372_v43, 0.0 }
 0x487   : > { %v11439_v63 = vmax.f32 %v11375_v31, 0.0 }
 0x488   : > { %v11437_v4 = vmax.f32 %v11373_v29, 0.0  ;;  %v13788_v49 = vpop.f32.mrb[24].mxu0 }
 0x489   : > { %v12613_v27 = vpack.c.bf16 %v11439_v63, %v11438_v12  ;;  %v13866_v35 = vadd.f32 %v13788_v49, %v17332_v38  ;;  %v10930_v41 = vpop.f32.mrb[25].mxu0 }
 0x48a   : > { %v12608_v34 = vpack.c.bf16 %v11437_v4, %v11436_v50  ;;  %v13867_v26 = vadd.f32 %v10930_v41, %v17334_v53  ;;  %v13789_v16 = vpop.f32.mrb[26].mxu0 }
 0x48b   : > { %12725 = vst [vmem:[%s15716_s29 + $0x58] sm:$0xff] %v12613_v27   ;;  %v11378_v46 = vadd.f32 %v13866_v35, %v17351_v9  ;;  %v13868_v62 = vadd.f32 %v13789_v16, %v17336_v59  ;;  %v10933_v1 = vpop.f32.mrb[27].mxu0 }
 0x48c   : > { %12724 = vst [vmem:[%s15716_s29 + $0x50] sm:$0xff] %v12608_v34   ;;  %v11376_v18 = vadd.f32 %v13867_v26, %v17351_v9  ;;  %v13869_v32 = vadd.f32 %v10933_v1, %v17338_v45 }
 0x48d   : > { %v11379_v57 = vadd.f32 %v13868_v62, %v17351_v9  ;;  %v11442_v23 = vmax.f32 %v11378_v46, 0.0 }
 0x48e   : > { %v11377_v38 = vadd.f32 %v13869_v32, %v17351_v9  ;;  %v11440_v33 = vmax.f32 %v11376_v18, 0.0 }
 0x48f   : > { %v11443_v53 = vmax.f32 %v11379_v57, 0.0 }
 0x490   : > { %v11441_v55 = vmax.f32 %v11377_v38, 0.0  ;;  %v13792_v56 = vpop.f32.mrb[28].mxu0 }
 0x491   : > { %v12623_v25 = vpack.c.bf16 %v11443_v53, %v11442_v23  ;;  %v13870_v59 = vadd.f32 %v13792_v56, %v17340_v8  ;;  %v10946_v24 = vpop.f32.mrb[29].mxu0 }
 0x492   : > { %v12618_v37 = vpack.c.bf16 %v11441_v55, %v11440_v33  ;;  %v13871_v17 = vadd.f32 %v10946_v24, %v17342_v6  ;;  %v13793_v19 = vpop.f32.mrb[30].mxu0 }
 0x493   : > { %12727 = vst [vmem:[%s15716_s29 + $0x68] sm:$0xff] %v12623_v25   ;;  %v11382_v45 = vadd.f32 %v13870_v59, %v17351_v9  ;;  %v13872_v42 = vadd.f32 %v13793_v19, %v17344_v60  ;;  %v10949_v52 = vpop.f32.mrb[31].mxu0 }
 0x494   : > { %12726 = vst [vmem:[%s15716_s29 + $0x60] sm:$0xff] %v12618_v37   ;;  %v11380_v44 = vadd.f32 %v13871_v17, %v17351_v9  ;;  %v13873_v2 = vadd.f32 %v10949_v52, %v17346_v39 }
 0x495   : > { %v11383_v54 = vadd.f32 %v13872_v42, %v17351_v9  ;;  %v11446_v10 = vmax.f32 %v11382_v45, 0.0 }
 0x496   : > { %v11381_v8 = vadd.f32 %v13873_v2, %v17351_v9  ;;  %v11444_v3 = vmax.f32 %v11380_v44, 0.0 }
 0x497   : > { %v11447_v6 = vmax.f32 %v11383_v54, 0.0 }
 0x498   : > { %v11445_v58 = vmax.f32 %v11381_v8, 0.0  ;;  %v13796_v0 = vpop.f32.mrb[32].mxu0  ;;  %v13476_v30 = vpop.f32.mrb[32].mxu1 }
 0x499   : > { %v12633_v36 = vpack.c.bf16 %v11447_v6, %v11446_v10  ;;  %v10962_v22 = vpop.f32.mrb[33].mxu0  ;;  %v13874_v48 = vadd.f32 %v13796_v0, %v13476_v30  ;;  %v6621_v14 = vpop.f32.mrb[33].mxu1 }
 0x49a   : > { %v12628_v60 = vpack.c.bf16 %v11445_v58, %v11444_v3  ;;  %v13797_v13 = vpop.f32.mrb[34].mxu0  ;;  %v13875_v39 = vadd.f32 %v10962_v22, %v6621_v14  ;;  %v13477_v11 = vpop.f32.mrb[34].mxu1 }
 0x49b   : > { %12729 = vst [vmem:[%s15716_s29 + $0x78] sm:$0xff] %v12633_v36   ;;  %v10965_v20 = vpop.f32.mrb[35].mxu0  ;;  %v11386_v51 = vadd.f32 %v13874_v48, %v17351_v9  ;;  %v13876_v5 = vadd.f32 %v13797_v13, %v13477_v11  ;;  %v6624_v61 = vpop.f32.mrb[35].mxu1 }
 0x49c   : > { %12728 = vst [vmem:[%s15716_s29 + $0x70] sm:$0xff] %v12628_v60   ;;  %v11384_v15 = vadd.f32 %v13875_v39, %v17351_v9  ;;  %v13877_v7 = vadd.f32 %v10965_v20, %v6624_v61 }
 0x49d   : > { %v11387_v21 = vadd.f32 %v13876_v5, %v17351_v9  ;;  %v11450_v43 = vmax.f32 %v11386_v51, 0.0 }
 0x49e   : > { %v11385_v47 = vadd.f32 %v13877_v7, %v17351_v9  ;;  %v11448_v29 = vmax.f32 %v11384_v15, 0.0 }
 0x49f   : > { %v11451_v40 = vmax.f32 %v11387_v21, 0.0 }
 0x4a0   : > { %v13800_v28 = vpop.f32.mrb[36].mxu0  ;;  %v11449_v12 = vmax.f32 %v11385_v47, 0.0  ;;  %v13480_v63 = vpop.f32.mrb[36].mxu1 }
 0x4a1   : > { %v10978_v31 = vpop.f32.mrb[37].mxu0  ;;  %v12643_v4 = vpack.c.bf16 %v11451_v40, %v11450_v43  ;;  %v13878_v49 = vadd.f32 %v13800_v28, %v13480_v63  ;;  %v6637_v27 = vpop.f32.mrb[37].mxu1 }
 0x4a2   : > { %v13801_v50 = vpop.f32.mrb[38].mxu0  ;;  %v12638_v41 = vpack.c.bf16 %v11449_v12, %v11448_v29  ;;  %v13879_v34 = vadd.f32 %v10978_v31, %v6637_v27  ;;  %v13481_v26 = vpop.f32.mrb[38].mxu1 }
 0x4a3   : > { %v10981_v35 = vpop.f32.mrb[39].mxu0  ;;  %12731 = vst [vmem:[%s15716_s29 + $0x88] sm:$0xff] %v12643_v4   ;;  %v11390_v16 = vadd.f32 %v13878_v49, %v17351_v9  ;;  %v13880_v46 = vadd.f32 %v13801_v50, %v13481_v26  ;;  %v6640_v62 = vpop.f32.mrb[39].mxu1 }
 0x4a4   : > { %12730 = vst [vmem:[%s15716_s29 + $0x80] sm:$0xff] %v12638_v41   ;;  %v11388_v1 = vadd.f32 %v13879_v34, %v17351_v9  ;;  %v13881_v18 = vadd.f32 %v10981_v35, %v6640_v62 }
 0x4a5   : > { %v11391_v32 = vadd.f32 %v13880_v46, %v17351_v9  ;;  %v11454_v23 = vmax.f32 %v11390_v16, 0.0 }
 0x4a6   : > { %v11389_v57 = vadd.f32 %v13881_v18, %v17351_v9  ;;  %v11452_v55 = vmax.f32 %v11388_v1, 0.0 }
 0x4a7   : > { %v11455_v53 = vmax.f32 %v11391_v32, 0.0 }
 0x4a8   : > { %v13804_v38 = vpop.f32.mrb[40].mxu0  ;;  %v11453_v56 = vmax.f32 %v11389_v57, 0.0  ;;  %v13484_v25 = vpop.f32.mrb[40].mxu1 }
 0x4a9   : > { %v10994_v33 = vpop.f32.mrb[41].mxu0  ;;  %v12653_v24 = vpack.c.bf16 %v11455_v53, %v11454_v23  ;;  %v13882_v37 = vadd.f32 %v13804_v38, %v13484_v25  ;;  %v6653_v17 = vpop.f32.mrb[41].mxu1 }
 0x4aa   : > { %v13805_v59 = vpop.f32.mrb[42].mxu0  ;;  %v12648_v45 = vpack.c.bf16 %v11453_v56, %v11452_v55  ;;  %v13883_v42 = vadd.f32 %v10994_v33, %v6653_v17  ;;  %v13485_v52 = vpop.f32.mrb[42].mxu1 }
 0x4ab   : > { %v10997_v19 = vpop.f32.mrb[43].mxu0  ;;  %12733 = vst [vmem:[%s15716_s29 + $0x98] sm:$0xff] %v12653_v24   ;;  %v11394_v44 = vadd.f32 %v13882_v37, %v17351_v9  ;;  %v13884_v2 = vadd.f32 %v13805_v59, %v13485_v52  ;;  %v6656_v54 = vpop.f32.mrb[43].mxu1 }
 0x4ac   : > { %12732 = vst [vmem:[%s15716_s29 + $0x90] sm:$0xff] %v12648_v45   ;;  %v11392_v8 = vadd.f32 %v13883_v42, %v17351_v9  ;;  %v13885_v10 = vadd.f32 %v10997_v19, %v6656_v54 }
 0x4ad   : > { %v11395_v6 = vadd.f32 %v13884_v2, %v17351_v9  ;;  %v11458_v0 = vmax.f32 %v11394_v44, 0.0 }
 0x4ae   : > { %v11393_v3 = vadd.f32 %v13885_v10, %v17351_v9  ;;  %v11456_v60 = vmax.f32 %v11392_v8, 0.0 }
 0x4af   : > { %v11459_v36 = vmax.f32 %v11395_v6, 0.0 }
 0x4b0   : > { %v13808_v58 = vpop.f32.mrb[44].mxu0  ;;  %v11457_v30 = vmax.f32 %v11393_v3, 0.0  ;;  %v13488_v13 = vpop.f32.mrb[44].mxu1 }
 0x4b1   : > { %v11010_v22 = vpop.f32.mrb[45].mxu0  ;;  %v12663_v14 = vpack.c.bf16 %v11459_v36, %v11458_v0  ;;  %v13886_v20 = vadd.f32 %v13808_v58, %v13488_v13  ;;  %v6669_v39 = vpop.f32.mrb[45].mxu1 }
 0x4b2   : > { %v13809_v48 = vpop.f32.mrb[46].mxu0  ;;  %v12658_v51 = vpack.c.bf16 %v11457_v30, %v11456_v60  ;;  %v13887_v5 = vadd.f32 %v11010_v22, %v6669_v39  ;;  %v13489_v61 = vpop.f32.mrb[46].mxu1 }
 0x4b3   : > { %v11013_v11 = vpop.f32.mrb[47].mxu0  ;;  %12735 = vst [vmem:[%s15716_s29 + $0xa8] sm:$0xff] %v12663_v14   ;;  %v11398_v15 = vadd.f32 %v13886_v20, %v17351_v9  ;;  %v13888_v7 = vadd.f32 %v13809_v48, %v13489_v61  ;;  %v6672_v21 = vpop.f32.mrb[47].mxu1 }
 0x4b4   : > { %12734 = vst [vmem:[%s15716_s29 + $0xa0] sm:$0xff] %v12658_v51   ;;  %v11396_v47 = vadd.f32 %v13887_v5, %v17351_v9  ;;  %v13889_v28 = vadd.f32 %v11013_v11, %v6672_v21 }
 0x4b5   : > { %v11399_v43 = vadd.f32 %v13888_v7, %v17351_v9  ;;  %v11462_v29 = vmax.f32 %v11398_v15, 0.0 }
 0x4b6   : > { %v11397_v40 = vadd.f32 %v13889_v28, %v17351_v9  ;;  %v11460_v50 = vmax.f32 %v11396_v47, 0.0 }
 0x4b7   : > { %v11463_v12 = vmax.f32 %v11399_v43, 0.0 }
 0x4b8   : > { %v13812_v31 = vpop.f32.mrb[48].mxu0  ;;  %v11461_v4 = vmax.f32 %v11397_v40, 0.0  ;;  %v13492_v49 = vpop.f32.mrb[48].mxu1 }
 0x4b9   : > { %v11026_v63 = vpop.f32.mrb[49].mxu0  ;;  %v12673_v35 = vpack.c.bf16 %v11463_v12, %v11462_v29  ;;  %v13890_v41 = vadd.f32 %v13812_v31, %v13492_v49  ;;  %v6685_v34 = vpop.f32.mrb[49].mxu1 }
 0x4ba   : > { %v13813_v27 = vpop.f32.mrb[50].mxu0  ;;  %v12668_v16 = vpack.c.bf16 %v11461_v4, %v11460_v50  ;;  %v13891_v46 = vadd.f32 %v11026_v63, %v6685_v34  ;;  %v13493_v62 = vpop.f32.mrb[50].mxu1 }
 0x4bb   : > { %v11029_v26 = vpop.f32.mrb[51].mxu0  ;;  %12737 = vst [vmem:[%s15716_s29 + $0xb8] sm:$0xff] %v12673_v35   ;;  %v11402_v1 = vadd.f32 %v13890_v41, %v17351_v9  ;;  %v13892_v18 = vadd.f32 %v13813_v27, %v13493_v62  ;;  %v6688_v32 = vpop.f32.mrb[51].mxu1 }
 0x4bc   : > { %12736 = vst [vmem:[%s15716_s29 + $0xb0] sm:$0xff] %v12668_v16   ;;  %v11400_v57 = vadd.f32 %v13891_v46, %v17351_v9  ;;  %v13893_v38 = vadd.f32 %v11029_v26, %v6688_v32 }
 0x4bd   : > { %v11403_v23 = vadd.f32 %v13892_v18, %v17351_v9  ;;  %v11466_v55 = vmax.f32 %v11402_v1, 0.0 }
 0x4be   : > { %v11401_v53 = vadd.f32 %v13893_v38, %v17351_v9  ;;  %v11464_v59 = vmax.f32 %v11400_v57, 0.0 }
 0x4bf   : > { %v11467_v56 = vmax.f32 %v11403_v23, 0.0 }
 0x4c0   : > { %v13816_v33 = vpop.f32.mrb[52].mxu0  ;;  %v11465_v24 = vmax.f32 %v11401_v53, 0.0  ;;  %v13496_v37 = vpop.f32.mrb[52].mxu1 }
 0x4c1   : > { %v11042_v25 = vpop.f32.mrb[53].mxu0  ;;  %v12683_v19 = vpack.c.bf16 %v11467_v56, %v11466_v55  ;;  %v13894_v45 = vadd.f32 %v13816_v33, %v13496_v37  ;;  %v6701_v42 = vpop.f32.mrb[53].mxu1 }
 0x4c2   : > { %v13817_v17 = vpop.f32.mrb[54].mxu0  ;;  %v12678_v44 = vpack.c.bf16 %v11465_v24, %v11464_v59  ;;  %v13895_v2 = vadd.f32 %v11042_v25, %v6701_v42  ;;  %v13497_v54 = vpop.f32.mrb[54].mxu1 }
 0x4c3   : > { %v11045_v52 = vpop.f32.mrb[55].mxu0  ;;  %12739 = vst [vmem:[%s15716_s29 + $0xc8] sm:$0xff] %v12683_v19   ;;  %v11406_v8 = vadd.f32 %v13894_v45, %v17351_v9  ;;  %v13896_v10 = vadd.f32 %v13817_v17, %v13497_v54  ;;  %v6704_v6 = vpop.f32.mrb[55].mxu1 }
 0x4c4   : > { %12738 = vst [vmem:[%s15716_s29 + $0xc0] sm:$0xff] %v12678_v44   ;;  %v11404_v3 = vadd.f32 %v13895_v2, %v17351_v9  ;;  %v13897_v58 = vadd.f32 %v11045_v52, %v6704_v6 }
 0x4c5   : > { %v11407_v0 = vadd.f32 %v13896_v10, %v17351_v9  ;;  %v11470_v60 = vmax.f32 %v11406_v8, 0.0 }
 0x4c6   : > { %v11405_v36 = vadd.f32 %v13897_v58, %v17351_v9  ;;  %v11468_v48 = vmax.f32 %v11404_v3, 0.0 }
 0x4c7   : > { %v11471_v30 = vmax.f32 %v11407_v0, 0.0 }
 0x4c8   : > { %v13820_v22 = vpop.f32.mrb[56].mxu0  ;;  %v11469_v14 = vmax.f32 %v11405_v36, 0.0  ;;  %v13500_v20 = vpop.f32.mrb[56].mxu1 }
 0x4c9   : > { %v11058_v13 = vpop.f32.mrb[57].mxu0  ;;  %v12693_v11 = vpack.c.bf16 %v11471_v30, %v11470_v60  ;;  %v13898_v51 = vadd.f32 %v13820_v22, %v13500_v20  ;;  %v6717_v5 = vpop.f32.mrb[57].mxu1 }
 0x4ca   : > { %v13821_v39 = vpop.f32.mrb[58].mxu0  ;;  %v12688_v15 = vpack.c.bf16 %v11469_v14, %v11468_v48  ;;  %v13899_v7 = vadd.f32 %v11058_v13, %v6717_v5  ;;  %v13501_v21 = vpop.f32.mrb[58].mxu1 }
 0x4cb   : > { %v11061_v61 = vpop.f32.mrb[59].mxu0  ;;  %12741 = vst [vmem:[%s15716_s29 + $0xd8] sm:$0xff] %v12693_v11   ;;  %v11410_v47 = vadd.f32 %v13898_v51, %v17351_v9  ;;  %v13900_v28 = vadd.f32 %v13821_v39, %v13501_v21  ;;  %v6720_v43 = vpop.f32.mrb[59].mxu1 }
 0x4cc   : > { %12740 = vst [vmem:[%s15716_s29 + $0xd0] sm:$0xff] %v12688_v15   ;;  %v11408_v40 = vadd.f32 %v13899_v7, %v17351_v9  ;;  %v13901_v31 = vadd.f32 %v11061_v61, %v6720_v43 }
 0x4cd   : > { %v11411_v29 = vadd.f32 %v13900_v28, %v17351_v9  ;;  %v11474_v50 = vmax.f32 %v11410_v47, 0.0 }
 0x4ce   : > { %v11409_v12 = vadd.f32 %v13901_v31, %v17351_v9  ;;  %v11472_v27 = vmax.f32 %v11408_v40, 0.0 }
 0x4cf   : > { %v11475_v4 = vmax.f32 %v11411_v29, 0.0 }
 0x4d0   : > { %v13824_v63 = vpop.f32.mrb[60].mxu0  ;;  %v11473_v35 = vmax.f32 %v11409_v12, 0.0  ;;  %v13504_v41 = vpop.f32.mrb[60].mxu1 }
 0x4d1   : > { %v11074_v49 = vpop.f32.mrb[61].mxu0  ;;  %v12703_v26 = vpack.c.bf16 %v11475_v4, %v11474_v50  ;;  %v13902_v16 = vadd.f32 %v13824_v63, %v13504_v41  ;;  %v6733_v46 = vpop.f32.mrb[61].mxu1 }
 0x4d2   : > { %v13825_v34 = vpop.f32.mrb[62].mxu0  ;;  %v12698_v1 = vpack.c.bf16 %v11473_v35, %v11472_v27  ;;  %v13903_v18 = vadd.f32 %v11074_v49, %v6733_v46  ;;  %v13505_v32 = vpop.f32.mrb[62].mxu1 }
 0x4d3   : > { %v11077_v62 = vpop.f32.mrb[63].mxu0  ;;  %12743 = vst [vmem:[%s15716_s29 + $0xe8] sm:$0xff] %v12703_v26   ;;  %v11414_v57 = vadd.f32 %v13902_v16, %v17351_v9  ;;  %v13904_v38 = vadd.f32 %v13825_v34, %v13505_v32  ;;  %v6736_v23 = vpop.f32.mrb[63].mxu1 }
 0x4d4   : > { %12742 = vst [vmem:[%s15716_s29 + $0xe0] sm:$0xff] %v12698_v1   ;;  %v11412_v53 = vadd.f32 %v13903_v18, %v17351_v9  ;;  %v13905_v33 = vadd.f32 %v11077_v62, %v6736_v23 }
 0x4d5   : > { %v11415_v55 = vadd.f32 %v13904_v38, %v17351_v9  ;;  %v11478_v25 = vmax.f32 %v11414_v57, 0.0 }
 0x4d6   : > { %v11413_v56 = vadd.f32 %v13905_v33, %v17351_v9  ;;  %v11476_v24 = vmax.f32 %v11412_v53, 0.0 }
 0x4d7   : > { %v11479_v59 = vmax.f32 %v11415_v55, 0.0 }
 0x4d8   : > { %v11477_v37 = vmax.f32 %v11413_v56, 0.0 }
 0x4d9   : > { %v12713_v17 = vpack.c.bf16 %v11479_v59, %v11478_v25 }
 0x4da   : > { %v12708_v19 = vpack.c.bf16 %v11477_v37, %v11476_v24 }
 0x4db   : > { %12745 = vst [vmem:[%s15716_s29 + $0xf8] sm:$0xff] %v12713_v17  }
 0x4dc   : > { %12744 = vst [vmem:[%s15716_s29 + $0xf0] sm:$0xff] %v12708_v19  }
 0x4dd   : > { %14818 = shalt.err (!%p14815_p5)
}
 0x4de   : > { %s14819_s29 = scalar_lea.hbm %s17477_s18, 4096  ;;  %s14823_s21 = scalar_lea.hbm %s17671_s15, 16384 }
 0x4df   : > { %p14820_p4 = scmp.ne.s32.totalorder %s17477_s18, %s14819_s29  ;;  %p14824_p1 = scmp.lt.u32.totalorder %s17477_s18, %s17671_s15 }
 0x4e0   : > { %p14825_p13 = scmp.lt.u32.totalorder %s14823_s21, %s14819_s29  ;;  %p14827_p8 = scmp.lt.u32.totalorder %s14819_s29, %s17477_s18 }
 0x4e1   : > { %p14821_p10 = pnand %p14820_p4, %p17672_p11 }
 0x4e2   : > { %p14826_p12 = por %p14825_p13, %p14824_p1 }
 0x4e3   : > { %p14822_p7 = pneg %p14821_p10 }
 0x4e4   : > { %p14828_p6 = por %p14827_p8, %p14826_p12 }
 0x4e6   : > { %p14829_p2 = pnand %p14828_p6, %p14822_p7 }
 0x4e8   : > { %14832 = shalt.err (!%p14829_p2)
}
 0x4e9   : > { %s14974_s20 = smov 64   ;;  %s14975_s30 = smov 4  }
 0x4ea   : > { %14364 = dma.vmem_to_hbm [thread:$0]  (%p17672_p11), %s17479_s2, 4096, %s17477_s18, %s11801_s4, %s14974_s20, %s14974_s20, %s14975_s30  }
 0x4eb PF: > { %s17673_s9 = sld [smem:[#allocation33_spill]]  ;;  %p14387_p3 = scmp.ge.s32.totalorder %s14963_s6, 2 }
 0x4ec   : > { %s11832_s1 = sand.u32 1, %s14935_s24  }
 0x4ed   : > { %s11833_s11 = scalar_lea.sflag [#allocation6], %s11832_s1 }
 0x4f1   : > { %p17674_p0 = scmp.ne.s32.totalorder %s17673_s9, 0 }
 0x4f3   : > { %p14381_p9 = pnand %p14387_p3, %p17674_p0 }
 0x4f5   : > { %14906 = dma.done.wait (!%p14381_p9), %s11833_s11, 4096  }
 0x4f6   : > { %14908 = vsyncadd (!%p14381_p9), %s11833_s11, 4294963200  ;;  %s25_s6 = sadd.s32 1, %s14963_s6   ;;  %s17676_s18 = sld [smem:[#allocation19_spill]] }
 0x4f7   : > { %p17512_p5 = scmp.ge.s32.totalorder %s25_s6, 6   ;;  %s17677_s19 = sld [smem:[#allocation20_spill]] }
 0x4f8   : > { %s17678_s17 = sld [smem:[#allocation21_spill]]  ;;  %s17679_s23 = sld [smem:[#allocation31_spill]] }
 0x4f9   : > { %s17680_s13 = sld [smem:[#allocation22_spill]]  ;;  %s17681_s26 = sld [smem:[#allocation32_spill]] }
 0x4fa   : > { %s17682_s27 = sld [smem:[#allocation25_spill]]  ;;  %s17683_s28 = sld [smem:[#allocation26_spill]] }
 0x4fb   : > { %s17684_s29 = sld [smem:[#allocation27_spill]]  ;;  %s17685_s30 = sld [smem:[#allocation28_spill]] }
 0x4fc   : > { %s17686_s20 = smov %s17706_s12  ;;  %s17687_s21 = smov %s14927_s22 }
 0x4fd   : > { %s17689_s24 = smov %s14939_s25  ;;  %24 = sbr.rel (!%p17512_p5) target bundleno = 20 (0x14), region = 133 }
 0x4fe   : > { %s17688_s22 = smov %s17678_s17 }
 0x4ff   : > { %s17690_s25 = smov %s17680_s13 }
 0x504   :  { %11838 = vsyncpa [#allocation5], 1 }
 0x505   :  { %11840 = vsyncpa [#allocation5 + $0x1], 1 }
 0x506   :  { %11841 = vsyncpa [#allocation8], 1 }
 0x507   :  { %11843 = vsyncpa [#allocation8 + $0x1], 1 }
 0x508   :  { %11844 = vsyncpa [#allocation11], 1 }
 0x509   :  { %11845 = vsyncpa [#allocation6], 1 }
 0x50a   :  { %11847 = vsyncpa [#allocation6 + $0x1], 1 }

</bundles_post_ra>
